<compile_context>
chip_gen: v5e
topology: v5e:2x2
jax: 0.10.0
libtpu: 0.0.40
codegen_flags: <defaults>
</compile_context>

<pallas_src>
import functools
import math

import jax
import jax.numpy as jnp
from jax import lax
from jax.experimental import pallas as pl
from jax.experimental.pallas import tpu as pltpu

SEQ_LEN = 16907          # = 11 * 1537 ; H * (W - 199) must equal this
CONV_KW = 200
FC1_OUT = 512
H_DIM = 100
OUT_DIM = 10

LANE = 128
CONV_WIN = ((LANE + CONV_KW - 1 + LANE - 1) // LANE) * LANE   # 384
K_TILE = 4608            # fc1 reduction tile = 36 * 128


def _round_up(x, m):
    return ((x + m - 1) // m) * m


# ----------------------- Conv2d(1,1,(1,200)) + ReLU ------------------------
def _conv_relu_kernel(bc_ref, x_ref, t_ref, o_ref, *, n_tiles, win):
    # out[:, j*128 + l] = relu( sum_k x[:, j*128 + l + k] * wc[k] + bias )
    # expressed as one (R, win) @ (win, 128) MXU matmul per 128-wide out tile.
    bias = bc_ref[0]
    for j in range(n_tiles):                                   # static unroll
        window = x_ref[:, j * LANE: j * LANE + win]            # 128-aligned slice
        acc = jnp.dot(window, t_ref[...], preferred_element_type=jnp.float32)
        o_ref[:, j * LANE:(j + 1) * LANE] = jnp.maximum(acc + bias, 0.0)


def conv1x200_relu(x2d, t_band, conv_b):
    # x2d: [R, W] rows of the (B,H,W) input -> [R, Wout_p], Wout_p = ceil128(W-199).
    # Columns >= W-199 are junk; they hit zero rows of the pre-padded fc1 weight.
    R, W = x2d.shape
    win = t_band.shape[0]                      # 384
    wout = W - CONV_KW + 1
    wout_p = _round_up(wout, LANE)
    n_tiles = wout_p // LANE
    w_need = (n_tiles - 1) * LANE + win        # input width the last tile reads
    x_pad = jnp.pad(x2d, ((0, 0), (0, w_need - W)))   # tiny activation pad only
    return pl.pallas_call(
        functools.partial(_conv_relu_kernel, n_tiles=n_tiles, win=win),
        out_shape=jax.ShapeDtypeStruct((R, wout_p), jnp.float32),
        grid_spec=pltpu.PrefetchScalarGridSpec(
            num_scalar_prefetch=0,
            grid=(1,),
            in_specs=[
                pl.BlockSpec(memory_space=pltpu.MemorySpace.SMEM),   # conv_b (1,)
                pl.BlockSpec((R, w_need), lambda i: (0, 0)),         # x in VMEM
                pl.BlockSpec((win, LANE), lambda i: (0, 0)),         # tap matrix
            ],
            out_specs=pl.BlockSpec((R, wout_p), lambda i: (0, 0)),
        ),
    )(conv_b, x_pad, t_band)


# ------------------- fused fc1+ReLU -> fc2+ReLU -> fc3 ----------------------
def _mlp_fused_kernel(x_ref, w1_ref, b1_ref, w2_ref, b2_ref, w3_ref, b3_ref,
                      o_ref, acc_ref):
    k = pl.program_id(0)

    @pl.when(k == 0)
    def _():
        acc_ref[...] = jnp.zeros_like(acc_ref)

    # fc1 partial product: bf16 x bf16 on the MXU, f32 accumulation.
    acc_ref[...] += jnp.dot(x_ref[...].astype(jnp.bfloat16), w1_ref[...],
                            preferred_element_type=jnp.float32)

    @pl.when(k == pl.num_programs(0) - 1)
    def _():
        h1 = jnp.maximum(acc_ref[...] + b1_ref[...], 0.0)          # fc1 + ReLU
        # dropout(p=0.0) is the identity -> no-op
        h2 = jnp.dot(h1, w2_ref[...], preferred_element_type=jnp.float32)
        h2 = jnp.maximum(h2 + b2_ref[...], 0.0)                    # fc2 + ReLU
        h3 = jnp.dot(h2, w3_ref[...], preferred_element_type=jnp.float32)
        o_ref[...] = (h3 + b3_ref[...]).astype(o_ref.dtype)        # fc3


def mlp_fused(feat, w1, b1, w2, b2, w3, b3, *, k_tile=K_TILE):
    M, K = feat.shape
    K2, N1 = w1.shape
    assert K == K2 and K % k_tile == 0 and M % 8 == 0
    N2p = w2.shape[1]
    N3p = w3.shape[1]
    nk = K // k_tile
    return pl.pallas_call(
        _mlp_fused_kernel,
        out_shape=jax.ShapeDtypeStruct((M, N3p), jnp.float32),
        grid_spec=pltpu.PrefetchScalarGridSpec(
            num_scalar_prefetch=0,
            grid=(nk,),
            in_specs=[
                pl.BlockSpec((M, k_tile), lambda k: (0, k)),   # activations
                pl.BlockSpec((k_tile, N1), lambda k: (k, 0)),  # fc1 weight (bf16)
                pl.BlockSpec((1, N1), lambda k: (0, 0)),       # fc1 bias
                pl.BlockSpec((N1, N2p), lambda k: (0, 0)),     # fc2 weight
                pl.BlockSpec((1, N2p), lambda k: (0, 0)),      # fc2 bias
                pl.BlockSpec((N2p, N3p), lambda k: (0, 0)),    # fc3 weight
                pl.BlockSpec((1, N3p), lambda k: (0, 0)),      # fc3 bias
            ],
            out_specs=pl.BlockSpec((M, N3p), lambda k: (0, 0)),
            scratch_shapes=[pltpu.VMEM((M, N1), jnp.float32)],
        ),
        compiler_params=pltpu.CompilerParams(
            dimension_semantics=("arbitrary",),
            vmem_limit_bytes=32 * 1024 * 1024),
    )(feat, w1, b1, w2, b2, w3, b3)


# --------------------------- one-time param prep ----------------------------
def prepare_params(p, h_rows, width):
    """One-time layout prep (outside the per-forward hot path)."""
    wout = width - CONV_KW + 1
    assert h_rows * wout == SEQ_LEN
    wout_p = _round_up(wout, LANE)

    # Banded tap matrix: t[m, l] = conv_w[m - l] for 0 <= m - l < 200, else 0.
    m = jnp.arange(CONV_WIN)[:, None]
    l = jnp.arange(LANE)[None, :]
    tap = m - l
    t_band = jnp.where((tap >= 0) & (tap < CONV_KW),
                       p["conv_w"][jnp.clip(tap, 0, CONV_KW - 1)],
                       0.0).astype(jnp.float32)

    # fc1 weight: zero rows interleaved to match the conv's per-row lane pad,
    # then K padded up to a K_TILE multiple, stored in bf16.
    k_pad = _round_up(h_rows * wout_p, K_TILE)
    w1 = p["fc1_w"].reshape(h_rows, wout, FC1_OUT)
    w1 = jnp.pad(w1, ((0, 0), (0, wout_p - wout), (0, 0)))
    w1 = w1.reshape(h_rows * wout_p, FC1_OUT)
    w1 = jnp.pad(w1, ((0, k_pad - h_rows * wout_p), (0, 0))).astype(jnp.bfloat16)

    # fc2/fc3 zero-padded to 128-lane-friendly shapes (exact same math).
    n2p = _round_up(H_DIM, LANE)
    n3p = _round_up(OUT_DIM, LANE)
    w2 = jnp.pad(p["fc2_w"], ((0, 0), (0, n2p - H_DIM))).astype(jnp.float32)
    b2 = jnp.pad(p["fc2_b"], (0, n2p - H_DIM)).reshape(1, n2p).astype(jnp.float32)
    w3 = jnp.pad(p["fc3_w"], ((0, n2p - H_DIM), (0, n3p - OUT_DIM))).astype(jnp.float32)
    b3 = jnp.pad(p["fc3_b"], (0, n3p - OUT_DIM)).reshape(1, n3p).astype(jnp.float32)

    return {
        "t_band": t_band,
        "conv_b": p["conv_b"].astype(jnp.float32),
        "w1": w1,
        "b1": p["fc1_b"].reshape(1, FC1_OUT).astype(jnp.float32),
        "w2": w2, "b2": b2, "w3": w3, "b3": b3,
    }


# --------------------------------- forward ----------------------------------
def identity_forward(x, prep):
    B, H, W = x.shape
    x2d = x.reshape(B * H, W)
    conv = conv1x200_relu(x2d, prep["t_band"], prep["conv_b"])   # [B*H, wout_p]
    wout_p = conv.shape[1]
    feat = conv.reshape(B, H * wout_p)        # matches the zero-row padding of w1
    k_pad = prep["w1"].shape[0]
    m_pad = _round_up(B, 8)
    feat = jnp.pad(feat, ((0, m_pad - B), (0, k_pad - feat.shape[1])))
    out = mlp_fused(feat, prep["w1"], prep["b1"], prep["w2"], prep["b2"],
                    prep["w3"], prep["b3"])
    return out[:B, :OUT_DIM]


def identity_forward_reference(x, p):
    xN = x[:, None, :, :]
    cw = p["conv_w"].reshape(1, 1, 1, -1)
    conv = lax.conv_general_dilated(
        xN, cw, window_strides=(1, 1), padding="VALID",
        dimension_numbers=("NCHW", "OIHW", "NCHW")) + p["conv_b"][0]
    h = jax.nn.relu(conv).reshape(x.shape[0], -1)
    h = jax.nn.relu(h @ p["fc1_w"] + p["fc1_b"])
    h = jax.nn.relu(h @ p["fc2_w"] + p["fc2_b"])
    return h @ p["fc3_w"] + p["fc3_b"]


if __name__ == "__main__":
    # Smallest input consistent with the module: H * (W - 199) == 16907.
    B, Himg, Wimg = 2, 11, CONV_KW - 1 + SEQ_LEN // 11        # (2, 11, 1736)
    assert Himg * (Wimg - CONV_KW + 1) == SEQ_LEN

    key = jax.random.PRNGKey(0)
    kx, k0, k1, k2, k3, k4, k5, k6, k7 = jax.random.split(key, 9)
    x = jax.random.normal(kx, (B, Himg, Wimg), dtype=jnp.float32)

    def uinit(k, shape, fan_in):
        bound = 1.0 / math.sqrt(fan_in)
        return jax.random.uniform(k, shape, jnp.float32, -bound, bound)

    params = {
        "conv_w": uinit(k0, (CONV_KW,), CONV_KW),
        "conv_b": uinit(k1, (1,), CONV_KW),
        "fc1_w": uinit(k2, (SEQ_LEN, FC1_OUT), SEQ_LEN),
        "fc1_b": uinit(k3, (FC1_OUT,), SEQ_LEN),
        "fc2_w": uinit(k4, (FC1_OUT, H_DIM), FC1_OUT),
        "fc2_b": uinit(k5, (H_DIM,), FC1_OUT),
        "fc3_w": uinit(k6, (H_DIM, OUT_DIM), H_DIM),
        "fc3_b": uinit(k7, (OUT_DIM,), H_DIM),
    }

    prep = prepare_params(params, Himg, Wimg)     # one-time layout/weight prep
    fwd = jax.jit(identity_forward)

    out = jax.block_until_ready(fwd(x, prep))
    ref = jax.block_until_ready(identity_forward_reference(x, params))

    assert out.shape == (B, OUT_DIM), out.shape
    err = float(jnp.max(jnp.abs(out - ref)))
    assert err < 1e-2, f"max abs err {err}"
    print("KERNEL_OK")
</pallas_src>

<mosaic_0001>
module attributes {stable_mosaic.version = 11 : i64} {
  func.func @_conv_relu_kernel(%arg0: i32, %arg1: memref<1xf32, #tpu.memory_space<smem>>, %arg2: memref<22x1920xf32, #tpu.memory_space<vmem>>, %arg3: memref<384x128xf32, #tpu.memory_space<vmem>>, %arg4: memref<22x1664xf32, #tpu.memory_space<vmem>>) attributes {dimension_semantics = [#tpu.dimension_semantics<arbitrary>], iteration_bounds = array<i64: 1>, scalar_prefetch = 0 : i64, scratch_operands = 0 : i64, tpu.core_type = #tpu.core_type<tc>, window_params = [{transform_indices = @transform_0, window_bounds = array<i64: 1>}, {pipeline_mode = #tpu.pipeline_mode<synchronous>, transform_indices = @transform_1, window_bounds = array<i64: 22, 1920>}, {pipeline_mode = #tpu.pipeline_mode<synchronous>, transform_indices = @transform_2, window_bounds = array<i64: 384, 128>}, {pipeline_mode = #tpu.pipeline_mode<synchronous>, transform_indices = @transform_3, window_bounds = array<i64: 22, 1664>}]} {
    %c0 = arith.constant 0 : index
    %0 = memref.load %arg1[%c0] : memref<1xf32, #tpu.memory_space<smem>>
    %c0_0 = arith.constant 0 : index
    %c0_1 = arith.constant 0 : index
    %1 = vector.load %arg2[%c0_0, %c0_1] : memref<22x1920xf32, #tpu.memory_space<vmem>>, vector<22x384xf32>
    %c0_2 = arith.constant 0 : index
    %c0_3 = arith.constant 0 : index
    %2 = vector.load %arg3[%c0_2, %c0_3] : memref<384x128xf32, #tpu.memory_space<vmem>>, vector<384x128xf32>
    %cst = arith.constant dense<0.000000e+00> : vector<22x128xf32>
    %3 = tpu.matmul %1, %2, %cst {dimension_numbers = #tpu.dot_dimension_numbers<[1], [0], [0], [1], [0, 0, 1, 1], [], []>} : vector<22x384xf32>, vector<384x128xf32>, vector<22x128xf32> -> vector<22x128xf32>
    %4 = vector.broadcast %0 : f32 to vector<22x128xf32>
    %5 = arith.addf %3, %4 : vector<22x128xf32>
    %cst_4 = arith.constant 0.000000e+00 : f32
    %6 = vector.broadcast %cst_4 : f32 to vector<22x128xf32>
    %7 = arith.maximumf %5, %6 : vector<22x128xf32>
    %c0_5 = arith.constant 0 : index
    %c0_6 = arith.constant 0 : index
    %8 = vector.load %arg4[%c0_5, %c0_6] : memref<22x1664xf32, #tpu.memory_space<vmem>>, vector<22x128xf32>
    tpu.vector_store %arg4[%c0_5, %c0_6], %7 {strides = array<i32>} : memref<22x1664xf32, #tpu.memory_space<vmem>>, vector<22x128xf32>,
    %c0_7 = arith.constant 0 : index
    %c128 = arith.constant 128 : index
    %9 = vector.load %arg2[%c0_7, %c128] : memref<22x1920xf32, #tpu.memory_space<vmem>>, vector<22x384xf32>
    %c0_8 = arith.constant 0 : index
    %c0_9 = arith.constant 0 : index
    %10 = vector.load %arg3[%c0_8, %c0_9] : memref<384x128xf32, #tpu.memory_space<vmem>>, vector<384x128xf32>
    %cst_10 = arith.constant dense<0.000000e+00> : vector<22x128xf32>
    %11 = tpu.matmul %9, %10, %cst_10 {dimension_numbers = #tpu.dot_dimension_numbers<[1], [0], [0], [1], [0, 0, 1, 1], [], []>} : vector<22x384xf32>, vector<384x128xf32>, vector<22x128xf32> -> vector<22x128xf32>
    %12 = vector.broadcast %0 : f32 to vector<22x128xf32>
    %13 = arith.addf %11, %12 : vector<22x128xf32>
    %cst_11 = arith.constant 0.000000e+00 : f32
    %14 = vector.broadcast %cst_11 : f32 to vector<22x128xf32>
    %15 = arith.maximumf %13, %14 : vector<22x128xf32>
    %c0_12 = arith.constant 0 : index
    %c128_13 = arith.constant 128 : index
    %16 = vector.load %arg4[%c0_12, %c128_13] : memref<22x1664xf32, #tpu.memory_space<vmem>>, vector<22x128xf32>
    tpu.vector_store %arg4[%c0_12, %c128_13], %15 {strides = array<i32>} : memref<22x1664xf32, #tpu.memory_space<vmem>>, vector<22x128xf32>,
    %c0_14 = arith.constant 0 : index
    %c256 = arith.constant 256 : index
    %17 = vector.load %arg2[%c0_14, %c256] : memref<22x1920xf32, #tpu.memory_space<vmem>>, vector<22x384xf32>
    %c0_15 = arith.constant 0 : index
    %c0_16 = arith.constant 0 : index
    %18 = vector.load %arg3[%c0_15, %c0_16] : memref<384x128xf32, #tpu.memory_space<vmem>>, vector<384x128xf32>
    %cst_17 = arith.constant dense<0.000000e+00> : vector<22x128xf32>
    %19 = tpu.matmul %17, %18, %cst_17 {dimension_numbers = #tpu.dot_dimension_numbers<[1], [0], [0], [1], [0, 0, 1, 1], [], []>} : vector<22x384xf32>, vector<384x128xf32>, vector<22x128xf32> -> vector<22x128xf32>
    %20 = vector.broadcast %0 : f32 to vector<22x128xf32>
    %21 = arith.addf %19, %20 : vector<22x128xf32>
    %cst_18 = arith.constant 0.000000e+00 : f32
    %22 = vector.broadcast %cst_18 : f32 to vector<22x128xf32>
    %23 = arith.maximumf %21, %22 : vector<22x128xf32>
    %c0_19 = arith.constant 0 : index
    %c256_20 = arith.constant 256 : index
    %24 = vector.load %arg4[%c0_19, %c256_20] : memref<22x1664xf32, #tpu.memory_space<vmem>>, vector<22x128xf32>
    tpu.vector_store %arg4[%c0_19, %c256_20], %23 {strides = array<i32>} : memref<22x1664xf32, #tpu.memory_space<vmem>>, vector<22x128xf32>,
    %c0_21 = arith.constant 0 : index
    %c384 = arith.constant 384 : index
    %25 = vector.load %arg2[%c0_21, %c384] : memref<22x1920xf32, #tpu.memory_space<vmem>>, vector<22x384xf32>
    %c0_22 = arith.constant 0 : index
    %c0_23 = arith.constant 0 : index
    %26 = vector.load %arg3[%c0_22, %c0_23] : memref<384x128xf32, #tpu.memory_space<vmem>>, vector<384x128xf32>
    %cst_24 = arith.constant dense<0.000000e+00> : vector<22x128xf32>
    %27 = tpu.matmul %25, %26, %cst_24 {dimension_numbers = #tpu.dot_dimension_numbers<[1], [0], [0], [1], [0, 0, 1, 1], [], []>} : vector<22x384xf32>, vector<384x128xf32>, vector<22x128xf32> -> vector<22x128xf32>
    %28 = vector.broadcast %0 : f32 to vector<22x128xf32>
    %29 = arith.addf %27, %28 : vector<22x128xf32>
    %cst_25 = arith.constant 0.000000e+00 : f32
    %30 = vector.broadcast %cst_25 : f32 to vector<22x128xf32>
    %31 = arith.maximumf %29, %30 : vector<22x128xf32>
    %c0_26 = arith.constant 0 : index
    %c384_27 = arith.constant 384 : index
    %32 = vector.load %arg4[%c0_26, %c384_27] : memref<22x1664xf32, #tpu.memory_space<vmem>>, vector<22x128xf32>
    tpu.vector_store %arg4[%c0_26, %c384_27], %31 {strides = array<i32>} : memref<22x1664xf32, #tpu.memory_space<vmem>>, vector<22x128xf32>,
    %c0_28 = arith.constant 0 : index
    %c512 = arith.constant 512 : index
    %33 = vector.load %arg2[%c0_28, %c512] : memref<22x1920xf32, #tpu.memory_space<vmem>>, vector<22x384xf32>
    %c0_29 = arith.constant 0 : index
    %c0_30 = arith.constant 0 : index
    %34 = vector.load %arg3[%c0_29, %c0_30] : memref<384x128xf32, #tpu.memory_space<vmem>>, vector<384x128xf32>
    %cst_31 = arith.constant dense<0.000000e+00> : vector<22x128xf32>
    %35 = tpu.matmul %33, %34, %cst_31 {dimension_numbers = #tpu.dot_dimension_numbers<[1], [0], [0], [1], [0, 0, 1, 1], [], []>} : vector<22x384xf32>, vector<384x128xf32>, vector<22x128xf32> -> vector<22x128xf32>
    %36 = vector.broadcast %0 : f32 to vector<22x128xf32>
    %37 = arith.addf %35, %36 : vector<22x128xf32>
    %cst_32 = arith.constant 0.000000e+00 : f32
    %38 = vector.broadcast %cst_32 : f32 to vector<22x128xf32>
    %39 = arith.maximumf %37, %38 : vector<22x128xf32>
    %c0_33 = arith.constant 0 : index
    %c512_34 = arith.constant 512 : index
    %40 = vector.load %arg4[%c0_33, %c512_34] : memref<22x1664xf32, #tpu.memory_space<vmem>>, vector<22x128xf32>
    tpu.vector_store %arg4[%c0_33, %c512_34], %39 {strides = array<i32>} : memref<22x1664xf32, #tpu.memory_space<vmem>>, vector<22x128xf32>,
    %c0_35 = arith.constant 0 : index
    %c640 = arith.constant 640 : index
    %41 = vector.load %arg2[%c0_35, %c640] : memref<22x1920xf32, #tpu.memory_space<vmem>>, vector<22x384xf32>
    %c0_36 = arith.constant 0 : index
    %c0_37 = arith.constant 0 : index
    %42 = vector.load %arg3[%c0_36, %c0_37] : memref<384x128xf32, #tpu.memory_space<vmem>>, vector<384x128xf32>
    %cst_38 = arith.constant dense<0.000000e+00> : vector<22x128xf32>
    %43 = tpu.matmul %41, %42, %cst_38 {dimension_numbers = #tpu.dot_dimension_numbers<[1], [0], [0], [1], [0, 0, 1, 1], [], []>} : vector<22x384xf32>, vector<384x128xf32>, vector<22x128xf32> -> vector<22x128xf32>
    %44 = vector.broadcast %0 : f32 to vector<22x128xf32>
    %45 = arith.addf %43, %44 : vector<22x128xf32>
    %cst_39 = arith.constant 0.000000e+00 : f32
    %46 = vector.broadcast %cst_39 : f32 to vector<22x128xf32>
    %47 = arith.maximumf %45, %46 : vector<22x128xf32>
    %c0_40 = arith.constant 0 : index
    %c640_41 = arith.constant 640 : index
    %48 = vector.load %arg4[%c0_40, %c640_41] : memref<22x1664xf32, #tpu.memory_space<vmem>>, vector<22x128xf32>
    tpu.vector_store %arg4[%c0_40, %c640_41], %47 {strides = array<i32>} : memref<22x1664xf32, #tpu.memory_space<vmem>>, vector<22x128xf32>,
    %c0_42 = arith.constant 0 : index
    %c768 = arith.constant 768 : index
    %49 = vector.load %arg2[%c0_42, %c768] : memref<22x1920xf32, #tpu.memory_space<vmem>>, vector<22x384xf32>
    %c0_43 = arith.constant 0 : index
    %c0_44 = arith.constant 0 : index
    %50 = vector.load %arg3[%c0_43, %c0_44] : memref<384x128xf32, #tpu.memory_space<vmem>>, vector<384x128xf32>
    %cst_45 = arith.constant dense<0.000000e+00> : vector<22x128xf32>
    %51 = tpu.matmul %49, %50, %cst_45 {dimension_numbers = #tpu.dot_dimension_numbers<[1], [0], [0], [1], [0, 0, 1, 1], [], []>} : vector<22x384xf32>, vector<384x128xf32>, vector<22x128xf32> -> vector<22x128xf32>
    %52 = vector.broadcast %0 : f32 to vector<22x128xf32>
    %53 = arith.addf %51, %52 : vector<22x128xf32>
    %cst_46 = arith.constant 0.000000e+00 : f32
    %54 = vector.broadcast %cst_46 : f32 to vector<22x128xf32>
    %55 = arith.maximumf %53, %54 : vector<22x128xf32>
    %c0_47 = arith.constant 0 : index
    %c768_48 = arith.constant 768 : index
    %56 = vector.load %arg4[%c0_47, %c768_48] : memref<22x1664xf32, #tpu.memory_space<vmem>>, vector<22x128xf32>
    tpu.vector_store %arg4[%c0_47, %c768_48], %55 {strides = array<i32>} : memref<22x1664xf32, #tpu.memory_space<vmem>>, vector<22x128xf32>,
    %c0_49 = arith.constant 0 : index
    %c896 = arith.constant 896 : index
    %57 = vector.load %arg2[%c0_49, %c896] : memref<22x1920xf32, #tpu.memory_space<vmem>>, vector<22x384xf32>
    %c0_50 = arith.constant 0 : index
    %c0_51 = arith.constant 0 : index
    %58 = vector.load %arg3[%c0_50, %c0_51] : memref<384x128xf32, #tpu.memory_space<vmem>>, vector<384x128xf32>
    %cst_52 = arith.constant dense<0.000000e+00> : vector<22x128xf32>
    %59 = tpu.matmul %57, %58, %cst_52 {dimension_numbers = #tpu.dot_dimension_numbers<[1], [0], [0], [1], [0, 0, 1, 1], [], []>} : vector<22x384xf32>, vector<384x128xf32>, vector<22x128xf32> -> vector<22x128xf32>
    %60 = vector.broadcast %0 : f32 to vector<22x128xf32>
    %61 = arith.addf %59, %60 : vector<22x128xf32>
    %cst_53 = arith.constant 0.000000e+00 : f32
    %62 = vector.broadcast %cst_53 : f32 to vector<22x128xf32>
    %63 = arith.maximumf %61, %62 : vector<22x128xf32>
    %c0_54 = arith.constant 0 : index
    %c896_55 = arith.constant 896 : index
    %64 = vector.load %arg4[%c0_54, %c896_55] : memref<22x1664xf32, #tpu.memory_space<vmem>>, vector<22x128xf32>
    tpu.vector_store %arg4[%c0_54, %c896_55], %63 {strides = array<i32>} : memref<22x1664xf32, #tpu.memory_space<vmem>>, vector<22x128xf32>,
    %c0_56 = arith.constant 0 : index
    %c1024 = arith.constant 1024 : index
    %65 = vector.load %arg2[%c0_56, %c1024] : memref<22x1920xf32, #tpu.memory_space<vmem>>, vector<22x384xf32>
    %c0_57 = arith.constant 0 : index
    %c0_58 = arith.constant 0 : index
    %66 = vector.load %arg3[%c0_57, %c0_58] : memref<384x128xf32, #tpu.memory_space<vmem>>, vector<384x128xf32>
    %cst_59 = arith.constant dense<0.000000e+00> : vector<22x128xf32>
    %67 = tpu.matmul %65, %66, %cst_59 {dimension_numbers = #tpu.dot_dimension_numbers<[1], [0], [0], [1], [0, 0, 1, 1], [], []>} : vector<22x384xf32>, vector<384x128xf32>, vector<22x128xf32> -> vector<22x128xf32>
    %68 = vector.broadcast %0 : f32 to vector<22x128xf32>
    %69 = arith.addf %67, %68 : vector<22x128xf32>
    %cst_60 = arith.constant 0.000000e+00 : f32
    %70 = vector.broadcast %cst_60 : f32 to vector<22x128xf32>
    %71 = arith.maximumf %69, %70 : vector<22x128xf32>
    %c0_61 = arith.constant 0 : index
    %c1024_62 = arith.constant 1024 : index
    %72 = vector.load %arg4[%c0_61, %c1024_62] : memref<22x1664xf32, #tpu.memory_space<vmem>>, vector<22x128xf32>
    tpu.vector_store %arg4[%c0_61, %c1024_62], %71 {strides = array<i32>} : memref<22x1664xf32, #tpu.memory_space<vmem>>, vector<22x128xf32>,
    %c0_63 = arith.constant 0 : index
    %c1152 = arith.constant 1152 : index
    %73 = vector.load %arg2[%c0_63, %c1152] : memref<22x1920xf32, #tpu.memory_space<vmem>>, vector<22x384xf32>
    %c0_64 = arith.constant 0 : index
    %c0_65 = arith.constant 0 : index
    %74 = vector.load %arg3[%c0_64, %c0_65] : memref<384x128xf32, #tpu.memory_space<vmem>>, vector<384x128xf32>
    %cst_66 = arith.constant dense<0.000000e+00> : vector<22x128xf32>
    %75 = tpu.matmul %73, %74, %cst_66 {dimension_numbers = #tpu.dot_dimension_numbers<[1], [0], [0], [1], [0, 0, 1, 1], [], []>} : vector<22x384xf32>, vector<384x128xf32>, vector<22x128xf32> -> vector<22x128xf32>
    %76 = vector.broadcast %0 : f32 to vector<22x128xf32>
    %77 = arith.addf %75, %76 : vector<22x128xf32>
    %cst_67 = arith.constant 0.000000e+00 : f32
    %78 = vector.broadcast %cst_67 : f32 to vector<22x128xf32>
    %79 = arith.maximumf %77, %78 : vector<22x128xf32>
    %c0_68 = arith.constant 0 : index
    %c1152_69 = arith.constant 1152 : index
    %80 = vector.load %arg4[%c0_68, %c1152_69] : memref<22x1664xf32, #tpu.memory_space<vmem>>, vector<22x128xf32>
    tpu.vector_store %arg4[%c0_68, %c1152_69], %79 {strides = array<i32>} : memref<22x1664xf32, #tpu.memory_space<vmem>>, vector<22x128xf32>,
    %c0_70 = arith.constant 0 : index
    %c1280 = arith.constant 1280 : index
    %81 = vector.load %arg2[%c0_70, %c1280] : memref<22x1920xf32, #tpu.memory_space<vmem>>, vector<22x384xf32>
    %c0_71 = arith.constant 0 : index
    %c0_72 = arith.constant 0 : index
    %82 = vector.load %arg3[%c0_71, %c0_72] : memref<384x128xf32, #tpu.memory_space<vmem>>, vector<384x128xf32>
    %cst_73 = arith.constant dense<0.000000e+00> : vector<22x128xf32>
    %83 = tpu.matmul %81, %82, %cst_73 {dimension_numbers = #tpu.dot_dimension_numbers<[1], [0], [0], [1], [0, 0, 1, 1], [], []>} : vector<22x384xf32>, vector<384x128xf32>, vector<22x128xf32> -> vector<22x128xf32>
    %84 = vector.broadcast %0 : f32 to vector<22x128xf32>
    %85 = arith.addf %83, %84 : vector<22x128xf32>
    %cst_74 = arith.constant 0.000000e+00 : f32
    %86 = vector.broadcast %cst_74 : f32 to vector<22x128xf32>
    %87 = arith.maximumf %85, %86 : vector<22x128xf32>
    %c0_75 = arith.constant 0 : index
    %c1280_76 = arith.constant 1280 : index
    %88 = vector.load %arg4[%c0_75, %c1280_76] : memref<22x1664xf32, #tpu.memory_space<vmem>>, vector<22x128xf32>
    tpu.vector_store %arg4[%c0_75, %c1280_76], %87 {strides = array<i32>} : memref<22x1664xf32, #tpu.memory_space<vmem>>, vector<22x128xf32>,
    %c0_77 = arith.constant 0 : index
    %c1408 = arith.constant 1408 : index
    %89 = vector.load %arg2[%c0_77, %c1408] : memref<22x1920xf32, #tpu.memory_space<vmem>>, vector<22x384xf32>
    %c0_78 = arith.constant 0 : index
    %c0_79 = arith.constant 0 : index
    %90 = vector.load %arg3[%c0_78, %c0_79] : memref<384x128xf32, #tpu.memory_space<vmem>>, vector<384x128xf32>
    %cst_80 = arith.constant dense<0.000000e+00> : vector<22x128xf32>
    %91 = tpu.matmul %89, %90, %cst_80 {dimension_numbers = #tpu.dot_dimension_numbers<[1], [0], [0], [1], [0, 0, 1, 1], [], []>} : vector<22x384xf32>, vector<384x128xf32>, vector<22x128xf32> -> vector<22x128xf32>
    %92 = vector.broadcast %0 : f32 to vector<22x128xf32>
    %93 = arith.addf %91, %92 : vector<22x128xf32>
    %cst_81 = arith.constant 0.000000e+00 : f32
    %94 = vector.broadcast %cst_81 : f32 to vector<22x128xf32>
    %95 = arith.maximumf %93, %94 : vector<22x128xf32>
    %c0_82 = arith.constant 0 : index
    %c1408_83 = arith.constant 1408 : index
    %96 = vector.load %arg4[%c0_82, %c1408_83] : memref<22x1664xf32, #tpu.memory_space<vmem>>, vector<22x128xf32>
    tpu.vector_store %arg4[%c0_82, %c1408_83], %95 {strides = array<i32>} : memref<22x1664xf32, #tpu.memory_space<vmem>>, vector<22x128xf32>,
    %c0_84 = arith.constant 0 : index
    %c1536 = arith.constant 1536 : index
    %97 = vector.load %arg2[%c0_84, %c1536] : memref<22x1920xf32, #tpu.memory_space<vmem>>, vector<22x384xf32>
    %c0_85 = arith.constant 0 : index
    %c0_86 = arith.constant 0 : index
    %98 = vector.load %arg3[%c0_85, %c0_86] : memref<384x128xf32, #tpu.memory_space<vmem>>, vector<384x128xf32>
    %cst_87 = arith.constant dense<0.000000e+00> : vector<22x128xf32>
    %99 = tpu.matmul %97, %98, %cst_87 {dimension_numbers = #tpu.dot_dimension_numbers<[1], [0], [0], [1], [0, 0, 1, 1], [], []>} : vector<22x384xf32>, vector<384x128xf32>, vector<22x128xf32> -> vector<22x128xf32>
    %100 = vector.broadcast %0 : f32 to vector<22x128xf32>
    %101 = arith.addf %99, %100 : vector<22x128xf32>
    %cst_88 = arith.constant 0.000000e+00 : f32
    %102 = vector.broadcast %cst_88 : f32 to vector<22x128xf32>
    %103 = arith.maximumf %101, %102 : vector<22x128xf32>
    %c0_89 = arith.constant 0 : index
    %c1536_90 = arith.constant 1536 : index
    %104 = vector.load %arg4[%c0_89, %c1536_90] : memref<22x1664xf32, #tpu.memory_space<vmem>>, vector<22x128xf32>
    tpu.vector_store %arg4[%c0_89, %c1536_90], %103 {strides = array<i32>} : memref<22x1664xf32, #tpu.memory_space<vmem>>, vector<22x128xf32>,
    return
  }
  func.func @transform_0(%arg0: i32) -> i32 {
    %c0_i32 = arith.constant 0 : i32
    %c0_i32_0 = arith.constant 0 : i32
    return %c0_i32 : i32
  }
  func.func @transform_1(%arg0: i32) -> (i32, i32) {
    %c0_i32 = arith.constant 0 : i32
    %c0_i32_0 = arith.constant 0 : i32
    %c0_i32_1 = arith.constant 0 : i32
    return %c0_i32, %c0_i32_0 : i32, i32
  }
  func.func @transform_2(%arg0: i32) -> (i32, i32) {
    %c0_i32 = arith.constant 0 : i32
    %c0_i32_0 = arith.constant 0 : i32
    %c0_i32_1 = arith.constant 0 : i32
    return %c0_i32, %c0_i32_0 : i32, i32
  }
  func.func @transform_3(%arg0: i32) -> (i32, i32) {
    %c0_i32 = arith.constant 0 : i32
    %c0_i32_0 = arith.constant 0 : i32
    %c0_i32_1 = arith.constant 0 : i32
    return %c0_i32, %c0_i32_0 : i32, i32
  }
}

module attributes {stable_mosaic.version = 11 : i64} {
  func.func @_mlp_fused_kernel(%arg0: i32, %arg1: memref<8x4608xf32, #tpu.memory_space<vmem>>, %arg2: memref<4608x512xbf16, #tpu.memory_space<vmem>>, %arg3: memref<1x512xf32, #tpu.memory_space<vmem>>, %arg4: memref<512x128xf32, #tpu.memory_space<vmem>>, %arg5: memref<1x128xf32, #tpu.memory_space<vmem>>, %arg6: memref<128x128xf32, #tpu.memory_space<vmem>>, %arg7: memref<1x128xf32, #tpu.memory_space<vmem>>, %arg8: memref<8x128xf32, #tpu.memory_space<vmem>>, %arg9: memref<8x512xf32, #tpu.memory_space<vmem>>) attributes {dimension_semantics = [#tpu.dimension_semantics<arbitrary>], iteration_bounds = array<i64: 4>, scalar_prefetch = 0 : i64, scratch_operands = 1 : i64, tpu.core_type = #tpu.core_type<tc>, window_params = [{transform_indices = @transform_0, window_bounds = array<i64: 8, 4608>}, {transform_indices = @transform_1, window_bounds = array<i64: 4608, 512>}, {pipeline_mode = #tpu.pipeline_mode<synchronous>, transform_indices = @transform_2, window_bounds = array<i64: 1, 512>}, {pipeline_mode = #tpu.pipeline_mode<synchronous>, transform_indices = @transform_3, window_bounds = array<i64: 512, 128>}, {pipeline_mode = #tpu.pipeline_mode<synchronous>, transform_indices = @transform_4, window_bounds = array<i64: 1, 128>}, {pipeline_mode = #tpu.pipeline_mode<synchronous>, transform_indices = @transform_5, window_bounds = array<i64: 128, 128>}, {pipeline_mode = #tpu.pipeline_mode<synchronous>, transform_indices = @transform_6, window_bounds = array<i64: 1, 128>}, {pipeline_mode = #tpu.pipeline_mode<synchronous>, transform_indices = @transform_7, window_bounds = array<i64: 8, 128>}]} {
    %c0_i32 = arith.constant 0 : i32
    %0 = arith.cmpi eq, %arg0, %c0_i32 : i32
    %1 = arith.extui %0 : i1 to i32
    %c0_i32_0 = arith.constant 0 : i32
    %2 = arith.cmpi ne, %1, %c0_i32_0 : i32
    scf.if %2 {
      %cst_9 = arith.constant 0.000000e+00 : f32
      %13 = vector.broadcast %cst_9 : f32 to vector<8x512xf32>
      %c0_10 = arith.constant 0 : index
      %c0_11 = arith.constant 0 : index
      %14 = vector.load %arg9[%c0_10, %c0_11] : memref<8x512xf32, #tpu.memory_space<vmem>>, vector<8x512xf32>
      tpu.vector_store %arg9[%c0_10, %c0_11], %13 {strides = array<i32>} : memref<8x512xf32, #tpu.memory_space<vmem>>, vector<8x512xf32>,
    } else {
    }
    %c0 = arith.constant 0 : index
    %c0_1 = arith.constant 0 : index
    %3 = vector.load %arg9[%c0, %c0_1] : memref<8x512xf32, #tpu.memory_space<vmem>>, vector<8x512xf32>
    %c0_2 = arith.constant 0 : index
    %c0_3 = arith.constant 0 : index
    %4 = vector.load %arg1[%c0_2, %c0_3] : memref<8x4608xf32, #tpu.memory_space<vmem>>, vector<8x4608xf32>
    %5 = arith.truncf %4 : vector<8x4608xf32> to vector<8x4608xbf16>
    %c0_4 = arith.constant 0 : index
    %c0_5 = arith.constant 0 : index
    %6 = vector.load %arg2[%c0_4, %c0_5] : memref<4608x512xbf16, #tpu.memory_space<vmem>>, vector<4608x512xbf16>
    %cst = arith.constant dense<0.000000e+00> : vector<8x512xf32>
    %7 = tpu.matmul %5, %6, %cst {dimension_numbers = #tpu.dot_dimension_numbers<[1], [0], [0], [1], [0, 0, 1, 1], [], []>} : vector<8x4608xbf16>, vector<4608x512xbf16>, vector<8x512xf32> -> vector<8x512xf32>
    %8 = arith.addf %3, %7 : vector<8x512xf32>
    %c0_6 = arith.constant 0 : index
    %c0_7 = arith.constant 0 : index
    %9 = vector.load %arg9[%c0_6, %c0_7] : memref<8x512xf32, #tpu.memory_space<vmem>>, vector<8x512xf32>
    tpu.vector_store %arg9[%c0_6, %c0_7], %8 {strides = array<i32>} : memref<8x512xf32, #tpu.memory_space<vmem>>, vector<8x512xf32>,
    %c3_i32 = arith.constant 3 : i32
    %10 = arith.cmpi eq, %arg0, %c3_i32 : i32
    %11 = arith.extui %10 : i1 to i32
    %c0_i32_8 = arith.constant 0 : i32
    %12 = arith.cmpi ne, %11, %c0_i32_8 : i32
    scf.if %12 {
      %c0_9 = arith.constant 0 : index
      %c0_10 = arith.constant 0 : index
      %13 = vector.load %arg9[%c0_9, %c0_10] : memref<8x512xf32, #tpu.memory_space<vmem>>, vector<8x512xf32>
      %c0_11 = arith.constant 0 : index
      %c0_12 = arith.constant 0 : index
      %14 = vector.load %arg3[%c0_11, %c0_12] : memref<1x512xf32, #tpu.memory_space<vmem>>, vector<1x512xf32>
      %15 = vector.broadcast %14 : vector<1x512xf32> to vector<8x512xf32>
      %16 = arith.addf %13, %15 : vector<8x512xf32>
      %cst_13 = arith.constant 0.000000e+00 : f32
      %17 = vector.broadcast %cst_13 : f32 to vector<8x512xf32>
      %18 = arith.maximumf %16, %17 : vector<8x512xf32>
      %c0_14 = arith.constant 0 : index
      %c0_15 = arith.constant 0 : index
      %19 = vector.load %arg4[%c0_14, %c0_15] : memref<512x128xf32, #tpu.memory_space<vmem>>, vector<512x128xf32>
      %cst_16 = arith.constant dense<0.000000e+00> : vector<8x128xf32>
      %20 = tpu.matmul %18, %19, %cst_16 {dimension_numbers = #tpu.dot_dimension_numbers<[1], [0], [0], [1], [0, 0, 1, 1], [], []>} : vector<8x512xf32>, vector<512x128xf32>, vector<8x128xf32> -> vector<8x128xf32>
      %c0_17 = arith.constant 0 : index
      %c0_18 = arith.constant 0 : index
      %21 = vector.load %arg5[%c0_17, %c0_18] : memref<1x128xf32, #tpu.memory_space<vmem>>, vector<1x128xf32>
      %22 = vector.broadcast %21 : vector<1x128xf32> to vector<8x128xf32>
      %23 = arith.addf %20, %22 : vector<8x128xf32>
      %cst_19 = arith.constant 0.000000e+00 : f32
      %24 = vector.broadcast %cst_19 : f32 to vector<8x128xf32>
      %25 = arith.maximumf %23, %24 : vector<8x128xf32>
      %c0_20 = arith.constant 0 : index
      %c0_21 = arith.constant 0 : index
      %26 = vector.load %arg6[%c0_20, %c0_21] : memref<128x128xf32, #tpu.memory_space<vmem>>, vector<128x128xf32>
      %cst_22 = arith.constant dense<0.000000e+00> : vector<8x128xf32>
      %27 = tpu.matmul %25, %26, %cst_22 {dimension_numbers = #tpu.dot_dimension_numbers<[1], [0], [0], [1], [0, 0, 1, 1], [], []>} : vector<8x128xf32>, vector<128x128xf32>, vector<8x128xf32> -> vector<8x128xf32>
      %c0_23 = arith.constant 0 : index
      %c0_24 = arith.constant 0 : index
      %28 = vector.load %arg7[%c0_23, %c0_24] : memref<1x128xf32, #tpu.memory_space<vmem>>, vector<1x128xf32>
      %29 = vector.broadcast %28 : vector<1x128xf32> to vector<8x128xf32>
      %30 = arith.addf %27, %29 : vector<8x128xf32>
      %c0_25 = arith.constant 0 : index
      %c0_26 = arith.constant 0 : index
      %31 = vector.load %arg8[%c0_25, %c0_26] : memref<8x128xf32, #tpu.memory_space<vmem>>, vector<8x128xf32>
      tpu.vector_store %arg8[%c0_25, %c0_26], %30 {strides = array<i32>} : memref<8x128xf32, #tpu.memory_space<vmem>>, vector<8x128xf32>,
    } else {
    }
    return
  }
  func.func @transform_0(%arg0: i32) -> (i32, i32) {
    %c0_i32 = arith.constant 0 : i32
    %c0_i32_0 = arith.constant 0 : i32
    return %c0_i32, %arg0 : i32, i32
  }
  func.func @transform_1(%arg0: i32) -> (i32, i32) {
    %c0_i32 = arith.constant 0 : i32
    %c0_i32_0 = arith.constant 0 : i32
    return %arg0, %c0_i32 : i32, i32
  }
  func.func @transform_2(%arg0: i32) -> (i32, i32) {
    %c0_i32 = arith.constant 0 : i32
    %c0_i32_0 = arith.constant 0 : i32
    %c0_i32_1 = arith.constant 0 : i32
    return %c0_i32, %c0_i32_0 : i32, i32
  }
  func.func @transform_3(%arg0: i32) -> (i32, i32) {
    %c0_i32 = arith.constant 0 : i32
    %c0_i32_0 = arith.constant 0 : i32
    %c0_i32_1 = arith.constant 0 : i32
    return %c0_i32, %c0_i32_0 : i32, i32
  }
  func.func @transform_4(%arg0: i32) -> (i32, i32) {
    %c0_i32 = arith.constant 0 : i32
    %c0_i32_0 = arith.constant 0 : i32
    %c0_i32_1 = arith.constant 0 : i32
    return %c0_i32, %c0_i32_0 : i32, i32
  }
  func.func @transform_5(%arg0: i32) -> (i32, i32) {
    %c0_i32 = arith.constant 0 : i32
    %c0_i32_0 = arith.constant 0 : i32
    %c0_i32_1 = arith.constant 0 : i32
    return %c0_i32, %c0_i32_0 : i32, i32
  }
  func.func @transform_6(%arg0: i32) -> (i32, i32) {
    %c0_i32 = arith.constant 0 : i32
    %c0_i32_0 = arith.constant 0 : i32
    %c0_i32_1 = arith.constant 0 : i32
    return %c0_i32, %c0_i32_0 : i32, i32
  }
  func.func @transform_7(%arg0: i32) -> (i32, i32) {
    %c0_i32 = arith.constant 0 : i32
    %c0_i32_0 = arith.constant 0 : i32
    %c0_i32_1 = arith.constant 0 : i32
    return %c0_i32, %c0_i32_0 : i32, i32
  }
}

</mosaic_0001>

<bundles_post_ra>
// kernel: identity_forward.2
= control target key start
LH: loop header
LB: loop body
LE: loop exit
PB: predicated region body
PF: predicated region fallthrough
CT: control target
= control target key end

     0   :  { %9 = vsyncpa [#allocation4], 0  ;;  %s1916_s15 = smov [#allocation3]   ;;  %s1917_s17 = smov 128   ;;  %s3380_s0 = inlined_call_operand.<no memory space> [shape: f32[1], index: 0, kind: input, shape index: {}]   ;;  %s3381_s1 = inlined_call_operand.vmem [shape: f32[22,1920], index: 1, kind: input, shape index: {}]   ;;  %s3382_s2 = inlined_call_operand.hbm [shape: f32[384,128], index: 2, kind: input, shape index: {}]   ;;  %s3383_s3 = inlined_call_operand.vmem [shape: f32[22,1664], index: 3, kind: output, shape index: {}]  }
   0x1   :  { %s18_s14 = sshll.u32 %s3382_s2, 4  ;;  %s20_s16 = sshll.u32 %s1916_s15, 4  ;;  %s19_s14 = int_to_ptr.hbm [resolvable:$true] %s18_s14  ;;  %s21_s16 = int_to_ptr.vmem [resolvable:$true] %s20_s16 }
   0x2   :  { %s1918_s18 = smov 8  }
   0x3   :  { %26 = dma.hbm_to_vmem [thread:$0]  %s19_s14, 6144, %s21_s16, [#allocation4], %s1917_s17, %s1917_s17, %s1918_s18  }
   0x4   :  { %1914 = dma.done.wait [#allocation4], 6144  }
   0x5   :  { %1915 = vsyncadd [#allocation4], 4294961152  ;;  %v1942_v0 = vld [vmem:[#allocation3 + $0x78] sm:$0xff]  ;;  %v1946_v2 = vld [vmem:[#allocation3 + $0x70] sm:$0xff] }
   0x6   :  { %v1944_v1 = vld [vmem:[#allocation3 + $0x178] sm:$0xff]  ;;  %90 = vmatpush.msra.mxu0 %v1942_v0  ;;  %v1950_v3 = vld [vmem:[#allocation3 + $0x170] sm:$0xff]  ;;  %v1954_v5 = vld [vmem:[#allocation3 + $0x68] sm:$0xff]  ;;  %231 = vmatpush.msra.mxu3 %v1942_v0 }
   0x7   :  { %142 = vmatpush.msra.mxu2 %v1944_v1  ;;  %v1952_v4 = vld [vmem:[#allocation3 + $0xf8] sm:$0xff]  ;;  %v1957_v6 = vld [vmem:[#allocation3 + $0x168] sm:$0xff]  ;;  %v1960_v7 = vld [vmem:[#allocation3 + $0xf0] sm:$0xff] }
   0x8   :  { %116 = vmatpush.msra.mxu1 %v1952_v4  ;;  %91 = vmatpush.msra.mxu0 %v1946_v2  ;;  %v1964_v8 = vld [vmem:[#allocation3 + $0xe8] sm:$0xff]  ;;  %v1966_v9 = vld [vmem:[#allocation3 + $0x60] sm:$0xff]  ;;  %v1976_v12 = vld [vmem:[#allocation3 + $0x58] sm:$0xff] }
   0x9   :  { %143 = vmatpush.msra.mxu2 %v1950_v3  ;;  %v1969_v10 = vld [vmem:[#allocation3 + $0x160] sm:$0xff]  ;;  %232 = vmatpush.msra.mxu3 %v1946_v2  ;;  %v1979_v13 = vld [vmem:[#allocation3 + $0x158] sm:$0xff]  ;;  %v1986_v15 = vld [vmem:[#allocation3 + $0x50] sm:$0xff] }
   0xa   :  { %117 = vmatpush.msra.mxu1 %v1960_v7  ;;  %92 = vmatpush.msra.mxu0 %v1954_v5  ;;  %v1974_v11 = vld [vmem:[#allocation3 + $0xe0] sm:$0xff]  ;;  %v1984_v14 = vld [vmem:[#allocation3 + $0xd8] sm:$0xff]  ;;  %v1989_v16 = vld [vmem:[#allocation3 + $0x150] sm:$0xff] }
   0xb   :  { %144 = vmatpush.msra.mxu2 %v1957_v6  ;;  %233 = vmatpush.msra.mxu3 %v1954_v5  ;;  %v1994_v17 = vld [vmem:[#allocation3 + $0xd0] sm:$0xff]  ;;  %v1996_v18 = vld [vmem:[#allocation3 + $0x48] sm:$0xff]  ;;  %v2006_v21 = vld [vmem:[#allocation3 + $0x40] sm:$0xff] }
   0xc   :  { %118 = vmatpush.msra.mxu1 %v1964_v8  ;;  %93 = vmatpush.msra.mxu0 %v1966_v9  ;;  %v1999_v19 = vld [vmem:[#allocation3 + $0x148] sm:$0xff]  ;;  %v2009_v22 = vld [vmem:[#allocation3 + $0x140] sm:$0xff]  ;;  %v2016_v24 = vld [vmem:[#allocation3 + $0x38] sm:$0xff] }
   0xd   :  { %145 = vmatpush.msra.mxu2 %v1969_v10  ;;  %234 = vmatpush.msra.mxu3 %v1966_v9  ;;  %v2004_v20 = vld [vmem:[#allocation3 + $0xc8] sm:$0xff]  ;;  %v2014_v23 = vld [vmem:[#allocation3 + $0xc0] sm:$0xff]  ;;  %v2019_v25 = vld [vmem:[#allocation3 + $0x138] sm:$0xff] }
   0xe   :  { %119 = vmatpush.msra.mxu1 %v1974_v11  ;;  %94 = vmatpush.msra.mxu0 %v1976_v12  ;;  %v2024_v26 = vld [vmem:[#allocation3 + $0xb8] sm:$0xff]  ;;  %v2026_v27 = vld [vmem:[#allocation3 + $0x30] sm:$0xff]  ;;  %v2036_v30 = vld [vmem:[#allocation3 + $0x28] sm:$0xff] }
   0xf   :  { %146 = vmatpush.msra.mxu2 %v1979_v13  ;;  %235 = vmatpush.msra.mxu3 %v1976_v12  ;;  %v2029_v28 = vld [vmem:[#allocation3 + $0x130] sm:$0xff]  ;;  %v2039_v31 = vld [vmem:[#allocation3 + $0x128] sm:$0xff]  ;;  %v2046_v33 = vld [vmem:[#allocation3 + $0x20] sm:$0xff] }
  0x10   :  { %120 = vmatpush.msra.mxu1 %v1984_v14  ;;  %95 = vmatpush.msra.mxu0 %v1986_v15  ;;  %v2034_v29 = vld [vmem:[#allocation3 + $0xb0] sm:$0xff]  ;;  %v2044_v32 = vld [vmem:[#allocation3 + $0xa8] sm:$0xff]  ;;  %v2049_v34 = vld [vmem:[#allocation3 + $0x120] sm:$0xff] }
  0x11   :  { %147 = vmatpush.msra.mxu2 %v1989_v16  ;;  %236 = vmatpush.msra.mxu3 %v1986_v15  ;;  %v2054_v35 = vld [vmem:[#allocation3 + $0xa0] sm:$0xff]  ;;  %v2056_v36 = vld [vmem:[#allocation3 + $0x18] sm:$0xff]  ;;  %v2066_v39 = vld [vmem:[#allocation3 + $0x10] sm:$0xff] }
  0x12   :  { %121 = vmatpush.msra.mxu1 %v1994_v17  ;;  %96 = vmatpush.msra.mxu0 %v1996_v18  ;;  %v2059_v37 = vld [vmem:[#allocation3 + $0x118] sm:$0xff]  ;;  %v2069_v40 = vld [vmem:[#allocation3 + $0x110] sm:$0xff]  ;;  %v2076_v42 = vld [vmem:[#allocation3 + $0x8] sm:$0xff] }
  0x13   :  { %148 = vmatpush.msra.mxu2 %v1999_v19  ;;  %237 = vmatpush.msra.mxu3 %v1996_v18  ;;  %v2064_v38 = vld [vmem:[#allocation3 + $0x98] sm:$0xff]  ;;  %v2074_v41 = vld [vmem:[#allocation3 + $0x90] sm:$0xff]  ;;  %v2079_v43 = vld [vmem:[#allocation3 + $0x108] sm:$0xff] }
  0x14   :  { %122 = vmatpush.msra.mxu1 %v2004_v20  ;;  %97 = vmatpush.msra.mxu0 %v2006_v21  ;;  %v2084_v44 = vld [vmem:[#allocation3 + $0x88] sm:$0xff]  ;;  %v2086_v45 = vld [vmem:[#allocation3] sm:$0xff]  ;;  %v35_v50 = vld [vmem:[%s3381_s1 + $0x78] sm:$0xff] }
  0x15   :  { %149 = vmatpush.msra.mxu2 %v2009_v22  ;;  %238 = vmatpush.msra.mxu3 %v2006_v21  ;;  %v2089_v46 = vld [vmem:[#allocation3 + $0x100] sm:$0xff]  ;;  %v33_v49 = vld [vmem:[%s3381_s1 + $0x8] sm:$0xff]  ;;  %v2173_v52 = vld [vmem:[%s3381_s1 + $0x10] sm:$0xff] }
  0x16   :  { %123 = vmatpush.msra.mxu1 %v2014_v23  ;;  %98 = vmatpush.msra.mxu0 %v2016_v24  ;;  %v2096_v47 = vld [vmem:[#allocation3 + $0x80] sm:$0xff]  ;;  %v38_v53 = vld [vmem:[%s3381_s1 + $0xf0] sm:$0x3f]  ;;  %v39_v54 = vld [vmem:[%s3381_s1 + $0xf8] sm:$0x3f] }
  0x17   :  { %150 = vmatpush.msra.mxu2 %v2019_v25  ;;  %239 = vmatpush.msra.mxu3 %v2016_v24  ;;  %v32_v48 = vld [vmem:[%s3381_s1] sm:$0xff]  ;;  %v2213_v55 = vld [vmem:[%s3381_s1 + $0x18] sm:$0xff]  ;;  %v2224_v56 = vld [vmem:[%s3381_s1 + $0x88] sm:$0xff] }
  0x18   :  { %124 = vmatpush.msra.mxu1 %v2024_v26  ;;  %99 = vmatpush.msra.mxu0 %v2026_v27  ;;  %v36_v51 = vld [vmem:[%s3381_s1 + $0x80] sm:$0xff]  ;;  %v180_v58 = vld [vmem:[%s3381_s1 + $0xf8] sm:$0x3f]  ;;  %v2264_v59 = vld [vmem:[%s3381_s1 + $0x90] sm:$0xff] }
  0x19   :  { %151 = vmatpush.msra.mxu2 %v2029_v28  ;;  %240 = vmatpush.msra.mxu3 %v2026_v27  ;;  %v40_v57 = vld [vmem:[%s3381_s1 + $0x100] sm:$0x3f]  ;;  %v182_v61 = vld [vmem:[%s3381_s1 + $0x108] sm:$0x3f] }
  0x1a   :  { %125 = vmatpush.msra.mxu1 %v2034_v29  ;;  %100 = vmatpush.msra.mxu0 %v2036_v30  ;;  %v181_v60 = vld [vmem:[%s3381_s1 + $0x100] sm:$0x3f] }
  0x1b   :  { %152 = vmatpush.msra.mxu2 %v2039_v31  ;;  %241 = vmatpush.msra.mxu3 %v2036_v30  ;;  %v2303_v62 = vld [vmem:[%s3381_s1 + $0x20] sm:$0xff] }
  0x1c   :  { %126 = vmatpush.msra.mxu1 %v2044_v32  ;;  %101 = vmatpush.msra.mxu0 %v2046_v33  ;;  %v321_v63 = vld [vmem:[%s3381_s1 + $0x100] sm:$0x3f] }
  0x1d   :  { %153 = vmatpush.msra.mxu2 %v2049_v34  ;;  %242 = vmatpush.msra.mxu3 %v2046_v33 }
  0x1e   :  { %127 = vmatpush.msra.mxu1 %v2054_v35  ;;  %102 = vmatpush.msra.mxu0 %v2056_v36 }
  0x1f   :  { %154 = vmatpush.msra.mxu2 %v2059_v37  ;;  %243 = vmatpush.msra.mxu3 %v2056_v36 }
  0x20   :  { %128 = vmatpush.msra.mxu1 %v2064_v38  ;;  %103 = vmatpush.msra.mxu0 %v2066_v39 }
  0x21   :  { %155 = vmatpush.msra.mxu2 %v2069_v40  ;;  %244 = vmatpush.msra.mxu3 %v2066_v39 }
  0x22   :  { %129 = vmatpush.msra.mxu1 %v2074_v41  ;;  %104 = vmatpush.msra.mxu0 %v2076_v42 }
  0x23   :  { %156 = vmatpush.msra.mxu2 %v2079_v43  ;;  %245 = vmatpush.msra.mxu3 %v2076_v42 }
  0x24   :  { %130 = vmatpush.msra.mxu1 %v2084_v44  ;;  %105 = vmatpush.msra.mxu0 %v2086_v45 }
  0x25   :  { %157 = vmatpush.msra.mxu2 %v2089_v46  ;;  %246 = vmatpush.msra.mxu3 %v2086_v45 }
  0x26   :  { %257 = vmatpush.msrb.mxu0 %v1952_v4  ;;  %131 = vmatpush.msra.mxu1 %v2096_v47 }
  0x27   :  { %372 = vmatpush.msrb.mxu2 %v1942_v0  ;;  %398 = vmatpush.msrb.mxu3 %v1952_v4 }
  0x28   :  { %258 = vmatpush.msrb.mxu0 %v1960_v7  ;;  %283 = vmatpush.msrb.mxu1 %v1944_v1 }
  0x29   :  { %373 = vmatpush.msrb.mxu2 %v1946_v2  ;;  %399 = vmatpush.msrb.mxu3 %v1960_v7 }
  0x2a   :  { %259 = vmatpush.msrb.mxu0 %v1964_v8  ;;  %284 = vmatpush.msrb.mxu1 %v1950_v3 }
  0x2b   :  { %374 = vmatpush.msrb.mxu2 %v1954_v5  ;;  %400 = vmatpush.msrb.mxu3 %v1964_v8 }
  0x2c   :  { %260 = vmatpush.msrb.mxu0 %v1974_v11  ;;  %285 = vmatpush.msrb.mxu1 %v1957_v6 }
  0x2d   :  { %375 = vmatpush.msrb.mxu2 %v1966_v9  ;;  %401 = vmatpush.msrb.mxu3 %v1974_v11 }
  0x2e   :  { %261 = vmatpush.msrb.mxu0 %v1984_v14  ;;  %286 = vmatpush.msrb.mxu1 %v1969_v10 }
  0x2f   :  { %376 = vmatpush.msrb.mxu2 %v1976_v12  ;;  %402 = vmatpush.msrb.mxu3 %v1984_v14 }
  0x30   :  { %262 = vmatpush.msrb.mxu0 %v1994_v17  ;;  %287 = vmatpush.msrb.mxu1 %v1979_v13 }
  0x31   :  { %377 = vmatpush.msrb.mxu2 %v1986_v15  ;;  %403 = vmatpush.msrb.mxu3 %v1994_v17 }
  0x32   :  { %263 = vmatpush.msrb.mxu0 %v2004_v20  ;;  %288 = vmatpush.msrb.mxu1 %v1989_v16 }
  0x33   :  { %378 = vmatpush.msrb.mxu2 %v1996_v18  ;;  %404 = vmatpush.msrb.mxu3 %v2004_v20 }
  0x34   :  { %264 = vmatpush.msrb.mxu0 %v2014_v23  ;;  %289 = vmatpush.msrb.mxu1 %v1999_v19 }
  0x35   :  { %379 = vmatpush.msrb.mxu2 %v2006_v21  ;;  %405 = vmatpush.msrb.mxu3 %v2014_v23 }
  0x36   :  { %265 = vmatpush.msrb.mxu0 %v2024_v26  ;;  %290 = vmatpush.msrb.mxu1 %v2009_v22 }
  0x37   :  { %380 = vmatpush.msrb.mxu2 %v2016_v24  ;;  %106 = vmatmul.f32.vlgmr.msra.gmra.mxu0 %v32_v48  ;;  %v2531_v48 = vld [vmem:[#allocation3 + $0x118] sm:$0xff] }
  0x38   :  { %266 = vmatpush.msrb.mxu0 %v2034_v29  ;;  %291 = vmatpush.msrb.mxu1 %v2019_v25 }
  0x39   :  { %381 = vmatpush.msrb.mxu2 %v2026_v27  ;;  %406 = vmatpush.msrb.mxu3 %v2024_v26 }
  0x3a   :  { %267 = vmatpush.msrb.mxu0 %v2044_v32  ;;  %132 = vmatmul.f32.vlgmr.msra.gmra.mxu1 %v33_v49 }
  0x3b   :  { %382 = vmatpush.msrb.mxu2 %v2036_v30  ;;  %292 = vmatpush.msrb.mxu1 %v2029_v28 }
  0x3c   :  { %268 = vmatpush.msrb.mxu0 %v2054_v35  ;;  %407 = vmatpush.msrb.mxu3 %v2034_v29 }
  0x3d   :  { %383 = vmatpush.msrb.mxu2 %v2046_v33  ;;  %293 = vmatpush.msrb.mxu1 %v2039_v31 }
  0x3e   :  { %269 = vmatpush.msrb.mxu0 %v2064_v38  ;;  %408 = vmatpush.msrb.mxu3 %v2044_v32 }
  0x3f   :  { %384 = vmatpush.msrb.mxu2 %v2056_v36  ;;  %294 = vmatpush.msrb.mxu1 %v2049_v34 }
  0x40   :  { %270 = vmatpush.msrb.mxu0 %v2074_v41  ;;  %409 = vmatpush.msrb.mxu3 %v2054_v35 }
  0x41   :  { %385 = vmatpush.msrb.mxu2 %v2066_v39  ;;  %109 = vmatmul.f32.gmra.mxu0 %v35_v50  ;;  %v2536_v50 = vld [vmem:[#allocation3 + $0x8] sm:$0xff] }
  0x42   :  { %295 = vmatpush.msrb.mxu1 %v2059_v37  ;;  %271 = vmatpush.msrb.mxu0 %v2084_v44 }
  0x43   :  { %386 = vmatpush.msrb.mxu2 %v2076_v42  ;;  %410 = vmatpush.msrb.mxu3 %v2064_v38 }
  0x44   :  { %135 = vmatmul.f32.gmra.mxu1 %v36_v51  ;;  %272 = vmatpush.msrb.mxu0 %v2096_v47 }
  0x45   :  { %296 = vmatpush.msrb.mxu1 %v2069_v40  ;;  %387 = vmatpush.msrb.mxu2 %v2086_v45 }
  0x46   :  { %411 = vmatpush.msrb.mxu3 %v2074_v41  ;;  %158 = vmatmul.f32.vlgmr.msra.gmra.mxu2 %v2173_v52 }
  0x47   :  { %424 = vmatpush.msra.mxu0 %v1944_v1  ;;  %539 = vmatpush.msra.mxu2 %v1952_v4 }
  0x48   :  { %297 = vmatpush.msrb.mxu1 %v2079_v43  ;;  %412 = vmatpush.msrb.mxu3 %v2084_v44 }
  0x49   :  { %425 = vmatpush.msra.mxu0 %v1950_v3  ;;  %540 = vmatpush.msra.mxu2 %v1960_v7 }
  0x4a   :  { %298 = vmatpush.msrb.mxu1 %v2089_v46  ;;  %413 = vmatpush.msrb.mxu3 %v2096_v47 }
  0x4b   :  { %112 = vmatmul.f32.gmra.mxu0 %v38_v53  ;;  %247 = vmatmul.f32.vlgmr.msra.gmra.mxu3 %v33_v49  ;;  %v2534_v49 = vld [vmem:[#allocation3 + $0x88] sm:$0xff]  ;;  %v2548_v53 = vld [vmem:[#allocation3] sm:$0xff] }
  0x4c   :  { %426 = vmatpush.msra.mxu0 %v1957_v6  ;;  %513 = vmatpush.msra.mxu1 %v1942_v0 }
  0x4d   :  { %541 = vmatpush.msra.mxu2 %v1964_v8  ;;  %565 = vmatpush.msra.mxu3 %v1944_v1 }
  0x4e   :  { %138 = vmatmul.f32.gmra.mxu1 %v39_v54  ;;  %427 = vmatpush.msra.mxu0 %v1969_v10  ;;  %v2555_v54 = vld [vmem:[%s3381_s1 + $0x30] sm:$0xff] }
  0x4f   :  { %514 = vmatpush.msra.mxu1 %v1946_v2  ;;  %542 = vmatpush.msra.mxu2 %v1974_v11 }
  0x50   :  { %566 = vmatpush.msra.mxu3 %v1950_v3  ;;  %428 = vmatpush.msra.mxu0 %v1979_v13 }
  0x51   :  { %515 = vmatpush.msra.mxu1 %v1954_v5  ;;  %543 = vmatpush.msra.mxu2 %v1984_v14 }
  0x52   :  { %567 = vmatpush.msra.mxu3 %v1957_v6  ;;  %429 = vmatpush.msra.mxu0 %v1989_v16 }
  0x53   :  { %516 = vmatpush.msra.mxu1 %v1966_v9  ;;  %544 = vmatpush.msra.mxu2 %v1994_v17 }
  0x54   :  { %568 = vmatpush.msra.mxu3 %v1969_v10  ;;  %273 = vmatmul.f32.vlgmr.msrb.gmra.mxu0 %v2173_v52 }
  0x55   :  { %517 = vmatpush.msra.mxu1 %v1976_v12  ;;  %430 = vmatpush.msra.mxu0 %v1999_v19 }
  0x56   :  { %545 = vmatpush.msra.mxu2 %v2004_v20  ;;  %569 = vmatpush.msra.mxu3 %v1979_v13 }
  0x57   :  { %299 = vmatmul.f32.vlgmr.msrb.gmra.mxu1 %v2213_v55  ;;  %431 = vmatpush.msra.mxu0 %v2009_v22 }
  0x58   :  { %518 = vmatpush.msra.mxu1 %v1986_v15  ;;  %546 = vmatpush.msra.mxu2 %v2014_v23 }
  0x59   :  { %570 = vmatpush.msra.mxu3 %v1989_v16  ;;  %161 = vmatmul.f32.gmra.mxu2 %v2224_v56 }
  0x5a   :  { %432 = vmatpush.msra.mxu0 %v2019_v25  ;;  %519 = vmatpush.msra.mxu1 %v1996_v18 }
  0x5b   :  { %547 = vmatpush.msra.mxu2 %v2024_v26  ;;  %571 = vmatpush.msra.mxu3 %v1999_v19 }
  0x5c   :  { %433 = vmatpush.msra.mxu0 %v2029_v28  ;;  %250 = vmatmul.f32.gmra.mxu3 %v36_v51  ;;  %v2542_v51 = vld [vmem:[#allocation3 + $0x80] sm:$0xff] }
  0x5d   :  { %520 = vmatpush.msra.mxu1 %v2006_v21  ;;  %548 = vmatpush.msra.mxu2 %v2034_v29 }
  0x5e   :  { %572 = vmatpush.msra.mxu3 %v2009_v22  ;;  %434 = vmatpush.msra.mxu0 %v2039_v31 }
  0x5f   :  { %521 = vmatpush.msra.mxu1 %v2016_v24  ;;  %549 = vmatpush.msra.mxu2 %v2044_v32 }
  0x60   :  { %573 = vmatpush.msra.mxu3 %v2019_v25  ;;  %435 = vmatpush.msra.mxu0 %v2049_v34 }
  0x61   :  { %522 = vmatpush.msra.mxu1 %v2026_v27  ;;  %550 = vmatpush.msra.mxu2 %v2054_v35 }
  0x62   :  { %574 = vmatpush.msra.mxu3 %v2029_v28  ;;  %164 = vmatmul.f32.gmra.mxu2 %v40_v57 }
  0x63   :  { %436 = vmatpush.msra.mxu0 %v2059_v37  ;;  %523 = vmatpush.msra.mxu1 %v2036_v30 }
  0x64   :  { %551 = vmatpush.msra.mxu2 %v2064_v38  ;;  %575 = vmatpush.msra.mxu3 %v2039_v31 }
  0x65   :  { %276 = vmatmul.f32.gmra.mxu0 %v2224_v56  ;;  %253 = vmatmul.f32.gmra.mxu3 %v180_v58  ;;  %v2565_v58 = vld [vmem:[#allocation3 + $0x100] sm:$0xff] }
  0x66   :  { %437 = vmatpush.msra.mxu0 %v2069_v40  ;;  %524 = vmatpush.msra.mxu1 %v2046_v33 }
  0x67   :  { %552 = vmatpush.msra.mxu2 %v2074_v41  ;;  %576 = vmatpush.msra.mxu3 %v2049_v34 }
  0x68   :  { %438 = vmatpush.msra.mxu0 %v2079_v43  ;;  %525 = vmatpush.msra.mxu1 %v2056_v36 }
  0x69   :  { %553 = vmatpush.msra.mxu2 %v2084_v44  ;;  %577 = vmatpush.msra.mxu3 %v2059_v37 }
  0x6a   :  { %302 = vmatmul.f32.gmra.mxu1 %v2264_v59  ;;  %439 = vmatpush.msra.mxu0 %v2089_v46 }
  0x6b   :  { %526 = vmatpush.msra.mxu1 %v2066_v39  ;;  %554 = vmatpush.msra.mxu2 %v2096_v47 }
  0x6c   :  { %578 = vmatpush.msra.mxu3 %v2069_v40  ;;  %388 = vmatmul.f32.vlgmr.msrb.gmra.mxu2 %v2173_v52  ;;  %v2544_v52 = vld [vmem:[#allocation3 + $0x110] sm:$0xff] }
  0x6d   :  { %654 = vmatpush.msrb.mxu0 %v1942_v0  ;;  %706 = vmatpush.msrb.mxu2 %v1944_v1  ;;  %v2349_v1 = vld [vmem:[%s3381_s1 + $0x98] sm:$0xff] }
  0x6e   :  { %527 = vmatpush.msra.mxu1 %v2076_v42  ;;  %579 = vmatpush.msra.mxu3 %v2079_v43 }
  0x6f   :  { %279 = vmatmul.f32.gmra.mxu0 %v181_v60  ;;  %414 = vmatmul.f32.vlgmr.msrb.gmra.mxu3 %v2213_v55  ;;  %v604_v60 = vld [vmem:[%s3381_s1 + $0x118] sm:$0x3f] }
  0x70   :  { %655 = vmatpush.msrb.mxu0 %v1946_v2  ;;  %707 = vmatpush.msrb.mxu2 %v1950_v3  ;;  %v2368_v3 = vld [vmem:[#allocation3 + $0x78] sm:$0xff] }
  0x71   :  { %528 = vmatpush.msra.mxu1 %v2086_v45  ;;  %580 = vmatpush.msra.mxu3 %v2089_v46 }
  0x72   :  { %656 = vmatpush.msrb.mxu0 %v1954_v5  ;;  %708 = vmatpush.msrb.mxu2 %v1957_v6  ;;  %v2384_v6 = vld [vmem:[#allocation3 + $0xf0] sm:$0xff] }
  0x73   :  { %680 = vmatpush.msrb.mxu1 %v1952_v4  ;;  %795 = vmatpush.msrb.mxu3 %v1942_v0  ;;  %v322_v0 = vld [vmem:[%s3381_s1 + $0x108] sm:$0x3f]  ;;  %v323_v4 = vld [vmem:[%s3381_s1 + $0x110] sm:$0x3f] }
  0x74   :  { %305 = vmatmul.f32.gmra.mxu1 %v182_v61  ;;  %657 = vmatpush.msrb.mxu0 %v1966_v9 }
  0x75   :  { %681 = vmatpush.msrb.mxu1 %v1960_v7  ;;  %709 = vmatpush.msrb.mxu2 %v1969_v10  ;;  %v2386_v7 = vld [vmem:[#allocation3 + $0x70] sm:$0xff]  ;;  %v2397_v10 = vld [vmem:[#allocation3 + $0x68] sm:$0xff] }
  0x76   :  { %796 = vmatpush.msrb.mxu3 %v1946_v2  ;;  %658 = vmatpush.msrb.mxu0 %v1976_v12  ;;  %v2366_v2 = vld [vmem:[#allocation3 + $0xf8] sm:$0xff] }
  0x77   :  { %682 = vmatpush.msrb.mxu1 %v1964_v8  ;;  %710 = vmatpush.msrb.mxu2 %v1979_v13  ;;  %v2391_v8 = vld [vmem:[#allocation3 + $0xe8] sm:$0xff]  ;;  %v2407_v13 = vld [vmem:[#allocation3 + $0x60] sm:$0xff] }
  0x78   :  { %797 = vmatpush.msrb.mxu3 %v1954_v5  ;;  %440 = vmatmul.f32.vlgmr.msra.gmra.mxu0 %v2303_v62  ;;  %v2380_v5 = vld [vmem:[%s3381_s1 + $0x28] sm:$0xff] }
  0x79   :  { %683 = vmatpush.msrb.mxu1 %v1974_v11  ;;  %659 = vmatpush.msrb.mxu0 %v1986_v15  ;;  %v2401_v11 = vld [vmem:[#allocation3 + $0xe0] sm:$0xff] }
  0x7a   :  { %711 = vmatpush.msrb.mxu2 %v1989_v16  ;;  %798 = vmatpush.msrb.mxu3 %v1966_v9  ;;  %v2393_v9 = vld [vmem:[#allocation3 + $0x178] sm:$0xff] }
  0x7b   :  { %684 = vmatpush.msrb.mxu1 %v1984_v14  ;;  %660 = vmatpush.msrb.mxu0 %v1996_v18  ;;  %v2411_v14 = vld [vmem:[#allocation3 + $0xd8] sm:$0xff] }
  0x7c   :  { %712 = vmatpush.msrb.mxu2 %v1999_v19  ;;  %799 = vmatpush.msrb.mxu3 %v1976_v12  ;;  %v2405_v12 = vld [vmem:[#allocation3 + $0x170] sm:$0xff]  ;;  %v2417_v16 = vld [vmem:[#allocation3 + $0x58] sm:$0xff] }
  0x7d   :  { %685 = vmatpush.msrb.mxu1 %v1994_v17  ;;  %661 = vmatpush.msrb.mxu0 %v2006_v21  ;;  %v2421_v17 = vld [vmem:[#allocation3 + $0xd0] sm:$0xff] }
  0x7e   :  { %713 = vmatpush.msrb.mxu2 %v2009_v22  ;;  %800 = vmatpush.msrb.mxu3 %v1986_v15  ;;  %v2415_v15 = vld [vmem:[#allocation3 + $0x168] sm:$0xff]  ;;  %v2427_v19 = vld [vmem:[#allocation3 + $0x50] sm:$0xff] }
  0x7f   :  { %391 = vmatmul.f32.gmra.mxu2 %v2224_v56  ;;  %662 = vmatpush.msrb.mxu0 %v2016_v24  ;;  %v2437_v22 = vld [vmem:[#allocation3 + $0x48] sm:$0xff] }
  0x80   :  { %686 = vmatpush.msrb.mxu1 %v2004_v20  ;;  %714 = vmatpush.msrb.mxu2 %v2019_v25  ;;  %v2431_v20 = vld [vmem:[#allocation3 + $0xc8] sm:$0xff]  ;;  %v2448_v25 = vld [vmem:[#allocation3 + $0x150] sm:$0xff] }
  0x81   :  { %801 = vmatpush.msrb.mxu3 %v1996_v18  ;;  %663 = vmatpush.msrb.mxu0 %v2026_v27  ;;  %v2425_v18 = vld [vmem:[#allocation3 + $0x160] sm:$0xff]  ;;  %v2559_v56 = vld [vmem:[#allocation3 + $0x108] sm:$0xff] }
  0x82   :  { %417 = vmatmul.f32.gmra.mxu3 %v2264_v59  ;;  %687 = vmatpush.msrb.mxu1 %v2014_v23  ;;  %v462_v23 = vld [vmem:[%s3381_s1 + $0x108] sm:$0x3f] }
  0x83   :  { %715 = vmatpush.msrb.mxu2 %v2029_v28  ;;  %802 = vmatpush.msrb.mxu3 %v2006_v21  ;;  %v2435_v21 = vld [vmem:[#allocation3 + $0x158] sm:$0xff]  ;;  %v2459_v28 = vld [vmem:[#allocation3 + $0x148] sm:$0xff] }
  0x84   :  { %664 = vmatpush.msrb.mxu0 %v2036_v30  ;;  %688 = vmatpush.msrb.mxu1 %v2024_v26  ;;  %v2452_v26 = vld [vmem:[#allocation3 + $0x40] sm:$0xff] }
  0x85   :  { %716 = vmatpush.msrb.mxu2 %v2039_v31  ;;  %803 = vmatpush.msrb.mxu3 %v2016_v24  ;;  %v2446_v24 = vld [vmem:[#allocation3 + $0xc0] sm:$0xff] }
  0x86   :  { %665 = vmatpush.msrb.mxu0 %v2046_v33  ;;  %689 = vmatpush.msrb.mxu1 %v2034_v29  ;;  %v2461_v29 = vld [vmem:[#allocation3 + $0x38] sm:$0xff]  ;;  %v2472_v31 = vld [vmem:[%s3381_s1 + $0xa0] sm:$0xff] }
  0x87   :  { %717 = vmatpush.msrb.mxu2 %v2049_v34  ;;  %804 = vmatpush.msrb.mxu3 %v2026_v27  ;;  %v2455_v27 = vld [vmem:[#allocation3 + $0xb8] sm:$0xff] }
  0x88   :  { %394 = vmatmul.f32.gmra.mxu2 %v321_v63  ;;  %666 = vmatpush.msrb.mxu0 %v2056_v36  ;;  %v2482_v34 = vld [vmem:[#allocation3 + $0x138] sm:$0xff] }
  0x89   :  { %690 = vmatpush.msrb.mxu1 %v2044_v32  ;;  %718 = vmatpush.msrb.mxu2 %v2059_v37  ;;  %v2474_v32 = vld [vmem:[#allocation3 + $0x140] sm:$0xff] }
  0x8a   :  { %805 = vmatpush.msrb.mxu3 %v2036_v30  ;;  %443 = vmatmul.f32.gmra.mxu0 %v2349_v1  ;;  %v2465_v30 = vld [vmem:[#allocation3 + $0xb0] sm:$0xff]  ;;  %v2494_v37 = vld [vmem:[#allocation3 + $0xa0] sm:$0xff] }
  0x8b   :  { %420 = vmatmul.f32.gmra.mxu3 %v322_v0  ;;  %667 = vmatpush.msrb.mxu0 %v2066_v39 }
  0x8c   :  { %691 = vmatpush.msrb.mxu1 %v2054_v35  ;;  %719 = vmatpush.msrb.mxu2 %v2069_v40  ;;  %v2486_v35 = vld [vmem:[#allocation3 + $0xa8] sm:$0xff]  ;;  %v463_v40 = vld [vmem:[%s3381_s1 + $0x110] sm:$0x3f] }
  0x8d   :  { %806 = vmatpush.msrb.mxu3 %v2046_v33  ;;  %529 = vmatmul.f32.vlgmr.msra.gmra.mxu1 %v2213_v55  ;;  %v2478_v33 = vld [vmem:[#allocation3 + $0x30] sm:$0xff] }
  0x8e   :  { %668 = vmatpush.msrb.mxu0 %v2076_v42  ;;  %692 = vmatpush.msrb.mxu1 %v2064_v38  ;;  %v2496_v38 = vld [vmem:[#allocation3 + $0x130] sm:$0xff] }
  0x8f   :  { %720 = vmatpush.msrb.mxu2 %v2079_v43  ;;  %807 = vmatpush.msrb.mxu3 %v2056_v36  ;;  %v2488_v36 = vld [vmem:[#allocation3 + $0x28] sm:$0xff]  ;;  %v2513_v43 = vld [vmem:[#allocation3 + $0x18] sm:$0xff] }
  0x90   :  { %669 = vmatpush.msrb.mxu0 %v2086_v45  ;;  %693 = vmatpush.msrb.mxu1 %v2074_v41  ;;  %v2507_v41 = vld [vmem:[#allocation3 + $0x98] sm:$0xff] }
  0x91   :  { %721 = vmatpush.msrb.mxu2 %v2089_v46  ;;  %808 = vmatpush.msrb.mxu3 %v2066_v39  ;;  %v2500_v39 = vld [vmem:[#allocation3 + $0x20] sm:$0xff] }
  0x92   :  { %555 = vmatmul.f32.vlgmr.msra.gmra.mxu2 %v2303_v62  ;;  %821 = vmatpush.msra.mxu0 %v2366_v2  ;;  %v2523_v46 = vld [vmem:[#allocation3 + $0x120] sm:$0xff] }
  0x93   :  { %936 = vmatpush.msra.mxu2 %v2368_v3  ;;  %694 = vmatpush.msrb.mxu1 %v2084_v44  ;;  %v2517_v44 = vld [vmem:[#allocation3 + $0x90] sm:$0xff] }
  0x94   :  { %809 = vmatpush.msrb.mxu3 %v2076_v42  ;;  %446 = vmatmul.f32.gmra.mxu0 %v323_v4  ;;  %v2511_v42 = vld [vmem:[#allocation3 + $0x128] sm:$0xff] }
  0x95   :  { %581 = vmatmul.f32.vlgmr.msra.gmra.mxu3 %v2380_v5  ;;  %822 = vmatpush.msra.mxu0 %v2384_v6 }
  0x96   :  { %937 = vmatpush.msra.mxu2 %v2386_v7  ;;  %695 = vmatpush.msrb.mxu1 %v2096_v47  ;;  %v2527_v47 = vld [vmem:[#allocation3 + $0x10] sm:$0xff] }
  0x97   :  { %810 = vmatpush.msrb.mxu3 %v2086_v45  ;;  %823 = vmatpush.msra.mxu0 %v2391_v8  ;;  %v464_v45 = vld [vmem:[%s3381_s1 + $0x118] sm:$0x3f] }
  0x98   :  { %847 = vmatpush.msra.mxu1 %v2393_v9  ;;  %938 = vmatpush.msra.mxu2 %v2397_v10 }
  0x99   :  { %962 = vmatpush.msra.mxu3 %v2366_v2  ;;  %532 = vmatmul.f32.gmra.mxu1 %v2264_v59  ;;  %v603_v59 = vld [vmem:[%s3381_s1 + $0x110] sm:$0x3f] }
  0x9a   :  { %824 = vmatpush.msra.mxu0 %v2401_v11  ;;  %848 = vmatpush.msra.mxu1 %v2405_v12 }
  0x9b   :  { %939 = vmatpush.msra.mxu2 %v2407_v13  ;;  %963 = vmatpush.msra.mxu3 %v2384_v6 }
  0x9c   :  { %825 = vmatpush.msra.mxu0 %v2411_v14  ;;  %849 = vmatpush.msra.mxu1 %v2415_v15 }
  0x9d   :  { %940 = vmatpush.msra.mxu2 %v2417_v16  ;;  %964 = vmatpush.msra.mxu3 %v2391_v8 }
  0x9e   :  { %826 = vmatpush.msra.mxu0 %v2421_v17  ;;  %850 = vmatpush.msra.mxu1 %v2425_v18 }
  0x9f   :  { %941 = vmatpush.msra.mxu2 %v2427_v19  ;;  %965 = vmatpush.msra.mxu3 %v2401_v11 }
  0xa0   :  { %827 = vmatpush.msra.mxu0 %v2431_v20  ;;  %851 = vmatpush.msra.mxu1 %v2435_v21 }
  0xa1   :  { %942 = vmatpush.msra.mxu2 %v2437_v22  ;;  %966 = vmatpush.msra.mxu3 %v2411_v14 }
  0xa2   :  { %535 = vmatmul.f32.gmra.mxu1 %v462_v23  ;;  %828 = vmatpush.msra.mxu0 %v2446_v24  ;;  %v2623_v23 = vld [vmem:[%s3381_s1 + $0xa8] sm:$0xff] }
  0xa3   :  { %852 = vmatpush.msra.mxu1 %v2448_v25  ;;  %943 = vmatpush.msra.mxu2 %v2452_v26 }
  0xa4   :  { %967 = vmatpush.msra.mxu3 %v2421_v17  ;;  %558 = vmatmul.f32.gmra.mxu2 %v2349_v1 }
  0xa5   :  { %829 = vmatpush.msra.mxu0 %v2455_v27  ;;  %853 = vmatpush.msra.mxu1 %v2459_v28 }
  0xa6   :  { %944 = vmatpush.msra.mxu2 %v2461_v29  ;;  %968 = vmatpush.msra.mxu3 %v2431_v20 }
  0xa7   :  { %830 = vmatpush.msra.mxu0 %v2465_v30  ;;  %584 = vmatmul.f32.gmra.mxu3 %v2472_v31 }
  0xa8   :  { %854 = vmatpush.msra.mxu1 %v2474_v32  ;;  %945 = vmatpush.msra.mxu2 %v2478_v33 }
  0xa9   :  { %969 = vmatpush.msra.mxu3 %v2446_v24  ;;  %670 = vmatmul.f32.vlgmr.msrb.gmra.mxu0 %v2303_v62  ;;  %v2590_v62 = vstv %s3380_s0 }
  0xaa   :  { %855 = vmatpush.msra.mxu1 %v2482_v34  ;;  %831 = vmatpush.msra.mxu0 %v2486_v35 }
  0xab   :  { %946 = vmatpush.msra.mxu2 %v2488_v36  ;;  %970 = vmatpush.msra.mxu3 %v2455_v27 }
  0xac   :  { %696 = vmatmul.f32.vlgmr.msrb.gmra.mxu1 %v2380_v5  ;;  %832 = vmatpush.msra.mxu0 %v2494_v37 }
  0xad   :  { %856 = vmatpush.msra.mxu1 %v2496_v38  ;;  %947 = vmatpush.msra.mxu2 %v2500_v39 }
  0xae   :  { %971 = vmatpush.msra.mxu3 %v2465_v30  ;;  %561 = vmatmul.f32.gmra.mxu2 %v463_v40 }
  0xaf   :  { %833 = vmatpush.msra.mxu0 %v2507_v41  ;;  %857 = vmatpush.msra.mxu1 %v2511_v42 }
  0xb0   :  { %948 = vmatpush.msra.mxu2 %v2513_v43  ;;  %972 = vmatpush.msra.mxu3 %v2486_v35 }
  0xb1   :  { %834 = vmatpush.msra.mxu0 %v2517_v44  ;;  %587 = vmatmul.f32.gmra.mxu3 %v464_v45 }
  0xb2   :  { %858 = vmatpush.msra.mxu1 %v2523_v46  ;;  %949 = vmatpush.msra.mxu2 %v2527_v47 }
  0xb3   :  { %973 = vmatpush.msra.mxu3 %v2494_v37  ;;  %673 = vmatmul.f32.gmra.mxu0 %v2349_v1  ;;  %v2610_v1 = vld [vmem:[%s3381_s1 + $0x38] sm:$0xff] }
  0xb4   :  { %859 = vmatpush.msra.mxu1 %v2531_v48  ;;  %835 = vmatpush.msra.mxu0 %v2534_v49  ;;  %v107_v55 = vpop.f32.mrf.mxu0 }
  0xb5   :  { %950 = vmatpush.msra.mxu2 %v2536_v50  ;;  %974 = vmatpush.msra.mxu3 %v2507_v41  ;;  %v108_v0 = vadd.f32 %v107_v55, %v2590_v62 }
  0xb6   :  { %699 = vmatmul.f32.gmra.mxu1 %v2472_v31  ;;  %836 = vmatpush.msra.mxu0 %v2542_v51 }
  0xb7   :  { %860 = vmatpush.msra.mxu1 %v2544_v52  ;;  %951 = vmatpush.msra.mxu2 %v2548_v53  ;;  %v133_v57 = vpop.f32.mrf.mxu1 }
  0xb8   :  { %975 = vmatpush.msra.mxu3 %v2517_v44  ;;  %722 = vmatmul.f32.vlgmr.msrb.gmra.mxu2 %v2555_v54  ;;  %v134_v4 = vadd.f32 %v133_v57, %v108_v0 }
  0xb9   :  { %988 = vmatpush.msrb.mxu0 %v2393_v9  ;;  %1103 = vmatpush.msrb.mxu2 %v2366_v2 }
  0xba   :  { %861 = vmatpush.msra.mxu1 %v2559_v56  ;;  %976 = vmatpush.msra.mxu3 %v2534_v49 }
  0xbb   :  { %989 = vmatpush.msrb.mxu0 %v2405_v12  ;;  %1104 = vmatpush.msrb.mxu2 %v2384_v6 }
  0xbc   :  { %862 = vmatpush.msra.mxu1 %v2565_v58  ;;  %977 = vmatpush.msra.mxu3 %v2542_v51 }
  0xbd   :  { %676 = vmatmul.f32.gmra.mxu0 %v603_v59  ;;  %811 = vmatmul.f32.vlgmr.msrb.gmra.mxu3 %v2380_v5 }
  0xbe   :  { %990 = vmatpush.msrb.mxu0 %v2415_v15  ;;  %1077 = vmatpush.msrb.mxu1 %v2368_v3  ;;  %v2584_v61 = vpop.f32.mrf.mxu0 }
  0xbf   :  { %1105 = vmatpush.msrb.mxu2 %v2391_v8  ;;  %1129 = vmatpush.msrb.mxu3 %v2393_v9 }
  0xc0   :  { %702 = vmatmul.f32.gmra.mxu1 %v604_v60  ;;  %991 = vmatpush.msrb.mxu0 %v2425_v18 }
  0xc1   :  { %1078 = vmatpush.msrb.mxu1 %v2386_v7  ;;  %v2594_v63 = vpop.f32.mrf.mxu1  ;;  %1106 = vmatpush.msrb.mxu2 %v2401_v11 }
  0xc2   :  { %1130 = vmatpush.msrb.mxu3 %v2405_v12  ;;  %992 = vmatpush.msrb.mxu0 %v2435_v21 }
  0xc3   :  { %1079 = vmatpush.msrb.mxu1 %v2397_v10  ;;  %1107 = vmatpush.msrb.mxu2 %v2411_v14 }
  0xc4   :  { %1131 = vmatpush.msrb.mxu3 %v2415_v15  ;;  %993 = vmatpush.msrb.mxu0 %v2448_v25 }
  0xc5   :  { %1080 = vmatpush.msrb.mxu1 %v2407_v13  ;;  %1108 = vmatpush.msrb.mxu2 %v2421_v17 }
  0xc6   :  { %1132 = vmatpush.msrb.mxu3 %v2425_v18  ;;  %837 = vmatmul.f32.vlgmr.msra.gmra.mxu0 %v2555_v54 }
  0xc7   :  { %1081 = vmatpush.msrb.mxu1 %v2417_v16  ;;  %994 = vmatpush.msrb.mxu0 %v2459_v28 }
  0xc8   :  { %1109 = vmatpush.msrb.mxu2 %v2431_v20  ;;  %v2616_v5 = vpop.f32.mrf.mxu0  ;;  %1133 = vmatpush.msrb.mxu3 %v2435_v21 }
  0xc9   :  { %863 = vmatmul.f32.vlgmr.msra.gmra.mxu1 %v2610_v1  ;;  %995 = vmatpush.msrb.mxu0 %v2474_v32  ;;  %v159_v40 = vpop.f32.mrf.mxu2 }
  0xca   :  { %1082 = vmatpush.msrb.mxu1 %v2427_v19  ;;  %1110 = vmatpush.msrb.mxu2 %v2446_v24  ;;  %v160_v55 = vadd.f32 %v159_v40, %v134_v4 }
  0xcb   :  { %1134 = vmatpush.msrb.mxu3 %v2448_v25  ;;  %v2629_v45 = vpop.f32.mrf.mxu1  ;;  %725 = vmatmul.f32.gmra.mxu2 %v2623_v23 }
  0xcc   :  { %996 = vmatpush.msrb.mxu0 %v2482_v34  ;;  %1083 = vmatpush.msrb.mxu1 %v2437_v22  ;;  %v168_v57 = vmax.f32 %v160_v55, 0.0  ;;  %v744_v55 = vld [vmem:[%s3381_s1 + $0x118] sm:$0x3f] }
  0xcd   :  { %1111 = vmatpush.msrb.mxu2 %v2455_v27  ;;  %1135 = vmatpush.msrb.mxu3 %v2459_v28 }
  0xce   :  { %997 = vmatpush.msrb.mxu0 %v2496_v38  ;;  %814 = vmatmul.f32.gmra.mxu3 %v2472_v31  ;;  %171 = vst [vmem:[%s3383_s3] sm:$0xff] %v168_v57  ;;  %v248_v59 = vpop.f32.mrf.mxu3  ;;  %v605_v31 = vld [vmem:[%s3381_s1 + $0x120] sm:$0x3f] }
  0xcf   :  { %1084 = vmatpush.msrb.mxu1 %v2452_v26  ;;  %1112 = vmatpush.msrb.mxu2 %v2465_v30  ;;  %v249_v60 = vadd.f32 %v248_v59, %v2590_v62  ;;  %v111_v59 = vadd.f32 %v2584_v61, %v2590_v62 }
  0xd0   :  { %1136 = vmatpush.msrb.mxu3 %v2474_v32  ;;  %998 = vmatpush.msrb.mxu0 %v2511_v42 }
  0xd1   :  { %1085 = vmatpush.msrb.mxu1 %v2461_v29  ;;  %1113 = vmatpush.msrb.mxu2 %v2486_v35  ;;  %v274_v0 = vpop.f32.mrf.mxu0  ;;  %v137_v61 = vadd.f32 %v2594_v63, %v111_v59  ;;  %v745_v63 = vld [vmem:[%s3381_s1 + $0x120] sm:$0x3f] }
  0xd2   :  { %1137 = vmatpush.msrb.mxu3 %v2482_v34  ;;  %999 = vmatpush.msrb.mxu0 %v2523_v46  ;;  %v275_v4 = vadd.f32 %v274_v0, %v249_v60 }
  0xd3   :  { %1086 = vmatpush.msrb.mxu1 %v2478_v33  ;;  %1114 = vmatpush.msrb.mxu2 %v2494_v37 }
  0xd4   :  { %1138 = vmatpush.msrb.mxu3 %v2496_v38  ;;  %v300_v40 = vpop.f32.mrf.mxu1  ;;  %728 = vmatmul.f32.gmra.mxu2 %v605_v31  ;;  %v2672_v31 = vld [vmem:[%s3381_s1 + $0xb0] sm:$0xff] }
  0xd5   :  { %1000 = vmatpush.msrb.mxu0 %v2531_v48  ;;  %v301_v57 = vadd.f32 %v300_v40, %v275_v4  ;;  %1087 = vmatpush.msrb.mxu1 %v2488_v36  ;;  %v114_v40 = vadd.f32 %v2616_v5, %v2590_v62  ;;  %v746_v5 = vld [vmem:[%s3381_s1 + $0x128] sm:$0x3f] }
  0xd6   :  { %1115 = vmatpush.msrb.mxu2 %v2507_v41  ;;  %1139 = vmatpush.msrb.mxu3 %v2511_v42 }
  0xd7   :  { %840 = vmatmul.f32.gmra.mxu0 %v2623_v23  ;;  %v309_v60 = vmax.f32 %v301_v57, 0.0  ;;  %817 = vmatmul.f32.gmra.mxu3 %v744_v55 }
  0xd8   :  { %1001 = vmatpush.msrb.mxu0 %v2544_v52  ;;  %1088 = vmatpush.msrb.mxu1 %v2500_v39 }
  0xd9   :  { %1116 = vmatpush.msrb.mxu2 %v2517_v44  ;;  %312 = vst [vmem:[%s3383_s3 + $0x8] sm:$0xff] %v309_v60  ;;  %1140 = vmatpush.msrb.mxu3 %v2523_v46  ;;  %v140_v60 = vadd.f32 %v2629_v45, %v114_v40  ;;  %v2722_v45 = vld [vmem:[%s3381_s1 + $0x40] sm:$0xff] }
  0xda   :  { %1002 = vmatpush.msrb.mxu0 %v2559_v56  ;;  %1089 = vmatpush.msrb.mxu1 %v2513_v43 }
  0xdb   :  { %1117 = vmatpush.msrb.mxu2 %v2534_v49  ;;  %1141 = vmatpush.msrb.mxu3 %v2531_v48 }
  0xdc   :  { %866 = vmatmul.f32.gmra.mxu1 %v2672_v31  ;;  %1003 = vmatpush.msrb.mxu0 %v2565_v58  ;;  %v162_v0 = vpop.f32.mrf.mxu2 }
  0xdd   :  { %1090 = vmatpush.msrb.mxu1 %v2527_v47  ;;  %1118 = vmatpush.msrb.mxu2 %v2542_v51  ;;  %v163_v4 = vadd.f32 %v162_v0, %v137_v61 }
  0xde   :  { %1142 = vmatpush.msrb.mxu3 %v2544_v52  ;;  %952 = vmatmul.f32.vlgmr.msra.gmra.mxu2 %v2555_v54 }
  0xdf   :  { %1218 = vmatpush.msra.mxu0 %v2368_v3  ;;  %1270 = vmatpush.msra.mxu2 %v2393_v9  ;;  %v169_v55 = vmax.f32 %v163_v4, 0.0  ;;  %v251_v57 = vpop.f32.mrf.mxu3 }
  0xe0   :  { %1091 = vmatpush.msrb.mxu1 %v2536_v50  ;;  %1143 = vmatpush.msrb.mxu3 %v2559_v56  ;;  %v252_v59 = vadd.f32 %v251_v57, %v2590_v62 }
  0xe1   :  { %843 = vmatmul.f32.gmra.mxu0 %v745_v63  ;;  %978 = vmatmul.f32.vlgmr.msra.gmra.mxu3 %v2610_v1  ;;  %172 = vst [vmem:[%s3383_s3 + $0x68] sm:$0xff] %v169_v55 }
  0xe2   :  { %1219 = vmatpush.msra.mxu0 %v2386_v7  ;;  %v277_v54 = vpop.f32.mrf.mxu0  ;;  %1271 = vmatpush.msra.mxu2 %v2405_v12 }
  0xe3   :  { %1092 = vmatpush.msrb.mxu1 %v2548_v53  ;;  %1144 = vmatpush.msrb.mxu3 %v2565_v58  ;;  %v278_v61 = vadd.f32 %v277_v54, %v252_v59 }
  0xe4   :  { %1220 = vmatpush.msra.mxu0 %v2397_v10  ;;  %1272 = vmatpush.msra.mxu2 %v2415_v15 }
  0xe5   :  { %1244 = vmatpush.msra.mxu1 %v2366_v2  ;;  %1359 = vmatpush.msra.mxu3 %v2368_v3  ;;  %v165_v0 = vpop.f32.mrf.mxu2 }
  0xe6   :  { %869 = vmatmul.f32.gmra.mxu1 %v746_v5  ;;  %1221 = vmatpush.msra.mxu0 %v2407_v13  ;;  %v166_v63 = vadd.f32 %v165_v0, %v140_v60  ;;  %v2894_v60 = vld [vmem:[#allocation3 + $0xb8] sm:$0xff]  ;;  %v2900_v0 = vld [vmem:[#allocation3 + $0x148] sm:$0xff] }
  0xe7   :  { %1245 = vmatpush.msra.mxu1 %v2384_v6  ;;  %v303_v4 = vpop.f32.mrf.mxu1  ;;  %1273 = vmatpush.msra.mxu2 %v2425_v18 }
  0xe8   :  { %1360 = vmatpush.msra.mxu3 %v2386_v7  ;;  %v304_v15 = vadd.f32 %v303_v4, %v278_v61  ;;  %1222 = vmatpush.msra.mxu0 %v2417_v16  ;;  %v170_v40 = vmax.f32 %v166_v63, 0.0  ;;  %v254_v55 = vpop.f32.mrf.mxu3  ;;  %v1028_v61 = vld [vmem:[%s3381_s1 + $0x138] sm:$0x3f] }
  0xe9   :  { %1246 = vmatpush.msra.mxu1 %v2391_v8  ;;  %1274 = vmatpush.msra.mxu2 %v2435_v21  ;;  %v255_v18 = vadd.f32 %v254_v55, %v2590_v62 }
  0xea   :  { %1361 = vmatpush.msra.mxu3 %v2397_v10  ;;  %v310_v57 = vmax.f32 %v304_v15, 0.0  ;;  %1004 = vmatmul.f32.vlgmr.msrb.gmra.mxu0 %v2722_v45  ;;  %173 = vst [vmem:[%s3383_s3 + $0xd0] sm:$0x3f] %v170_v40  ;;  %v2911_v40 = vld [vmem:[#allocation3 + $0x140] sm:$0xff] }
  0xeb   :  { %1247 = vmatpush.msra.mxu1 %v2401_v11  ;;  %1223 = vmatpush.msra.mxu0 %v2427_v19 }
  0xec   :  { %1275 = vmatpush.msra.mxu2 %v2448_v25  ;;  %313 = vst [vmem:[%s3383_s3 + $0x70] sm:$0xff] %v310_v57  ;;  %v280_v21 = vpop.f32.mrf.mxu0  ;;  %1362 = vmatpush.msra.mxu3 %v2407_v13  ;;  %v2914_v57 = vld [vmem:[#allocation3 + $0xb0] sm:$0xff] }
  0xed   :  { %955 = vmatmul.f32.gmra.mxu2 %v2623_v23  ;;  %1224 = vmatpush.msra.mxu0 %v2437_v22  ;;  %v281_v59 = vadd.f32 %v280_v21, %v255_v18  ;;  %v2916_v18 = vld [vmem:[#allocation3 + $0x30] sm:$0xff] }
  0xee   :  { %1248 = vmatpush.msra.mxu1 %v2411_v14  ;;  %1276 = vmatpush.msra.mxu2 %v2459_v28 }
  0xef   :  { %1363 = vmatpush.msra.mxu3 %v2417_v16  ;;  %1225 = vmatpush.msra.mxu0 %v2452_v26  ;;  %v389_v25 = vpop.f32.mrf.mxu2 }
  0xf0   :  { %981 = vmatmul.f32.gmra.mxu3 %v2672_v31  ;;  %1249 = vmatpush.msra.mxu1 %v2421_v17  ;;  %v390_v23 = vadd.f32 %v389_v25, %v2590_v62  ;;  %v885_v17 = vld [vmem:[%s3381_s1 + $0x120] sm:$0x3f]  ;;  %v2924_v25 = vld [vmem:[#allocation3 + $0x138] sm:$0xff] }
  0xf1   :  { %1277 = vmatpush.msra.mxu2 %v2474_v32  ;;  %v306_v54 = vpop.f32.mrf.mxu1  ;;  %1364 = vmatpush.msra.mxu3 %v2427_v19  ;;  %v2766_v19 = vld [vmem:[%s3381_s1 + $0xb8] sm:$0xff] }
  0xf2   :  { %1226 = vmatpush.msra.mxu0 %v2461_v29  ;;  %v307_v14 = vadd.f32 %v306_v54, %v281_v59  ;;  %1250 = vmatpush.msra.mxu1 %v2431_v20  ;;  %v415_v16 = vpop.f32.mrf.mxu3  ;;  %v2922_v59 = vld [vmem:[#allocation3 + $0xa8] sm:$0xff] }
  0xf3   :  { %1278 = vmatpush.msra.mxu2 %v2482_v34  ;;  %1365 = vmatpush.msra.mxu3 %v2437_v22  ;;  %v416_v32 = vadd.f32 %v415_v16, %v390_v23  ;;  %v886_v22 = vld [vmem:[%s3381_s1 + $0x128] sm:$0x3f]  ;;  %v2937_v16 = vld [vmem:[#allocation3 + $0xa0] sm:$0xff] }
  0xf4   :  { %1093 = vmatmul.f32.vlgmr.msrb.gmra.mxu1 %v2610_v1  ;;  %v311_v28 = vmax.f32 %v307_v14, 0.0  ;;  %1227 = vmatpush.msra.mxu0 %v2478_v33  ;;  %v2888_v1 = vld [vmem:[#allocation3 + $0x150] sm:$0xff]  ;;  %v2928_v23 = vld [vmem:[#allocation3 + $0x28] sm:$0xff] }
  0xf5   :  { %1251 = vmatpush.msra.mxu1 %v2446_v24  ;;  %1279 = vmatpush.msra.mxu2 %v2496_v38  ;;  %v441_v20 = vpop.f32.mrf.mxu0  ;;  %v2823_v38 = vld [vmem:[#allocation3 + $0xf8] sm:$0xff]  ;;  %v2935_v14 = vld [vmem:[%s3381_s1 + $0x50] sm:$0xff] }
  0xf6   :  { %1366 = vmatpush.msra.mxu3 %v2452_v26  ;;  %314 = vst [vmem:[%s3383_s3 + $0xd8] sm:$0x3f] %v311_v28  ;;  %958 = vmatmul.f32.gmra.mxu2 %v885_v17  ;;  %v442_v24 = vadd.f32 %v441_v20, %v416_v32  ;;  %v2944_v17 = vld [vmem:[#allocation3 + $0x130] sm:$0xff]  ;;  %v2946_v28 = vld [vmem:[#allocation3 + $0x20] sm:$0xff]  ;;  %v2954_v20 = vld [vmem:[#allocation3 + $0x128] sm:$0xff] }
  0xf7   :  { %1228 = vmatpush.msra.mxu0 %v2488_v36  ;;  %1252 = vmatpush.msra.mxu1 %v2455_v27  ;;  %v887_v27 = vld [vmem:[%s3381_s1 + $0x130] sm:$0x3f] }
  0xf8   :  { %1280 = vmatpush.msra.mxu2 %v2511_v42  ;;  %1367 = vmatpush.msra.mxu3 %v2461_v29  ;;  %v450_v26 = vmax.f32 %v442_v24, 0.0  ;;  %v2803_v29 = vld [vmem:[%s3381_s1 + $0x48] sm:$0xff]  ;;  %v2850_v42 = vld [vmem:[#allocation3 + $0x58] sm:$0xff]  ;;  %v1167_v24 = vld [vmem:[%s3381_s1 + $0x130] sm:$0x3f] }
  0xf9   :  { %1007 = vmatmul.f32.gmra.mxu0 %v2766_v19  ;;  %984 = vmatmul.f32.gmra.mxu3 %v886_v22  ;;  %v2958_v22 = vld [vmem:[#allocation3 + $0x18] sm:$0xff] }
  0xfa   :  { %1229 = vmatpush.msra.mxu0 %v2500_v39  ;;  %1253 = vmatpush.msra.mxu1 %v2465_v30  ;;  %453 = vst [vmem:[%s3383_s3 + $0x10] sm:$0xff] %v450_v26  ;;  %v2965_v26 = vld [vmem:[#allocation3 + $0x120] sm:$0xff] }
  0xfb   :  { %1281 = vmatpush.msra.mxu2 %v2523_v46  ;;  %1368 = vmatpush.msra.mxu3 %v2478_v33 }
  0xfc   :  { %1230 = vmatpush.msra.mxu0 %v2513_v43  ;;  %1254 = vmatpush.msra.mxu1 %v2486_v35  ;;  %v1026_v35 = vld [vmem:[%s3381_s1 + $0x128] sm:$0x3f] }
  0xfd   :  { %1282 = vmatpush.msra.mxu2 %v2531_v48  ;;  %1369 = vmatpush.msra.mxu3 %v2488_v36  ;;  %v2870_v48 = vld [vmem:[#allocation3 + $0xc8] sm:$0xff] }
  0xfe   :  { %1096 = vmatmul.f32.gmra.mxu1 %v2672_v31  ;;  %1231 = vmatpush.msra.mxu0 %v2527_v47  ;;  %v2890_v31 = vld [vmem:[#allocation3 + $0x40] sm:$0xff] }
  0xff   :  { %1255 = vmatpush.msra.mxu1 %v2494_v37  ;;  %1283 = vmatpush.msra.mxu2 %v2544_v52 }
 0x100   :  { %1370 = vmatpush.msra.mxu3 %v2500_v39  ;;  %1119 = vmatmul.f32.vlgmr.msrb.gmra.mxu2 %v2722_v45 }
 0x101   :  { %1232 = vmatpush.msra.mxu0 %v2536_v50  ;;  %1256 = vmatpush.msra.mxu1 %v2507_v41 }
 0x102   :  { %1284 = vmatpush.msra.mxu2 %v2559_v56  ;;  %v392_v30 = vpop.f32.mrf.mxu2  ;;  %1371 = vmatpush.msra.mxu3 %v2513_v43  ;;  %v2852_v43 = vld [vmem:[#allocation3 + $0xe8] sm:$0xff]  ;;  %v2883_v56 = vld [vmem:[#allocation3 + $0xc0] sm:$0xff] }
 0x103   :  { %1010 = vmatmul.f32.gmra.mxu0 %v887_v27  ;;  %v393_v33 = vadd.f32 %v392_v30, %v2590_v62  ;;  %1145 = vmatmul.f32.vlgmr.msrb.gmra.mxu3 %v2803_v29  ;;  %v2969_v27 = vld [vmem:[#allocation3 + $0x90] sm:$0xff] }
 0x104   :  { %1233 = vmatpush.msra.mxu0 %v2548_v53  ;;  %1257 = vmatpush.msra.mxu1 %v2517_v44  ;;  %v2856_v44 = vld [vmem:[#allocation3 + $0x160] sm:$0xff]  ;;  %v2971_v30 = vld [vmem:[#allocation3 + $0x10] sm:$0xff] }
 0x105   :  { %1285 = vmatpush.msra.mxu2 %v2565_v58  ;;  %v418_v34 = vpop.f32.mrf.mxu3  ;;  %1372 = vmatpush.msra.mxu3 %v2527_v47  ;;  %v2860_v47 = vld [vmem:[#allocation3 + $0xd0] sm:$0xff] }
 0x106   :  { %1385 = vmatpush.msrb.mxu0 %v2366_v2  ;;  %v419_v36 = vadd.f32 %v418_v34, %v393_v33  ;;  %1258 = vmatpush.msra.mxu1 %v2534_v49  ;;  %v2872_v49 = vld [vmem:[#allocation3 + $0x158] sm:$0xff] }
 0x107   :  { %1500 = vmatpush.msrb.mxu2 %v2368_v3  ;;  %1373 = vmatpush.msra.mxu3 %v2536_v50  ;;  %v444_v37 = vpop.f32.mrf.mxu0  ;;  %v1168_v33 = vld [vmem:[%s3381_s1 + $0x138] sm:$0x3f] }
 0x108   :  { %1386 = vmatpush.msrb.mxu0 %v2384_v6  ;;  %1099 = vmatmul.f32.gmra.mxu1 %v1026_v35  ;;  %v445_v2 = vadd.f32 %v444_v37, %v419_v36  ;;  %v2831_v6 = vld [vmem:[#allocation3 + $0xf0] sm:$0xff]  ;;  %v2982_v35 = vld [vmem:[#allocation3 + $0x118] sm:$0xff]  ;;  %v2986_v36 = vld [vmem:[#allocation3 + $0x8] sm:$0xff] }
 0x109   :  { %1501 = vmatpush.msrb.mxu2 %v2386_v7  ;;  %1259 = vmatpush.msra.mxu1 %v2542_v51  ;;  %v2833_v7 = vld [vmem:[#allocation3 + $0xd8] sm:$0xff]  ;;  %v2876_v51 = vld [vmem:[#allocation3 + $0x48] sm:$0xff] }
 0x10a   :  { %1374 = vmatpush.msra.mxu3 %v2548_v53  ;;  %1387 = vmatpush.msrb.mxu0 %v2391_v8  ;;  %v451_v3 = vmax.f32 %v445_v2, 0.0  ;;  %v2841_v8 = vld [vmem:[%s3381_s1 + $0xc0] sm:$0xff]  ;;  %v1027_v53 = vld [vmem:[%s3381_s1 + $0x130] sm:$0x3f]  ;;  %v2992_v2 = vld [vmem:[%s3381_s1 + $0xc8] sm:$0xff] }
 0x10b   :  { %1411 = vmatpush.msrb.mxu1 %v2393_v9  ;;  %v395_v39 = vpop.f32.mrf.mxu2  ;;  %1502 = vmatpush.msrb.mxu2 %v2397_v10  ;;  %v2843_v9 = vld [vmem:[#allocation3 + $0x168] sm:$0xff]  ;;  %v530_v10 = vpop.f32.mrf.mxu1 }
 0x10c   :  { %1526 = vmatpush.msrb.mxu3 %v2823_v38  ;;  %v396_v41 = vadd.f32 %v395_v39, %v2590_v62  ;;  %1122 = vmatmul.f32.gmra.mxu2 %v2766_v19  ;;  %454 = vst [vmem:[%s3383_s3 + $0x78] sm:$0xff] %v451_v3  ;;  %v531_v58 = vadd.f32 %v530_v10, %v2590_v62  ;;  %v2994_v3 = vld [vmem:[#allocation3 + $0x80] sm:$0xff] }
 0x10d   :  { %1388 = vmatpush.msrb.mxu0 %v2401_v11  ;;  %1412 = vmatpush.msrb.mxu1 %v2405_v12  ;;  %v2862_v12 = vld [vmem:[#allocation3 + $0x50] sm:$0xff]  ;;  %v3000_v10 = vld [vmem:[#allocation3] sm:$0xff] }
 0x10e   :  { %1503 = vmatpush.msrb.mxu2 %v2407_v13  ;;  %v421_v11 = vpop.f32.mrf.mxu3  ;;  %1527 = vmatpush.msrb.mxu3 %v2831_v6  ;;  %v2866_v13 = vld [vmem:[#allocation3 + $0xe0] sm:$0xff] }
 0x10f   :  { %1389 = vmatpush.msrb.mxu0 %v2833_v7  ;;  %v422_v46 = vadd.f32 %v421_v11, %v396_v41  ;;  %1148 = vmatmul.f32.gmra.mxu3 %v2841_v8  ;;  %v2998_v41 = vld [vmem:[#allocation3 + $0x110] sm:$0xff] }
 0x110   :  { %1413 = vmatpush.msrb.mxu1 %v2843_v9  ;;  %1504 = vmatpush.msrb.mxu2 %v2850_v42 }
 0x111   :  { %1528 = vmatpush.msrb.mxu3 %v2852_v43  ;;  %1234 = vmatmul.f32.vlgmr.msra.gmra.mxu0 %v2722_v45  ;;  %v447_v50 = vpop.f32.mrf.mxu0  ;;  %v2907_v45 = vld [vmem:[#allocation3 + $0x38] sm:$0xff] }
 0x112   :  { %1414 = vmatpush.msrb.mxu1 %v2856_v44  ;;  %1390 = vmatpush.msrb.mxu0 %v2860_v47  ;;  %v448_v52 = vadd.f32 %v447_v50, %v422_v46  ;;  %v3004_v50 = vld [vmem:[#allocation3 + $0x178] sm:$0xff] }
 0x113   :  { %1505 = vmatpush.msrb.mxu2 %v2862_v12  ;;  %1529 = vmatpush.msrb.mxu3 %v2866_v13 }
 0x114   :  { %1260 = vmatmul.f32.vlgmr.msra.gmra.mxu1 %v2803_v29  ;;  %1391 = vmatpush.msrb.mxu0 %v2870_v48  ;;  %v452_v5 = vmax.f32 %v448_v52, 0.0 }
 0x115   :  { %1415 = vmatpush.msrb.mxu1 %v2872_v49  ;;  %1506 = vmatpush.msrb.mxu2 %v2876_v51  ;;  %v556_v4 = vpop.f32.mrf.mxu2 }
 0x116   :  { %1530 = vmatpush.msrb.mxu3 %v2833_v7  ;;  %1125 = vmatmul.f32.gmra.mxu2 %v1027_v53  ;;  %455 = vst [vmem:[%s3383_s3 + $0xe0] sm:$0x3f] %v452_v5  ;;  %v533_v63 = vpop.f32.mrf.mxu1  ;;  %v557_v15 = vadd.f32 %v556_v4, %v531_v58  ;;  %v3010_v53 = vld [vmem:[#allocation3 + $0x108] sm:$0xff]  ;;  %v3016_v5 = vld [vmem:[#allocation3 + $0x170] sm:$0xff]  ;;  %v3025_v4 = vld [vmem:[%s3381_s1 + $0x58] sm:$0xff] }
 0x117   :  { %1392 = vmatpush.msrb.mxu0 %v2883_v56  ;;  %1416 = vmatpush.msrb.mxu1 %v2888_v1  ;;  %v534_v34 = vadd.f32 %v533_v63, %v2590_v62 }
 0x118   :  { %1507 = vmatpush.msrb.mxu2 %v2890_v31  ;;  %1531 = vmatpush.msrb.mxu3 %v2860_v47  ;;  %v582_v55 = vpop.f32.mrf.mxu3 }
 0x119   :  { %1393 = vmatpush.msrb.mxu0 %v2894_v60  ;;  %1151 = vmatmul.f32.gmra.mxu3 %v1028_v61  ;;  %v583_v21 = vadd.f32 %v582_v55, %v557_v15  ;;  %v3018_v61 = vld [vmem:[#allocation3 + $0x100] sm:$0xff] }
 0x11a   :  { %1417 = vmatpush.msrb.mxu1 %v2900_v0  ;;  %1508 = vmatpush.msrb.mxu2 %v2907_v45 }
 0x11b   :  { %1532 = vmatpush.msrb.mxu3 %v2870_v48  ;;  %1237 = vmatmul.f32.gmra.mxu0 %v2766_v19  ;;  %v591_v54 = vmax.f32 %v583_v21, 0.0  ;;  %v2950_v19 = vld [vmem:[#allocation3 + $0x98] sm:$0xff]  ;;  %v1169_v21 = vld [vmem:[%s3381_s1 + $0x140] sm:$0x3f] }
 0x11c   :  { %1418 = vmatpush.msrb.mxu1 %v2911_v40  ;;  %1394 = vmatpush.msrb.mxu0 %v2914_v57 }
 0x11d   :  { %1509 = vmatpush.msrb.mxu2 %v2916_v18  ;;  %1533 = vmatpush.msrb.mxu3 %v2883_v56  ;;  %594 = vst [vmem:[%s3383_s3 + $0x18] sm:$0xff] %v591_v54 }
 0x11e   :  { %1263 = vmatmul.f32.gmra.mxu1 %v2841_v8  ;;  %1395 = vmatpush.msrb.mxu0 %v2922_v59 }
 0x11f   :  { %1419 = vmatpush.msrb.mxu1 %v2924_v25  ;;  %v536_v32 = vpop.f32.mrf.mxu1  ;;  %1510 = vmatpush.msrb.mxu2 %v2928_v23 }
 0x120   :  { %1534 = vmatpush.msrb.mxu3 %v2894_v60  ;;  %1286 = vmatmul.f32.vlgmr.msra.gmra.mxu2 %v2935_v14  ;;  %v537_v15 = vadd.f32 %v536_v32, %v2590_v62  ;;  %v3046_v32 = vld [vmem:[#allocation3 + $0x70] sm:$0xff] }
 0x121   :  { %1396 = vmatpush.msrb.mxu0 %v2937_v16  ;;  %1420 = vmatpush.msrb.mxu1 %v2944_v17 }
 0x122   :  { %1511 = vmatpush.msrb.mxu2 %v2946_v28  ;;  %1535 = vmatpush.msrb.mxu3 %v2914_v57 }
 0x123   :  { %1397 = vmatpush.msrb.mxu0 %v2950_v19  ;;  %1375 = vmatmul.f32.vlgmr.msra.gmra.mxu3 %v2803_v29  ;;  %v2980_v29 = vld [vmem:[#allocation3 + $0x88] sm:$0xff] }
 0x124   :  { %1421 = vmatpush.msrb.mxu1 %v2954_v20  ;;  %1512 = vmatpush.msrb.mxu2 %v2958_v22 }
 0x125   :  { %1536 = vmatpush.msrb.mxu3 %v2922_v59  ;;  %1240 = vmatmul.f32.gmra.mxu0 %v1167_v24 }
 0x126   :  { %1422 = vmatpush.msrb.mxu1 %v2965_v26  ;;  %1398 = vmatpush.msrb.mxu0 %v2969_v27  ;;  %v671_v37 = vpop.f32.mrf.mxu0 }
 0x127   :  { %1513 = vmatpush.msrb.mxu2 %v2971_v30  ;;  %1537 = vmatpush.msrb.mxu3 %v2937_v16  ;;  %v559_v39 = vpop.f32.mrf.mxu2 }
 0x128   :  { %1266 = vmatmul.f32.gmra.mxu1 %v1168_v33  ;;  %1399 = vmatpush.msrb.mxu0 %v2980_v29  ;;  %v560_v11 = vadd.f32 %v559_v39, %v534_v34  ;;  %v1308_v34 = vld [vmem:[%s3381_s1 + $0x138] sm:$0x3f]  ;;  %v3056_v39 = vld [vmem:[#allocation3 + $0x68] sm:$0xff] }
 0x129   :  { %1423 = vmatpush.msrb.mxu1 %v2982_v35  ;;  %v697_v46 = vpop.f32.mrf.mxu1  ;;  %1514 = vmatpush.msrb.mxu2 %v2986_v36 }
 0x12a   :  { %1538 = vmatpush.msrb.mxu3 %v2950_v19  ;;  %1289 = vmatmul.f32.gmra.mxu2 %v2992_v2  ;;  %v585_v52 = vpop.f32.mrf.mxu3 }
 0x12b   :  { %1400 = vmatpush.msrb.mxu0 %v2994_v3  ;;  %1424 = vmatpush.msrb.mxu1 %v2998_v41  ;;  %v586_v58 = vadd.f32 %v585_v52, %v560_v11  ;;  %v672_v11 = vadd.f32 %v671_v37, %v2590_v62  ;;  %v3071_v37 = vld [vmem:[%s3381_s1 + $0xd0] sm:$0xff] }
 0x12c   :  { %1515 = vmatpush.msrb.mxu2 %v3000_v10  ;;  %1539 = vmatpush.msrb.mxu3 %v2969_v27 }
 0x12d   :  { %1552 = vmatpush.msra.mxu0 %v3004_v50  ;;  %1378 = vmatmul.f32.gmra.mxu3 %v2841_v8  ;;  %v592_v63 = vmax.f32 %v586_v58, 0.0  ;;  %v3030_v8 = vld [vmem:[#allocation3 + $0x78] sm:$0xff] }
 0x12e   :  { %1667 = vmatpush.msra.mxu2 %v2823_v38  ;;  %1425 = vmatpush.msrb.mxu1 %v3010_v53 }
 0x12f   :  { %1540 = vmatpush.msrb.mxu3 %v2980_v29  ;;  %1401 = vmatmul.f32.vlgmr.msrb.gmra.mxu0 %v2935_v14  ;;  %595 = vst [vmem:[%s3383_s3 + $0x80] sm:$0xff] %v592_v63  ;;  %v3063_v63 = vld [vmem:[#allocation3 + $0x60] sm:$0xff] }
 0x130   :  { %1668 = vmatpush.msra.mxu2 %v2831_v6  ;;  %1553 = vmatpush.msra.mxu0 %v3016_v5  ;;  %v3037_v55 = vpop.f32.mrf.mxu0 }
 0x131   :  { %1426 = vmatpush.msrb.mxu1 %v3018_v61  ;;  %1541 = vmatpush.msrb.mxu3 %v2994_v3  ;;  %v562_v54 = vpop.f32.mrf.mxu2 }
 0x132   :  { %1427 = vmatmul.f32.vlgmr.msrb.gmra.mxu1 %v3025_v4  ;;  %1554 = vmatpush.msra.mxu0 %v2843_v9  ;;  %v563_v24 = vadd.f32 %v562_v54, %v537_v15 }
 0x133   :  { %1641 = vmatpush.msra.mxu1 %v3030_v8  ;;  %v3048_v33 = vpop.f32.mrf.mxu1  ;;  %1669 = vmatpush.msra.mxu2 %v2852_v43 }
 0x134   :  { %1693 = vmatpush.msra.mxu3 %v3004_v50  ;;  %1292 = vmatmul.f32.gmra.mxu2 %v1169_v21  ;;  %v588_v52 = vpop.f32.mrf.mxu3  ;;  %v698_v21 = vadd.f32 %v697_v46, %v672_v11 }
 0x135   :  { %1555 = vmatpush.msra.mxu0 %v2856_v44  ;;  %1642 = vmatpush.msra.mxu1 %v3046_v32  ;;  %v589_v58 = vadd.f32 %v588_v52, %v563_v24  ;;  %v1309_v52 = vld [vmem:[%s3381_s1 + $0x140] sm:$0x3f] }
 0x136   :  { %1670 = vmatpush.msra.mxu2 %v2866_v13  ;;  %1694 = vmatpush.msra.mxu3 %v3016_v5 }
 0x137   :  { %1556 = vmatpush.msra.mxu0 %v2872_v49  ;;  %1381 = vmatmul.f32.gmra.mxu3 %v1308_v34  ;;  %v593_v15 = vmax.f32 %v589_v58, 0.0  ;;  %v1310_v58 = vld [vmem:[%s3381_s1 + $0x148] sm:$0x3f] }
 0x138   :  { %1643 = vmatpush.msra.mxu1 %v3056_v39  ;;  %1671 = vmatpush.msra.mxu2 %v2833_v7 }
 0x139   :  { %1695 = vmatpush.msra.mxu3 %v2843_v9  ;;  %1404 = vmatmul.f32.gmra.mxu0 %v2992_v2  ;;  %596 = vst [vmem:[%s3383_s3 + $0xe8] sm:$0x3f] %v593_v15 }
 0x13a   :  { %1644 = vmatpush.msra.mxu1 %v3063_v63  ;;  %v3078_v54 = vpop.f32.mrf.mxu0  ;;  %1557 = vmatpush.msra.mxu0 %v2888_v1 }
 0x13b   :  { %1672 = vmatpush.msra.mxu2 %v2860_v47  ;;  %1696 = vmatpush.msra.mxu3 %v2856_v44  ;;  %v723_v24 = vpop.f32.mrf.mxu2 }
 0x13c   :  { %1430 = vmatmul.f32.gmra.mxu1 %v3071_v37  ;;  %1558 = vmatpush.msra.mxu0 %v2900_v0  ;;  %v724_v34 = vadd.f32 %v723_v24, %v698_v21 }
 0x13d   :  { %1645 = vmatpush.msra.mxu1 %v2850_v42  ;;  %v3086_v46 = vpop.f32.mrf.mxu1  ;;  %1673 = vmatpush.msra.mxu2 %v2870_v48 }
 0x13e   :  { %1697 = vmatpush.msra.mxu3 %v2872_v49  ;;  %1516 = vmatmul.f32.vlgmr.msrb.gmra.mxu2 %v2935_v14  ;;  %v732_v11 = vmax.f32 %v724_v34, 0.0 }
 0x13f   :  { %1559 = vmatpush.msra.mxu0 %v2911_v40  ;;  %1646 = vmatpush.msra.mxu1 %v2862_v12 }
 0x140   :  { %1674 = vmatpush.msra.mxu2 %v2883_v56  ;;  %1698 = vmatpush.msra.mxu3 %v2888_v1  ;;  %735 = vst [vmem:[%s3383_s3 + $0x20] sm:$0xff] %v732_v11  ;;  %v812_v14 = vpop.f32.mrf.mxu3 }
 0x141   :  { %1560 = vmatpush.msra.mxu0 %v2924_v25  ;;  %1542 = vmatmul.f32.vlgmr.msrb.gmra.mxu3 %v3025_v4  ;;  %v813_v15 = vadd.f32 %v812_v14, %v2590_v62 }
 0x142   :  { %1647 = vmatpush.msra.mxu1 %v2876_v51  ;;  %1675 = vmatpush.msra.mxu2 %v2894_v60 }
 0x143   :  { %1699 = vmatpush.msra.mxu3 %v2900_v0  ;;  %1407 = vmatmul.f32.gmra.mxu0 %v1309_v52  ;;  %v838_v21 = vpop.f32.mrf.mxu0  ;;  %v675_v52 = vadd.f32 %v3037_v55, %v2590_v62  ;;  %v1449_v55 = vld [vmem:[%s3381_s1 + $0x140] sm:$0x3f] }
 0x144   :  { %1648 = vmatpush.msra.mxu1 %v2890_v31  ;;  %1561 = vmatpush.msra.mxu0 %v2944_v17  ;;  %v839_v24 = vadd.f32 %v838_v21, %v813_v15  ;;  %v3148_v15 = vld [vmem:[%s3381_s1 + $0x60] sm:$0xff]  ;;  %v678_v21 = vadd.f32 %v3078_v54, %v2590_v62 }
 0x145   :  { %1676 = vmatpush.msra.mxu2 %v2914_v57  ;;  %1700 = vmatpush.msra.mxu3 %v2911_v40 }
 0x146   :  { %1433 = vmatmul.f32.gmra.mxu1 %v1310_v58  ;;  %v864_v34 = vpop.f32.mrf.mxu1  ;;  %1562 = vmatpush.msra.mxu0 %v2954_v20 }
 0x147   :  { %1649 = vmatpush.msra.mxu1 %v2907_v45  ;;  %v865_v11 = vadd.f32 %v864_v34, %v839_v24  ;;  %1677 = vmatpush.msra.mxu2 %v2922_v59  ;;  %v1450_v24 = vld [vmem:[%s3381_s1 + $0x148] sm:$0x3f] }
 0x148   :  { %1701 = vmatpush.msra.mxu3 %v2924_v25  ;;  %1519 = vmatmul.f32.gmra.mxu2 %v2992_v2  ;;  %v701_v2 = vadd.f32 %v3048_v33, %v675_v52 }
 0x149   :  { %1563 = vmatpush.msra.mxu0 %v2965_v26  ;;  %v873_v14 = vmax.f32 %v865_v11, 0.0  ;;  %1650 = vmatpush.msra.mxu1 %v2916_v18 }
 0x14a   :  { %1678 = vmatpush.msra.mxu2 %v2937_v16  ;;  %1702 = vmatpush.msra.mxu3 %v2944_v17 }
 0x14b   :  { %1564 = vmatpush.msra.mxu0 %v2982_v35  ;;  %876 = vst [vmem:[%s3383_s3 + $0x28] sm:$0xff] %v873_v14  ;;  %1545 = vmatmul.f32.gmra.mxu3 %v3071_v37  ;;  %v704_v14 = vadd.f32 %v3086_v46, %v678_v21 }
 0x14c   :  { %1651 = vmatpush.msra.mxu1 %v2928_v23  ;;  %1679 = vmatpush.msra.mxu2 %v2950_v19 }
 0x14d   :  { %1703 = vmatpush.msra.mxu3 %v2954_v20  ;;  %1565 = vmatpush.msra.mxu0 %v2998_v41 }
 0x14e   :  { %1652 = vmatpush.msra.mxu1 %v2946_v28  ;;  %1680 = vmatpush.msra.mxu2 %v2969_v27  ;;  %v726_v58 = vpop.f32.mrf.mxu2 }
 0x14f   :  { %1704 = vmatpush.msra.mxu3 %v2965_v26  ;;  %1566 = vmatpush.msra.mxu0 %v3010_v53  ;;  %v727_v33 = vadd.f32 %v726_v58, %v701_v2  ;;  %v3179_v58 = vld [vmem:[%s3381_s1 + $0xd8] sm:$0xff] }
 0x150   :  { %1653 = vmatpush.msra.mxu1 %v2958_v22  ;;  %1681 = vmatpush.msra.mxu2 %v2980_v29 }
 0x151   :  { %1705 = vmatpush.msra.mxu3 %v2982_v35  ;;  %1522 = vmatmul.f32.gmra.mxu2 %v1449_v55  ;;  %v733_v34 = vmax.f32 %v727_v33, 0.0  ;;  %v815_v11 = vpop.f32.mrf.mxu3 }
 0x152   :  { %1567 = vmatpush.msra.mxu0 %v3018_v61  ;;  %1654 = vmatpush.msra.mxu1 %v2971_v30  ;;  %v816_v52 = vadd.f32 %v815_v11, %v2590_v62 }
 0x153   :  { %1682 = vmatpush.msra.mxu2 %v2994_v3  ;;  %1706 = vmatpush.msra.mxu3 %v2998_v41  ;;  %736 = vst [vmem:[%s3383_s3 + $0x88] sm:$0xff] %v733_v34 }
 0x154   :  { %1568 = vmatmul.f32.vlgmr.msra.gmra.mxu0 %v3148_v15  ;;  %v841_v54 = vpop.f32.mrf.mxu0  ;;  %1548 = vmatmul.f32.gmra.mxu3 %v1450_v24 }
 0x155   :  { %1834 = vmatpush.msrb.mxu2 %v3004_v50  ;;  %1655 = vmatpush.msra.mxu1 %v2986_v36  ;;  %v842_v2 = vadd.f32 %v841_v54, %v816_v52 }
 0x156   :  { %1707 = vmatpush.msra.mxu3 %v3010_v53  ;;  %1782 = vmatpush.msrb.mxu0 %v3030_v8 }
 0x157   :  { %1835 = vmatpush.msrb.mxu2 %v3016_v5  ;;  %1656 = vmatpush.msra.mxu1 %v3000_v10  ;;  %v729_v55 = vpop.f32.mrf.mxu2 }
 0x158   :  { %1708 = vmatpush.msra.mxu3 %v3018_v61  ;;  %1783 = vmatpush.msrb.mxu0 %v3046_v32  ;;  %v730_v50 = vadd.f32 %v729_v55, %v704_v14 }
 0x159   :  { %v867_v46 = vpop.f32.mrf.mxu1  ;;  %1808 = vmatpush.msrb.mxu1 %v2823_v38  ;;  %1836 = vmatpush.msrb.mxu2 %v2843_v9  ;;  %v3191_v9 = vld [vmem:[%s3381_s1 + $0x68] sm:$0xff] }
 0x15a   :  { %1871 = vmatpush.msrb.mxu3 %v3030_v8  ;;  %v868_v5 = vadd.f32 %v867_v46, %v842_v2  ;;  %1784 = vmatpush.msrb.mxu0 %v3056_v39  ;;  %v734_v33 = vmax.f32 %v730_v50, 0.0  ;;  %v818_v8 = vpop.f32.mrf.mxu3 }
 0x15b   :  { %1809 = vmatpush.msrb.mxu1 %v2831_v6  ;;  %1837 = vmatpush.msrb.mxu2 %v2856_v44  ;;  %v819_v38 = vadd.f32 %v818_v8, %v2590_v62 }
 0x15c   :  { %1872 = vmatpush.msrb.mxu3 %v3046_v32  ;;  %v874_v21 = vmax.f32 %v868_v5, 0.0  ;;  %1683 = vmatmul.f32.vlgmr.msra.gmra.mxu2 %v3148_v15  ;;  %737 = vst [vmem:[%s3383_s3 + $0xf0] sm:$0x3f] %v734_v33 }
 0x15d   :  { %1571 = vmatmul.f32.gmra.mxu0 %v3179_v58  ;;  %1810 = vmatpush.msrb.mxu1 %v2852_v43 }
 0x15e   :  { %1873 = vmatpush.msrb.mxu3 %v3056_v39  ;;  %1785 = vmatpush.msrb.mxu0 %v3063_v63  ;;  %877 = vst [vmem:[%s3383_s3 + $0x90] sm:$0xff] %v874_v21  ;;  %v844_v6 = vpop.f32.mrf.mxu0 }
 0x15f   :  { %1838 = vmatpush.msrb.mxu2 %v2872_v49  ;;  %1709 = vmatmul.f32.vlgmr.msra.gmra.mxu3 %v3191_v9  ;;  %v845_v44 = vadd.f32 %v844_v6, %v819_v38 }
 0x160   :  { %1786 = vmatpush.msrb.mxu0 %v2850_v42  ;;  %1874 = vmatpush.msrb.mxu3 %v3063_v63 }
 0x161   :  { %1811 = vmatpush.msrb.mxu1 %v2866_v13  ;;  %1839 = vmatpush.msrb.mxu2 %v2888_v1  ;;  %v953_v32 = vpop.f32.mrf.mxu2  ;;  %v1451_v13 = vld [vmem:[%s3381_s1 + $0x150] sm:$0x3f] }
 0x162   :  { %1657 = vmatmul.f32.vlgmr.msra.gmra.mxu1 %v3025_v4  ;;  %1875 = vmatpush.msrb.mxu3 %v2850_v42  ;;  %v954_v49 = vadd.f32 %v953_v32, %v2590_v62 }
 0x163   :  { %1787 = vmatpush.msrb.mxu0 %v2862_v12  ;;  %v870_v43 = vpop.f32.mrf.mxu1  ;;  %1812 = vmatpush.msrb.mxu1 %v2833_v7  ;;  %v3225_v7 = vld [vmem:[%s3381_s1 + $0xe0] sm:$0xff] }
 0x164   :  { %1840 = vmatpush.msrb.mxu2 %v2900_v0  ;;  %v871_v39 = vadd.f32 %v870_v43, %v845_v44  ;;  %1876 = vmatpush.msrb.mxu3 %v2862_v12  ;;  %v979_v1 = vpop.f32.mrf.mxu3  ;;  %v1590_v0 = vld [vmem:[%s3381_s1 + $0x148] sm:$0x3f] }
 0x165   :  { %1788 = vmatpush.msrb.mxu0 %v2876_v51  ;;  %1813 = vmatpush.msrb.mxu1 %v2860_v47  ;;  %v980_v4 = vadd.f32 %v979_v1, %v954_v49 }
 0x166   :  { %1841 = vmatpush.msrb.mxu2 %v2911_v40  ;;  %v875_v42 = vmax.f32 %v871_v39, 0.0  ;;  %1574 = vmatmul.f32.gmra.mxu0 %v1451_v13 }
 0x167   :  { %1686 = vmatmul.f32.gmra.mxu2 %v3179_v58  ;;  %1877 = vmatpush.msrb.mxu3 %v2876_v51  ;;  %v1005_v47 = vpop.f32.mrf.mxu0 }
 0x168   :  { %1789 = vmatpush.msrb.mxu0 %v2890_v31  ;;  %878 = vst [vmem:[%s3383_s3 + $0xf8] sm:$0x3f] %v875_v42  ;;  %1814 = vmatpush.msrb.mxu1 %v2870_v48  ;;  %v1006_v12 = vadd.f32 %v1005_v47, %v980_v4  ;;  %v1591_v48 = vld [vmem:[%s3381_s1 + $0x150] sm:$0x3f] }
 0x169   :  { %1842 = vmatpush.msrb.mxu2 %v2924_v25  ;;  %1712 = vmatmul.f32.gmra.mxu3 %v3225_v7  ;;  %v1727_v25 = vld [vmem:[%s3381_s1 + $0x70] sm:$0xff] }
 0x16a   :  { %1790 = vmatpush.msrb.mxu0 %v2907_v45  ;;  %1878 = vmatpush.msrb.mxu3 %v2890_v31  ;;  %v1014_v51 = vmax.f32 %v1006_v12, 0.0 }
 0x16b   :  { %1815 = vmatpush.msrb.mxu1 %v2883_v56  ;;  %1843 = vmatpush.msrb.mxu2 %v2944_v17  ;;  %v1592_v56 = vld [vmem:[%s3381_s1 + $0x158] sm:$0x3f] }
 0x16c   :  { %1660 = vmatmul.f32.gmra.mxu1 %v3071_v37  ;;  %1879 = vmatpush.msrb.mxu3 %v2907_v45  ;;  %1017 = vst [vmem:[%s3383_s3 + $0x30] sm:$0xff] %v1014_v51  ;;  %v1732_v37 = vld [vmem:[%s3381_s1 + $0x158] sm:$0x3f] }
 0x16d   :  { %1791 = vmatpush.msrb.mxu0 %v2916_v18  ;;  %1816 = vmatpush.msrb.mxu1 %v2894_v60 }
 0x16e   :  { %1844 = vmatpush.msrb.mxu2 %v2954_v20  ;;  %1880 = vmatpush.msrb.mxu3 %v2916_v18 }
 0x16f   :  { %1792 = vmatpush.msrb.mxu0 %v2928_v23  ;;  %1817 = vmatpush.msrb.mxu1 %v2914_v57 }
 0x170   :  { %1845 = vmatpush.msrb.mxu2 %v2965_v26  ;;  %v956_v31 = vpop.f32.mrf.mxu2  ;;  %1881 = vmatpush.msrb.mxu3 %v2928_v23 }
 0x171   :  { %1689 = vmatmul.f32.gmra.mxu2 %v1591_v48  ;;  %v957_v60 = vadd.f32 %v956_v31, %v2590_v62  ;;  %1793 = vmatpush.msrb.mxu0 %v2946_v28  ;;  %v1094_v45 = vpop.f32.mrf.mxu1 }
 0x172   :  { %1818 = vmatpush.msrb.mxu1 %v2922_v59  ;;  %1846 = vmatpush.msrb.mxu2 %v2982_v35 }
 0x173   :  { %1715 = vmatmul.f32.gmra.mxu3 %v1592_v56  ;;  %v982_v40 = vpop.f32.mrf.mxu3  ;;  %1794 = vmatpush.msrb.mxu0 %v2958_v22 }
 0x174   :  { %1882 = vmatpush.msrb.mxu3 %v2946_v28  ;;  %v983_v57 = vadd.f32 %v982_v40, %v957_v60  ;;  %1819 = vmatpush.msrb.mxu1 %v2937_v16 }
 0x175   :  { %1847 = vmatpush.msrb.mxu2 %v2998_v41  ;;  %1663 = vmatmul.f32.gmra.mxu1 %v1590_v0 }
 0x176   :  { %1883 = vmatpush.msrb.mxu3 %v2958_v22  ;;  %v1008_v18 = vpop.f32.mrf.mxu0  ;;  %1795 = vmatpush.msrb.mxu0 %v2971_v30  ;;  %v1730_v22 = vld [vmem:[%s3381_s1 + $0xe8] sm:$0xff] }
 0x177   :  { %1820 = vmatpush.msrb.mxu1 %v2950_v19  ;;  %v1009_v59 = vadd.f32 %v1008_v18, %v983_v57  ;;  %1848 = vmatpush.msrb.mxu2 %v3010_v53  ;;  %v1733_v53 = vld [vmem:[%s3381_s1 + $0x160] sm:$0x3f] }
 0x178   :  { %1884 = vmatpush.msrb.mxu3 %v2971_v30  ;;  %1796 = vmatpush.msrb.mxu0 %v2986_v36 }
 0x179   :  { %1821 = vmatpush.msrb.mxu1 %v2969_v27  ;;  %v1015_v23 = vmax.f32 %v1009_v59, 0.0  ;;  %1849 = vmatpush.msrb.mxu2 %v3018_v61  ;;  %v959_v16 = vpop.f32.mrf.mxu2  ;;  %v1095_v27 = vadd.f32 %v1094_v45, %v2590_v62 }
 0x17a   :  { %1885 = vmatpush.msrb.mxu3 %v2986_v36  ;;  %1850 = vmatmul.f32.vlgmr.msrb.gmra.mxu2 %v1727_v25  ;;  %v960_v17 = vadd.f32 %v959_v16, %v2590_v62 }
 0x17b   :  { %1797 = vmatpush.msrb.mxu0 %v3000_v10  ;;  %1018 = vst [vmem:[%s3383_s3 + $0x98] sm:$0xff] %v1015_v23  ;;  %1822 = vmatpush.msrb.mxu1 %v2980_v29  ;;  %v1097_v28 = vpop.f32.mrf.mxu1  ;;  %v1731_v29 = vld [vmem:[%s3381_s1 + $0x150] sm:$0x3f] }
 0x17c   :  { %1798 = vmatmul.f32.vlgmr.msrb.gmra.mxu0 %v3148_v15  ;;  %1886 = vmatpush.msrb.mxu3 %v3000_v10  ;;  %v985_v19 = vpop.f32.mrf.mxu3  ;;  %v1098_v15 = vadd.f32 %v1097_v28, %v2590_v62 }
 0x17d   :  { %1823 = vmatpush.msrb.mxu1 %v2994_v3  ;;  %1801 = vmatmul.f32.vlgmr.msrb.gmra.mxu3 %v3179_v58  ;;  %v986_v20 = vadd.f32 %v985_v19, %v960_v17 }
 0x17e   :  { %1824 = vmatmul.f32.vlgmr.msrb.gmra.mxu1 %v3191_v9 }
 0x180   :  { %v1011_v26 = vpop.f32.mrf.mxu0 }
 0x181   :  { %v1012_v30 = vadd.f32 %v1011_v26, %v986_v20 }
 0x182   :  { %1853 = vmatmul.f32.gmra.mxu2 %v1730_v22 }
 0x183   :  { %v1016_v35 = vmax.f32 %v1012_v30, 0.0  ;;  %v1120_v36 = vpop.f32.mrf.mxu2 }
 0x184   :  { %v1121_v3 = vadd.f32 %v1120_v36, %v1095_v27 }
 0x185   :  { %1019 = vst [vmem:[%s3383_s3 + $0x100] sm:$0x3f] %v1016_v35  ;;  %1804 = vmatmul.f32.gmra.mxu3 %v1731_v29  ;;  %v1100_v41 = vpop.f32.mrf.mxu1 }
 0x186   :  { %1827 = vmatmul.f32.gmra.mxu1 %v3225_v7  ;;  %v1146_v10 = vpop.f32.mrf.mxu3  ;;  %v1101_v55 = vadd.f32 %v1100_v41, %v2590_v62 }
 0x187   :  { %v1147_v61 = vadd.f32 %v1146_v10, %v1121_v3 }
 0x189   :  { %v1155_v63 = vmax.f32 %v1147_v61, 0.0 }
 0x18a   :  { %1856 = vmatmul.f32.gmra.mxu2 %v1733_v53 }
 0x18b   :  { %1158 = vst [vmem:[%s3383_s3 + $0x38] sm:$0xff] %v1155_v63 }
 0x18e   :  { %1830 = vmatmul.f32.gmra.mxu1 %v1732_v37  ;;  %v1235_v24 = vpop.f32.mrf.mxu0 }
 0x18f   :  { %v1123_v34 = vpop.f32.mrf.mxu2  ;;  %v1236_v33 = vadd.f32 %v1235_v24, %v2590_v62 }
 0x190   :  { %v1124_v11 = vadd.f32 %v1123_v34, %v1098_v15 }
 0x191   :  { %v1261_v52 = vpop.f32.mrf.mxu1 }
 0x192   :  { %v1149_v54 = vpop.f32.mrf.mxu3  ;;  %v1262_v9 = vadd.f32 %v1261_v52, %v1236_v33 }
 0x193   :  { %v1150_v14 = vadd.f32 %v1149_v54, %v1124_v11 }
 0x195   :  { %v1156_v2 = vmax.f32 %v1150_v14, 0.0 }
 0x197   :  { %1159 = vst [vmem:[%s3383_s3 + $0xa0] sm:$0xff] %v1156_v2 }
 0x198   :  { %v1238_v50 = vpop.f32.mrf.mxu0 }
 0x199   :  { %v1126_v46 = vpop.f32.mrf.mxu2  ;;  %v1239_v49 = vadd.f32 %v1238_v50, %v2590_v62 }
 0x19a   :  { %v1127_v58 = vadd.f32 %v1126_v46, %v1101_v55 }
 0x19b   :  { %v1264_v5 = vpop.f32.mrf.mxu1 }
 0x19c   :  { %v1152_v8 = vpop.f32.mrf.mxu3  ;;  %v1265_v42 = vadd.f32 %v1264_v5, %v1239_v49 }
 0x19d   :  { %v1153_v21 = vadd.f32 %v1152_v8, %v1127_v58 }
 0x19f   :  { %v1157_v38 = vmax.f32 %v1153_v21, 0.0 }
 0x1a1   :  { %1160 = vst [vmem:[%s3383_s3 + $0x108] sm:$0x3f] %v1157_v38 }
 0x1a2   :  { %v1241_v6 = vpop.f32.mrf.mxu0 }
 0x1a3   :  { %v1287_v44 = vpop.f32.mrf.mxu2  ;;  %v1242_v56 = vadd.f32 %v1241_v6, %v2590_v62 }
 0x1a4   :  { %v1288_v43 = vadd.f32 %v1287_v44, %v1262_v9 }
 0x1a5   :  { %v1267_v32 = vpop.f32.mrf.mxu1 }
 0x1a6   :  { %v1296_v13 = vmax.f32 %v1288_v43, 0.0  ;;  %v1376_v39 = vpop.f32.mrf.mxu3  ;;  %v1268_v40 = vadd.f32 %v1267_v32, %v1242_v56 }
 0x1a7   :  { %v1377_v1 = vadd.f32 %v1376_v39, %v2590_v62 }
 0x1a8   :  { %1299 = vst [vmem:[%s3383_s3 + $0x40] sm:$0xff] %v1296_v13 }
 0x1ac   :  { %v1402_v4 = vpop.f32.mrf.mxu0 }
 0x1ad   :  { %v1403_v7 = vadd.f32 %v1402_v4, %v1377_v1  ;;  %v1290_v47 = vpop.f32.mrf.mxu2 }
 0x1ae   :  { %v1291_v12 = vadd.f32 %v1290_v47, %v1265_v42 }
 0x1af   :  { %v1428_v51 = vpop.f32.mrf.mxu1 }
 0x1b0   :  { %v1429_v48 = vadd.f32 %v1428_v51, %v1403_v7  ;;  %v1297_v31 = vmax.f32 %v1291_v12, 0.0  ;;  %v1379_v60 = vpop.f32.mrf.mxu3 }
 0x1b1   :  { %v1380_v45 = vadd.f32 %v1379_v60, %v2590_v62 }
 0x1b2   :  { %v1437_v0 = vmax.f32 %v1429_v48, 0.0  ;;  %1300 = vst [vmem:[%s3383_s3 + $0xa8] sm:$0xff] %v1297_v31 }
 0x1b4   :  { %1440 = vst [vmem:[%s3383_s3 + $0x48] sm:$0xff] %v1437_v0 }
 0x1b6   :  { %v1405_v57 = vpop.f32.mrf.mxu0 }
 0x1b7   :  { %v1406_v18 = vadd.f32 %v1405_v57, %v1380_v45  ;;  %v1293_v59 = vpop.f32.mrf.mxu2 }
 0x1b8   :  { %v1294_v25 = vadd.f32 %v1293_v59, %v1268_v40 }
 0x1b9   :  { %v1431_v23 = vpop.f32.mrf.mxu1 }
 0x1ba   :  { %v1432_v16 = vadd.f32 %v1431_v23, %v1406_v18  ;;  %v1298_v17 = vmax.f32 %v1294_v25, 0.0  ;;  %v1382_v28 = vpop.f32.mrf.mxu3 }
 0x1bb   :  { %v1383_v20 = vadd.f32 %v1382_v28, %v2590_v62 }
 0x1bc   :  { %v1438_v19 = vmax.f32 %v1432_v16, 0.0  ;;  %1301 = vst [vmem:[%s3383_s3 + $0x110] sm:$0x3f] %v1298_v17 }
 0x1be   :  { %1441 = vst [vmem:[%s3383_s3 + $0xb0] sm:$0xff] %v1438_v19 }
 0x1c0   :  { %v1408_v22 = vpop.f32.mrf.mxu0 }
 0x1c1   :  { %v1409_v26 = vadd.f32 %v1408_v22, %v1383_v20  ;;  %v1517_v27 = vpop.f32.mrf.mxu2 }
 0x1c2   :  { %v1518_v3 = vadd.f32 %v1517_v27, %v2590_v62 }
 0x1c3   :  { %v1434_v30 = vpop.f32.mrf.mxu1 }
 0x1c4   :  { %v1435_v29 = vadd.f32 %v1434_v30, %v1409_v26  ;;  %v1543_v35 = vpop.f32.mrf.mxu3 }
 0x1c5   :  { %v1544_v53 = vadd.f32 %v1543_v35, %v1518_v3 }
 0x1c6   :  { %v1439_v36 = vmax.f32 %v1435_v29, 0.0 }
 0x1c8   :  { %1442 = vst [vmem:[%s3383_s3 + $0x118] sm:$0x3f] %v1439_v36 }
 0x1cb   :  { %v1520_v41 = vpop.f32.mrf.mxu2 }
 0x1cc   :  { %v1521_v15 = vadd.f32 %v1520_v41, %v2590_v62 }
 0x1ce   :  { %v1546_v10 = vpop.f32.mrf.mxu3 }
 0x1cf   :  { %v1547_v34 = vadd.f32 %v1546_v10, %v1521_v15 }
 0x1d1   :  { %v1569_v61 = vpop.f32.mrf.mxu0 }
 0x1d2   :  { %v1570_v63 = vadd.f32 %v1569_v61, %v1544_v53 }
 0x1d4   :  { %v1578_v37 = vmax.f32 %v1570_v63, 0.0  ;;  %v1523_v24 = vpop.f32.mrf.mxu2 }
 0x1d5   :  { %v1524_v2 = vadd.f32 %v1523_v24, %v2590_v62 }
 0x1d6   :  { %1581 = vst [vmem:[%s3383_s3 + $0x50] sm:$0xff] %v1578_v37 }
 0x1d7   :  { %v1549_v11 = vpop.f32.mrf.mxu3 }
 0x1d8   :  { %v1550_v5 = vadd.f32 %v1549_v11, %v1524_v2 }
 0x1da   :  { %v1572_v52 = vpop.f32.mrf.mxu0 }
 0x1db   :  { %v1573_v54 = vadd.f32 %v1572_v52, %v1547_v34 }
 0x1dd   :  { %v1579_v14 = vmax.f32 %v1573_v54, 0.0 }
 0x1df   :  { %1582 = vst [vmem:[%s3383_s3 + $0xb8] sm:$0xff] %v1579_v14  ;;  %v1658_v55 = vpop.f32.mrf.mxu1  ;;  %v1684_v46 = vpop.f32.mrf.mxu2 }
 0x1e0   :  { %v1659_v50 = vadd.f32 %v1658_v55, %v2590_v62 }
 0x1e2   :  { %v1685_v58 = vadd.f32 %v1684_v46, %v1659_v50  ;;  %v1710_v33 = vpop.f32.mrf.mxu3 }
 0x1e3   :  { %v1575_v21 = vpop.f32.mrf.mxu0 }
 0x1e4   :  { %v1711_v8 = vadd.f32 %v1710_v33, %v1685_v58  ;;  %v1576_v38 = vadd.f32 %v1575_v21, %v1550_v5 }
 0x1e6   :  { %v1719_v9 = vmax.f32 %v1711_v8, 0.0  ;;  %v1580_v6 = vmax.f32 %v1576_v38, 0.0 }
 0x1e8   :  { %1722 = vst [vmem:[%s3383_s3 + $0x58] sm:$0xff] %v1719_v9 }
 0x1e9   :  { %1583 = vst [vmem:[%s3383_s3 + $0x120] sm:$0x3f] %v1580_v6  ;;  %v1661_v44 = vpop.f32.mrf.mxu1 }
 0x1ea   :  { %v1662_v32 = vadd.f32 %v1661_v44, %v2590_v62  ;;  %v1687_v43 = vpop.f32.mrf.mxu2 }
 0x1ec   :  { %v1688_v49 = vadd.f32 %v1687_v43, %v1662_v32  ;;  %v1713_v13 = vpop.f32.mrf.mxu3 }
 0x1ee   :  { %v1714_v39 = vadd.f32 %v1713_v13, %v1688_v49 }
 0x1f0   :  { %v1720_v1 = vmax.f32 %v1714_v39, 0.0 }
 0x1f2   :  { %1723 = vst [vmem:[%s3383_s3 + $0xc0] sm:$0xff] %v1720_v1  ;;  %v1664_v42 = vpop.f32.mrf.mxu1 }
 0x1f3   :  { %v1665_v4 = vadd.f32 %v1664_v42, %v2590_v62 }
 0x1f4   :  { %v1690_v7 = vpop.f32.mrf.mxu2 }
 0x1f5   :  { %v1691_v47 = vadd.f32 %v1690_v7, %v1665_v4 }
 0x1f6   :  { %v1716_v12 = vpop.f32.mrf.mxu3 }
 0x1f7   :  { %v1717_v51 = vadd.f32 %v1716_v12, %v1691_v47 }
 0x1f9   :  { %v1799_v48 = vpop.f32.mrf.mxu0  ;;  %v1721_v56 = vmax.f32 %v1717_v51, 0.0 }
 0x1fa   :  { %v1800_v31 = vadd.f32 %v1799_v48, %v2590_v62 }
 0x1fb   :  { %1724 = vst [vmem:[%s3383_s3 + $0x128] sm:$0x3f] %v1721_v56  ;;  %v1825_v60 = vpop.f32.mrf.mxu1 }
 0x1fc   :  { %v1826_v0 = vadd.f32 %v1825_v60, %v1800_v31 }
 0x1fd   :  { %v1851_v45 = vpop.f32.mrf.mxu2 }
 0x1fe   :  { %v1852_v40 = vadd.f32 %v1851_v45, %v1826_v0 }
 0x200   :  { %v1860_v57 = vmax.f32 %v1852_v40, 0.0  ;;  %v1802_v18 = vpop.f32.mrf.mxu3 }
 0x201   :  { %v1803_v59 = vadd.f32 %v1802_v18, %v2590_v62 }
 0x202   :  { %1863 = vst [vmem:[%s3383_s3 + $0x60] sm:$0xff] %v1860_v57 }
 0x203   :  { %v1828_v25 = vpop.f32.mrf.mxu1 }
 0x204   :  { %v1829_v23 = vadd.f32 %v1828_v25, %v1803_v59 }
 0x205   :  { %v1854_v16 = vpop.f32.mrf.mxu2 }
 0x206   :  { %v1855_v17 = vadd.f32 %v1854_v16, %v1829_v23 }
 0x208   :  { %v1861_v28 = vmax.f32 %v1855_v17, 0.0  ;;  %v1805_v19 = vpop.f32.mrf.mxu3 }
 0x209   :  { %v1806_v20 = vadd.f32 %v1805_v19, %v2590_v62 }
 0x20a   :  { %1864 = vst [vmem:[%s3383_s3 + $0xc8] sm:$0xff] %v1861_v28 }
 0x20b   :  { %v1831_v22 = vpop.f32.mrf.mxu1 }
 0x20c   :  { %v1832_v26 = vadd.f32 %v1831_v22, %v1806_v20 }
 0x20d   :  { %v1857_v27 = vpop.f32.mrf.mxu2 }
 0x20e   :  { %v1858_v30 = vadd.f32 %v1857_v27, %v1832_v26 }
 0x210   :  { %v1862_v29 = vmax.f32 %v1858_v30, 0.0 }
 0x212   :  { %1865 = vst [vmem:[%s3383_s3 + $0x130] sm:$0x3f] %v1862_v29 }
 0x213   :  { %1870 = vsyncpa [#allocation4], 1 }

// kernel: identity_forward.3
= control target key start
LH: loop header
LB: loop body
LE: loop exit
PB: predicated region body
PF: predicated region fallthrough
CT: control target
= control target key end

     0   :  { %12 = vsyncpa [#allocation4], 0  ;;  %s18580_s0 = inlined_call_operand.vmem [shape: f32[8,18432], index: 0, kind: input, shape index: {}]   ;;  %s18581_s1 = inlined_call_operand.hbm [shape: bf16[18432,512], index: 1, kind: input, shape index: {}]   ;;  %s18582_s2 = inlined_call_operand.hbm [shape: f32[1,512], index: 2, kind: input, shape index: {}]   ;;  %s18583_s3 = inlined_call_operand.hbm [shape: f32[512,128], index: 3, kind: input, shape index: {}]   ;;  %s18584_s4 = inlined_call_operand.hbm [shape: f32[1,128], index: 4, kind: input, shape index: {}]   ;;  %s18585_s5 = inlined_call_operand.hbm [shape: f32[128,128], index: 5, kind: input, shape index: {}]   ;;  %s18586_s6 = inlined_call_operand.hbm [shape: f32[1,128], index: 6, kind: input, shape index: {}]   ;;  %s18587_s7 = inlined_call_operand.vmem [shape: f32[8,128], index: 7, kind: output, shape index: {}]  }
   0x1   :  { %14 = vsyncpa [#allocation4 + $0x1], 0 }
   0x2   :  { %15 = vsyncpa [#allocation6], 0 }
   0x3   :  { %16 = vsyncpa [#allocation9], 0 }
   0x4   :  { %17 = vsyncpa [#allocation12], 0  ;;  %s15739_s24 = smov 0   ;;  %s15741_s25 = smov 0  }
   0x5   :  { %s15743_s26 = smov 0   ;;  %s15745_s27 = smov 0  }
   0x6 LB: > { %s218_s30 = sshll.u32 %s18582_s2, 4  ;;  %s15763_s8 = sadd.s32 4294967295, %s15687_s27   ;;  %s15687_s27 = sphi %s15745_s27, %s18622_s27   ;;  %s15683_s26 = sphi %s15743_s26, %s18621_s26   ;;  %s15679_s25 = sphi %s15741_s25, %s18620_s25   ;;  %s15675_s24 = sphi %s15739_s24, %s18619_s24   ;;  %s219_s30 = int_to_ptr.hbm [resolvable:$true] %s218_s30 }
   0x7   : > { %p9579_p0 = scmp.ge.s32.totalorder %s15687_s27, 1  ;;  %p70_p1 = scmp.eq.s32.totalorder %s15763_s8, 0 }
   0x8   : > { %p206_p2 = scmp.lt.s32.totalorder %s15687_s27, 5  ;;  %p9580_p3 = scmp.ne.s32.totalorder %s15763_s8, 0 }
   0x9   : > { %s15689_s10 = smov [#allocation5]   ;;  %s244_s14 = sshll.u32 %s18584_s4, 4  ;;  %s245_s14 = int_to_ptr.hbm [resolvable:$true] %s244_s14 }
   0xa   : > { %p15769_p4 = pnand %p9579_p0, %p206_p2  ;;  %s220_s11 = sshll.u32 %s15689_s10, 4  ;;  %s221_s11 = int_to_ptr.vmem [resolvable:$true] %s220_s11 }
   0xb   : > { %s15690_s16 = smov [#allocation8]   ;;  %s229_s20 = sshll.u32 %s18583_s3, 4  ;;  %s230_s20 = int_to_ptr.hbm [resolvable:$true] %s229_s20 }
   0xc   : > { %p15386_p5 = pneg %p15769_p4  ;;  %s246_s17 = sshll.u32 %s15690_s16, 4  ;;  %s247_s17 = int_to_ptr.vmem [resolvable:$true] %s246_s17 }
   0xd   : > { %s15691_s21 = smov [#allocation7]   ;;  %s255_s29 = sshll.u32 %s18585_s5, 4  ;;  %s256_s29 = int_to_ptr.hbm [resolvable:$true] %s255_s29 }
   0xe   : > { %p15780_p6 = pnand %p15386_p5, %p70_p1  ;;  %s231_s22 = sshll.u32 %s15691_s21, 4  ;;  %s232_s22 = int_to_ptr.vmem [resolvable:$true] %s231_s22 }
   0xf   : > { %s15692_s10 = smov 128   ;;  %s15693_s12 = smov 8  }
  0x10   : > { %15389 = dma.hbm_to_vmem [thread:$0]  (!%p15780_p6), %s219_s30, 64, %s221_s11, [#allocation6]  }
  0x11   : > { %15395 = dma.hbm_to_vmem [thread:$0]  (!%p15780_p6), %s245_s14, 16, %s247_s17, [#allocation9]  }
  0x12   : > { %15392 = dma.hbm_to_vmem [thread:$0]  (!%p15780_p6), %s230_s20, 8192, %s232_s22, [#allocation6], %s15692_s10, %s15692_s10, %s15693_s12  }
  0x13   : > { %s15694_s30 = smov [#allocation10]   ;;  %s270_s16 = sshll.u32 %s18586_s6, 4  ;;  %s271_s16 = int_to_ptr.hbm [resolvable:$true] %s270_s16 }
  0x14   : > { %s257_s11 = sshll.u32 %s15694_s30, 4  ;;  %s15695_s17 = smov [#allocation11]   ;;  %s258_s11 = int_to_ptr.vmem [resolvable:$true] %s257_s11 }
  0x15   : > { %15398 = dma.hbm_to_vmem [thread:$0]  (!%p15780_p6), %s256_s29, 2048, %s258_s11, [#allocation9], %s15692_s10, %s15692_s10, %s15693_s12  }
  0x16   : > { %s272_s18 = sshll.u32 %s15695_s17, 4  ;;  %s15804_s19 = sadd.s32 1, %s15687_s27   ;;  %s273_s18 = int_to_ptr.vmem [resolvable:$true] %s272_s18 }
  0x17   : > { %15401 = dma.hbm_to_vmem [thread:$0]  (!%p15780_p6), %s271_s16, 16, %s273_s18, [#allocation12]  }
  0x18   : > { %s53_s20 = ssub.s32 %s15687_s27, %s15804_s19  ;;  %s56_s21 = sadd.s32 1, %s15683_s26 }
  0x19   : > { %p54_p7 = scmp.eq.s32.totalorder %s53_s20, 0  ;;  %p63_p8 = scmp.ne.s32.totalorder %s15683_s26, %s15679_s25 }
  0x1a   : > { %p64_p9 = scmp.eq.s32.totalorder %s15687_s27, 0  ;;  %p69_p10 = scmp.ne.s32.totalorder %s15679_s25, %s15675_s24 }
  0x1b   : > { %s15815_s22 = scalar_select %p54_p7, %s15683_s26, %s56_s21  }
  0x1c   : > { %p65_p11 = por %p64_p9, %p63_p8  ;;  %p15819_p12 = por %p70_p1, %p69_p10 }
  0x1d   : > { %p15411_p13 = scmp.lt.s32.totalorder %s15687_s27, 4  ;;  %s292_s15 = sand.u32 1, %s15683_s26  }
  0x1e   : > { %s15362_s28 = smul.u32 9216, %s292_s15  ;;  %s293_s16 = scalar_lea.sflag [#allocation4], %s292_s15 }
  0x1f   : > { %s15361_s29 = smul.u32 9216, %s15687_s27  ;;  %p15826_p0 = pnand %p15411_p13, %p65_p11 }
  0x20   : > { %s296_s11 = scalar_lea.vmem [#allocation3], %s15362_s28  ;;  %s15618_s21 = scalar_lea.hbm %s18581_s1, 36864 }
  0x21   : > { %s302_s24 = scalar_lea.hbm %s18581_s1, %s15361_s29  ;;  %s305_s13 = sshll.u32 %s296_s11, 4  ;;  %s306_s13 = int_to_ptr.vmem [resolvable:$true] %s305_s13 }
  0x22   : > { %s303_s14 = sshll.u32 %s302_s24, 4  ;;  %p15615_p5 = pneg %p15826_p0  ;;  %s304_s14 = int_to_ptr.hbm [resolvable:$true] %s303_s14 }
  0x23   : > { %s15611_s17 = sshra.s32 %s304_s14, 4  ;;  %s15612_s17 = int_to_ptr.hbm [resolvable:$true] %s15611_s17 }
  0x24   : > { %s15613_s18 = scalar_lea.hbm %s15612_s17, 9216  ;;  %p15619_p8 = scmp.lt.s32.totalorder %s15612_s17, %s18581_s1 }
  0x25   : > { %p15614_p2 = scmp.ne.s32.totalorder %s15612_s17, %s15613_s18  ;;  %p15620_p9 = scmp.lt.s32.totalorder %s15618_s21, %s15613_s18 }
  0x27   : > { %p15616_p6 = pnand %p15615_p5, %p15614_p2  ;;  %p15621_p10 = por %p15620_p9, %p15619_p8 }
  0x29   : > { %p15617_p7 = pneg %p15616_p6 }
  0x2b   : > { %p15622_p11 = pnand %p15621_p10, %p15617_p7 }
  0x2d   : > { %15625 = shalt.err (!%p15622_p11)
}
  0x2e   : > { %s15696_s15 = smov 256   ;;  %s15697_s28 = smov 16  }
  0x2f   : > { %15405 = dma.hbm_to_vmem [thread:$0]  (!%p15826_p0), %s304_s14, 147456, %s306_s13, %s293_s16, %s15696_s15, %s15696_s15, %s15697_s28  }
  0x30   : > { %317 = sbr.rel (%p15769_p4) target bundleno = 1681 (0x691), region = 48 }
  0x35   : > { %s319_s30 = sand.u32 1, %s15679_s25  }
  0x36   : > { %s15363_s24 = smul.u32 9216, %s319_s30  ;;  %s320_s11 = scalar_lea.sflag [#allocation4], %s319_s30 }
  0x38   : > { %s15846_s27 = scalar_lea.vmem [#allocation3], %s15363_s24 }
  0x39   : > { %15658 = dma.done.wait (%p15819_p12), %s320_s11, 147456  }
  0x3a   : > { %15660 = vsyncadd (%p15819_p12), %s320_s11, 4294819840 }
  0x3b   : > { %15662 = dma.done.wait (%p70_p1), [#allocation6], 8256  }
  0x3c   : > { %15664 = vsyncadd (%p70_p1), [#allocation6], 4294959040 }
  0x3d   : > { %15666 = dma.done.wait (%p70_p1), [#allocation9], 2064  }
  0x3e   : > { %15668 = vsyncadd (%p70_p1), [#allocation9], 4294965232 }
  0x3f   : > { %15670 = dma.done.wait (%p70_p1), [#allocation12], 16  }
  0x40   : > { %15672 = vsyncadd (%p70_p1), [#allocation12], 4294967280  ;;  %s380_s9 = smul.u32 36, %s15763_s8 }
  0x42   : > { %p381_p4 = scmp.lt.s32.totalorder %s380_s9, 143  ;;  %390 = sbr.rel (%p9580_p3) target bundleno = 76 (0x4c), region = 76 }
  0x44   : > { %s18624_s9 = smov (!%p381_p4, %s380_s9), 143 }
  0x45   : > { %s9594_s23 = sshll.u32 %s18624_s9, 3 }
  0x46   : > { %s15868_s14 = scalar_lea.vmem %s18580_s0, %s9594_s23 }
  0x47   : > { %v15698_v0 = vmov 0.0  }
  0x48   : > { %391 = vst [vmem:[#allocation2 + $0x10] sm:$0xff] %v15698_v0 }
  0x49   : > { %392 = vst [vmem:[#allocation2] sm:$0xff] %v15698_v0 }
  0x4a   : > { %393 = vst [vmem:[#allocation2 + $0x18] sm:$0xff] %v15698_v0 }
  0x4b   : > { %394 = vst [vmem:[#allocation2 + $0x8] sm:$0xff] %v15698_v0 }
  0x4c PF: > { %v9710_v1 = vld [vmem:[%s15846_s27 + $0xe0] sm:$0xf]  ;;  %v14239_v2 = vld [vmem:[%s15846_s27 + $0xec] sm:$0xf0]  ;;  %p14204_p1 = scmp.ne.s32.totalorder %s15763_s8, 3 }
  0x4d   : > { %v9838_v3 = vld [vmem:[%s15846_s27 + $0x1e0] sm:$0xf]  ;;  %v9711_v4 = vor.u32 %v14239_v2, %v9710_v1  ;;  %v14271_v5 = vld [vmem:[%s15846_s27 + $0x1ec] sm:$0xf0] }
  0x4e   : > { %v9966_v6 = vld [vmem:[%s15846_s27 + $0x2e0] sm:$0xf]  ;;  %v14303_v7 = vld [vmem:[%s15846_s27 + $0x2ec] sm:$0xf0]  ;;  %v9839_v8 = vor.u32 %v14271_v5, %v9838_v3 }
  0x4f   : > { %v9967_v9 = vor.u32 %v14303_v7, %v9966_v6  ;;  %v10094_v10 = vld [vmem:[%s15846_s27 + $0x3e0] sm:$0xf]  ;;  %v14335_v11 = vld [vmem:[%s15846_s27 + $0x3ec] sm:$0xf0]  ;;  %7383 = vmatpush.bf16.msra.mxu0 %v9711_v4 }
  0x50   : > { %v9694_v12 = vld [vmem:[%s15846_s27 + $0xc0] sm:$0xf]  ;;  %v10095_v13 = vor.u32 %v14335_v11, %v10094_v10  ;;  %v14235_v14 = vld [vmem:[%s15846_s27 + $0xcc] sm:$0xf0]  ;;  %7396 = vmatpush.bf16.msra.mxu1 %v9839_v8 }
  0x51   : > { %v9822_v15 = vld [vmem:[%s15846_s27 + $0x1c0] sm:$0xf]  ;;  %v14267_v16 = vld [vmem:[%s15846_s27 + $0x1cc] sm:$0xf0]  ;;  %7409 = vmatpush.bf16.msra.mxu2 %v9967_v9  ;;  %v9695_v17 = vor.u32 %v14235_v14, %v9694_v12 }
  0x52   : > { %v9823_v18 = vor.u32 %v14267_v16, %v9822_v15  ;;  %v9950_v19 = vld [vmem:[%s15846_s27 + $0x2c0] sm:$0xf]  ;;  %v14299_v20 = vld [vmem:[%s15846_s27 + $0x2cc] sm:$0xf0]  ;;  %7422 = vmatpush.bf16.msra.mxu3 %v10095_v13 }
  0x53   : > { %v10078_v21 = vld [vmem:[%s15846_s27 + $0x3c0] sm:$0xf]  ;;  %v9951_v22 = vor.u32 %v14299_v20, %v9950_v19  ;;  %v14331_v23 = vld [vmem:[%s15846_s27 + $0x3cc] sm:$0xf0]  ;;  %7384 = vmatpush.bf16.msra.mxu0 %v9695_v17 }
  0x54   : > { %v9678_v24 = vld [vmem:[%s15846_s27 + $0xa0] sm:$0xf]  ;;  %v14231_v25 = vld [vmem:[%s15846_s27 + $0xac] sm:$0xf0]  ;;  %v10079_v26 = vor.u32 %v14331_v23, %v10078_v21  ;;  %7397 = vmatpush.bf16.msra.mxu1 %v9823_v18 }
  0x55   : > { %v9806_v27 = vld [vmem:[%s15846_s27 + $0x1a0] sm:$0xf]  ;;  %v14263_v28 = vld [vmem:[%s15846_s27 + $0x1ac] sm:$0xf0]  ;;  %v9679_v30 = vor.u32 %v14231_v25, %v9678_v24  ;;  %7410 = vmatpush.bf16.msra.mxu2 %v9951_v22 }
  0x56   : > { %v9934_v29 = vld [vmem:[%s15846_s27 + $0x2a0] sm:$0xf]  ;;  %v14295_v31 = vld [vmem:[%s15846_s27 + $0x2ac] sm:$0xf0]  ;;  %v9807_v34 = vor.u32 %v14263_v28, %v9806_v27  ;;  %7423 = vmatpush.bf16.msra.mxu3 %v10079_v26 }
  0x57   : > { %v10062_v32 = vld [vmem:[%s15846_s27 + $0x3a0] sm:$0xf]  ;;  %v14327_v33 = vld [vmem:[%s15846_s27 + $0x3ac] sm:$0xf0]  ;;  %v9935_v35 = vor.u32 %v14295_v31, %v9934_v29  ;;  %7385 = vmatpush.bf16.msra.mxu0 %v9679_v30 }
  0x58   : > { %v9662_v36 = vld [vmem:[%s15846_s27 + $0x80] sm:$0xf]  ;;  %v14227_v37 = vld [vmem:[%s15846_s27 + $0x8c] sm:$0xf0]  ;;  %v10063_v39 = vor.u32 %v14327_v33, %v10062_v32  ;;  %7398 = vmatpush.bf16.msra.mxu1 %v9807_v34 }
  0x59   : > { %v9790_v38 = vld [vmem:[%s15846_s27 + $0x180] sm:$0xf]  ;;  %v14259_v40 = vld [vmem:[%s15846_s27 + $0x18c] sm:$0xf0]  ;;  %v9663_v45 = vor.u32 %v14227_v37, %v9662_v36  ;;  %7411 = vmatpush.bf16.msra.mxu2 %v9935_v35 }
  0x5a   : > { %v9918_v41 = vld [vmem:[%s15846_s27 + $0x280] sm:$0xf]  ;;  %v14291_v42 = vld [vmem:[%s15846_s27 + $0x28c] sm:$0xf0]  ;;  %v9791_v46 = vor.u32 %v14259_v40, %v9790_v38  ;;  %7424 = vmatpush.bf16.msra.mxu3 %v10063_v39 }
  0x5b   : > { %v10046_v43 = vld [vmem:[%s15846_s27 + $0x380] sm:$0xf]  ;;  %v14323_v44 = vld [vmem:[%s15846_s27 + $0x38c] sm:$0xf0]  ;;  %v9919_v47 = vor.u32 %v14291_v42, %v9918_v41  ;;  %7386 = vmatpush.bf16.msra.mxu0 %v9663_v45 }
  0x5c   : > { %v9646_v48 = vld [vmem:[%s15846_s27 + $0x60] sm:$0xf]  ;;  %v14223_v49 = vld [vmem:[%s15846_s27 + $0x6c] sm:$0xf0]  ;;  %v10047_v51 = vor.u32 %v14323_v44, %v10046_v43  ;;  %7399 = vmatpush.bf16.msra.mxu1 %v9791_v46 }
  0x5d   : > { %v9774_v50 = vld [vmem:[%s15846_s27 + $0x160] sm:$0xf]  ;;  %v14255_v52 = vld [vmem:[%s15846_s27 + $0x16c] sm:$0xf0]  ;;  %v9647_v57 = vor.u32 %v14223_v49, %v9646_v48  ;;  %7412 = vmatpush.bf16.msra.mxu2 %v9919_v47 }
  0x5e   : > { %v9902_v53 = vld [vmem:[%s15846_s27 + $0x260] sm:$0xf]  ;;  %v14287_v54 = vld [vmem:[%s15846_s27 + $0x26c] sm:$0xf0]  ;;  %v9775_v58 = vor.u32 %v14255_v52, %v9774_v50  ;;  %7425 = vmatpush.bf16.msra.mxu3 %v10047_v51 }
  0x5f   : > { %v10030_v55 = vld [vmem:[%s15846_s27 + $0x360] sm:$0xf]  ;;  %v14319_v56 = vld [vmem:[%s15846_s27 + $0x36c] sm:$0xf0]  ;;  %v9903_v59 = vor.u32 %v14287_v54, %v9902_v53  ;;  %7387 = vmatpush.bf16.msra.mxu0 %v9647_v57 }
  0x60   : > { %v9630_v60 = vld [vmem:[%s15846_s27 + $0x40] sm:$0xf]  ;;  %v14219_v61 = vld [vmem:[%s15846_s27 + $0x4c] sm:$0xf0]  ;;  %v10031_v63 = vor.u32 %v14319_v56, %v10030_v55  ;;  %7400 = vmatpush.bf16.msra.mxu1 %v9775_v58 }
  0x61   : > { %v9758_v62 = vld [vmem:[%s15846_s27 + $0x140] sm:$0xf]  ;;  %v14251_v0 = vld [vmem:[%s15846_s27 + $0x14c] sm:$0xf0]  ;;  %v9631_v5 = vor.u32 %v14219_v61, %v9630_v60  ;;  %7413 = vmatpush.bf16.msra.mxu2 %v9903_v59 }
  0x62   : > { %v9886_v1 = vld [vmem:[%s15846_s27 + $0x240] sm:$0xf]  ;;  %v14283_v2 = vld [vmem:[%s15846_s27 + $0x24c] sm:$0xf0]  ;;  %v9759_v6 = vor.u32 %v14251_v0, %v9758_v62  ;;  %7426 = vmatpush.bf16.msra.mxu3 %v10031_v63 }
  0x63   : > { %v10014_v3 = vld [vmem:[%s15846_s27 + $0x340] sm:$0xf]  ;;  %v14315_v4 = vld [vmem:[%s15846_s27 + $0x34c] sm:$0xf0]  ;;  %v9887_v7 = vor.u32 %v14283_v2, %v9886_v1  ;;  %7388 = vmatpush.bf16.msra.mxu0 %v9631_v5 }
  0x64   : > { %v9614_v8 = vld [vmem:[%s15846_s27 + $0x20] sm:$0xf]  ;;  %v14215_v9 = vld [vmem:[%s15846_s27 + $0x2c] sm:$0xf0]  ;;  %v10015_v11 = vor.u32 %v14315_v4, %v10014_v3  ;;  %7401 = vmatpush.bf16.msra.mxu1 %v9759_v6 }
  0x65   : > { %v9742_v10 = vld [vmem:[%s15846_s27 + $0x120] sm:$0xf]  ;;  %v14247_v12 = vld [vmem:[%s15846_s27 + $0x12c] sm:$0xf0]  ;;  %v9615_v17 = vor.u32 %v14215_v9, %v9614_v8  ;;  %7414 = vmatpush.bf16.msra.mxu2 %v9887_v7 }
  0x66   : > { %v9870_v13 = vld [vmem:[%s15846_s27 + $0x220] sm:$0xf]  ;;  %v14279_v14 = vld [vmem:[%s15846_s27 + $0x22c] sm:$0xf0]  ;;  %v9743_v20 = vor.u32 %v14247_v12, %v9742_v10  ;;  %7427 = vmatpush.bf16.msra.mxu3 %v10015_v11  ;;  %v402_v11 = vld [vmem:[%s15868_s14 + $0x18] sm:$0xff] }
  0x67   : > { %v9998_v15 = vld [vmem:[%s15846_s27 + $0x320] sm:$0xf]  ;;  %v14311_v16 = vld [vmem:[%s15846_s27 + $0x32c] sm:$0xf0]  ;;  %v9871_v21 = vor.u32 %v14279_v14, %v9870_v13  ;;  %7389 = vmatpush.bf16.msra.mxu0 %v9615_v17  ;;  %v400_v12 = vld [vmem:[%s15868_s14 + $0x8] sm:$0xff]  ;;  %v15975_v17 = vpack.c.bf16 %v402_v11, %v402_v11 }
  0x68   : > { %v9598_v18 = vld [vmem:[%s15846_s27] sm:$0xf]  ;;  %v14211_v19 = vld [vmem:[%s15846_s27 + $0xc] sm:$0xf0]  ;;  %v9999_v25 = vor.u32 %v14311_v16, %v9998_v15  ;;  %7402 = vmatpush.bf16.msra.mxu1 %v9743_v20 }
  0x69   : > { %v9726_v22 = vld [vmem:[%s15846_s27 + $0x100] sm:$0xf]  ;;  %v14243_v23 = vld [vmem:[%s15846_s27 + $0x10c] sm:$0xf0]  ;;  %v9599_v32 = vor.u32 %v14211_v19, %v9598_v18  ;;  %7415 = vmatpush.bf16.msra.mxu2 %v9871_v21  ;;  %v15977_v18 = vpack.c.bf16 %v400_v12, %v400_v12 }
  0x6a   : > { %v9854_v24 = vld [vmem:[%s15846_s27 + $0x200] sm:$0xf]  ;;  %v14275_v26 = vld [vmem:[%s15846_s27 + $0x20c] sm:$0xf0]  ;;  %v9727_v36 = vor.u32 %v14243_v23, %v9726_v22  ;;  %7428 = vmatpush.bf16.msra.mxu3 %v9999_v25 }
  0x6b   : > { %v9982_v27 = vld [vmem:[%s15846_s27 + $0x300] sm:$0xf]  ;;  %v14307_v28 = vld [vmem:[%s15846_s27 + $0x30c] sm:$0xf0]  ;;  %v9855_v37 = vor.u32 %v14275_v26, %v9854_v24  ;;  %7390 = vmatpush.bf16.msra.mxu0 %v9599_v32 }
  0x6c   : > { %v10222_v29 = vld [vmem:[%s15846_s27 + $0x4e0] sm:$0xf]  ;;  %v14367_v30 = vld [vmem:[%s15846_s27 + $0x4ec] sm:$0xf0]  ;;  %v9983_v40 = vor.u32 %v14307_v28, %v9982_v27  ;;  %7403 = vmatpush.bf16.msra.mxu1 %v9727_v36 }
  0x6d   : > { %v10350_v31 = vld [vmem:[%s15846_s27 + $0x5e0] sm:$0xf]  ;;  %v14399_v33 = vld [vmem:[%s15846_s27 + $0x5ec] sm:$0xf0]  ;;  %v10223_v41 = vor.u32 %v14367_v30, %v10222_v29  ;;  %7416 = vmatpush.bf16.msra.mxu2 %v9855_v37 }
  0x6e   : > { %v10478_v34 = vld [vmem:[%s15846_s27 + $0x6e0] sm:$0xf]  ;;  %v14431_v35 = vld [vmem:[%s15846_s27 + $0x6ec] sm:$0xf0]  ;;  %v10351_v42 = vor.u32 %v14399_v33, %v10350_v31  ;;  %7429 = vmatpush.bf16.msra.mxu3 %v9983_v40 }
  0x6f   : > { %v10606_v38 = vld [vmem:[%s15846_s27 + $0x7e0] sm:$0xf]  ;;  %v14463_v39 = vld [vmem:[%s15846_s27 + $0x7ec] sm:$0xf0]  ;;  %v10479_v43 = vor.u32 %v14431_v35, %v10478_v34  ;;  %7435 = vmatpush.bf16.msrb.mxu0 %v10223_v41  ;;  %7404 = vmatmul.bf16.vlgmr.msra.gmra.mxu1 %v15977_v18 }
  0x70   : > { %v10206_v44 = vld [vmem:[%s15846_s27 + $0x4c0] sm:$0xf]  ;;  %v14363_v45 = vld [vmem:[%s15846_s27 + $0x4cc] sm:$0xf0]  ;;  %v10607_v47 = vor.u32 %v14463_v39, %v10606_v38  ;;  %7448 = vmatpush.bf16.msrb.mxu1 %v10351_v42 }
  0x71   : > { %v10334_v46 = vld [vmem:[%s15846_s27 + $0x5c0] sm:$0xf]  ;;  %v14395_v48 = vld [vmem:[%s15846_s27 + $0x5cc] sm:$0xf0]  ;;  %v10207_v53 = vor.u32 %v14363_v45, %v10206_v44  ;;  %7461 = vmatpush.bf16.msrb.mxu2 %v10479_v43  ;;  %7430 = vmatmul.bf16.vlgmr.msra.gmra.mxu3 %v15975_v17 }
  0x72   : > { %v10462_v49 = vld [vmem:[%s15846_s27 + $0x6c0] sm:$0xf]  ;;  %v14427_v50 = vld [vmem:[%s15846_s27 + $0x6cc] sm:$0xf0]  ;;  %v10335_v55 = vor.u32 %v14395_v48, %v10334_v46  ;;  %7474 = vmatpush.bf16.msrb.mxu3 %v10607_v47 }
  0x73   : > { %v10590_v51 = vld [vmem:[%s15846_s27 + $0x7c0] sm:$0xf]  ;;  %v14459_v52 = vld [vmem:[%s15846_s27 + $0x7cc] sm:$0xf0]  ;;  %v10463_v56 = vor.u32 %v14427_v50, %v10462_v49  ;;  %7436 = vmatpush.bf16.msrb.mxu0 %v10207_v53 }
  0x74   : > { %v10190_v54 = vld [vmem:[%s15846_s27 + $0x4a0] sm:$0xf]  ;;  %v14359_v57 = vld [vmem:[%s15846_s27 + $0x4ac] sm:$0xf0]  ;;  %v10591_v60 = vor.u32 %v14459_v52, %v10590_v51  ;;  %7449 = vmatpush.bf16.msrb.mxu1 %v10335_v55 }
  0x75   : > { %v10318_v58 = vld [vmem:[%s15846_s27 + $0x5a0] sm:$0xf]  ;;  %v401_v59 = vld [vmem:[%s15868_s14 + $0x10] sm:$0xff]  ;;  %v10191_v3 = vor.u32 %v14359_v57, %v10190_v54  ;;  %7462 = vmatpush.bf16.msrb.mxu2 %v10463_v56 }
  0x76   : > { %v14391_v61 = vld [vmem:[%s15846_s27 + $0x5ac] sm:$0xf0]  ;;  %v10446_v62 = vld [vmem:[%s15846_s27 + $0x6a0] sm:$0xf]  ;;  %v15959_v0 = vpack.c.bf16 %v401_v59, %v401_v59  ;;  %7475 = vmatpush.bf16.msrb.mxu3 %v10591_v60 }
  0x77   : > { %v14423_v63 = vld [vmem:[%s15846_s27 + $0x6ac] sm:$0xf0]  ;;  %v10574_v1 = vld [vmem:[%s15846_s27 + $0x7a0] sm:$0xf]  ;;  %v10319_v7 = vor.u32 %v14391_v61, %v10318_v58  ;;  %7437 = vmatpush.bf16.msrb.mxu0 %v10191_v3 }
  0x78   : > { %v14455_v2 = vld [vmem:[%s15846_s27 + $0x7ac] sm:$0xf0]  ;;  %v10174_v4 = vld [vmem:[%s15846_s27 + $0x480] sm:$0xf]  ;;  %7417 = vmatmul.bf16.vlgmr.msra.gmra.mxu2 %v15959_v0  ;;  %v10447_v8 = vor.u32 %v14423_v63, %v10446_v62 }
  0x79   : > { %v14355_v5 = vld [vmem:[%s15846_s27 + $0x48c] sm:$0xf0]  ;;  %v399_v6 = vld [vmem:[%s15868_s14] sm:$0xff]  ;;  %v10575_v13 = vor.u32 %v14455_v2, %v10574_v1  ;;  %7450 = vmatpush.bf16.msrb.mxu1 %v10319_v7 }
  0x7a   : > { %v10302_v9 = vld [vmem:[%s15846_s27 + $0x580] sm:$0xf]  ;;  %v15968_v10 = vpack.c.bf16 %v399_v6, %v399_v6  ;;  %v14387_v14 = vld [vmem:[%s15846_s27 + $0x58c] sm:$0xf0]  ;;  %v10175_v21 = vor.u32 %v14355_v5, %v10174_v4  ;;  %7463 = vmatpush.bf16.msrb.mxu2 %v10447_v8 }
  0x7b   : > { %v10430_v15 = vld [vmem:[%s15846_s27 + $0x680] sm:$0xf]  ;;  %v14419_v16 = vld [vmem:[%s15846_s27 + $0x68c] sm:$0xf0]  ;;  %v10303_v22 = vor.u32 %v14387_v14, %v10302_v9  ;;  %7476 = vmatpush.bf16.msrb.mxu3 %v10575_v13 }
  0x7c   : > { %v10558_v19 = vld [vmem:[%s15846_s27 + $0x780] sm:$0xf]  ;;  %v14451_v20 = vld [vmem:[%s15846_s27 + $0x78c] sm:$0xf0]  ;;  %7391 = vmatmul.bf16.vlgmr.msra.gmra.mxu0 %v15968_v10  ;;  %v10431_v23 = vor.u32 %v14419_v16, %v10430_v15 }
  0x7d   : > { %v10158_v24 = vld [vmem:[%s15846_s27 + $0x460] sm:$0xf]  ;;  %v14351_v25 = vld [vmem:[%s15846_s27 + $0x46c] sm:$0xf0]  ;;  %v10559_v27 = vor.u32 %v14451_v20, %v10558_v19  ;;  %7438 = vmatpush.bf16.msrb.mxu0 %v10175_v21  ;;  %7451 = vmatpush.bf16.msrb.mxu1 %v10303_v22 }
  0x7e   : > { %v10286_v26 = vld [vmem:[%s15846_s27 + $0x560] sm:$0xf]  ;;  %v14383_v28 = vld [vmem:[%s15846_s27 + $0x56c] sm:$0xf0]  ;;  %v10159_v33 = vor.u32 %v14351_v25, %v10158_v24  ;;  %7464 = vmatpush.bf16.msrb.mxu2 %v10431_v23  ;;  %v406_v25 = vld [vmem:[%s15868_s14 + $0x38] sm:$0xff] }
  0x7f   : > { %v10414_v29 = vld [vmem:[%s15846_s27 + $0x660] sm:$0xf]  ;;  %v14415_v30 = vld [vmem:[%s15846_s27 + $0x66c] sm:$0xf0]  ;;  %v10287_v34 = vor.u32 %v14383_v28, %v10286_v26  ;;  %7477 = vmatpush.bf16.msrb.mxu3 %v10559_v27 }
  0x80   : > { %v10542_v31 = vld [vmem:[%s15846_s27 + $0x760] sm:$0xf]  ;;  %v14447_v32 = vld [vmem:[%s15846_s27 + $0x76c] sm:$0xf0]  ;;  %v10415_v35 = vor.u32 %v14415_v30, %v10414_v29  ;;  %v404_v30 = vld [vmem:[%s15868_s14 + $0x28] sm:$0xff] }
  0x81   : > { %v10142_v36 = vld [vmem:[%s15846_s27 + $0x440] sm:$0xf]  ;;  %v14347_v37 = vld [vmem:[%s15846_s27 + $0x44c] sm:$0xf0]  ;;  %v10543_v39 = vor.u32 %v14447_v32, %v10542_v31  ;;  %7439 = vmatpush.bf16.msrb.mxu0 %v10159_v33  ;;  %7452 = vmatpush.bf16.msrb.mxu1 %v10287_v34 }
  0x82   : > { %v10270_v38 = vld [vmem:[%s15846_s27 + $0x540] sm:$0xf]  ;;  %v14379_v40 = vld [vmem:[%s15846_s27 + $0x54c] sm:$0xf0]  ;;  %v10143_v45 = vor.u32 %v14347_v37, %v10142_v36  ;;  %7465 = vmatpush.bf16.msrb.mxu2 %v10415_v35 }
  0x83   : > { %v10398_v41 = vld [vmem:[%s15846_s27 + $0x640] sm:$0xf]  ;;  %v14411_v42 = vld [vmem:[%s15846_s27 + $0x64c] sm:$0xf0]  ;;  %v10271_v46 = vor.u32 %v14379_v40, %v10270_v38  ;;  %7478 = vmatpush.bf16.msrb.mxu3 %v10543_v39  ;;  %v16040_v39 = vpack.c.bf16 %v406_v25, %v406_v25 }
  0x84   : > { %v10526_v43 = vld [vmem:[%s15846_s27 + $0x740] sm:$0xf]  ;;  %v14443_v44 = vld [vmem:[%s15846_s27 + $0x74c] sm:$0xf0]  ;;  %v10399_v47 = vor.u32 %v14411_v42, %v10398_v41  ;;  %v16042_v41 = vpack.c.bf16 %v404_v30, %v404_v30 }
  0x85   : > { %v10126_v48 = vld [vmem:[%s15846_s27 + $0x420] sm:$0xf]  ;;  %v14343_v49 = vld [vmem:[%s15846_s27 + $0x42c] sm:$0xf0]  ;;  %v10527_v51 = vor.u32 %v14443_v44, %v10526_v43  ;;  %7440 = vmatpush.bf16.msrb.mxu0 %v10143_v45  ;;  %7453 = vmatpush.bf16.msrb.mxu1 %v10271_v46  ;;  %18605 = vst [vmem:[#allocation19_spill] sm:$0xff] %v16040_v39 }
  0x86   : > { %v10254_v50 = vld [vmem:[%s15846_s27 + $0x520] sm:$0xf]  ;;  %v14375_v52 = vld [vmem:[%s15846_s27 + $0x52c] sm:$0xf0]  ;;  %v10127_v57 = vor.u32 %v14343_v49, %v10126_v48  ;;  %7466 = vmatpush.bf16.msrb.mxu2 %v10399_v47  ;;  %18606 = vst [vmem:[#allocation20_spill] sm:$0xff] %v16042_v41 }
  0x87   : > { %v10382_v53 = vld [vmem:[%s15846_s27 + $0x620] sm:$0xf]  ;;  %v14407_v54 = vld [vmem:[%s15846_s27 + $0x62c] sm:$0xf0]  ;;  %v10255_v60 = vor.u32 %v14375_v52, %v10254_v50  ;;  %7479 = vmatpush.bf16.msrb.mxu3 %v10527_v51 }
  0x88   : > { %v10510_v55 = vld [vmem:[%s15846_s27 + $0x720] sm:$0xf]  ;;  %v14439_v56 = vld [vmem:[%s15846_s27 + $0x72c] sm:$0xf0]  ;;  %v10383_v61 = vor.u32 %v14407_v54, %v10382_v53 }
  0x89   : > { %v10110_v58 = vld [vmem:[%s15846_s27 + $0x400] sm:$0xf]  ;;  %v14339_v59 = vld [vmem:[%s15846_s27 + $0x40c] sm:$0xf0]  ;;  %v10511_v2 = vor.u32 %v14439_v56, %v10510_v55  ;;  %7441 = vmatpush.bf16.msrb.mxu0 %v10127_v57  ;;  %7454 = vmatpush.bf16.msrb.mxu1 %v10255_v60 }
  0x8a   : > { %v10238_v62 = vld [vmem:[%s15846_s27 + $0x500] sm:$0xf]  ;;  %v14371_v63 = vld [vmem:[%s15846_s27 + $0x50c] sm:$0xf0]  ;;  %v10111_v9 = vor.u32 %v14339_v59, %v10110_v58  ;;  %7467 = vmatpush.bf16.msrb.mxu2 %v10383_v61 }
  0x8b   : > { %v10366_v1 = vld [vmem:[%s15846_s27 + $0x600] sm:$0xf]  ;;  %v14403_v3 = vld [vmem:[%s15846_s27 + $0x60c] sm:$0xf0]  ;;  %v10239_v14 = vor.u32 %v14371_v63, %v10238_v62  ;;  %7480 = vmatpush.bf16.msrb.mxu3 %v10511_v2 }
  0x8c   : > { %v10494_v4 = vld [vmem:[%s15846_s27 + $0x700] sm:$0xf]  ;;  %v14435_v5 = vld [vmem:[%s15846_s27 + $0x70c] sm:$0xf0]  ;;  %v10367_v15 = vor.u32 %v14403_v3, %v10366_v1 }
  0x8d   : > { %v10734_v6 = vld [vmem:[%s15846_s27 + $0x8e0] sm:$0xf]  ;;  %v14495_v7 = vld [vmem:[%s15846_s27 + $0x8ec] sm:$0xf0]  ;;  %v10495_v21 = vor.u32 %v14435_v5, %v10494_v4  ;;  %7442 = vmatpush.bf16.msrb.mxu0 %v10111_v9  ;;  %7455 = vmatpush.bf16.msrb.mxu1 %v10239_v14 }
  0x8e   : > { %v10862_v8 = vld [vmem:[%s15846_s27 + $0x9e0] sm:$0xf]  ;;  %v14527_v11 = vld [vmem:[%s15846_s27 + $0x9ec] sm:$0xf0]  ;;  %v10735_v22 = vor.u32 %v14495_v7, %v10734_v6  ;;  %7468 = vmatpush.bf16.msrb.mxu2 %v10367_v15 }
  0x8f   : > { %v10990_v12 = vld [vmem:[%s15846_s27 + $0xae0] sm:$0xf]  ;;  %v14559_v13 = vld [vmem:[%s15846_s27 + $0xaec] sm:$0xf0]  ;;  %v10863_v26 = vor.u32 %v14527_v11, %v10862_v8  ;;  %7481 = vmatpush.bf16.msrb.mxu3 %v10495_v21 }
  0x90   : > { %v11118_v16 = vld [vmem:[%s15846_s27 + $0xbe0] sm:$0xf]  ;;  %v14591_v19 = vld [vmem:[%s15846_s27 + $0xbec] sm:$0xf0]  ;;  %v10991_v27 = vor.u32 %v14559_v13, %v10990_v12  ;;  %7456 = vmatmul.bf16.vlgmr.msrb.gmra.mxu1 %v16042_v41 }
  0x91   : > { %v405_v20 = vld [vmem:[%s15868_s14 + $0x30] sm:$0xff]  ;;  %v10718_v23 = vld [vmem:[%s15846_s27 + $0x8c0] sm:$0xf]  ;;  %v11119_v31 = vor.u32 %v14591_v19, %v11118_v16  ;;  %7487 = vmatpush.bf16.msra.mxu0 %v10735_v22  ;;  %7500 = vmatpush.bf16.msra.mxu1 %v10863_v26 }
  0x92   : > { %v403_v24 = vld [vmem:[%s15868_s14 + $0x20] sm:$0xff]  ;;  %v14491_v28 = vld [vmem:[%s15846_s27 + $0x8cc] sm:$0xf0]  ;;  %v16034_v35 = vpack.c.bf16 %v405_v20, %v405_v20  ;;  %7513 = vmatpush.bf16.msra.mxu2 %v10991_v27  ;;  %7482 = vmatmul.bf16.vlgmr.msrb.gmra.mxu3 %v16040_v39 }
  0x93   : > { %v10846_v29 = vld [vmem:[%s15846_s27 + $0x9c0] sm:$0xf]  ;;  %v14523_v32 = vld [vmem:[%s15846_s27 + $0x9cc] sm:$0xf0]  ;;  %v16038_v38 = vpack.c.bf16 %v403_v24, %v403_v24  ;;  %v10719_v40 = vor.u32 %v14491_v28, %v10718_v23  ;;  %7526 = vmatpush.bf16.msra.mxu3 %v11119_v31 }
  0x94   : > { %v10974_v33 = vld [vmem:[%s15846_s27 + $0xac0] sm:$0xf]  ;;  %v14555_v34 = vld [vmem:[%s15846_s27 + $0xacc] sm:$0xf0]  ;;  %18603 = vst [vmem:[#allocation17_spill] sm:$0xff] %v16034_v35  ;;  %v10847_v42 = vor.u32 %v14523_v32, %v10846_v29  ;;  %7469 = vmatmul.bf16.vlgmr.msrb.gmra.mxu2 %v16034_v35 }
  0x95   : > { %v11102_v36 = vld [vmem:[%s15846_s27 + $0xbc0] sm:$0xf]  ;;  %v14587_v37 = vld [vmem:[%s15846_s27 + $0xbcc] sm:$0xf0]  ;;  %18604 = vst [vmem:[#allocation18_spill] sm:$0xff] %v16038_v38  ;;  %v10975_v43 = vor.u32 %v14555_v34, %v10974_v33  ;;  %7443 = vmatmul.bf16.vlgmr.msrb.gmra.mxu0 %v16038_v38 }
  0x96   : > { %v10702_v44 = vld [vmem:[%s15846_s27 + $0x8a0] sm:$0xf]  ;;  %v14487_v45 = vld [vmem:[%s15846_s27 + $0x8ac] sm:$0xf0]  ;;  %v11103_v47 = vor.u32 %v14587_v37, %v11102_v36  ;;  %7488 = vmatpush.bf16.msra.mxu0 %v10719_v40  ;;  %7501 = vmatpush.bf16.msra.mxu1 %v10847_v42 }
  0x97   : > { %v10830_v46 = vld [vmem:[%s15846_s27 + $0x9a0] sm:$0xf]  ;;  %v14519_v48 = vld [vmem:[%s15846_s27 + $0x9ac] sm:$0xf0]  ;;  %v10703_v53 = vor.u32 %v14487_v45, %v10702_v44  ;;  %7514 = vmatpush.bf16.msra.mxu2 %v10975_v43 }
  0x98   : > { %v10958_v49 = vld [vmem:[%s15846_s27 + $0xaa0] sm:$0xf]  ;;  %v14551_v50 = vld [vmem:[%s15846_s27 + $0xaac] sm:$0xf0]  ;;  %v10831_v54 = vor.u32 %v14519_v48, %v10830_v46  ;;  %7527 = vmatpush.bf16.msra.mxu3 %v11103_v47 }
  0x99   : > { %v11086_v51 = vld [vmem:[%s15846_s27 + $0xba0] sm:$0xf]  ;;  %v14583_v52 = vld [vmem:[%s15846_s27 + $0xbac] sm:$0xf0]  ;;  %v10959_v55 = vor.u32 %v14551_v50, %v10958_v49 }
  0x9a   : > { %v10686_v56 = vld [vmem:[%s15846_s27 + $0x880] sm:$0xf]  ;;  %v14483_v57 = vld [vmem:[%s15846_s27 + $0x88c] sm:$0xf0]  ;;  %v11087_v59 = vor.u32 %v14583_v52, %v11086_v51  ;;  %7489 = vmatpush.bf16.msra.mxu0 %v10703_v53  ;;  %7502 = vmatpush.bf16.msra.mxu1 %v10831_v54 }
  0x9b   : > { %v10814_v58 = vld [vmem:[%s15846_s27 + $0x980] sm:$0xf]  ;;  %v14515_v60 = vld [vmem:[%s15846_s27 + $0x98c] sm:$0xf0]  ;;  %v10687_v2 = vor.u32 %v14483_v57, %v10686_v56  ;;  %7515 = vmatpush.bf16.msra.mxu2 %v10959_v55 }
  0x9c   : > { %v10942_v61 = vld [vmem:[%s15846_s27 + $0xa80] sm:$0xf]  ;;  %v14547_v62 = vld [vmem:[%s15846_s27 + $0xa8c] sm:$0xf0]  ;;  %v10815_v3 = vor.u32 %v14515_v60, %v10814_v58  ;;  %7528 = vmatpush.bf16.msra.mxu3 %v11087_v59 }
  0x9d   : > { %v11070_v63 = vld [vmem:[%s15846_s27 + $0xb80] sm:$0xf]  ;;  %v14579_v1 = vld [vmem:[%s15846_s27 + $0xb8c] sm:$0xf0]  ;;  %v10943_v4 = vor.u32 %v14547_v62, %v10942_v61 }
  0x9e   : > { %v10670_v5 = vld [vmem:[%s15846_s27 + $0x860] sm:$0xf]  ;;  %v14479_v6 = vld [vmem:[%s15846_s27 + $0x86c] sm:$0xf0]  ;;  %v11071_v8 = vor.u32 %v14579_v1, %v11070_v63  ;;  %7490 = vmatpush.bf16.msra.mxu0 %v10687_v2  ;;  %7503 = vmatpush.bf16.msra.mxu1 %v10815_v3 }
  0x9f   : > { %v10798_v7 = vld [vmem:[%s15846_s27 + $0x960] sm:$0xf]  ;;  %v14511_v9 = vld [vmem:[%s15846_s27 + $0x96c] sm:$0xf0]  ;;  %v10671_v15 = vor.u32 %v14479_v6, %v10670_v5  ;;  %7516 = vmatpush.bf16.msra.mxu2 %v10943_v4 }
  0xa0   : > { %v10926_v11 = vld [vmem:[%s15846_s27 + $0xa60] sm:$0xf]  ;;  %v14543_v12 = vld [vmem:[%s15846_s27 + $0xa6c] sm:$0xf0]  ;;  %v10799_v16 = vor.u32 %v14511_v9, %v10798_v7  ;;  %7529 = vmatpush.bf16.msra.mxu3 %v11071_v8  ;;  %v408_v9 = vld [vmem:[%s15868_s14 + $0x48] sm:$0xff] }
  0xa1   : > { %v11054_v13 = vld [vmem:[%s15846_s27 + $0xb60] sm:$0xf]  ;;  %v14575_v14 = vld [vmem:[%s15846_s27 + $0xb6c] sm:$0xf0]  ;;  %v10927_v19 = vor.u32 %v14543_v12, %v10926_v11  ;;  %v410_v11 = vld [vmem:[%s15868_s14 + $0x58] sm:$0xff] }
  0xa2   : > { %v10654_v20 = vld [vmem:[%s15846_s27 + $0x840] sm:$0xf]  ;;  %v14475_v21 = vld [vmem:[%s15846_s27 + $0x84c] sm:$0xf0]  ;;  %v11055_v23 = vor.u32 %v14575_v14, %v11054_v13  ;;  %7491 = vmatpush.bf16.msra.mxu0 %v10671_v15  ;;  %7504 = vmatpush.bf16.msra.mxu1 %v10799_v16 }
  0xa3   : > { %v10782_v22 = vld [vmem:[%s15846_s27 + $0x940] sm:$0xf]  ;;  %v14507_v24 = vld [vmem:[%s15846_s27 + $0x94c] sm:$0xf0]  ;;  %v10655_v29 = vor.u32 %v14475_v21, %v10654_v20  ;;  %7517 = vmatpush.bf16.msra.mxu2 %v10927_v19 }
  0xa4   : > { %v10910_v25 = vld [vmem:[%s15846_s27 + $0xa40] sm:$0xf]  ;;  %v14539_v26 = vld [vmem:[%s15846_s27 + $0xa4c] sm:$0xf0]  ;;  %v10783_v30 = vor.u32 %v14507_v24, %v10782_v22  ;;  %7530 = vmatpush.bf16.msra.mxu3 %v11055_v23 }
  0xa5   : > { %v11038_v27 = vld [vmem:[%s15846_s27 + $0xb40] sm:$0xf]  ;;  %v14571_v28 = vld [vmem:[%s15846_s27 + $0xb4c] sm:$0xf0]  ;;  %v10911_v31 = vor.u32 %v14539_v26, %v10910_v25  ;;  %v16118_v25 = vpack.c.bf16 %v408_v9, %v408_v9 }
  0xa6   : > { %v10638_v32 = vld [vmem:[%s15846_s27 + $0x820] sm:$0xf]  ;;  %v14471_v33 = vld [vmem:[%s15846_s27 + $0x82c] sm:$0xf0]  ;;  %v11039_v36 = vor.u32 %v14571_v28, %v11038_v27  ;;  %7492 = vmatpush.bf16.msra.mxu0 %v10655_v29  ;;  %7505 = vmatpush.bf16.msra.mxu1 %v10783_v30  ;;  %v16122_v28 = vpack.c.bf16 %v410_v11, %v410_v11 }
  0xa7   : > { %v10766_v34 = vld [vmem:[%s15846_s27 + $0x920] sm:$0xf]  ;;  %v14503_v37 = vld [vmem:[%s15846_s27 + $0x92c] sm:$0xf0]  ;;  %v10639_v45 = vor.u32 %v14471_v33, %v10638_v32  ;;  %7518 = vmatpush.bf16.msra.mxu2 %v10911_v31  ;;  %18607 = vst [vmem:[#allocation21_spill] sm:$0xff] %v16118_v25 }
  0xa8   : > { %v10894_v40 = vld [vmem:[%s15846_s27 + $0xa20] sm:$0xf]  ;;  %v14535_v42 = vld [vmem:[%s15846_s27 + $0xa2c] sm:$0xf0]  ;;  %v10767_v48 = vor.u32 %v14503_v37, %v10766_v34  ;;  %7531 = vmatpush.bf16.msra.mxu3 %v11039_v36  ;;  %18608 = vst [vmem:[#allocation22_spill] sm:$0xff] %v16122_v28 }
  0xa9   : > { %v11022_v43 = vld [vmem:[%s15846_s27 + $0xb20] sm:$0xf]  ;;  %v14567_v44 = vld [vmem:[%s15846_s27 + $0xb2c] sm:$0xf0]  ;;  %v10895_v49 = vor.u32 %v14535_v42, %v10894_v40 }
  0xaa   : > { %v10622_v46 = vld [vmem:[%s15846_s27 + $0x800] sm:$0xf]  ;;  %v14467_v47 = vld [vmem:[%s15846_s27 + $0x80c] sm:$0xf0]  ;;  %v11023_v53 = vor.u32 %v14567_v44, %v11022_v43  ;;  %7493 = vmatpush.bf16.msra.mxu0 %v10639_v45  ;;  %7506 = vmatpush.bf16.msra.mxu1 %v10767_v48 }
  0xab   : > { %v10750_v50 = vld [vmem:[%s15846_s27 + $0x900] sm:$0xf]  ;;  %v14499_v51 = vld [vmem:[%s15846_s27 + $0x90c] sm:$0xf0]  ;;  %v10623_v60 = vor.u32 %v14467_v47, %v10622_v46  ;;  %7519 = vmatpush.bf16.msra.mxu2 %v10895_v49 }
  0xac   : > { %v10878_v52 = vld [vmem:[%s15846_s27 + $0xa00] sm:$0xf]  ;;  %v14531_v54 = vld [vmem:[%s15846_s27 + $0xa0c] sm:$0xf0]  ;;  %v10751_v1 = vor.u32 %v14499_v51, %v10750_v50  ;;  %7532 = vmatpush.bf16.msra.mxu3 %v11023_v53 }
  0xad   : > { %v11006_v55 = vld [vmem:[%s15846_s27 + $0xb00] sm:$0xf]  ;;  %v14563_v56 = vld [vmem:[%s15846_s27 + $0xb0c] sm:$0xf0]  ;;  %v10879_v2 = vor.u32 %v14531_v54, %v10878_v52 }
  0xae   : > { %v11246_v57 = vld [vmem:[%s15846_s27 + $0xce0] sm:$0xf]  ;;  %v14623_v58 = vld [vmem:[%s15846_s27 + $0xcec] sm:$0xf0]  ;;  %v11007_v6 = vor.u32 %v14563_v56, %v11006_v55  ;;  %7494 = vmatpush.bf16.msra.mxu0 %v10623_v60  ;;  %7507 = vmatpush.bf16.msra.mxu1 %v10751_v1 }
  0xaf   : > { %v11374_v59 = vld [vmem:[%s15846_s27 + $0xde0] sm:$0xf]  ;;  %v14655_v61 = vld [vmem:[%s15846_s27 + $0xdec] sm:$0xf0]  ;;  %v11247_v7 = vor.u32 %v14623_v58, %v11246_v57  ;;  %7520 = vmatpush.bf16.msra.mxu2 %v10879_v2 }
  0xb0   : > { %v11502_v62 = vld [vmem:[%s15846_s27 + $0xee0] sm:$0xf]  ;;  %v14687_v63 = vld [vmem:[%s15846_s27 + $0xeec] sm:$0xf0]  ;;  %v11375_v12 = vor.u32 %v14655_v61, %v11374_v59  ;;  %7533 = vmatpush.bf16.msra.mxu3 %v11007_v6 }
  0xb1   : > { %v11630_v3 = vld [vmem:[%s15846_s27 + $0xfe0] sm:$0xf]  ;;  %v14719_v4 = vld [vmem:[%s15846_s27 + $0xfec] sm:$0xf0]  ;;  %v11503_v13 = vor.u32 %v14687_v63, %v11502_v62  ;;  %7508 = vmatmul.bf16.vlgmr.msra.gmra.mxu1 %v16118_v25 }
  0xb2   : > { %v407_v5 = vld [vmem:[%s15868_s14 + $0x40] sm:$0xff]  ;;  %v409_v8 = vld [vmem:[%s15868_s14 + $0x50] sm:$0xff]  ;;  %v11631_v19 = vor.u32 %v14719_v4, %v11630_v3  ;;  %7539 = vmatpush.bf16.msrb.mxu0 %v11247_v7  ;;  %7552 = vmatpush.bf16.msrb.mxu1 %v11375_v12 }
  0xb3   : > { %v11230_v14 = vld [vmem:[%s15846_s27 + $0xcc0] sm:$0xf]  ;;  %v14619_v15 = vld [vmem:[%s15846_s27 + $0xccc] sm:$0xf0]  ;;  %v16111_v20 = vpack.c.bf16 %v407_v5, %v407_v5  ;;  %v16116_v24 = vpack.c.bf16 %v409_v8, %v409_v8  ;;  %7565 = vmatpush.bf16.msrb.mxu2 %v11503_v13  ;;  %7534 = vmatmul.bf16.vlgmr.msra.gmra.mxu3 %v16122_v28 }
  0xb4   : > { %v11358_v16 = vld [vmem:[%s15846_s27 + $0xdc0] sm:$0xf]  ;;  %v14651_v21 = vld [vmem:[%s15846_s27 + $0xdcc] sm:$0xf0]  ;;  %v11231_v29 = vor.u32 %v14619_v15, %v11230_v14  ;;  %7578 = vmatpush.bf16.msrb.mxu3 %v11631_v19 }
  0xb5   : > { %v11486_v22 = vld [vmem:[%s15846_s27 + $0xec0] sm:$0xf]  ;;  %v14683_v23 = vld [vmem:[%s15846_s27 + $0xecc] sm:$0xf0]  ;;  %v11359_v30 = vor.u32 %v14651_v21, %v11358_v16  ;;  %7495 = vmatmul.bf16.vlgmr.msra.gmra.mxu0 %v16111_v20  ;;  %7521 = vmatmul.bf16.vlgmr.msra.gmra.mxu2 %v16116_v24 }
  0xb6   : > { %v11614_v26 = vld [vmem:[%s15846_s27 + $0xfc0] sm:$0xf]  ;;  %v14715_v27 = vld [vmem:[%s15846_s27 + $0xfcc] sm:$0xf0]  ;;  %v11487_v31 = vor.u32 %v14683_v23, %v11486_v22  ;;  %7540 = vmatpush.bf16.msrb.mxu0 %v11231_v29 }
  0xb7   : > { %v11214_v32 = vld [vmem:[%s15846_s27 + $0xca0] sm:$0xf]  ;;  %v14615_v33 = vld [vmem:[%s15846_s27 + $0xcac] sm:$0xf0]  ;;  %v11615_v36 = vor.u32 %v14715_v27, %v11614_v26  ;;  %7553 = vmatpush.bf16.msrb.mxu1 %v11359_v30 }
  0xb8   : > { %v11342_v34 = vld [vmem:[%s15846_s27 + $0xda0] sm:$0xf]  ;;  %v14647_v37 = vld [vmem:[%s15846_s27 + $0xdac] sm:$0xf0]  ;;  %v11215_v45 = vor.u32 %v14615_v33, %v11214_v32  ;;  %7566 = vmatpush.bf16.msrb.mxu2 %v11487_v31 }
  0xb9   : > { %v11470_v40 = vld [vmem:[%s15846_s27 + $0xea0] sm:$0xf]  ;;  %v14679_v42 = vld [vmem:[%s15846_s27 + $0xeac] sm:$0xf0]  ;;  %v11343_v46 = vor.u32 %v14647_v37, %v11342_v34  ;;  %7579 = vmatpush.bf16.msrb.mxu3 %v11615_v36 }
  0xba   : > { %v11598_v43 = vld [vmem:[%s15846_s27 + $0xfa0] sm:$0xf]  ;;  %v14711_v44 = vld [vmem:[%s15846_s27 + $0xfac] sm:$0xf0]  ;;  %v11471_v47 = vor.u32 %v14679_v42, %v11470_v40  ;;  %7541 = vmatpush.bf16.msrb.mxu0 %v11215_v45 }
  0xbb   : > { %v11198_v48 = vld [vmem:[%s15846_s27 + $0xc80] sm:$0xf]  ;;  %v14611_v49 = vld [vmem:[%s15846_s27 + $0xc8c] sm:$0xf0]  ;;  %v11599_v51 = vor.u32 %v14711_v44, %v11598_v43  ;;  %7554 = vmatpush.bf16.msrb.mxu1 %v11343_v46 }
  0xbc   : > { %v11326_v50 = vld [vmem:[%s15846_s27 + $0xd80] sm:$0xf]  ;;  %v14643_v52 = vld [vmem:[%s15846_s27 + $0xd8c] sm:$0xf0]  ;;  %v11199_v57 = vor.u32 %v14611_v49, %v11198_v48  ;;  %7567 = vmatpush.bf16.msrb.mxu2 %v11471_v47 }
  0xbd   : > { %v11454_v53 = vld [vmem:[%s15846_s27 + $0xe80] sm:$0xf]  ;;  %v14675_v54 = vld [vmem:[%s15846_s27 + $0xe8c] sm:$0xf0]  ;;  %v11327_v58 = vor.u32 %v14643_v52, %v11326_v50  ;;  %7580 = vmatpush.bf16.msrb.mxu3 %v11599_v51 }
  0xbe   : > { %v11582_v55 = vld [vmem:[%s15846_s27 + $0xf80] sm:$0xf]  ;;  %v14707_v56 = vld [vmem:[%s15846_s27 + $0xf8c] sm:$0xf0]  ;;  %v11455_v59 = vor.u32 %v14675_v54, %v11454_v53  ;;  %7542 = vmatpush.bf16.msrb.mxu0 %v11199_v57 }
  0xbf   : > { %v11182_v60 = vld [vmem:[%s15846_s27 + $0xc60] sm:$0xf]  ;;  %v14607_v61 = vld [vmem:[%s15846_s27 + $0xc6c] sm:$0xf0]  ;;  %v11583_v63 = vor.u32 %v14707_v56, %v11582_v55  ;;  %7555 = vmatpush.bf16.msrb.mxu1 %v11327_v58 }
  0xc0   : > { %v11310_v62 = vld [vmem:[%s15846_s27 + $0xd60] sm:$0xf]  ;;  %v14639_v1 = vld [vmem:[%s15846_s27 + $0xd6c] sm:$0xf0]  ;;  %v11183_v6 = vor.u32 %v14607_v61, %v11182_v60  ;;  %7568 = vmatpush.bf16.msrb.mxu2 %v11455_v59 }
  0xc1   : > { %v11438_v2 = vld [vmem:[%s15846_s27 + $0xe60] sm:$0xf]  ;;  %v14671_v3 = vld [vmem:[%s15846_s27 + $0xe6c] sm:$0xf0]  ;;  %v11311_v7 = vor.u32 %v14639_v1, %v11310_v62  ;;  %7581 = vmatpush.bf16.msrb.mxu3 %v11583_v63 }
  0xc2   : > { %v11566_v4 = vld [vmem:[%s15846_s27 + $0xf60] sm:$0xf]  ;;  %v14703_v5 = vld [vmem:[%s15846_s27 + $0xf6c] sm:$0xf0]  ;;  %v11439_v8 = vor.u32 %v14671_v3, %v11438_v2  ;;  %7543 = vmatpush.bf16.msrb.mxu0 %v11183_v6  ;;  %v414_v6 = vld [vmem:[%s15868_s14 + $0x78] sm:$0xff] }
  0xc3   : > { %v11166_v9 = vld [vmem:[%s15846_s27 + $0xc40] sm:$0xf]  ;;  %v14603_v11 = vld [vmem:[%s15846_s27 + $0xc4c] sm:$0xf0]  ;;  %v11567_v13 = vor.u32 %v14703_v5, %v11566_v4  ;;  %7556 = vmatpush.bf16.msrb.mxu1 %v11311_v7  ;;  %v412_v5 = vld [vmem:[%s15868_s14 + $0x68] sm:$0xff] }
  0xc4   : > { %v11294_v12 = vld [vmem:[%s15846_s27 + $0xd40] sm:$0xf]  ;;  %v14635_v14 = vld [vmem:[%s15846_s27 + $0xd4c] sm:$0xf0]  ;;  %v11167_v22 = vor.u32 %v14603_v11, %v11166_v9  ;;  %7569 = vmatpush.bf16.msrb.mxu2 %v11439_v8 }
  0xc5   : > { %v11422_v15 = vld [vmem:[%s15846_s27 + $0xe40] sm:$0xf]  ;;  %v14667_v16 = vld [vmem:[%s15846_s27 + $0xe4c] sm:$0xf0]  ;;  %v11295_v23 = vor.u32 %v14635_v14, %v11294_v12  ;;  %7582 = vmatpush.bf16.msrb.mxu3 %v11567_v13 }
  0xc6   : > { %v11550_v19 = vld [vmem:[%s15846_s27 + $0xf40] sm:$0xf]  ;;  %v14699_v21 = vld [vmem:[%s15846_s27 + $0xf4c] sm:$0xf0]  ;;  %v11423_v26 = vor.u32 %v14667_v16, %v11422_v15  ;;  %7544 = vmatpush.bf16.msrb.mxu0 %v11167_v22  ;;  %v16198_v22 = vpack.c.bf16 %v412_v5, %v412_v5 }
  0xc7   : > { %v11150_v27 = vld [vmem:[%s15846_s27 + $0xc20] sm:$0xf]  ;;  %v14599_v29 = vld [vmem:[%s15846_s27 + $0xc2c] sm:$0xf0]  ;;  %v11551_v31 = vor.u32 %v14699_v21, %v11550_v19  ;;  %7557 = vmatpush.bf16.msrb.mxu1 %v11295_v23 }
  0xc8   : > { %v11278_v30 = vld [vmem:[%s15846_s27 + $0xd20] sm:$0xf]  ;;  %v14631_v32 = vld [vmem:[%s15846_s27 + $0xd2c] sm:$0xf0]  ;;  %v11151_v40 = vor.u32 %v14599_v29, %v11150_v27  ;;  %7570 = vmatpush.bf16.msrb.mxu2 %v11423_v26  ;;  %v16202_v27 = vpack.c.bf16 %v414_v6, %v414_v6 }
  0xc9   : > { %v11406_v33 = vld [vmem:[%s15846_s27 + $0xe20] sm:$0xf]  ;;  %v14663_v34 = vld [vmem:[%s15846_s27 + $0xe2c] sm:$0xf0]  ;;  %v11279_v44 = vor.u32 %v14631_v32, %v11278_v30  ;;  %7583 = vmatpush.bf16.msrb.mxu3 %v11551_v31 }
  0xca   : > { %v11534_v36 = vld [vmem:[%s15846_s27 + $0xf20] sm:$0xf]  ;;  %v14695_v37 = vld [vmem:[%s15846_s27 + $0xf2c] sm:$0xf0]  ;;  %v11407_v45 = vor.u32 %v14663_v34, %v11406_v33  ;;  %7545 = vmatpush.bf16.msrb.mxu0 %v11151_v40 }
  0xcb   : > { %v11134_v42 = vld [vmem:[%s15846_s27 + $0xc00] sm:$0xf]  ;;  %v14595_v43 = vld [vmem:[%s15846_s27 + $0xc0c] sm:$0xf0]  ;;  %v11535_v49 = vor.u32 %v14695_v37, %v11534_v36  ;;  %7558 = vmatpush.bf16.msrb.mxu1 %v11279_v44 }
  0xcc   : > { %v11262_v46 = vld [vmem:[%s15846_s27 + $0xd00] sm:$0xf]  ;;  %v14627_v47 = vld [vmem:[%s15846_s27 + $0xd0c] sm:$0xf0]  ;;  %v11135_v56 = vor.u32 %v14595_v43, %v11134_v42  ;;  %7571 = vmatpush.bf16.msrb.mxu2 %v11407_v45 }
  0xcd   : > { %v11390_v48 = vld [vmem:[%s15846_s27 + $0xe00] sm:$0xf]  ;;  %v14659_v50 = vld [vmem:[%s15846_s27 + $0xe0c] sm:$0xf0]  ;;  %v11263_v60 = vor.u32 %v14627_v47, %v11262_v46  ;;  %7584 = vmatpush.bf16.msrb.mxu3 %v11535_v49 }
  0xce   : > { %v11518_v51 = vld [vmem:[%s15846_s27 + $0xf00] sm:$0xf]  ;;  %v14691_v52 = vld [vmem:[%s15846_s27 + $0xf0c] sm:$0xf0]  ;;  %v11391_v61 = vor.u32 %v14659_v50, %v11390_v48  ;;  %7546 = vmatpush.bf16.msrb.mxu0 %v11135_v56 }
  0xcf   : > { %v11758_v53 = vld [vmem:[%s15846_s27 + $0x10e0] sm:$0xf]  ;;  %v14751_v54 = vld [vmem:[%s15846_s27 + $0x10ec] sm:$0xf0]  ;;  %v11519_v2 = vor.u32 %v14691_v52, %v11518_v51  ;;  %7559 = vmatpush.bf16.msrb.mxu1 %v11263_v60 }
  0xd0   : > { %v11886_v55 = vld [vmem:[%s15846_s27 + $0x11e0] sm:$0xf]  ;;  %v14783_v57 = vld [vmem:[%s15846_s27 + $0x11ec] sm:$0xf0]  ;;  %v11759_v3 = vor.u32 %v14751_v54, %v11758_v53  ;;  %7572 = vmatpush.bf16.msrb.mxu2 %v11391_v61 }
  0xd1   : > { %v12014_v58 = vld [vmem:[%s15846_s27 + $0x12e0] sm:$0xf]  ;;  %v14815_v59 = vld [vmem:[%s15846_s27 + $0x12ec] sm:$0xf0]  ;;  %v11887_v7 = vor.u32 %v14783_v57, %v11886_v55  ;;  %7585 = vmatpush.bf16.msrb.mxu3 %v11519_v2 }
  0xd2   : > { %v12142_v62 = vld [vmem:[%s15846_s27 + $0x13e0] sm:$0xf]  ;;  %v14847_v63 = vld [vmem:[%s15846_s27 + $0x13ec] sm:$0xf0]  ;;  %v12015_v8 = vor.u32 %v14815_v59, %v12014_v58  ;;  %7591 = vmatpush.bf16.msra.mxu0 %v11759_v3  ;;  %7560 = vmatmul.bf16.vlgmr.msrb.gmra.mxu1 %v16198_v22 }
  0xd3   : > { %v411_v1 = vld [vmem:[%s15868_s14 + $0x60] sm:$0xff]  ;;  %v413_v4 = vld [vmem:[%s15868_s14 + $0x70] sm:$0xff]  ;;  %v12143_v13 = vor.u32 %v14847_v63, %v12142_v62  ;;  %7604 = vmatpush.bf16.msra.mxu1 %v11887_v7 }
  0xd4   : > { %v11742_v9 = vld [vmem:[%s15846_s27 + $0x10c0] sm:$0xf]  ;;  %v14747_v11 = vld [vmem:[%s15846_s27 + $0x10cc] sm:$0xf0]  ;;  %v16191_v14 = vpack.c.bf16 %v411_v1, %v411_v1  ;;  %v16196_v21 = vpack.c.bf16 %v413_v4, %v413_v4  ;;  %7617 = vmatpush.bf16.msra.mxu2 %v12015_v8  ;;  %7586 = vmatmul.bf16.vlgmr.msrb.gmra.mxu3 %v16202_v27 }
  0xd5   : > { %v11870_v12 = vld [vmem:[%s15846_s27 + $0x11c0] sm:$0xf]  ;;  %v14779_v15 = vld [vmem:[%s15846_s27 + $0x11cc] sm:$0xf0]  ;;  %v11743_v29 = vor.u32 %v14747_v11, %v11742_v9  ;;  %7630 = vmatpush.bf16.msra.mxu3 %v12143_v13 }
  0xd6   : > { %v11998_v16 = vld [vmem:[%s15846_s27 + $0x12c0] sm:$0xf]  ;;  %v14811_v19 = vld [vmem:[%s15846_s27 + $0x12cc] sm:$0xf0]  ;;  %v11871_v30 = vor.u32 %v14779_v15, %v11870_v12  ;;  %7547 = vmatmul.bf16.vlgmr.msrb.gmra.mxu0 %v16191_v14  ;;  %7573 = vmatmul.bf16.vlgmr.msrb.gmra.mxu2 %v16196_v21 }
  0xd7   : > { %v12126_v23 = vld [vmem:[%s15846_s27 + $0x13c0] sm:$0xf]  ;;  %v14843_v26 = vld [vmem:[%s15846_s27 + $0x13cc] sm:$0xf0]  ;;  %v11999_v31 = vor.u32 %v14811_v19, %v11998_v16  ;;  %7592 = vmatpush.bf16.msra.mxu0 %v11743_v29 }
  0xd8   : > { %v11726_v32 = vld [vmem:[%s15846_s27 + $0x10a0] sm:$0xf]  ;;  %v14743_v33 = vld [vmem:[%s15846_s27 + $0x10ac] sm:$0xf0]  ;;  %v12127_v36 = vor.u32 %v14843_v26, %v12126_v23  ;;  %7605 = vmatpush.bf16.msra.mxu1 %v11871_v30 }
  0xd9   : > { %v11854_v34 = vld [vmem:[%s15846_s27 + $0x11a0] sm:$0xf]  ;;  %v14775_v37 = vld [vmem:[%s15846_s27 + $0x11ac] sm:$0xf0]  ;;  %v11727_v45 = vor.u32 %v14743_v33, %v11726_v32  ;;  %7618 = vmatpush.bf16.msra.mxu2 %v11999_v31 }
  0xda   : > { %v11982_v40 = vld [vmem:[%s15846_s27 + $0x12a0] sm:$0xf]  ;;  %v14807_v42 = vld [vmem:[%s15846_s27 + $0x12ac] sm:$0xf0]  ;;  %v11855_v46 = vor.u32 %v14775_v37, %v11854_v34  ;;  %7631 = vmatpush.bf16.msra.mxu3 %v12127_v36 }
  0xdb   : > { %v12110_v43 = vld [vmem:[%s15846_s27 + $0x13a0] sm:$0xf]  ;;  %v14839_v44 = vld [vmem:[%s15846_s27 + $0x13ac] sm:$0xf0]  ;;  %v11983_v47 = vor.u32 %v14807_v42, %v11982_v40  ;;  %7593 = vmatpush.bf16.msra.mxu0 %v11727_v45 }
  0xdc   : > { %v11710_v48 = vld [vmem:[%s15846_s27 + $0x1080] sm:$0xf]  ;;  %v14739_v49 = vld [vmem:[%s15846_s27 + $0x108c] sm:$0xf0]  ;;  %v12111_v51 = vor.u32 %v14839_v44, %v12110_v43  ;;  %7606 = vmatpush.bf16.msra.mxu1 %v11855_v46 }
  0xdd   : > { %v11838_v50 = vld [vmem:[%s15846_s27 + $0x1180] sm:$0xf]  ;;  %v14771_v52 = vld [vmem:[%s15846_s27 + $0x118c] sm:$0xf0]  ;;  %v11711_v57 = vor.u32 %v14739_v49, %v11710_v48  ;;  %7619 = vmatpush.bf16.msra.mxu2 %v11983_v47 }
  0xde   : > { %v11966_v53 = vld [vmem:[%s15846_s27 + $0x1280] sm:$0xf]  ;;  %v14803_v54 = vld [vmem:[%s15846_s27 + $0x128c] sm:$0xf0]  ;;  %v11839_v58 = vor.u32 %v14771_v52, %v11838_v50  ;;  %7632 = vmatpush.bf16.msra.mxu3 %v12111_v51 }
  0xdf   : > { %v12094_v55 = vld [vmem:[%s15846_s27 + $0x1380] sm:$0xf]  ;;  %v14835_v56 = vld [vmem:[%s15846_s27 + $0x138c] sm:$0xf0]  ;;  %v11967_v59 = vor.u32 %v14803_v54, %v11966_v53  ;;  %7594 = vmatpush.bf16.msra.mxu0 %v11711_v57 }
  0xe0   : > { %v11694_v60 = vld [vmem:[%s15846_s27 + $0x1060] sm:$0xf]  ;;  %v14735_v61 = vld [vmem:[%s15846_s27 + $0x106c] sm:$0xf0]  ;;  %v12095_v63 = vor.u32 %v14835_v56, %v12094_v55  ;;  %7607 = vmatpush.bf16.msra.mxu1 %v11839_v58 }
  0xe1   : > { %v11822_v62 = vld [vmem:[%s15846_s27 + $0x1160] sm:$0xf]  ;;  %v14767_v1 = vld [vmem:[%s15846_s27 + $0x116c] sm:$0xf0]  ;;  %v11695_v6 = vor.u32 %v14735_v61, %v11694_v60  ;;  %7620 = vmatpush.bf16.msra.mxu2 %v11967_v59 }
  0xe2   : > { %v11950_v2 = vld [vmem:[%s15846_s27 + $0x1260] sm:$0xf]  ;;  %v14799_v3 = vld [vmem:[%s15846_s27 + $0x126c] sm:$0xf0]  ;;  %v11823_v7 = vor.u32 %v14767_v1, %v11822_v62  ;;  %7633 = vmatpush.bf16.msra.mxu3 %v12095_v63 }
  0xe3   : > { %v12078_v4 = vld [vmem:[%s15846_s27 + $0x1360] sm:$0xf]  ;;  %v14831_v5 = vld [vmem:[%s15846_s27 + $0x136c] sm:$0xf0]  ;;  %v11951_v8 = vor.u32 %v14799_v3, %v11950_v2  ;;  %7595 = vmatpush.bf16.msra.mxu0 %v11695_v6 }
  0xe4   : > { %v11678_v9 = vld [vmem:[%s15846_s27 + $0x1040] sm:$0xf]  ;;  %v14731_v11 = vld [vmem:[%s15846_s27 + $0x104c] sm:$0xf0]  ;;  %v12079_v13 = vor.u32 %v14831_v5, %v12078_v4  ;;  %7608 = vmatpush.bf16.msra.mxu1 %v11823_v7 }
  0xe5   : > { %v11806_v12 = vld [vmem:[%s15846_s27 + $0x1140] sm:$0xf]  ;;  %v14763_v15 = vld [vmem:[%s15846_s27 + $0x114c] sm:$0xf0]  ;;  %v11679_v29 = vor.u32 %v14731_v11, %v11678_v9  ;;  %7621 = vmatpush.bf16.msra.mxu2 %v11951_v8  ;;  %v416_v9 = vld [vmem:[%s15868_s14 + $0x88] sm:$0xff] }
  0xe6   : > { %v11934_v16 = vld [vmem:[%s15846_s27 + $0x1240] sm:$0xf]  ;;  %v14795_v19 = vld [vmem:[%s15846_s27 + $0x124c] sm:$0xf0]  ;;  %v11807_v30 = vor.u32 %v14763_v15, %v11806_v12  ;;  %7634 = vmatpush.bf16.msra.mxu3 %v12079_v13  ;;  %v418_v11 = vld [vmem:[%s15868_s14 + $0x98] sm:$0xff] }
  0xe7   : > { %v12062_v23 = vld [vmem:[%s15846_s27 + $0x1340] sm:$0xf]  ;;  %v14827_v26 = vld [vmem:[%s15846_s27 + $0x134c] sm:$0xf0]  ;;  %v11935_v31 = vor.u32 %v14795_v19, %v11934_v16  ;;  %7596 = vmatpush.bf16.msra.mxu0 %v11679_v29 }
  0xe8   : > { %v11662_v32 = vld [vmem:[%s15846_s27 + $0x1020] sm:$0xf]  ;;  %v14727_v33 = vld [vmem:[%s15846_s27 + $0x102c] sm:$0xf0]  ;;  %v12063_v36 = vor.u32 %v14827_v26, %v12062_v23  ;;  %7609 = vmatpush.bf16.msra.mxu1 %v11807_v30 }
  0xe9   : > { %v11790_v34 = vld [vmem:[%s15846_s27 + $0x1120] sm:$0xf]  ;;  %v14759_v37 = vld [vmem:[%s15846_s27 + $0x112c] sm:$0xf0]  ;;  %v11663_v45 = vor.u32 %v14727_v33, %v11662_v32  ;;  %7622 = vmatpush.bf16.msra.mxu2 %v11935_v31  ;;  %v16278_v33 = vpack.c.bf16 %v416_v9, %v416_v9 }
  0xea   : > { %v11918_v40 = vld [vmem:[%s15846_s27 + $0x1220] sm:$0xf]  ;;  %v14791_v42 = vld [vmem:[%s15846_s27 + $0x122c] sm:$0xf0]  ;;  %v11791_v48 = vor.u32 %v14759_v37, %v11790_v34  ;;  %7635 = vmatpush.bf16.msra.mxu3 %v12063_v36  ;;  %v16282_v37 = vpack.c.bf16 %v418_v11, %v418_v11 }
  0xeb   : > { %v12046_v43 = vld [vmem:[%s15846_s27 + $0x1320] sm:$0xf]  ;;  %v14823_v44 = vld [vmem:[%s15846_s27 + $0x132c] sm:$0xf0]  ;;  %v11919_v49 = vor.u32 %v14791_v42, %v11918_v40  ;;  %7597 = vmatpush.bf16.msra.mxu0 %v11663_v45 }
  0xec   : > { %v11646_v46 = vld [vmem:[%s15846_s27 + $0x1000] sm:$0xf]  ;;  %v14723_v47 = vld [vmem:[%s15846_s27 + $0x100c] sm:$0xf0]  ;;  %v12047_v53 = vor.u32 %v14823_v44, %v12046_v43  ;;  %7610 = vmatpush.bf16.msra.mxu1 %v11791_v48 }
  0xed   : > { %v11774_v50 = vld [vmem:[%s15846_s27 + $0x1100] sm:$0xf]  ;;  %v14755_v51 = vld [vmem:[%s15846_s27 + $0x110c] sm:$0xf0]  ;;  %v11647_v60 = vor.u32 %v14723_v47, %v11646_v46  ;;  %7623 = vmatpush.bf16.msra.mxu2 %v11919_v49 }
  0xee   : > { %v11902_v52 = vld [vmem:[%s15846_s27 + $0x1200] sm:$0xf]  ;;  %v14787_v54 = vld [vmem:[%s15846_s27 + $0x120c] sm:$0xf0]  ;;  %v11775_v1 = vor.u32 %v14755_v51, %v11774_v50  ;;  %7636 = vmatpush.bf16.msra.mxu3 %v12047_v53 }
  0xef   : > { %v12030_v55 = vld [vmem:[%s15846_s27 + $0x1300] sm:$0xf]  ;;  %v14819_v56 = vld [vmem:[%s15846_s27 + $0x130c] sm:$0xf0]  ;;  %v11903_v2 = vor.u32 %v14787_v54, %v11902_v52  ;;  %7598 = vmatpush.bf16.msra.mxu0 %v11647_v60 }
  0xf0   : > { %v12270_v57 = vld [vmem:[%s15846_s27 + $0x14e0] sm:$0xf]  ;;  %v14879_v58 = vld [vmem:[%s15846_s27 + $0x14ec] sm:$0xf0]  ;;  %v12031_v6 = vor.u32 %v14819_v56, %v12030_v55  ;;  %7611 = vmatpush.bf16.msra.mxu1 %v11775_v1 }
  0xf1   : > { %v12398_v59 = vld [vmem:[%s15846_s27 + $0x15e0] sm:$0xf]  ;;  %v14911_v61 = vld [vmem:[%s15846_s27 + $0x15ec] sm:$0xf0]  ;;  %v12271_v7 = vor.u32 %v14879_v58, %v12270_v57  ;;  %7624 = vmatpush.bf16.msra.mxu2 %v11903_v2 }
  0xf2   : > { %v12526_v62 = vld [vmem:[%s15846_s27 + $0x16e0] sm:$0xf]  ;;  %v14943_v63 = vld [vmem:[%s15846_s27 + $0x16ec] sm:$0xf0]  ;;  %v12399_v12 = vor.u32 %v14911_v61, %v12398_v59  ;;  %7637 = vmatpush.bf16.msra.mxu3 %v12031_v6 }
  0xf3   : > { %v12654_v3 = vld [vmem:[%s15846_s27 + $0x17e0] sm:$0xf]  ;;  %v14975_v4 = vld [vmem:[%s15846_s27 + $0x17ec] sm:$0xf0]  ;;  %v12527_v13 = vor.u32 %v14943_v63, %v12526_v62  ;;  %7643 = vmatpush.bf16.msrb.mxu0 %v12271_v7  ;;  %7612 = vmatmul.bf16.vlgmr.msra.gmra.mxu1 %v16278_v33 }
  0xf4   : > { %v415_v5 = vld [vmem:[%s15868_s14 + $0x80] sm:$0xff]  ;;  %v417_v8 = vld [vmem:[%s15868_s14 + $0x90] sm:$0xff]  ;;  %v12655_v23 = vor.u32 %v14975_v4, %v12654_v3  ;;  %7656 = vmatpush.bf16.msrb.mxu1 %v12399_v12 }
  0xf5   : > { %v12254_v15 = vld [vmem:[%s15846_s27 + $0x14c0] sm:$0xf]  ;;  %v14875_v16 = vld [vmem:[%s15846_s27 + $0x14cc] sm:$0xf0]  ;;  %v16271_v26 = vpack.c.bf16 %v415_v5, %v415_v5  ;;  %v16276_v32 = vpack.c.bf16 %v417_v8, %v417_v8  ;;  %7669 = vmatpush.bf16.msrb.mxu2 %v12527_v13  ;;  %7638 = vmatmul.bf16.vlgmr.msra.gmra.mxu3 %v16282_v37 }
  0xf6   : > { %v12382_v19 = vld [vmem:[%s15846_s27 + $0x15c0] sm:$0xf]  ;;  %v14907_v29 = vld [vmem:[%s15846_s27 + $0x15cc] sm:$0xf0]  ;;  %v12255_v40 = vor.u32 %v14875_v16, %v12254_v15  ;;  %7682 = vmatpush.bf16.msrb.mxu3 %v12655_v23 }
  0xf7   : > { %v12510_v30 = vld [vmem:[%s15846_s27 + $0x16c0] sm:$0xf]  ;;  %v14939_v31 = vld [vmem:[%s15846_s27 + $0x16cc] sm:$0xf0]  ;;  %v12383_v42 = vor.u32 %v14907_v29, %v12382_v19  ;;  %7599 = vmatmul.bf16.vlgmr.msra.gmra.mxu0 %v16271_v26  ;;  %7625 = vmatmul.bf16.vlgmr.msra.gmra.mxu2 %v16276_v32 }
  0xf8   : > { %v12638_v34 = vld [vmem:[%s15846_s27 + $0x17c0] sm:$0xf]  ;;  %v14971_v36 = vld [vmem:[%s15846_s27 + $0x17cc] sm:$0xf0]  ;;  %v12511_v43 = vor.u32 %v14939_v31, %v12510_v30  ;;  %7644 = vmatpush.bf16.msrb.mxu0 %v12255_v40 }
  0xf9   : > { %v12238_v44 = vld [vmem:[%s15846_s27 + $0x14a0] sm:$0xf]  ;;  %v14871_v45 = vld [vmem:[%s15846_s27 + $0x14ac] sm:$0xf0]  ;;  %v12639_v47 = vor.u32 %v14971_v36, %v12638_v34  ;;  %7657 = vmatpush.bf16.msrb.mxu1 %v12383_v42  ;;  %v7392_v19 = vpop.f32.mrf.mxu0 }
  0xfa   : > { %v12366_v46 = vld [vmem:[%s15846_s27 + $0x15a0] sm:$0xf]  ;;  %v14903_v48 = vld [vmem:[%s15846_s27 + $0x15ac] sm:$0xf0]  ;;  %v12239_v53 = vor.u32 %v14871_v45, %v12238_v44  ;;  %7670 = vmatpush.bf16.msrb.mxu2 %v12511_v43 }
  0xfb   : > { %v12494_v49 = vld [vmem:[%s15846_s27 + $0x16a0] sm:$0xf]  ;;  %v14935_v50 = vld [vmem:[%s15846_s27 + $0x16ac] sm:$0xf0]  ;;  %v12367_v54 = vor.u32 %v14903_v48, %v12366_v46  ;;  %7683 = vmatpush.bf16.msrb.mxu3 %v12639_v47  ;;  %v7405_v46 = vpop.f32.mrf.mxu1  ;;  %v7418_v47 = vpop.f32.mrf.mxu2 }
  0xfc   : > { %v12622_v51 = vld [vmem:[%s15846_s27 + $0x17a0] sm:$0xf]  ;;  %v14967_v52 = vld [vmem:[%s15846_s27 + $0x17ac] sm:$0xf0]  ;;  %v12495_v55 = vor.u32 %v14935_v50, %v12494_v49  ;;  %7645 = vmatpush.bf16.msrb.mxu0 %v12239_v53  ;;  %v7406_v49 = vadd.f32 %v7405_v46, %v7392_v19 }
  0xfd   : > { %v12222_v56 = vld [vmem:[%s15846_s27 + $0x1480] sm:$0xf]  ;;  %v14867_v57 = vld [vmem:[%s15846_s27 + $0x148c] sm:$0xf0]  ;;  %v12623_v59 = vor.u32 %v14967_v52, %v12622_v51  ;;  %7658 = vmatpush.bf16.msrb.mxu1 %v12367_v54 }
  0xfe   : > { %v12350_v58 = vld [vmem:[%s15846_s27 + $0x1580] sm:$0xf]  ;;  %v14899_v60 = vld [vmem:[%s15846_s27 + $0x158c] sm:$0xf0]  ;;  %v12223_v2 = vor.u32 %v14867_v57, %v12222_v56  ;;  %7671 = vmatpush.bf16.msrb.mxu2 %v12495_v55 }
  0xff   : > { %v12478_v61 = vld [vmem:[%s15846_s27 + $0x1680] sm:$0xf]  ;;  %v14931_v62 = vld [vmem:[%s15846_s27 + $0x168c] sm:$0xf0]  ;;  %v12351_v3 = vor.u32 %v14899_v60, %v12350_v58  ;;  %7684 = vmatpush.bf16.msrb.mxu3 %v12623_v59  ;;  %v7419_v59 = vadd.f32 %v7418_v47, %v7406_v49 }
 0x100   : > { %v12606_v63 = vld [vmem:[%s15846_s27 + $0x1780] sm:$0xf]  ;;  %v14963_v1 = vld [vmem:[%s15846_s27 + $0x178c] sm:$0xf0]  ;;  %v12479_v4 = vor.u32 %v14931_v62, %v12478_v61  ;;  %7646 = vmatpush.bf16.msrb.mxu0 %v12223_v2  ;;  %v7431_v62 = vpop.f32.mrf.mxu3 }
 0x101   : > { %v12206_v5 = vld [vmem:[%s15846_s27 + $0x1460] sm:$0xf]  ;;  %v14863_v6 = vld [vmem:[%s15846_s27 + $0x146c] sm:$0xf0]  ;;  %v12607_v8 = vor.u32 %v14963_v1, %v12606_v63  ;;  %7659 = vmatpush.bf16.msrb.mxu1 %v12351_v3  ;;  %v16330_v3 = vadd.f32 %v7431_v62, %v7419_v59 }
 0x102   : > { %v12334_v7 = vld [vmem:[%s15846_s27 + $0x1560] sm:$0xf]  ;;  %v14895_v9 = vld [vmem:[%s15846_s27 + $0x156c] sm:$0xf0]  ;;  %v12207_v16 = vor.u32 %v14863_v6, %v12206_v5  ;;  %7672 = vmatpush.bf16.msrb.mxu2 %v12479_v4  ;;  %v7394_v4 = vpop.f32.mrf.mxu0 }
 0x103   : > { %v12462_v11 = vld [vmem:[%s15846_s27 + $0x1660] sm:$0xf]  ;;  %v14927_v12 = vld [vmem:[%s15846_s27 + $0x166c] sm:$0xf0]  ;;  %v12335_v23 = vor.u32 %v14895_v9, %v12334_v7  ;;  %7685 = vmatpush.bf16.msrb.mxu3 %v12607_v8 }
 0x104   : > { %v12590_v13 = vld [vmem:[%s15846_s27 + $0x1760] sm:$0xf]  ;;  %v14959_v15 = vld [vmem:[%s15846_s27 + $0x176c] sm:$0xf0]  ;;  %v12463_v29 = vor.u32 %v14927_v12, %v12462_v11  ;;  %7647 = vmatpush.bf16.msrb.mxu0 %v12207_v16 }
 0x105   : > { %v12190_v30 = vld [vmem:[%s15846_s27 + $0x1440] sm:$0xf]  ;;  %v14859_v31 = vld [vmem:[%s15846_s27 + $0x144c] sm:$0xf0]  ;;  %v12591_v36 = vor.u32 %v14959_v15, %v12590_v13  ;;  %7660 = vmatpush.bf16.msrb.mxu1 %v12335_v23 }
 0x106   : > { %v12318_v34 = vld [vmem:[%s15846_s27 + $0x1540] sm:$0xf]  ;;  %v14891_v40 = vld [vmem:[%s15846_s27 + $0x154c] sm:$0xf0]  ;;  %v12191_v48 = vor.u32 %v14859_v31, %v12190_v30  ;;  %7673 = vmatpush.bf16.msrb.mxu2 %v12463_v29  ;;  %v7407_v29 = vpop.f32.mrf.mxu1  ;;  %v7420_v30 = vpop.f32.mrf.mxu2 }
 0x107   : > { %v12446_v42 = vld [vmem:[%s15846_s27 + $0x1640] sm:$0xf]  ;;  %v14923_v43 = vld [vmem:[%s15846_s27 + $0x164c] sm:$0xf0]  ;;  %v12319_v50 = vor.u32 %v14891_v40, %v12318_v34  ;;  %7686 = vmatpush.bf16.msrb.mxu3 %v12591_v36 }
 0x108   : > { %v12574_v44 = vld [vmem:[%s15846_s27 + $0x1740] sm:$0xf]  ;;  %v14955_v45 = vld [vmem:[%s15846_s27 + $0x174c] sm:$0xf0]  ;;  %v12447_v51 = vor.u32 %v14923_v43, %v12446_v42  ;;  %7648 = vmatpush.bf16.msrb.mxu0 %v12191_v48 }
 0x109   : > { %v12174_v52 = vld [vmem:[%s15846_s27 + $0x1420] sm:$0xf]  ;;  %v14855_v53 = vld [vmem:[%s15846_s27 + $0x142c] sm:$0xf0]  ;;  %v12575_v55 = vor.u32 %v14955_v45, %v12574_v44  ;;  %7661 = vmatpush.bf16.msrb.mxu1 %v12319_v50  ;;  %v420_v50 = vld [vmem:[%s15868_s14 + $0xa8] sm:$0xff] }
 0x10a   : > { %v12302_v54 = vld [vmem:[%s15846_s27 + $0x1520] sm:$0xf]  ;;  %v14887_v56 = vld [vmem:[%s15846_s27 + $0x152c] sm:$0xf0]  ;;  %v12175_v63 = vor.u32 %v14855_v53, %v12174_v52  ;;  %7674 = vmatpush.bf16.msrb.mxu2 %v12447_v51  ;;  %v422_v51 = vld [vmem:[%s15868_s14 + $0xb8] sm:$0xff] }
 0x10b   : > { %v12430_v57 = vld [vmem:[%s15846_s27 + $0x1620] sm:$0xf]  ;;  %v14919_v58 = vld [vmem:[%s15846_s27 + $0x162c] sm:$0xf0]  ;;  %v12303_v5 = vor.u32 %v14887_v56, %v12302_v54  ;;  %7687 = vmatpush.bf16.msrb.mxu3 %v12575_v55 }
 0x10c   : > { %v12558_v60 = vld [vmem:[%s15846_s27 + $0x1720] sm:$0xf]  ;;  %v14951_v61 = vld [vmem:[%s15846_s27 + $0x172c] sm:$0xf0]  ;;  %v12431_v6 = vor.u32 %v14919_v58, %v12430_v57  ;;  %7649 = vmatpush.bf16.msrb.mxu0 %v12175_v63  ;;  %v7433_v57 = vpop.f32.mrf.mxu3 }
 0x10d   : > { %v12158_v1 = vld [vmem:[%s15846_s27 + $0x1400] sm:$0xf]  ;;  %v14851_v2 = vld [vmem:[%s15846_s27 + $0x140c] sm:$0xf0]  ;;  %v12559_v11 = vor.u32 %v14951_v61, %v12558_v60  ;;  %7662 = vmatpush.bf16.msrb.mxu1 %v12303_v5  ;;  %v16364_v5 = vpack.c.bf16 %v422_v51, %v422_v51 }
 0x10e   : > { %v12286_v7 = vld [vmem:[%s15846_s27 + $0x1500] sm:$0xf]  ;;  %v14883_v8 = vld [vmem:[%s15846_s27 + $0x150c] sm:$0xf0]  ;;  %v12159_v31 = vor.u32 %v14851_v2, %v12158_v1  ;;  %7675 = vmatpush.bf16.msrb.mxu2 %v12431_v6  ;;  %v16360_v1 = vpack.c.bf16 %v420_v50, %v420_v50  ;;  %v7457_v57 = vpop.f32.mrf.mxu1 }
 0x10f   : > { %v12414_v9 = vld [vmem:[%s15846_s27 + $0x1600] sm:$0xf]  ;;  %v14915_v12 = vld [vmem:[%s15846_s27 + $0x160c] sm:$0xf0]  ;;  %v12287_v42 = vor.u32 %v14883_v8, %v12286_v7  ;;  %7688 = vmatpush.bf16.msrb.mxu3 %v12559_v11 }
 0x110   : > { %v12542_v13 = vld [vmem:[%s15846_s27 + $0x1700] sm:$0xf]  ;;  %v14947_v15 = vld [vmem:[%s15846_s27 + $0x170c] sm:$0xf0]  ;;  %v12415_v43 = vor.u32 %v14915_v12, %v12414_v9  ;;  %7650 = vmatpush.bf16.msrb.mxu0 %v12159_v31 }
 0x111   : > { %v12782_v16 = vld [vmem:[%s15846_s27 + $0x18e0] sm:$0xf]  ;;  %v15007_v19 = vld [vmem:[%s15846_s27 + $0x18ec] sm:$0xf0]  ;;  %v12543_v47 = vor.u32 %v14947_v15, %v12542_v13  ;;  %7663 = vmatpush.bf16.msrb.mxu1 %v12287_v42 }
 0x112   : > { %v12910_v23 = vld [vmem:[%s15846_s27 + $0x19e0] sm:$0xf]  ;;  %v15039_v34 = vld [vmem:[%s15846_s27 + $0x19ec] sm:$0xf0]  ;;  %v12783_v48 = vor.u32 %v15007_v19, %v12782_v16  ;;  %7676 = vmatpush.bf16.msrb.mxu2 %v12415_v43  ;;  %v7444_v50 = vpop.f32.mrf.mxu0 }
 0x113   : > { %v13038_v36 = vld [vmem:[%s15846_s27 + $0x1ae0] sm:$0xf]  ;;  %v15071_v40 = vld [vmem:[%s15846_s27 + $0x1aec] sm:$0xf0]  ;;  %v12911_v52 = vor.u32 %v15039_v34, %v12910_v23  ;;  %7689 = vmatpush.bf16.msrb.mxu3 %v12543_v47 }
 0x114   : > { %v13166_v44 = vld [vmem:[%s15846_s27 + $0x1be0] sm:$0xf]  ;;  %v15103_v45 = vld [vmem:[%s15846_s27 + $0x1bec] sm:$0xf0]  ;;  %v13039_v53 = vor.u32 %v15071_v40, %v13038_v36  ;;  %7695 = vmatpush.bf16.msra.mxu0 %v12783_v48  ;;  %7664 = vmatmul.bf16.vlgmr.msrb.gmra.mxu1 %v16360_v1 }
 0x115   : > { %v419_v46 = vld [vmem:[%s15868_s14 + $0xa0] sm:$0xff]  ;;  %v421_v49 = vld [vmem:[%s15868_s14 + $0xb0] sm:$0xff]  ;;  %v13167_v58 = vor.u32 %v15103_v45, %v13166_v44  ;;  %7708 = vmatpush.bf16.msra.mxu1 %v12911_v52 }
 0x116   : > { %v12766_v54 = vld [vmem:[%s15846_s27 + $0x18c0] sm:$0xf]  ;;  %v15003_v55 = vld [vmem:[%s15846_s27 + $0x18cc] sm:$0xf0]  ;;  %v16353_v59 = vpack.c.bf16 %v419_v46, %v419_v46  ;;  %v16358_v63 = vpack.c.bf16 %v421_v49, %v421_v49  ;;  %7721 = vmatpush.bf16.msra.mxu2 %v13039_v53  ;;  %7690 = vmatmul.bf16.vlgmr.msrb.gmra.mxu3 %v16364_v5 }
 0x117   : > { %v12894_v56 = vld [vmem:[%s15846_s27 + $0x19c0] sm:$0xf]  ;;  %v15035_v60 = vld [vmem:[%s15846_s27 + $0x19cc] sm:$0xf0]  ;;  %v12767_v6 = vor.u32 %v15003_v55, %v12766_v54  ;;  %7734 = vmatpush.bf16.msra.mxu3 %v13167_v58 }
 0x118   : > { %v13022_v61 = vld [vmem:[%s15846_s27 + $0x1ac0] sm:$0xf]  ;;  %v15067_v62 = vld [vmem:[%s15846_s27 + $0x1acc] sm:$0xf0]  ;;  %v12895_v7 = vor.u32 %v15035_v60, %v12894_v56  ;;  %7651 = vmatmul.bf16.vlgmr.msrb.gmra.mxu0 %v16353_v59  ;;  %7677 = vmatmul.bf16.vlgmr.msrb.gmra.mxu2 %v16358_v63  ;;  %v7445_v56 = vadd.f32 %v7444_v50, %v16330_v3 }
 0x119   : > { %v13150_v2 = vld [vmem:[%s15846_s27 + $0x1bc0] sm:$0xf]  ;;  %v15099_v4 = vld [vmem:[%s15846_s27 + $0x1bcc] sm:$0xf0]  ;;  %v13023_v8 = vor.u32 %v15067_v62, %v13022_v61  ;;  %7696 = vmatpush.bf16.msra.mxu0 %v12767_v6 }
 0x11a   : > { %v12750_v9 = vld [vmem:[%s15846_s27 + $0x18a0] sm:$0xf]  ;;  %v14999_v11 = vld [vmem:[%s15846_s27 + $0x18ac] sm:$0xf0]  ;;  %v13151_v13 = vor.u32 %v15099_v4, %v13150_v2  ;;  %7709 = vmatpush.bf16.msra.mxu1 %v12895_v7  ;;  %v7458_v6 = vadd.f32 %v7457_v57, %v7445_v56 }
 0x11b   : > { %v12878_v12 = vld [vmem:[%s15846_s27 + $0x19a0] sm:$0xf]  ;;  %v15031_v15 = vld [vmem:[%s15846_s27 + $0x19ac] sm:$0xf0]  ;;  %v12751_v30 = vor.u32 %v14999_v11, %v12750_v9  ;;  %7722 = vmatpush.bf16.msra.mxu2 %v13023_v8 }
 0x11c   : > { %v13006_v16 = vld [vmem:[%s15846_s27 + $0x1aa0] sm:$0xf]  ;;  %v15063_v19 = vld [vmem:[%s15846_s27 + $0x1aac] sm:$0xf0]  ;;  %v12879_v31 = vor.u32 %v15031_v15, %v12878_v12  ;;  %7735 = vmatpush.bf16.msra.mxu3 %v13151_v13  ;;  %v7470_v13 = vpop.f32.mrf.mxu2 }
 0x11d   : > { %v13134_v23 = vld [vmem:[%s15846_s27 + $0x1ba0] sm:$0xf]  ;;  %v15095_v29 = vld [vmem:[%s15846_s27 + $0x1bac] sm:$0xf0]  ;;  %v13007_v34 = vor.u32 %v15063_v19, %v13006_v16  ;;  %7697 = vmatpush.bf16.msra.mxu0 %v12751_v30  ;;  %v7483_v30 = vpop.f32.mrf.mxu3 }
 0x11e   : > { %v12734_v36 = vld [vmem:[%s15846_s27 + $0x1880] sm:$0xf]  ;;  %v14995_v40 = vld [vmem:[%s15846_s27 + $0x188c] sm:$0xf0]  ;;  %v13135_v43 = vor.u32 %v15095_v29, %v13134_v23  ;;  %7710 = vmatpush.bf16.msra.mxu1 %v12879_v31  ;;  %v7471_v29 = vadd.f32 %v7470_v13, %v7458_v6 }
 0x11f   : > { %v12862_v42 = vld [vmem:[%s15846_s27 + $0x1980] sm:$0xf]  ;;  %v15027_v44 = vld [vmem:[%s15846_s27 + $0x198c] sm:$0xf0]  ;;  %v12735_v49 = vor.u32 %v14995_v40, %v12734_v36  ;;  %7723 = vmatpush.bf16.msra.mxu2 %v13007_v34 }
 0x120   : > { %v12990_v45 = vld [vmem:[%s15846_s27 + $0x1a80] sm:$0xf]  ;;  %v15059_v46 = vld [vmem:[%s15846_s27 + $0x1a8c] sm:$0xf0]  ;;  %v12863_v51 = vor.u32 %v15027_v44, %v12862_v42  ;;  %7736 = vmatpush.bf16.msra.mxu3 %v13135_v43  ;;  %v16403_v40 = vadd.f32 %v7483_v30, %v7471_v29  ;;  %v7446_v42 = vpop.f32.mrf.mxu0 }
 0x121   : > { %v13118_v47 = vld [vmem:[%s15846_s27 + $0x1b80] sm:$0xf]  ;;  %v15091_v48 = vld [vmem:[%s15846_s27 + $0x1b8c] sm:$0xf0]  ;;  %v12991_v52 = vor.u32 %v15059_v46, %v12990_v45  ;;  %7698 = vmatpush.bf16.msra.mxu0 %v12735_v49 }
 0x122   : > { %v12718_v53 = vld [vmem:[%s15846_s27 + $0x1860] sm:$0xf]  ;;  %v14991_v54 = vld [vmem:[%s15846_s27 + $0x186c] sm:$0xf0]  ;;  %v13119_v58 = vor.u32 %v15091_v48, %v13118_v47  ;;  %7711 = vmatpush.bf16.msra.mxu1 %v12863_v51  ;;  %v7459_v48 = vpop.f32.mrf.mxu1 }
 0x123   : > { %v12846_v55 = vld [vmem:[%s15846_s27 + $0x1960] sm:$0xf]  ;;  %v15023_v60 = vld [vmem:[%s15846_s27 + $0x196c] sm:$0xf0]  ;;  %v12719_v7 = vor.u32 %v14991_v54, %v12718_v53  ;;  %7724 = vmatpush.bf16.msra.mxu2 %v12991_v52 }
 0x124   : > { %v12974_v61 = vld [vmem:[%s15846_s27 + $0x1a60] sm:$0xf]  ;;  %v15055_v62 = vld [vmem:[%s15846_s27 + $0x1a6c] sm:$0xf0]  ;;  %v12847_v3 = vor.u32 %v15023_v60, %v12846_v55  ;;  %7737 = vmatpush.bf16.msra.mxu3 %v13119_v58 }
 0x125   : > { %v13102_v2 = vld [vmem:[%s15846_s27 + $0x1b60] sm:$0xf]  ;;  %v15087_v4 = vld [vmem:[%s15846_s27 + $0x1b6c] sm:$0xf0]  ;;  %v12975_v8 = vor.u32 %v15055_v62, %v12974_v61  ;;  %7699 = vmatpush.bf16.msra.mxu0 %v12719_v7 }
 0x126   : > { %v12702_v9 = vld [vmem:[%s15846_s27 + $0x1840] sm:$0xf]  ;;  %v14987_v11 = vld [vmem:[%s15846_s27 + $0x184c] sm:$0xf0]  ;;  %v13103_v15 = vor.u32 %v15087_v4, %v13102_v2  ;;  %7712 = vmatpush.bf16.msra.mxu1 %v12847_v3  ;;  %v7472_v4 = vpop.f32.mrf.mxu2 }
 0x127   : > { %v12830_v12 = vld [vmem:[%s15846_s27 + $0x1940] sm:$0xf]  ;;  %v15019_v16 = vld [vmem:[%s15846_s27 + $0x194c] sm:$0xf0]  ;;  %v12703_v36 = vor.u32 %v14987_v11, %v12702_v9  ;;  %7725 = vmatpush.bf16.msra.mxu2 %v12975_v8  ;;  %v7485_v9 = vpop.f32.mrf.mxu3 }
 0x128   : > { %v12958_v19 = vld [vmem:[%s15846_s27 + $0x1a40] sm:$0xf]  ;;  %v15051_v23 = vld [vmem:[%s15846_s27 + $0x1a4c] sm:$0xf0]  ;;  %v12831_v43 = vor.u32 %v15019_v16, %v12830_v12  ;;  %7738 = vmatpush.bf16.msra.mxu3 %v13103_v15 }
 0x129   : > { %v13086_v31 = vld [vmem:[%s15846_s27 + $0x1b40] sm:$0xf]  ;;  %v15083_v34 = vld [vmem:[%s15846_s27 + $0x1b4c] sm:$0xf0]  ;;  %v12959_v44 = vor.u32 %v15051_v23, %v12958_v19  ;;  %7700 = vmatpush.bf16.msra.mxu0 %v12703_v36 }
 0x12a   : > { %v12686_v45 = vld [vmem:[%s15846_s27 + $0x1820] sm:$0xf]  ;;  %v14983_v46 = vld [vmem:[%s15846_s27 + $0x182c] sm:$0xf0]  ;;  %v13087_v49 = vor.u32 %v15083_v34, %v13086_v31  ;;  %7713 = vmatpush.bf16.msra.mxu1 %v12831_v43 }
 0x12b   : > { %v12814_v47 = vld [vmem:[%s15846_s27 + $0x1920] sm:$0xf]  ;;  %v15015_v50 = vld [vmem:[%s15846_s27 + $0x192c] sm:$0xf0]  ;;  %v12687_v55 = vor.u32 %v14983_v46, %v12686_v45  ;;  %7726 = vmatpush.bf16.msra.mxu2 %v12959_v44  ;;  %v424_v45 = vld [vmem:[%s15868_s14 + $0xc8] sm:$0xff] }
 0x12c   : > { %v12942_v51 = vld [vmem:[%s15846_s27 + $0x1a20] sm:$0xf]  ;;  %v15047_v52 = vld [vmem:[%s15846_s27 + $0x1a2c] sm:$0xf0]  ;;  %v12815_v58 = vor.u32 %v15015_v50, %v12814_v47  ;;  %7739 = vmatpush.bf16.msra.mxu3 %v13087_v49  ;;  %v426_v46 = vld [vmem:[%s15868_s14 + $0xd8] sm:$0xff] }
 0x12d   : > { %v13070_v53 = vld [vmem:[%s15846_s27 + $0x1b20] sm:$0xf]  ;;  %v15079_v54 = vld [vmem:[%s15846_s27 + $0x1b2c] sm:$0xf0]  ;;  %v12943_v60 = vor.u32 %v15047_v52, %v12942_v51  ;;  %7701 = vmatpush.bf16.msra.mxu0 %v12687_v55 }
 0x12e   : > { %v12670_v56 = vld [vmem:[%s15846_s27 + $0x1800] sm:$0xf]  ;;  %v14979_v57 = vld [vmem:[%s15846_s27 + $0x180c] sm:$0xf0]  ;;  %v13071_v6 = vor.u32 %v15079_v54, %v13070_v53  ;;  %7714 = vmatpush.bf16.msra.mxu1 %v12815_v58  ;;  %v16443_v58 = vpack.c.bf16 %v424_v45, %v424_v45 }
 0x12f   : > { %v12798_v61 = vld [vmem:[%s15846_s27 + $0x1900] sm:$0xf]  ;;  %v15011_v62 = vld [vmem:[%s15846_s27 + $0x190c] sm:$0xf0]  ;;  %v12671_v15 = vor.u32 %v14979_v57, %v12670_v56  ;;  %7727 = vmatpush.bf16.msra.mxu2 %v12943_v60 }
 0x130   : > { %v12926_v2 = vld [vmem:[%s15846_s27 + $0x1a00] sm:$0xf]  ;;  %v15043_v7 = vld [vmem:[%s15846_s27 + $0x1a0c] sm:$0xf0]  ;;  %v12799_v29 = vor.u32 %v15011_v62, %v12798_v61  ;;  %7740 = vmatpush.bf16.msra.mxu3 %v13071_v6  ;;  %v16447_v62 = vpack.c.bf16 %v426_v46, %v426_v46 }
 0x131   : > { %v13054_v3 = vld [vmem:[%s15846_s27 + $0x1b00] sm:$0xf]  ;;  %v15075_v8 = vld [vmem:[%s15846_s27 + $0x1b0c] sm:$0xf0]  ;;  %v12927_v30 = vor.u32 %v15043_v7, %v12926_v2  ;;  %7702 = vmatpush.bf16.msra.mxu0 %v12671_v15 }
 0x132   : > { %v13294_v11 = vld [vmem:[%s15846_s27 + $0x1ce0] sm:$0xf]  ;;  %v15135_v12 = vld [vmem:[%s15846_s27 + $0x1cec] sm:$0xf0]  ;;  %v13055_v42 = vor.u32 %v15075_v8, %v13054_v3  ;;  %7715 = vmatpush.bf16.msra.mxu1 %v12799_v29  ;;  %v7496_v45 = vpop.f32.mrf.mxu0 }
 0x133   : > { %v13422_v13 = vld [vmem:[%s15846_s27 + $0x1de0] sm:$0xf]  ;;  %v15167_v16 = vld [vmem:[%s15846_s27 + $0x1dec] sm:$0xf0]  ;;  %v13295_v43 = vor.u32 %v15135_v12, %v13294_v11  ;;  %7728 = vmatpush.bf16.msra.mxu2 %v12927_v30 }
 0x134   : > { %v13550_v19 = vld [vmem:[%s15846_s27 + $0x1ee0] sm:$0xf]  ;;  %v15199_v23 = vld [vmem:[%s15846_s27 + $0x1eec] sm:$0xf0]  ;;  %v13423_v47 = vor.u32 %v15167_v16, %v13422_v13  ;;  %7741 = vmatpush.bf16.msra.mxu3 %v13055_v42 }
 0x135   : > { %v13678_v31 = vld [vmem:[%s15846_s27 + $0x1fe0] sm:$0xf]  ;;  %v15231_v34 = vld [vmem:[%s15846_s27 + $0x1fec] sm:$0xf0]  ;;  %v13551_v48 = vor.u32 %v15199_v23, %v13550_v19  ;;  %7747 = vmatpush.bf16.msrb.mxu0 %v13295_v43  ;;  %7716 = vmatmul.bf16.vlgmr.msra.gmra.mxu1 %v16443_v58 }
 0x136   : > { %v423_v36 = vld [vmem:[%s15868_s14 + $0xc0] sm:$0xff]  ;;  %v425_v44 = vld [vmem:[%s15868_s14 + $0xd0] sm:$0xff]  ;;  %v13679_v52 = vor.u32 %v15231_v34, %v13678_v31  ;;  %7760 = vmatpush.bf16.msrb.mxu1 %v13423_v47 }
 0x137   : > { %v13278_v49 = vld [vmem:[%s15846_s27 + $0x1cc0] sm:$0xf]  ;;  %v15131_v50 = vld [vmem:[%s15846_s27 + $0x1ccc] sm:$0xf0]  ;;  %v16436_v53 = vpack.c.bf16 %v423_v36, %v423_v36  ;;  %v16441_v57 = vpack.c.bf16 %v425_v44, %v425_v44  ;;  %7773 = vmatpush.bf16.msrb.mxu2 %v13551_v48  ;;  %7742 = vmatmul.bf16.vlgmr.msra.gmra.mxu3 %v16447_v62  ;;  %v7497_v48 = vadd.f32 %v7496_v45, %v16403_v40 }
 0x138   : > { %v13406_v51 = vld [vmem:[%s15846_s27 + $0x1dc0] sm:$0xf]  ;;  %v15163_v54 = vld [vmem:[%s15846_s27 + $0x1dcc] sm:$0xf0]  ;;  %v13279_v2 = vor.u32 %v15131_v50, %v13278_v49  ;;  %7786 = vmatpush.bf16.msrb.mxu3 %v13679_v52  ;;  %v7509_v50 = vpop.f32.mrf.mxu1 }
 0x139   : > { %v13534_v55 = vld [vmem:[%s15846_s27 + $0x1ec0] sm:$0xf]  ;;  %v15195_v56 = vld [vmem:[%s15846_s27 + $0x1ecc] sm:$0xf0]  ;;  %v13407_v4 = vor.u32 %v15163_v54, %v13406_v51  ;;  %7703 = vmatmul.bf16.vlgmr.msra.gmra.mxu0 %v16436_v53  ;;  %7729 = vmatmul.bf16.vlgmr.msra.gmra.mxu2 %v16441_v57 }
 0x13a   : > { %v13662_v60 = vld [vmem:[%s15846_s27 + $0x1fc0] sm:$0xf]  ;;  %v15227_v61 = vld [vmem:[%s15846_s27 + $0x1fcc] sm:$0xf0]  ;;  %v13535_v6 = vor.u32 %v15195_v56, %v13534_v55  ;;  %7748 = vmatpush.bf16.msrb.mxu0 %v13279_v2 }
 0x13b   : > { %v13262_v7 = vld [vmem:[%s15846_s27 + $0x1ca0] sm:$0xf]  ;;  %v15127_v3 = vld [vmem:[%s15846_s27 + $0x1cac] sm:$0xf0]  ;;  %v13663_v9 = vor.u32 %v15227_v61, %v13662_v60  ;;  %7761 = vmatpush.bf16.msrb.mxu1 %v13407_v4  ;;  %v7510_v61 = vadd.f32 %v7509_v50, %v7497_v48 }
 0x13c   : > { %v13390_v8 = vld [vmem:[%s15846_s27 + $0x1da0] sm:$0xf]  ;;  %v15159_v11 = vld [vmem:[%s15846_s27 + $0x1dac] sm:$0xf0]  ;;  %v13263_v19 = vor.u32 %v15127_v3, %v13262_v7  ;;  %7774 = vmatpush.bf16.msrb.mxu2 %v13535_v6 }
 0x13d   : > { %v13518_v12 = vld [vmem:[%s15846_s27 + $0x1ea0] sm:$0xf]  ;;  %v15191_v13 = vld [vmem:[%s15846_s27 + $0x1eac] sm:$0xf0]  ;;  %v13391_v23 = vor.u32 %v15159_v11, %v13390_v8  ;;  %7787 = vmatpush.bf16.msrb.mxu3 %v13663_v9 }
 0x13e   : > { %v13646_v15 = vld [vmem:[%s15846_s27 + $0x1fa0] sm:$0xf]  ;;  %v15223_v16 = vld [vmem:[%s15846_s27 + $0x1fac] sm:$0xf0]  ;;  %v13519_v29 = vor.u32 %v15191_v13, %v13518_v12  ;;  %7749 = vmatpush.bf16.msrb.mxu0 %v13263_v19 }
 0x13f   : > { %v13246_v30 = vld [vmem:[%s15846_s27 + $0x1c80] sm:$0xf]  ;;  %v15123_v31 = vld [vmem:[%s15846_s27 + $0x1c8c] sm:$0xf0]  ;;  %v13647_v36 = vor.u32 %v15223_v16, %v13646_v15  ;;  %7762 = vmatpush.bf16.msrb.mxu1 %v13391_v23  ;;  %v7522_v16 = vpop.f32.mrf.mxu2 }
 0x140   : > { %v13374_v34 = vld [vmem:[%s15846_s27 + $0x1d80] sm:$0xf]  ;;  %v15155_v42 = vld [vmem:[%s15846_s27 + $0x1d8c] sm:$0xf0]  ;;  %v13247_v49 = vor.u32 %v15123_v31, %v13246_v30  ;;  %7775 = vmatpush.bf16.msrb.mxu2 %v13519_v29  ;;  %v7523_v30 = vadd.f32 %v7522_v16, %v7510_v61  ;;  %v7535_v31 = vpop.f32.mrf.mxu3 }
 0x141   : > { %v13502_v43 = vld [vmem:[%s15846_s27 + $0x1e80] sm:$0xf]  ;;  %v15187_v44 = vld [vmem:[%s15846_s27 + $0x1e8c] sm:$0xf0]  ;;  %v13375_v51 = vor.u32 %v15155_v42, %v13374_v34  ;;  %7788 = vmatpush.bf16.msrb.mxu3 %v13647_v36  ;;  %v7498_v42 = vpop.f32.mrf.mxu0 }
 0x142   : > { %v13630_v46 = vld [vmem:[%s15846_s27 + $0x1f80] sm:$0xf]  ;;  %v15219_v47 = vld [vmem:[%s15846_s27 + $0x1f8c] sm:$0xf0]  ;;  %v13503_v52 = vor.u32 %v15187_v44, %v13502_v43  ;;  %7750 = vmatpush.bf16.msrb.mxu0 %v13247_v49  ;;  %v7511_v44 = vpop.f32.mrf.mxu1  ;;  %v16486_v45 = vadd.f32 %v7535_v31, %v7523_v30 }
 0x143   : > { %v13230_v54 = vld [vmem:[%s15846_s27 + $0x1c60] sm:$0xf]  ;;  %v15119_v55 = vld [vmem:[%s15846_s27 + $0x1c6c] sm:$0xf0]  ;;  %v13631_v60 = vor.u32 %v15219_v47, %v13630_v46  ;;  %7763 = vmatpush.bf16.msrb.mxu1 %v13375_v51 }
 0x144   : > { %v13358_v56 = vld [vmem:[%s15846_s27 + $0x1d60] sm:$0xf]  ;;  %v15151_v2 = vld [vmem:[%s15846_s27 + $0x1d6c] sm:$0xf0]  ;;  %v13231_v3 = vor.u32 %v15119_v55, %v13230_v54  ;;  %7776 = vmatpush.bf16.msrb.mxu2 %v13503_v52 }
 0x145   : > { %v13486_v4 = vld [vmem:[%s15846_s27 + $0x1e60] sm:$0xf]  ;;  %v15183_v40 = vld [vmem:[%s15846_s27 + $0x1e6c] sm:$0xf0]  ;;  %v13359_v8 = vor.u32 %v15151_v2, %v13358_v56  ;;  %7789 = vmatpush.bf16.msrb.mxu3 %v13631_v60 }
 0x146   : > { %v13614_v6 = vld [vmem:[%s15846_s27 + $0x1f60] sm:$0xf]  ;;  %v15215_v7 = vld [vmem:[%s15846_s27 + $0x1f6c] sm:$0xf0]  ;;  %v13487_v9 = vor.u32 %v15183_v40, %v13486_v4  ;;  %7751 = vmatpush.bf16.msrb.mxu0 %v13231_v3 }
 0x147   : > { %v13214_v11 = vld [vmem:[%s15846_s27 + $0x1c40] sm:$0xf]  ;;  %v15115_v12 = vld [vmem:[%s15846_s27 + $0x1c4c] sm:$0xf0]  ;;  %v13615_v15 = vor.u32 %v15215_v7, %v13614_v6  ;;  %7764 = vmatpush.bf16.msrb.mxu1 %v13359_v8 }
 0x148   : > { %v13342_v13 = vld [vmem:[%s15846_s27 + $0x1d40] sm:$0xf]  ;;  %v15147_v19 = vld [vmem:[%s15846_s27 + $0x1d4c] sm:$0xf0]  ;;  %v13215_v43 = vor.u32 %v15115_v12, %v13214_v11  ;;  %7777 = vmatpush.bf16.msrb.mxu2 %v13487_v9 }
 0x149   : > { %v13470_v23 = vld [vmem:[%s15846_s27 + $0x1e40] sm:$0xf]  ;;  %v15179_v29 = vld [vmem:[%s15846_s27 + $0x1e4c] sm:$0xf0]  ;;  %v13343_v46 = vor.u32 %v15147_v19, %v13342_v13  ;;  %7790 = vmatpush.bf16.msrb.mxu3 %v13615_v15  ;;  %v7524_v15 = vpop.f32.mrf.mxu2 }
 0x14a   : > { %v13598_v34 = vld [vmem:[%s15846_s27 + $0x1f40] sm:$0xf]  ;;  %v15211_v36 = vld [vmem:[%s15846_s27 + $0x1f4c] sm:$0xf0]  ;;  %v13471_v47 = vor.u32 %v15179_v29, %v13470_v23  ;;  %7752 = vmatpush.bf16.msrb.mxu0 %v13215_v43  ;;  %v7537_v29 = vpop.f32.mrf.mxu3 }
 0x14b   : > { %v13198_v48 = vld [vmem:[%s15846_s27 + $0x1c20] sm:$0xf]  ;;  %v15111_v49 = vld [vmem:[%s15846_s27 + $0x1c2c] sm:$0xf0]  ;;  %v13599_v51 = vor.u32 %v15211_v36, %v13598_v34  ;;  %7765 = vmatpush.bf16.msrb.mxu1 %v13343_v46 }
 0x14c   : > { %v13326_v50 = vld [vmem:[%s15846_s27 + $0x1d20] sm:$0xf]  ;;  %v15143_v52 = vld [vmem:[%s15846_s27 + $0x1d2c] sm:$0xf0]  ;;  %v13199_v61 = vor.u32 %v15111_v49, %v13198_v48  ;;  %7778 = vmatpush.bf16.msrb.mxu2 %v13471_v47 }
 0x14d   : > { %v13454_v54 = vld [vmem:[%s15846_s27 + $0x1e20] sm:$0xf]  ;;  %v15175_v55 = vld [vmem:[%s15846_s27 + $0x1e2c] sm:$0xf0]  ;;  %v13327_v40 = vor.u32 %v15143_v52, %v13326_v50  ;;  %7791 = vmatpush.bf16.msrb.mxu3 %v13599_v51  ;;  %v428_v51 = vld [vmem:[%s15868_s14 + $0xe8] sm:$0xff] }
 0x14e   : > { %v13582_v56 = vld [vmem:[%s15846_s27 + $0x1f20] sm:$0xf]  ;;  %v15207_v60 = vld [vmem:[%s15846_s27 + $0x1f2c] sm:$0xf0]  ;;  %v13455_v6 = vor.u32 %v15175_v55, %v13454_v54  ;;  %7753 = vmatpush.bf16.msrb.mxu0 %v13199_v61  ;;  %v430_v52 = vld [vmem:[%s15868_s14 + $0xf8] sm:$0xff] }
 0x14f   : > { %v13182_v2 = vld [vmem:[%s15846_s27 + $0x1c00] sm:$0xf]  ;;  %v15107_v4 = vld [vmem:[%s15846_s27 + $0x1c0c] sm:$0xf0]  ;;  %v13583_v9 = vor.u32 %v15207_v60, %v13582_v56  ;;  %7766 = vmatpush.bf16.msrb.mxu1 %v13327_v40 }
 0x150   : > { %v13310_v7 = vld [vmem:[%s15846_s27 + $0x1d00] sm:$0xf]  ;;  %v15139_v3 = vld [vmem:[%s15846_s27 + $0x1d0c] sm:$0xf0]  ;;  %v13183_v30 = vor.u32 %v15107_v4, %v13182_v2  ;;  %7779 = vmatpush.bf16.msrb.mxu2 %v13455_v6 }
 0x151   : > { %v13438_v8 = vld [vmem:[%s15846_s27 + $0x1e00] sm:$0xf]  ;;  %v15171_v11 = vld [vmem:[%s15846_s27 + $0x1e0c] sm:$0xf0]  ;;  %v13311_v42 = vor.u32 %v15139_v3, %v13310_v7  ;;  %7792 = vmatpush.bf16.msrb.mxu3 %v13583_v9 }
 0x152   : > { %v13566_v12 = vld [vmem:[%s15846_s27 + $0x1f00] sm:$0xf]  ;;  %v15203_v13 = vld [vmem:[%s15846_s27 + $0x1f0c] sm:$0xf0]  ;;  %v13439_v43 = vor.u32 %v15171_v11, %v13438_v8  ;;  %7754 = vmatpush.bf16.msrb.mxu0 %v13183_v30  ;;  %v16526_v8 = vpack.c.bf16 %v428_v51, %v428_v51 }
 0x153   : > { %v13806_v16 = vld [vmem:[%s15846_s27 + $0x20e0] sm:$0xf]  ;;  %v15263_v19 = vld [vmem:[%s15846_s27 + $0x20ec] sm:$0xf0]  ;;  %v13567_v48 = vor.u32 %v15203_v13, %v13566_v12  ;;  %7767 = vmatpush.bf16.msrb.mxu1 %v13311_v42  ;;  %v16530_v12 = vpack.c.bf16 %v430_v52, %v430_v52 }
 0x154   : > { %v13934_v23 = vld [vmem:[%s15846_s27 + $0x21e0] sm:$0xf]  ;;  %v15295_v31 = vld [vmem:[%s15846_s27 + $0x21ec] sm:$0xf0]  ;;  %v13807_v49 = vor.u32 %v15263_v19, %v13806_v16  ;;  %7780 = vmatpush.bf16.msrb.mxu2 %v13439_v43 }
 0x155   : > { %v14062_v34 = vld [vmem:[%s15846_s27 + $0x22e0] sm:$0xf]  ;;  %v15327_v36 = vld [vmem:[%s15846_s27 + $0x22ec] sm:$0xf0]  ;;  %v13935_v54 = vor.u32 %v15295_v31, %v13934_v23  ;;  %7793 = vmatpush.bf16.msrb.mxu3 %v13567_v48 }
 0x156   : > { %v14190_v44 = vld [vmem:[%s15846_s27 + $0x23e0] sm:$0xf]  ;;  %v15359_v46 = vld [vmem:[%s15846_s27 + $0x23ec] sm:$0xf0]  ;;  %v14063_v55 = vor.u32 %v15327_v36, %v14062_v34  ;;  %7799 = vmatpush.bf16.msra.mxu0 %v13807_v49  ;;  %7768 = vmatmul.bf16.vlgmr.msrb.gmra.mxu1 %v16526_v8 }
 0x157   : > { %v427_v47 = vld [vmem:[%s15868_s14 + $0xe0] sm:$0xff]  ;;  %v429_v50 = vld [vmem:[%s15868_s14 + $0xf0] sm:$0xff]  ;;  %v14191_v2 = vor.u32 %v15359_v46, %v14190_v44  ;;  %7812 = vmatpush.bf16.msra.mxu1 %v13935_v54 }
 0x158   : > { %v13790_v56 = vld [vmem:[%s15846_s27 + $0x20c0] sm:$0xf]  ;;  %v15259_v60 = vld [vmem:[%s15846_s27 + $0x20cc] sm:$0xf0]  ;;  %v16519_v4 = vpack.c.bf16 %v427_v47, %v427_v47  ;;  %v16524_v3 = vpack.c.bf16 %v429_v50, %v429_v50  ;;  %7825 = vmatpush.bf16.msra.mxu2 %v14063_v55  ;;  %7794 = vmatmul.bf16.vlgmr.msrb.gmra.mxu3 %v16530_v12 }
 0x159   : > { %v13918_v61 = vld [vmem:[%s15846_s27 + $0x21c0] sm:$0xf]  ;;  %v15291_v40 = vld [vmem:[%s15846_s27 + $0x21cc] sm:$0xf0]  ;;  %v13791_v13 = vor.u32 %v15259_v60, %v13790_v56  ;;  %7838 = vmatpush.bf16.msra.mxu3 %v14191_v2  ;;  %v7548_v56 = vpop.f32.mrf.mxu0 }
 0x15a   : > { %v14046_v6 = vld [vmem:[%s15846_s27 + $0x22c0] sm:$0xf]  ;;  %v15323_v7 = vld [vmem:[%s15846_s27 + $0x22cc] sm:$0xf0]  ;;  %v13919_v15 = vor.u32 %v15291_v40, %v13918_v61  ;;  %7755 = vmatmul.bf16.vlgmr.msrb.gmra.mxu0 %v16519_v4  ;;  %7781 = vmatmul.bf16.vlgmr.msrb.gmra.mxu2 %v16524_v3  ;;  %v7549_v2 = vadd.f32 %v7548_v56, %v16486_v45 }
 0x15b   : > { %v14174_v9 = vld [vmem:[%s15846_s27 + $0x23c0] sm:$0xf]  ;;  %v15355_v11 = vld [vmem:[%s15846_s27 + $0x23cc] sm:$0xf0]  ;;  %v14047_v16 = vor.u32 %v15323_v7, %v14046_v6  ;;  %7800 = vmatpush.bf16.msra.mxu0 %v13791_v13  ;;  %v7561_v6 = vpop.f32.mrf.mxu1 }
 0x15c   : > { %v13774_v19 = vld [vmem:[%s15846_s27 + $0x20a0] sm:$0xf]  ;;  %v15255_v23 = vld [vmem:[%s15846_s27 + $0x20ac] sm:$0xf0]  ;;  %v14175_v30 = vor.u32 %v15355_v11, %v14174_v9  ;;  %7813 = vmatpush.bf16.msra.mxu1 %v13919_v15 }
 0x15d   : > { %v13902_v29 = vld [vmem:[%s15846_s27 + $0x21a0] sm:$0xf]  ;;  %v15287_v31 = vld [vmem:[%s15846_s27 + $0x21ac] sm:$0xf0]  ;;  %v13775_v44 = vor.u32 %v15255_v23, %v13774_v19  ;;  %7826 = vmatpush.bf16.msra.mxu2 %v14047_v16  ;;  %v7562_v19 = vadd.f32 %v7561_v6, %v7549_v2 }
 0x15e   : > { %v14030_v34 = vld [vmem:[%s15846_s27 + $0x22a0] sm:$0xf]  ;;  %v15319_v36 = vld [vmem:[%s15846_s27 + $0x22ac] sm:$0xf0]  ;;  %v13903_v46 = vor.u32 %v15287_v31, %v13902_v29  ;;  %7839 = vmatpush.bf16.msra.mxu3 %v14175_v30 }
 0x15f   : > { %v14158_v42 = vld [vmem:[%s15846_s27 + $0x23a0] sm:$0xf]  ;;  %v15351_v43 = vld [vmem:[%s15846_s27 + $0x23ac] sm:$0xf0]  ;;  %v14031_v47 = vor.u32 %v15319_v36, %v14030_v34  ;;  %7801 = vmatpush.bf16.msra.mxu0 %v13775_v44 }
 0x160   : > { %v13758_v48 = vld [vmem:[%s15846_s27 + $0x2080] sm:$0xf]  ;;  %v15251_v49 = vld [vmem:[%s15846_s27 + $0x208c] sm:$0xf0]  ;;  %v14159_v51 = vor.u32 %v15351_v43, %v14158_v42  ;;  %7814 = vmatpush.bf16.msra.mxu1 %v13903_v46 }
 0x161   : > { %v13886_v50 = vld [vmem:[%s15846_s27 + $0x2180] sm:$0xf]  ;;  %v15283_v52 = vld [vmem:[%s15846_s27 + $0x218c] sm:$0xf0]  ;;  %v13759_v40 = vor.u32 %v15251_v49, %v13758_v48  ;;  %7827 = vmatpush.bf16.msra.mxu2 %v14031_v47  ;;  %v7574_v48 = vpop.f32.mrf.mxu2 }
 0x162   : > { %v14014_v54 = vld [vmem:[%s15846_s27 + $0x2280] sm:$0xf]  ;;  %v15315_v55 = vld [vmem:[%s15846_s27 + $0x228c] sm:$0xf0]  ;;  %v13887_v7 = vor.u32 %v15283_v52, %v13886_v50  ;;  %7840 = vmatpush.bf16.msra.mxu3 %v14159_v51  ;;  %v7575_v52 = vadd.f32 %v7574_v48, %v7562_v19 }
 0x163   : > { %v14142_v60 = vld [vmem:[%s15846_s27 + $0x2380] sm:$0xf]  ;;  %v15347_v61 = vld [vmem:[%s15846_s27 + $0x238c] sm:$0xf0]  ;;  %v14015_v9 = vor.u32 %v15315_v55, %v14014_v54  ;;  %7802 = vmatpush.bf16.msra.mxu0 %v13759_v40  ;;  %v7587_v54 = vpop.f32.mrf.mxu3  ;;  %v7563_v2 = vpop.f32.mrf.mxu1 }
 0x164   : > { %v13742_v11 = vld [vmem:[%s15846_s27 + $0x2060] sm:$0xf]  ;;  %v15247_v13 = vld [vmem:[%s15846_s27 + $0x206c] sm:$0xf0]  ;;  %v14143_v16 = vor.u32 %v15347_v61, %v14142_v60  ;;  %7815 = vmatpush.bf16.msra.mxu1 %v13887_v7  ;;  %v7550_v60 = vpop.f32.mrf.mxu0  ;;  %v16569_v40 = vadd.f32 %v7587_v54, %v7575_v52  ;;  %v14237_v52 = vld [vmem:[%s15846_s27 + $0xe4] sm:$0xf] }
 0x165   : > { %v13870_v15 = vld [vmem:[%s15846_s27 + $0x2160] sm:$0xf]  ;;  %v15279_v23 = vld [vmem:[%s15846_s27 + $0x216c] sm:$0xf0]  ;;  %v13743_v34 = vor.u32 %v15247_v13, %v13742_v11  ;;  %7828 = vmatpush.bf16.msra.mxu2 %v14015_v9  ;;  %v9712_v54 = vld [vmem:[%s15846_s27 + $0xf0] sm:$0xf0] }
 0x166   : > { %v13998_v29 = vld [vmem:[%s15846_s27 + $0x2260] sm:$0xf]  ;;  %v15311_v45 = vld [vmem:[%s15846_s27 + $0x226c] sm:$0xf0]  ;;  %v13871_v36 = vor.u32 %v15279_v23, %v13870_v15  ;;  %7841 = vmatpush.bf16.msra.mxu3 %v14143_v16  ;;  %v14301_v2 = vld [vmem:[%s15846_s27 + $0x2e4] sm:$0xf] }
 0x167   : > { %v14126_v30 = vld [vmem:[%s15846_s27 + $0x2360] sm:$0xf]  ;;  %v15343_v31 = vld [vmem:[%s15846_s27 + $0x236c] sm:$0xf0]  ;;  %v13999_v42 = vor.u32 %v15311_v45, %v13998_v29  ;;  %7803 = vmatpush.bf16.msra.mxu0 %v13743_v34 }
 0x168   : > { %v13726_v43 = vld [vmem:[%s15846_s27 + $0x2040] sm:$0xf]  ;;  %v15243_v44 = vld [vmem:[%s15846_s27 + $0x204c] sm:$0xf0]  ;;  %v14127_v47 = vor.u32 %v15343_v31, %v14126_v30  ;;  %7816 = vmatpush.bf16.msra.mxu1 %v13871_v36 }
 0x169   : > { %v13854_v46 = vld [vmem:[%s15846_s27 + $0x2140] sm:$0xf]  ;;  %v15275_v49 = vld [vmem:[%s15846_s27 + $0x214c] sm:$0xf0]  ;;  %v13727_v61 = vor.u32 %v15243_v44, %v13726_v43  ;;  %7829 = vmatpush.bf16.msra.mxu2 %v13999_v42 }
 0x16a   : > { %v13982_v50 = vld [vmem:[%s15846_s27 + $0x2240] sm:$0xf]  ;;  %v15307_v51 = vld [vmem:[%s15846_s27 + $0x224c] sm:$0xf0]  ;;  %v13855_v6 = vor.u32 %v15275_v49, %v13854_v46  ;;  %7842 = vmatpush.bf16.msra.mxu3 %v14127_v47 }
 0x16b   : > { %v14110_v55 = vld [vmem:[%s15846_s27 + $0x2340] sm:$0xf]  ;;  %v15339_v56 = vld [vmem:[%s15846_s27 + $0x234c] sm:$0xf0]  ;;  %v13983_v7 = vor.u32 %v15307_v51, %v13982_v50  ;;  %7804 = vmatpush.bf16.msra.mxu0 %v13727_v61  ;;  %v7576_v51 = vpop.f32.mrf.mxu2  ;;  %v9840_v61 = vld [vmem:[%s15846_s27 + $0x1f0] sm:$0xf0] }
 0x16c   : > { %v13710_v9 = vld [vmem:[%s15846_s27 + $0x2020] sm:$0xf]  ;;  %v15239_v11 = vld [vmem:[%s15846_s27 + $0x202c] sm:$0xf0]  ;;  %v14111_v15 = vor.u32 %v15339_v56, %v14110_v55  ;;  %7817 = vmatpush.bf16.msra.mxu1 %v13855_v6  ;;  %v14269_v55 = vld [vmem:[%s15846_s27 + $0x1e4] sm:$0xf]  ;;  %v7589_v56 = vpop.f32.mrf.mxu3 }
 0x16d   : > { %v13838_v13 = vld [vmem:[%s15846_s27 + $0x2120] sm:$0xf]  ;;  %v15271_v16 = vld [vmem:[%s15846_s27 + $0x212c] sm:$0xf0]  ;;  %v13711_v30 = vor.u32 %v15239_v11, %v13710_v9  ;;  %7830 = vmatpush.bf16.msra.mxu2 %v13983_v7  ;;  %v9968_v6 = vld [vmem:[%s15846_s27 + $0x2f0] sm:$0xf0] }
 0x16e   : > { %v13966_v19 = vld [vmem:[%s15846_s27 + $0x2220] sm:$0xf]  ;;  %v15303_v23 = vld [vmem:[%s15846_s27 + $0x222c] sm:$0xf0]  ;;  %v13839_v36 = vor.u32 %v15271_v16, %v13838_v13  ;;  %7843 = vmatpush.bf16.msra.mxu3 %v14111_v15  ;;  %v14333_v11 = vld [vmem:[%s15846_s27 + $0x3e4] sm:$0xf] }
 0x16f   : > { %v14094_v29 = vld [vmem:[%s15846_s27 + $0x2320] sm:$0xf]  ;;  %v15335_v45 = vld [vmem:[%s15846_s27 + $0x232c] sm:$0xf0]  ;;  %v13967_v42 = vor.u32 %v15303_v23, %v13966_v19  ;;  %7805 = vmatpush.bf16.msra.mxu0 %v13711_v30  ;;  %v10096_v13 = vld [vmem:[%s15846_s27 + $0x3f0] sm:$0xf0]  ;;  %v9715_v19 = vor.u32 %v14237_v52, %v9712_v54  ;;  %v9843_v30 = vor.u32 %v14269_v55, %v9840_v61 }
 0x170   : > { %v13694_v31 = vld [vmem:[%s15846_s27 + $0x2000] sm:$0xf]  ;;  %v15235_v34 = vld [vmem:[%s15846_s27 + $0x200c] sm:$0xf0]  ;;  %v14095_v47 = vor.u32 %v15335_v45, %v14094_v29  ;;  %7818 = vmatpush.bf16.msra.mxu1 %v13839_v36  ;;  %v432_v29 = vld [vmem:[%s15868_s14 + $0x108] sm:$0xff] }
 0x171   : > { %v13822_v43 = vld [vmem:[%s15846_s27 + $0x2100] sm:$0xf]  ;;  %v15267_v44 = vld [vmem:[%s15846_s27 + $0x210c] sm:$0xf0]  ;;  %v13695_v60 = vor.u32 %v15235_v34, %v13694_v31  ;;  %7831 = vmatpush.bf16.msra.mxu2 %v13967_v42  ;;  %v434_v45 = vld [vmem:[%s15868_s14 + $0x118] sm:$0xff]  ;;  %v9971_v31 = vor.u32 %v14301_v2, %v9968_v6 }
 0x172   : > { %v13950_v46 = vld [vmem:[%s15846_s27 + $0x2200] sm:$0xf]  ;;  %v15299_v48 = vld [vmem:[%s15846_s27 + $0x220c] sm:$0xf0]  ;;  %v13823_v7 = vor.u32 %v15267_v44, %v13822_v43  ;;  %7844 = vmatpush.bf16.msra.mxu3 %v14095_v47  ;;  %v14233_v34 = vld [vmem:[%s15846_s27 + $0xc4] sm:$0xf]  ;;  %v10099_v43 = vor.u32 %v14333_v11, %v10096_v13  ;;  %v16613_v54 = vpack.c.bf16 %v434_v45, %v434_v45 }
 0x173   : > { %v14078_v49 = vld [vmem:[%s15846_s27 + $0x2300] sm:$0xf]  ;;  %v15331_v50 = vld [vmem:[%s15846_s27 + $0x230c] sm:$0xf0]  ;;  %v13951_v9 = vor.u32 %v15299_v48, %v13950_v46  ;;  %v9696_v36 = vld [vmem:[%s15846_s27 + $0xd0] sm:$0xf0]  ;;  %7806 = vmatpush.bf16.msra.mxu0 %v13695_v60 }
 0x174   : > { %v431_v15 = vld [vmem:[%s15868_s14 + $0x100] sm:$0xff]  ;;  %v14079_v16 = vor.u32 %v15331_v50, %v14078_v49  ;;  %v433_v23 = vld [vmem:[%s15868_s14 + $0x110] sm:$0xff]  ;;  %7819 = vmatpush.bf16.msra.mxu1 %v13823_v7  ;;  %v16609_v50 = vpack.c.bf16 %v432_v29, %v432_v29  ;;  %v9699_v55 = vor.u32 %v14233_v34, %v9696_v36 }
 0x175   : > { %v14265_v42 = vld [vmem:[%s15846_s27 + $0x1c4] sm:$0xf]  ;;  %v16602_v44 = vpack.c.bf16 %v431_v15, %v431_v15  ;;  %v9824_v46 = vld [vmem:[%s15846_s27 + $0x1d0] sm:$0xf0]  ;;  %7832 = vmatpush.bf16.msra.mxu2 %v13951_v9  ;;  %v16607_v49 = vpack.c.bf16 %v433_v23, %v433_v23 }
 0x176   : > { %v14297_v48 = vld [vmem:[%s15846_s27 + $0x2c4] sm:$0xf]  ;;  %v9952_v47 = vld [vmem:[%s15846_s27 + $0x2d0] sm:$0xf0]  ;;  %7845 = vmatpush.bf16.msra.mxu3 %v14079_v16  ;;  %v9827_v56 = vor.u32 %v14265_v42, %v9824_v46  ;;  %v7600_v46 = vpop.f32.mrf.mxu0 }
 0x177   : > { %v14329_v51 = vld [vmem:[%s15846_s27 + $0x3c4] sm:$0xf]  ;;  %v10080_v52 = vld [vmem:[%s15846_s27 + $0x3d0] sm:$0xf0]  ;;  %7851 = vmatpush.bf16.msrb.mxu0 %v9715_v19  ;;  %v9955_v60 = vor.u32 %v14297_v48, %v9952_v47  ;;  %7820 = vmatmul.bf16.vlgmr.msra.gmra.mxu1 %v16609_v50 }
 0x178   : > { %7864 = vmatpush.bf16.msrb.mxu1 %v9843_v30  ;;  %v14229_v61 = vld [vmem:[%s15846_s27 + $0xa4] sm:$0xf]  ;;  %v9680_v2 = vld [vmem:[%s15846_s27 + $0xb0] sm:$0xf0]  ;;  %7807 = vmatmul.bf16.vlgmr.msra.gmra.mxu0 %v16602_v44  ;;  %v10083_v7 = vor.u32 %v14329_v51, %v10080_v52  ;;  %v7601_v51 = vadd.f32 %v7600_v46, %v16569_v40 }
 0x179   : > { %7877 = vmatpush.bf16.msrb.mxu2 %v9971_v31  ;;  %v14261_v6 = vld [vmem:[%s15846_s27 + $0x1a4] sm:$0xf]  ;;  %v9808_v9 = vld [vmem:[%s15846_s27 + $0x1b0] sm:$0xf0]  ;;  %7846 = vmatmul.bf16.vlgmr.msra.gmra.mxu3 %v16613_v54  ;;  %v9683_v19 = vor.u32 %v14229_v61, %v9680_v2 }
 0x17a   : > { %7890 = vmatpush.bf16.msrb.mxu3 %v10099_v43  ;;  %v14293_v11 = vld [vmem:[%s15846_s27 + $0x2a4] sm:$0xf]  ;;  %v9936_v13 = vld [vmem:[%s15846_s27 + $0x2b0] sm:$0xf0]  ;;  %7833 = vmatmul.bf16.vlgmr.msra.gmra.mxu2 %v16607_v49  ;;  %v9811_v23 = vor.u32 %v14261_v6, %v9808_v9 }
 0x17b   : > { %v14325_v15 = vld [vmem:[%s15846_s27 + $0x3a4] sm:$0xf]  ;;  %v10064_v16 = vld [vmem:[%s15846_s27 + $0x3b0] sm:$0xf0]  ;;  %7852 = vmatpush.bf16.msrb.mxu0 %v9699_v55  ;;  %v9939_v29 = vor.u32 %v14293_v11, %v9936_v13  ;;  %v7613_v55 = vpop.f32.mrf.mxu1 }
 0x17c   : > { %7865 = vmatpush.bf16.msrb.mxu1 %v9827_v56  ;;  %v14225_v45 = vld [vmem:[%s15846_s27 + $0x84] sm:$0xf]  ;;  %v9664_v30 = vld [vmem:[%s15846_s27 + $0x90] sm:$0xf0]  ;;  %v10067_v34 = vor.u32 %v14325_v15, %v10064_v16  ;;  %v7614_v9 = vadd.f32 %v7613_v55, %v7601_v51 }
 0x17d   : > { %7878 = vmatpush.bf16.msrb.mxu2 %v9955_v60  ;;  %v14257_v31 = vld [vmem:[%s15846_s27 + $0x184] sm:$0xf]  ;;  %v9792_v36 = vld [vmem:[%s15846_s27 + $0x190] sm:$0xf0]  ;;  %v9667_v52 = vor.u32 %v14225_v45, %v9664_v30 }
 0x17e   : > { %7891 = vmatpush.bf16.msrb.mxu3 %v10083_v7  ;;  %v14289_v42 = vld [vmem:[%s15846_s27 + $0x284] sm:$0xf]  ;;  %v9920_v43 = vld [vmem:[%s15846_s27 + $0x290] sm:$0xf0]  ;;  %v9795_v56 = vor.u32 %v14257_v31, %v9792_v36  ;;  %v7626_v36 = vpop.f32.mrf.mxu2  ;;  %v7602_v55 = vpop.f32.mrf.mxu0 }
 0x17f   : > { %v14321_v48 = vld [vmem:[%s15846_s27 + $0x384] sm:$0xf]  ;;  %v10048_v47 = vld [vmem:[%s15846_s27 + $0x390] sm:$0xf0]  ;;  %7853 = vmatpush.bf16.msrb.mxu0 %v9683_v19  ;;  %v9923_v60 = vor.u32 %v14289_v42, %v9920_v43 }
 0x180   : > { %7866 = vmatpush.bf16.msrb.mxu1 %v9811_v23  ;;  %v14221_v61 = vld [vmem:[%s15846_s27 + $0x64] sm:$0xf]  ;;  %v9648_v2 = vld [vmem:[%s15846_s27 + $0x70] sm:$0xf0]  ;;  %v10051_v7 = vor.u32 %v14321_v48, %v10048_v47  ;;  %v7627_v48 = vadd.f32 %v7626_v36, %v7614_v9  ;;  %v7639_v47 = vpop.f32.mrf.mxu3 }
 0x181   : > { %7879 = vmatpush.bf16.msrb.mxu2 %v9939_v29  ;;  %v14253_v6 = vld [vmem:[%s15846_s27 + $0x164] sm:$0xf]  ;;  %v9776_v11 = vld [vmem:[%s15846_s27 + $0x170] sm:$0xf0]  ;;  %v9651_v19 = vor.u32 %v14221_v61, %v9648_v2 }
 0x182   : > { %7892 = vmatpush.bf16.msrb.mxu3 %v10067_v34  ;;  %v14285_v13 = vld [vmem:[%s15846_s27 + $0x264] sm:$0xf]  ;;  %v9904_v40 = vld [vmem:[%s15846_s27 + $0x270] sm:$0xf0]  ;;  %v9779_v23 = vor.u32 %v14253_v6, %v9776_v11  ;;  %v16652_v61 = vadd.f32 %v7639_v47, %v7627_v48 }
 0x183   : > { %v14317_v15 = vld [vmem:[%s15846_s27 + $0x364] sm:$0xf]  ;;  %v10032_v16 = vld [vmem:[%s15846_s27 + $0x370] sm:$0xf0]  ;;  %7854 = vmatpush.bf16.msrb.mxu0 %v9667_v52  ;;  %v9907_v29 = vor.u32 %v14285_v13, %v9904_v40 }
 0x184   : > { %7867 = vmatpush.bf16.msrb.mxu1 %v9795_v56  ;;  %v14217_v45 = vld [vmem:[%s15846_s27 + $0x44] sm:$0xf]  ;;  %v9632_v30 = vld [vmem:[%s15846_s27 + $0x50] sm:$0xf0]  ;;  %v10035_v34 = vor.u32 %v14317_v15, %v10032_v16 }
 0x185   : > { %7880 = vmatpush.bf16.msrb.mxu2 %v9923_v60  ;;  %v14249_v31 = vld [vmem:[%s15846_s27 + $0x144] sm:$0xf]  ;;  %v9760_v42 = vld [vmem:[%s15846_s27 + $0x150] sm:$0xf0]  ;;  %v9635_v56 = vor.u32 %v14217_v45, %v9632_v30  ;;  %v7615_v60 = vpop.f32.mrf.mxu1 }
 0x186   : > { %7893 = vmatpush.bf16.msrb.mxu3 %v10051_v7  ;;  %v14281_v43 = vld [vmem:[%s15846_s27 + $0x244] sm:$0xf]  ;;  %v9888_v46 = vld [vmem:[%s15846_s27 + $0x250] sm:$0xf0]  ;;  %v9763_v2 = vor.u32 %v14249_v31, %v9760_v42 }
 0x187   : > { %v14313_v51 = vld [vmem:[%s15846_s27 + $0x344] sm:$0xf]  ;;  %v10016_v52 = vld [vmem:[%s15846_s27 + $0x350] sm:$0xf0]  ;;  %7855 = vmatpush.bf16.msrb.mxu0 %v9651_v19  ;;  %v9891_v6 = vor.u32 %v14281_v43, %v9888_v46 }
 0x188   : > { %7868 = vmatpush.bf16.msrb.mxu1 %v9779_v23  ;;  %v14213_v7 = vld [vmem:[%s15846_s27 + $0x24] sm:$0xf]  ;;  %v9616_v9 = vld [vmem:[%s15846_s27 + $0x30] sm:$0xf0]  ;;  %v10019_v13 = vor.u32 %v14313_v51, %v10016_v52  ;;  %v7628_v52 = vpop.f32.mrf.mxu2 }
 0x189   : > { %7881 = vmatpush.bf16.msrb.mxu2 %v9907_v29  ;;  %v14245_v11 = vld [vmem:[%s15846_s27 + $0x124] sm:$0xf]  ;;  %v9744_v40 = vld [vmem:[%s15846_s27 + $0x130] sm:$0xf0]  ;;  %v9619_v29 = vor.u32 %v14213_v7, %v9616_v9 }
 0x18a   : > { %7894 = vmatpush.bf16.msrb.mxu3 %v10035_v34  ;;  %v14277_v15 = vld [vmem:[%s15846_s27 + $0x224] sm:$0xf]  ;;  %v9872_v16 = vld [vmem:[%s15846_s27 + $0x230] sm:$0xf0]  ;;  %v9747_v31 = vor.u32 %v14245_v11, %v9744_v40 }
 0x18b   : > { %v14309_v19 = vld [vmem:[%s15846_s27 + $0x324] sm:$0xf]  ;;  %v10000_v23 = vld [vmem:[%s15846_s27 + $0x330] sm:$0xf0]  ;;  %7856 = vmatpush.bf16.msrb.mxu0 %v9635_v56  ;;  %v9875_v34 = vor.u32 %v14277_v15, %v9872_v16 }
 0x18c   : > { %v14209_v45 = vld [vmem:[%s15846_s27 + $0x4] sm:$0xf]  ;;  %v9600_v30 = vld [vmem:[%s15846_s27 + $0x10] sm:$0xf0]  ;;  %7869 = vmatpush.bf16.msrb.mxu1 %v9763_v2  ;;  %v10003_v46 = vor.u32 %v14309_v19, %v10000_v23  ;;  %v7641_v2 = vpop.f32.mrf.mxu3 }
 0x18d   : > { %7882 = vmatpush.bf16.msrb.mxu2 %v9891_v6  ;;  %v14241_v36 = vld [vmem:[%s15846_s27 + $0x104] sm:$0xf]  ;;  %v9728_v42 = vld [vmem:[%s15846_s27 + $0x110] sm:$0xf0]  ;;  %v9603_v6 = vor.u32 %v14209_v45, %v9600_v30 }
 0x18e   : > { %v14273_v43 = vld [vmem:[%s15846_s27 + $0x204] sm:$0xf]  ;;  %7895 = vmatpush.bf16.msrb.mxu3 %v10019_v13  ;;  %v9856_v48 = vld [vmem:[%s15846_s27 + $0x210] sm:$0xf0]  ;;  %v9731_v13 = vor.u32 %v14241_v36, %v9728_v42 }
 0x18f   : > { %v14305_v47 = vld [vmem:[%s15846_s27 + $0x304] sm:$0xf]  ;;  %v9984_v51 = vld [vmem:[%s15846_s27 + $0x310] sm:$0xf0]  ;;  %7857 = vmatpush.bf16.msrb.mxu0 %v9619_v29  ;;  %v9859_v40 = vor.u32 %v14273_v43, %v9856_v48 }
 0x190   : > { %v14365_v55 = vld [vmem:[%s15846_s27 + $0x4e4] sm:$0xf]  ;;  %v10224_v56 = vld [vmem:[%s15846_s27 + $0x4f0] sm:$0xf0]  ;;  %7870 = vmatpush.bf16.msrb.mxu1 %v9747_v31  ;;  %v9987_v19 = vor.u32 %v14305_v47, %v9984_v51 }
 0x191   : > { %v14397_v60 = vld [vmem:[%s15846_s27 + $0x5e4] sm:$0xf]  ;;  %v10352_v7 = vld [vmem:[%s15846_s27 + $0x5f0] sm:$0xf0]  ;;  %7883 = vmatpush.bf16.msrb.mxu2 %v9875_v34  ;;  %v10227_v23 = vor.u32 %v14365_v55, %v10224_v56 }
 0x192   : > { %v14429_v9 = vld [vmem:[%s15846_s27 + $0x6e4] sm:$0xf]  ;;  %v10480_v11 = vld [vmem:[%s15846_s27 + $0x6f0] sm:$0xf0]  ;;  %7896 = vmatpush.bf16.msrb.mxu3 %v10003_v46  ;;  %v10355_v29 = vor.u32 %v14397_v60, %v10352_v7 }
 0x193   : > { %v14461_v15 = vld [vmem:[%s15846_s27 + $0x7e4] sm:$0xf]  ;;  %v10608_v16 = vld [vmem:[%s15846_s27 + $0x7f0] sm:$0xf0]  ;;  %v10483_v45 = vor.u32 %v14429_v9, %v10480_v11  ;;  %7858 = vmatpush.bf16.msrb.mxu0 %v9603_v6 }
 0x194   : > { %v14361_v30 = vld [vmem:[%s15846_s27 + $0x4c4] sm:$0xf]  ;;  %v10208_v52 = vld [vmem:[%s15846_s27 + $0x4d0] sm:$0xf0]  ;;  %v10611_v31 = vor.u32 %v14461_v15, %v10608_v16  ;;  %7871 = vmatpush.bf16.msrb.mxu1 %v9731_v13 }
 0x195   : > { %v14393_v2 = vld [vmem:[%s15846_s27 + $0x5c4] sm:$0xf]  ;;  %v10336_v34 = vld [vmem:[%s15846_s27 + $0x5d0] sm:$0xf0]  ;;  %7884 = vmatpush.bf16.msrb.mxu2 %v9859_v40  ;;  %v10211_v48 = vor.u32 %v14361_v30, %v10208_v52 }
 0x196   : > { %v14425_v36 = vld [vmem:[%s15846_s27 + $0x6c4] sm:$0xf]  ;;  %v10464_v42 = vld [vmem:[%s15846_s27 + $0x6d0] sm:$0xf0]  ;;  %7897 = vmatpush.bf16.msrb.mxu3 %v9987_v19  ;;  %v10339_v47 = vor.u32 %v14393_v2, %v10336_v34  ;;  %7859 = vmatmul.bf16.vlgmr.msrb.gmra.mxu0 %v15968_v10  ;;  %v7652_v34 = vpop.f32.mrf.mxu0 }
 0x197   : > { %v14457_v43 = vld [vmem:[%s15846_s27 + $0x7c4] sm:$0xf]  ;;  %v10592_v46 = vld [vmem:[%s15846_s27 + $0x7d0] sm:$0xf0]  ;;  %7903 = vmatpush.bf16.msra.mxu0 %v10227_v23  ;;  %v10467_v51 = vor.u32 %v14425_v36, %v10464_v42  ;;  %7872 = vmatmul.bf16.vlgmr.msrb.gmra.mxu1 %v15977_v18 }
 0x198   : > { %7916 = vmatpush.bf16.msra.mxu1 %v10355_v29  ;;  %v14357_v55 = vld [vmem:[%s15846_s27 + $0x4a4] sm:$0xf]  ;;  %v10192_v56 = vld [vmem:[%s15846_s27 + $0x4b0] sm:$0xf0]  ;;  %v10595_v6 = vor.u32 %v14457_v43, %v10592_v46  ;;  %7885 = vmatmul.bf16.vlgmr.msrb.gmra.mxu2 %v15959_v0  ;;  %v7653_v43 = vadd.f32 %v7652_v34, %v16652_v61 }
 0x199   : > { %7929 = vmatpush.bf16.msra.mxu2 %v10483_v45  ;;  %v14389_v60 = vld [vmem:[%s15846_s27 + $0x5a4] sm:$0xf]  ;;  %v10320_v7 = vld [vmem:[%s15846_s27 + $0x5b0] sm:$0xf0]  ;;  %7898 = vmatmul.bf16.vlgmr.msrb.gmra.mxu3 %v15975_v17  ;;  %v10195_v15 = vor.u32 %v14357_v55, %v10192_v56 }
 0x19a   : > { %7942 = vmatpush.bf16.msra.mxu3 %v10611_v31  ;;  %v14421_v9 = vld [vmem:[%s15846_s27 + $0x6a4] sm:$0xf]  ;;  %v10448_v11 = vld [vmem:[%s15846_s27 + $0x6b0] sm:$0xf0]  ;;  %v10323_v16 = vor.u32 %v14389_v60, %v10320_v7 }
 0x19b   : > { %v14453_v13 = vld [vmem:[%s15846_s27 + $0x7a4] sm:$0xf]  ;;  %v10576_v40 = vld [vmem:[%s15846_s27 + $0x7b0] sm:$0xf0]  ;;  %7904 = vmatpush.bf16.msra.mxu0 %v10211_v48  ;;  %v10451_v19 = vor.u32 %v14421_v9, %v10448_v11  ;;  %v7665_v48 = vpop.f32.mrf.mxu1 }
 0x19c   : > { %7917 = vmatpush.bf16.msra.mxu1 %v10339_v47  ;;  %v14353_v23 = vld [vmem:[%s15846_s27 + $0x484] sm:$0xf]  ;;  %v10176_v29 = vld [vmem:[%s15846_s27 + $0x490] sm:$0xf0]  ;;  %v10579_v30 = vor.u32 %v14453_v13, %v10576_v40  ;;  %v7666_v7 = vadd.f32 %v7665_v48, %v7653_v43 }
 0x19d   : > { %7930 = vmatpush.bf16.msra.mxu2 %v10467_v51  ;;  %v14385_v45 = vld [vmem:[%s15846_s27 + $0x584] sm:$0xf]  ;;  %v10304_v52 = vld [vmem:[%s15846_s27 + $0x590] sm:$0xf0]  ;;  %v10179_v46 = vor.u32 %v14353_v23, %v10176_v29 }
 0x19e   : > { %7943 = vmatpush.bf16.msra.mxu3 %v10595_v6  ;;  %v14417_v2 = vld [vmem:[%s15846_s27 + $0x684] sm:$0xf]  ;;  %v10432_v31 = vld [vmem:[%s15846_s27 + $0x690] sm:$0xf0]  ;;  %v10307_v47 = vor.u32 %v14385_v45, %v10304_v52  ;;  %v7678_v52 = vpop.f32.mrf.mxu2  ;;  %v7654_v48 = vpop.f32.mrf.mxu0 }
 0x19f   : > { %v14449_v36 = vld [vmem:[%s15846_s27 + $0x784] sm:$0xf]  ;;  %v10560_v42 = vld [vmem:[%s15846_s27 + $0x790] sm:$0xf0]  ;;  %7905 = vmatpush.bf16.msra.mxu0 %v10195_v15  ;;  %v10435_v51 = vor.u32 %v14417_v2, %v10432_v31 }
 0x1a0   : > { %7918 = vmatpush.bf16.msra.mxu1 %v10323_v16  ;;  %v14349_v55 = vld [vmem:[%s15846_s27 + $0x464] sm:$0xf]  ;;  %v10160_v56 = vld [vmem:[%s15846_s27 + $0x470] sm:$0xf0]  ;;  %v10563_v6 = vor.u32 %v14449_v36, %v10560_v42  ;;  %v7679_v36 = vadd.f32 %v7678_v52, %v7666_v7  ;;  %v7691_v42 = vpop.f32.mrf.mxu3 }
 0x1a1   : > { %7931 = vmatpush.bf16.msra.mxu2 %v10451_v19  ;;  %v14381_v60 = vld [vmem:[%s15846_s27 + $0x564] sm:$0xf]  ;;  %v10288_v9 = vld [vmem:[%s15846_s27 + $0x570] sm:$0xf0]  ;;  %v10163_v15 = vor.u32 %v14349_v55, %v10160_v56 }
 0x1a2   : > { %7944 = vmatpush.bf16.msra.mxu3 %v10579_v30  ;;  %v14413_v11 = vld [vmem:[%s15846_s27 + $0x664] sm:$0xf]  ;;  %v10416_v61 = vld [vmem:[%s15846_s27 + $0x670] sm:$0xf0]  ;;  %v10291_v16 = vor.u32 %v14381_v60, %v10288_v9  ;;  %v16723_v55 = vadd.f32 %v7691_v42, %v7679_v36 }
 0x1a3   : > { %v14445_v13 = vld [vmem:[%s15846_s27 + $0x764] sm:$0xf]  ;;  %v10544_v40 = vld [vmem:[%s15846_s27 + $0x770] sm:$0xf0]  ;;  %7906 = vmatpush.bf16.msra.mxu0 %v10179_v46  ;;  %v10419_v19 = vor.u32 %v14413_v11, %v10416_v61 }
 0x1a4   : > { %7919 = vmatpush.bf16.msra.mxu1 %v10307_v47  ;;  %v14345_v23 = vld [vmem:[%s15846_s27 + $0x444] sm:$0xf]  ;;  %v10144_v29 = vld [vmem:[%s15846_s27 + $0x450] sm:$0xf0]  ;;  %v10547_v30 = vor.u32 %v14445_v13, %v10544_v40 }
 0x1a5   : > { %7932 = vmatpush.bf16.msra.mxu2 %v10435_v51  ;;  %v14377_v45 = vld [vmem:[%s15846_s27 + $0x544] sm:$0xf]  ;;  %v10272_v2 = vld [vmem:[%s15846_s27 + $0x550] sm:$0xf0]  ;;  %v10147_v47 = vor.u32 %v14345_v23, %v10144_v29  ;;  %v7667_v51 = vpop.f32.mrf.mxu1 }
 0x1a6   : > { %7945 = vmatpush.bf16.msra.mxu3 %v10563_v6  ;;  %v14409_v31 = vld [vmem:[%s15846_s27 + $0x644] sm:$0xf]  ;;  %v10400_v34 = vld [vmem:[%s15846_s27 + $0x650] sm:$0xf0]  ;;  %v10275_v56 = vor.u32 %v14377_v45, %v10272_v2 }
 0x1a7   : > { %v14441_v43 = vld [vmem:[%s15846_s27 + $0x744] sm:$0xf]  ;;  %v10528_v46 = vld [vmem:[%s15846_s27 + $0x750] sm:$0xf0]  ;;  %7907 = vmatpush.bf16.msra.mxu0 %v10163_v15  ;;  %v10403_v60 = vor.u32 %v14409_v31, %v10400_v34 }
 0x1a8   : > { %7920 = vmatpush.bf16.msra.mxu1 %v10291_v16  ;;  %v14341_v6 = vld [vmem:[%s15846_s27 + $0x424] sm:$0xf]  ;;  %v10128_v7 = vld [vmem:[%s15846_s27 + $0x430] sm:$0xf0]  ;;  %v10531_v11 = vor.u32 %v14441_v43, %v10528_v46  ;;  %v7680_v46 = vpop.f32.mrf.mxu2 }
 0x1a9   : > { %7933 = vmatpush.bf16.msra.mxu2 %v10419_v19  ;;  %v14373_v9 = vld [vmem:[%s15846_s27 + $0x524] sm:$0xf]  ;;  %v10256_v61 = vld [vmem:[%s15846_s27 + $0x530] sm:$0xf0]  ;;  %v10131_v19 = vor.u32 %v14341_v6, %v10128_v7 }
 0x1aa   : > { %7946 = vmatpush.bf16.msra.mxu3 %v10547_v30  ;;  %v14405_v13 = vld [vmem:[%s15846_s27 + $0x624] sm:$0xf]  ;;  %v10384_v40 = vld [vmem:[%s15846_s27 + $0x630] sm:$0xf0]  ;;  %v10259_v45 = vor.u32 %v14373_v9, %v10256_v61 }
 0x1ab   : > { %v14437_v15 = vld [vmem:[%s15846_s27 + $0x724] sm:$0xf]  ;;  %v10512_v16 = vld [vmem:[%s15846_s27 + $0x730] sm:$0xf0]  ;;  %7908 = vmatpush.bf16.msra.mxu0 %v10147_v47  ;;  %v10387_v30 = vor.u32 %v14405_v13, %v10384_v40 }
 0x1ac   : > { %v14337_v23 = vld [vmem:[%s15846_s27 + $0x404] sm:$0xf]  ;;  %v10112_v29 = vld [vmem:[%s15846_s27 + $0x410] sm:$0xf0]  ;;  %7921 = vmatpush.bf16.msra.mxu1 %v10275_v56  ;;  %v10515_v34 = vor.u32 %v14437_v15, %v10512_v16  ;;  %v7693_v56 = vpop.f32.mrf.mxu3 }
 0x1ad   : > { %7934 = vmatpush.bf16.msra.mxu2 %v10403_v60  ;;  %v14369_v52 = vld [vmem:[%s15846_s27 + $0x504] sm:$0xf]  ;;  %v10240_v2 = vld [vmem:[%s15846_s27 + $0x510] sm:$0xf0]  ;;  %v10115_v60 = vor.u32 %v14337_v23, %v10112_v29 }
 0x1ae   : > { %v14401_v31 = vld [vmem:[%s15846_s27 + $0x604] sm:$0xf]  ;;  %7947 = vmatpush.bf16.msra.mxu3 %v10531_v11  ;;  %v10368_v36 = vld [vmem:[%s15846_s27 + $0x610] sm:$0xf0]  ;;  %v10243_v11 = vor.u32 %v14369_v52, %v10240_v2 }
 0x1af   : > { %v14433_v42 = vld [vmem:[%s15846_s27 + $0x704] sm:$0xf]  ;;  %v10496_v43 = vld [vmem:[%s15846_s27 + $0x710] sm:$0xf0]  ;;  %7909 = vmatpush.bf16.msra.mxu0 %v10131_v19  ;;  %v10371_v61 = vor.u32 %v14401_v31, %v10368_v36 }
 0x1b0   : > { %v14493_v48 = vld [vmem:[%s15846_s27 + $0x8e4] sm:$0xf]  ;;  %v10736_v47 = vld [vmem:[%s15846_s27 + $0x8f0] sm:$0xf0]  ;;  %7922 = vmatpush.bf16.msra.mxu1 %v10259_v45  ;;  %v10499_v15 = vor.u32 %v14433_v42, %v10496_v43 }
 0x1b1   : > { %v14525_v51 = vld [vmem:[%s15846_s27 + $0x9e4] sm:$0xf]  ;;  %v10864_v6 = vld [vmem:[%s15846_s27 + $0x9f0] sm:$0xf0]  ;;  %7935 = vmatpush.bf16.msra.mxu2 %v10387_v30  ;;  %v10739_v16 = vor.u32 %v14493_v48, %v10736_v47 }
 0x1b2   : > { %v14557_v7 = vld [vmem:[%s15846_s27 + $0xae4] sm:$0xf]  ;;  %v10992_v9 = vld [vmem:[%s15846_s27 + $0xaf0] sm:$0xf0]  ;;  %7948 = vmatpush.bf16.msra.mxu3 %v10515_v34  ;;  %v10867_v19 = vor.u32 %v14525_v51, %v10864_v6 }
 0x1b3   : > { %v14589_v13 = vld [vmem:[%s15846_s27 + $0xbe4] sm:$0xf]  ;;  %v11120_v40 = vld [vmem:[%s15846_s27 + $0xbf0] sm:$0xf0]  ;;  %v10995_v23 = vor.u32 %v14557_v7, %v10992_v9  ;;  %7910 = vmatpush.bf16.msra.mxu0 %v10115_v60 }
 0x1b4   : > { %v14489_v29 = vld [vmem:[%s15846_s27 + $0x8c4] sm:$0xf]  ;;  %v10720_v46 = vld [vmem:[%s15846_s27 + $0x8d0] sm:$0xf0]  ;;  %v11123_v45 = vor.u32 %v14589_v13, %v11120_v40  ;;  %7923 = vmatpush.bf16.msra.mxu1 %v10243_v11 }
 0x1b5   : > { %v14521_v56 = vld [vmem:[%s15846_s27 + $0x9c4] sm:$0xf]  ;;  %v10848_v30 = vld [vmem:[%s15846_s27 + $0x9d0] sm:$0xf0]  ;;  %7936 = vmatpush.bf16.msra.mxu2 %v10371_v61  ;;  %v10723_v36 = vor.u32 %v14489_v29, %v10720_v46 }
 0x1b6   : > { %v14553_v52 = vld [vmem:[%s15846_s27 + $0xac4] sm:$0xf]  ;;  %v10976_v2 = vld [vmem:[%s15846_s27 + $0xad0] sm:$0xf0]  ;;  %7949 = vmatpush.bf16.msra.mxu3 %v10499_v15  ;;  %v10851_v42 = vor.u32 %v14521_v56, %v10848_v30  ;;  %7911 = vmatmul.bf16.vlgmr.msra.gmra.mxu0 %v16038_v38  ;;  %v16775_v30 = vpop.f32.mrf.mxu0 }
 0x1b7   : > { %v14585_v31 = vld [vmem:[%s15846_s27 + $0xbc4] sm:$0xf]  ;;  %v11104_v34 = vld [vmem:[%s15846_s27 + $0xbd0] sm:$0xf0]  ;;  %7955 = vmatpush.bf16.msrb.mxu0 %v10739_v16  ;;  %v10979_v43 = vor.u32 %v14553_v52, %v10976_v2  ;;  %7924 = vmatmul.bf16.vlgmr.msra.gmra.mxu1 %v16042_v41 }
 0x1b8   : > { %7968 = vmatpush.bf16.msrb.mxu1 %v10867_v19  ;;  %v14485_v48 = vld [vmem:[%s15846_s27 + $0x8a4] sm:$0xf]  ;;  %v10704_v47 = vld [vmem:[%s15846_s27 + $0x8b0] sm:$0xf0]  ;;  %v11107_v60 = vor.u32 %v14585_v31, %v11104_v34  ;;  %7937 = vmatmul.bf16.vlgmr.msra.gmra.mxu2 %v16034_v35  ;;  %v16779_v34 = vpop.f32.mrf.mxu1 }
 0x1b9   : > { %7981 = vmatpush.bf16.msrb.mxu2 %v10995_v23  ;;  %v14517_v51 = vld [vmem:[%s15846_s27 + $0x9a4] sm:$0xf]  ;;  %v10832_v6 = vld [vmem:[%s15846_s27 + $0x9b0] sm:$0xf0]  ;;  %7950 = vmatmul.bf16.vlgmr.msra.gmra.mxu3 %v16040_v39  ;;  %v10707_v13 = vor.u32 %v14485_v48, %v10704_v47 }
 0x1ba   : > { %7994 = vmatpush.bf16.msrb.mxu3 %v11123_v45  ;;  %v14549_v7 = vld [vmem:[%s15846_s27 + $0xaa4] sm:$0xf]  ;;  %v10960_v9 = vld [vmem:[%s15846_s27 + $0xab0] sm:$0xf0]  ;;  %v10835_v40 = vor.u32 %v14517_v51, %v10832_v6 }
 0x1bb   : > { %v14581_v11 = vld [vmem:[%s15846_s27 + $0xba4] sm:$0xf]  ;;  %v11088_v61 = vld [vmem:[%s15846_s27 + $0xbb0] sm:$0xf0]  ;;  %7956 = vmatpush.bf16.msrb.mxu0 %v10723_v36  ;;  %v10963_v15 = vor.u32 %v14549_v7, %v10960_v9 }
 0x1bc   : > { %7969 = vmatpush.bf16.msrb.mxu1 %v10851_v42  ;;  %v14481_v16 = vld [vmem:[%s15846_s27 + $0x884] sm:$0xf]  ;;  %v10688_v19 = vld [vmem:[%s15846_s27 + $0x890] sm:$0xf0]  ;;  %v11091_v29 = vor.u32 %v14581_v11, %v11088_v61 }
 0x1bd   : > { %7982 = vmatpush.bf16.msrb.mxu2 %v10979_v43  ;;  %v14513_v23 = vld [vmem:[%s15846_s27 + $0x984] sm:$0xf]  ;;  %v10816_v46 = vld [vmem:[%s15846_s27 + $0x990] sm:$0xf0]  ;;  %v10691_v31 = vor.u32 %v14481_v16, %v10688_v19 }
 0x1be   : > { %7995 = vmatpush.bf16.msrb.mxu3 %v11107_v60  ;;  %v14545_v56 = vld [vmem:[%s15846_s27 + $0xa84] sm:$0xf]  ;;  %v10944_v45 = vld [vmem:[%s15846_s27 + $0xa90] sm:$0xf0]  ;;  %v10819_v36 = vor.u32 %v14513_v23, %v10816_v46 }
 0x1bf   : > { %v14577_v52 = vld [vmem:[%s15846_s27 + $0xb84] sm:$0xf]  ;;  %v11072_v2 = vld [vmem:[%s15846_s27 + $0xb90] sm:$0xf0]  ;;  %7957 = vmatpush.bf16.msrb.mxu0 %v10707_v13  ;;  %v10947_v42 = vor.u32 %v14545_v56, %v10944_v45 }
 0x1c0   : > { %7970 = vmatpush.bf16.msrb.mxu1 %v10835_v40  ;;  %v14477_v43 = vld [vmem:[%s15846_s27 + $0x864] sm:$0xf]  ;;  %v10672_v48 = vld [vmem:[%s15846_s27 + $0x870] sm:$0xf0]  ;;  %v11075_v51 = vor.u32 %v14577_v52, %v11072_v2  ;;  %v16797_v52 = vpop.f32.mrf.mxu3 }
 0x1c1   : > { %7983 = vmatpush.bf16.msrb.mxu2 %v10963_v15  ;;  %v14509_v47 = vld [vmem:[%s15846_s27 + $0x964] sm:$0xf]  ;;  %v10800_v60 = vld [vmem:[%s15846_s27 + $0x970] sm:$0xf0]  ;;  %v10675_v61 = vor.u32 %v14477_v43, %v10672_v48  ;;  %v7719_v43 = vpop.f32.mrf.mxu1 }
 0x1c2   : > { %7996 = vmatpush.bf16.msrb.mxu3 %v11091_v29  ;;  %v14541_v6 = vld [vmem:[%s15846_s27 + $0xa64] sm:$0xf]  ;;  %v10928_v7 = vld [vmem:[%s15846_s27 + $0xa70] sm:$0xf0]  ;;  %v10803_v13 = vor.u32 %v14509_v47, %v10800_v60  ;;  %v16792_v29 = vpop.f32.mrf.mxu2 }
 0x1c3   : > { %v14573_v9 = vld [vmem:[%s15846_s27 + $0xb64] sm:$0xf]  ;;  %v11056_v11 = vld [vmem:[%s15846_s27 + $0xb70] sm:$0xf0]  ;;  %7958 = vmatpush.bf16.msrb.mxu0 %v10691_v31  ;;  %v10931_v40 = vor.u32 %v14541_v6, %v10928_v7 }
 0x1c4   : > { %7971 = vmatpush.bf16.msrb.mxu1 %v10819_v36  ;;  %v14473_v15 = vld [vmem:[%s15846_s27 + $0x844] sm:$0xf]  ;;  %v10656_v16 = vld [vmem:[%s15846_s27 + $0x850] sm:$0xf0]  ;;  %v11059_v23 = vor.u32 %v14573_v9, %v11056_v11  ;;  %v7706_v36 = vpop.f32.mrf.mxu0 }
 0x1c5   : > { %7984 = vmatpush.bf16.msrb.mxu2 %v10947_v42  ;;  %v14505_v19 = vld [vmem:[%s15846_s27 + $0x944] sm:$0xf]  ;;  %v10784_v46 = vld [vmem:[%s15846_s27 + $0x950] sm:$0xf0]  ;;  %v10659_v42 = vor.u32 %v14473_v15, %v10656_v16 }
 0x1c6   : > { %7997 = vmatpush.bf16.msrb.mxu3 %v11075_v51  ;;  %v14537_v56 = vld [vmem:[%s15846_s27 + $0xa44] sm:$0xf]  ;;  %v10912_v45 = vld [vmem:[%s15846_s27 + $0xa50] sm:$0xf0]  ;;  %v10787_v48 = vor.u32 %v14505_v19, %v10784_v46 }
 0x1c7   : > { %v14569_v2 = vld [vmem:[%s15846_s27 + $0xb44] sm:$0xf]  ;;  %v11040_v31 = vld [vmem:[%s15846_s27 + $0xb50] sm:$0xf0]  ;;  %7959 = vmatpush.bf16.msrb.mxu0 %v10675_v61  ;;  %v10915_v47 = vor.u32 %v14537_v56, %v10912_v45 }
 0x1c8   : > { %7972 = vmatpush.bf16.msrb.mxu1 %v10803_v13  ;;  %v14469_v51 = vld [vmem:[%s15846_s27 + $0x824] sm:$0xf]  ;;  %v10640_v60 = vld [vmem:[%s15846_s27 + $0x830] sm:$0xf0]  ;;  %v11043_v7 = vor.u32 %v14569_v2, %v11040_v31 }
 0x1c9   : > { %7985 = vmatpush.bf16.msrb.mxu2 %v10931_v40  ;;  %v14501_v6 = vld [vmem:[%s15846_s27 + $0x924] sm:$0xf]  ;;  %v10768_v9 = vld [vmem:[%s15846_s27 + $0x930] sm:$0xf0]  ;;  %v10643_v40 = vor.u32 %v14469_v51, %v10640_v60 }
 0x1ca   : > { %7998 = vmatpush.bf16.msrb.mxu3 %v11059_v23  ;;  %v14533_v11 = vld [vmem:[%s15846_s27 + $0xa24] sm:$0xf]  ;;  %v10896_v61 = vld [vmem:[%s15846_s27 + $0xa30] sm:$0xf0]  ;;  %v10771_v23 = vor.u32 %v14501_v6, %v10768_v9  ;;  %v7732_v51 = vpop.f32.mrf.mxu2 }
 0x1cb   : > { %v14565_v15 = vld [vmem:[%s15846_s27 + $0xb24] sm:$0xf]  ;;  %v11024_v13 = vld [vmem:[%s15846_s27 + $0xb30] sm:$0xf0]  ;;  %7960 = vmatpush.bf16.msrb.mxu0 %v10659_v42  ;;  %v10899_v46 = vor.u32 %v14533_v11, %v10896_v61 }
 0x1cc   : > { %v14465_v16 = vld [vmem:[%s15846_s27 + $0x804] sm:$0xf]  ;;  %v10624_v19 = vld [vmem:[%s15846_s27 + $0x810] sm:$0xf0]  ;;  %7973 = vmatpush.bf16.msrb.mxu1 %v10787_v48  ;;  %v11027_v31 = vor.u32 %v14565_v15, %v11024_v13 }
 0x1cd   : > { %7986 = vmatpush.bf16.msrb.mxu2 %v10915_v47  ;;  %v14497_v56 = vld [vmem:[%s15846_s27 + $0x904] sm:$0xf]  ;;  %v10752_v45 = vld [vmem:[%s15846_s27 + $0x910] sm:$0xf0]  ;;  %v7745_v47 = vpop.f32.mrf.mxu3  ;;  %v10627_v6 = vor.u32 %v14465_v16, %v10624_v19 }
 0x1ce   : > { %v14529_v2 = vld [vmem:[%s15846_s27 + $0xa04] sm:$0xf]  ;;  %7999 = vmatpush.bf16.msrb.mxu3 %v11043_v7  ;;  %v10880_v36 = vld [vmem:[%s15846_s27 + $0xa10] sm:$0xf0]  ;;  %v10755_v7 = vor.u32 %v14497_v56, %v10752_v45 }
 0x1cf   : > { %v14561_v42 = vld [vmem:[%s15846_s27 + $0xb04] sm:$0xf]  ;;  %v11008_v43 = vld [vmem:[%s15846_s27 + $0xb10] sm:$0xf0]  ;;  %7961 = vmatpush.bf16.msrb.mxu0 %v10643_v40  ;;  %v10883_v15 = vor.u32 %v14529_v2, %v10880_v36 }
 0x1d0   : > { %v14621_v60 = vld [vmem:[%s15846_s27 + $0xce4] sm:$0xf]  ;;  %v11248_v41 = vld [vmem:[%s15846_s27 + $0xcf0] sm:$0xf0]  ;;  %7974 = vmatpush.bf16.msrb.mxu1 %v10771_v23  ;;  %v11011_v40 = vor.u32 %v14561_v42, %v11008_v43 }
 0x1d1   : > { %v14653_v48 = vld [vmem:[%s15846_s27 + $0xde4] sm:$0xf]  ;;  %v11376_v9 = vld [vmem:[%s15846_s27 + $0xdf0] sm:$0xf0]  ;;  %7987 = vmatpush.bf16.msrb.mxu2 %v10899_v46  ;;  %v11251_v47 = vor.u32 %v14621_v60, %v11248_v41 }
 0x1d2   : > { %v14685_v11 = vld [vmem:[%s15846_s27 + $0xee4] sm:$0xf]  ;;  %v11504_v61 = vld [vmem:[%s15846_s27 + $0xef0] sm:$0xf0]  ;;  %8000 = vmatpush.bf16.msrb.mxu3 %v11027_v31  ;;  %v11379_v16 = vor.u32 %v14653_v48, %v11376_v9 }
 0x1d3   : > { %v14717_v13 = vld [vmem:[%s15846_s27 + $0xfe4] sm:$0xf]  ;;  %v11632_v51 = vld [vmem:[%s15846_s27 + $0xff0] sm:$0xf0]  ;;  %v11507_v19 = vor.u32 %v14685_v11, %v11504_v61  ;;  %7962 = vmatpush.bf16.msrb.mxu0 %v10627_v6 }
 0x1d4   : > { %v14617_v39 = vld [vmem:[%s15846_s27 + $0xcc4] sm:$0xf]  ;;  %v11232_v38 = vld [vmem:[%s15846_s27 + $0xcd0] sm:$0xf0]  ;;  %v11635_v23 = vor.u32 %v14717_v13, %v11632_v51  ;;  %7975 = vmatpush.bf16.msrb.mxu1 %v10755_v7 }
 0x1d5   : > { %v14649_v35 = vld [vmem:[%s15846_s27 + $0xdc4] sm:$0xf]  ;;  %v11360_v46 = vld [vmem:[%s15846_s27 + $0xdd0] sm:$0xf0]  ;;  %7988 = vmatpush.bf16.msrb.mxu2 %v10883_v15  ;;  %v11235_v41 = vor.u32 %v14617_v39, %v11232_v38 }
 0x1d6   : > { %v14681_v56 = vld [vmem:[%s15846_s27 + $0xec4] sm:$0xf]  ;;  %v11488_v45 = vld [vmem:[%s15846_s27 + $0xed0] sm:$0xf0]  ;;  %8001 = vmatpush.bf16.msrb.mxu3 %v11011_v40  ;;  %v11363_v36 = vor.u32 %v14649_v35, %v11360_v46  ;;  %7963 = vmatmul.bf16.vlgmr.msrb.gmra.mxu0 %v16111_v20 }
 0x1d7   : > { %v14713_v2 = vld [vmem:[%s15846_s27 + $0xfc4] sm:$0xf]  ;;  %v11616_v31 = vld [vmem:[%s15846_s27 + $0xfd0] sm:$0xf0]  ;;  %8007 = vmatpush.bf16.msra.mxu0 %v11251_v47  ;;  %v11491_v42 = vor.u32 %v14681_v56, %v11488_v45  ;;  %7976 = vmatmul.bf16.vlgmr.msrb.gmra.mxu1 %v16118_v25  ;;  %v16851_v46 = vpop.f32.mrf.mxu0 }
 0x1d8   : > { %8020 = vmatpush.bf16.msra.mxu1 %v11379_v16  ;;  %v14613_v43 = vld [vmem:[%s15846_s27 + $0xca4] sm:$0xf]  ;;  %v11216_v60 = vld [vmem:[%s15846_s27 + $0xcb0] sm:$0xf0]  ;;  %v11619_v6 = vor.u32 %v14713_v2, %v11616_v31  ;;  %7989 = vmatmul.bf16.vlgmr.msrb.gmra.mxu2 %v16116_v24  ;;  %v16855_v31 = vpop.f32.mrf.mxu1 }
 0x1d9   : > { %8033 = vmatpush.bf16.msra.mxu2 %v11507_v19  ;;  %v14645_v48 = vld [vmem:[%s15846_s27 + $0xda4] sm:$0xf]  ;;  %v11344_v9 = vld [vmem:[%s15846_s27 + $0xdb0] sm:$0xf0]  ;;  %8002 = vmatmul.bf16.vlgmr.msrb.gmra.mxu3 %v16122_v28  ;;  %v11219_v39 = vor.u32 %v14613_v43, %v11216_v60 }
 0x1da   : > { %8046 = vmatpush.bf16.msra.mxu3 %v11635_v23  ;;  %v14677_v11 = vld [vmem:[%s15846_s27 + $0xea4] sm:$0xf]  ;;  %v11472_v61 = vld [vmem:[%s15846_s27 + $0xeb0] sm:$0xf0]  ;;  %v11347_v7 = vor.u32 %v14645_v48, %v11344_v9 }
 0x1db   : > { %v14709_v35 = vld [vmem:[%s15846_s27 + $0xfa4] sm:$0xf]  ;;  %v11600_v38 = vld [vmem:[%s15846_s27 + $0xfb0] sm:$0xf0]  ;;  %8008 = vmatpush.bf16.msra.mxu0 %v11235_v41  ;;  %v11475_v15 = vor.u32 %v14677_v11, %v11472_v61 }
 0x1dc   : > { %8021 = vmatpush.bf16.msra.mxu1 %v11363_v36  ;;  %v14609_v13 = vld [vmem:[%s15846_s27 + $0xc84] sm:$0xf]  ;;  %v11200_v51 = vld [vmem:[%s15846_s27 + $0xc90] sm:$0xf0]  ;;  %v11603_v47 = vor.u32 %v14709_v35, %v11600_v38 }
 0x1dd   : > { %8034 = vmatpush.bf16.msra.mxu2 %v11491_v42  ;;  %v14641_v40 = vld [vmem:[%s15846_s27 + $0xd84] sm:$0xf]  ;;  %v11328_v16 = vld [vmem:[%s15846_s27 + $0xd90] sm:$0xf0]  ;;  %v11203_v2 = vor.u32 %v14609_v13, %v11200_v51 }
 0x1de   : > { %8047 = vmatpush.bf16.msra.mxu3 %v11619_v6  ;;  %v14673_v19 = vld [vmem:[%s15846_s27 + $0xe84] sm:$0xf]  ;;  %v11456_v23 = vld [vmem:[%s15846_s27 + $0xe90] sm:$0xf0]  ;;  %v11331_v41 = vor.u32 %v14641_v40, %v11328_v16 }
 0x1df   : > { %v14705_v56 = vld [vmem:[%s15846_s27 + $0xf84] sm:$0xf]  ;;  %v11584_v45 = vld [vmem:[%s15846_s27 + $0xf90] sm:$0xf0]  ;;  %8009 = vmatpush.bf16.msra.mxu0 %v11219_v39  ;;  %v11459_v36 = vor.u32 %v14673_v19, %v11456_v23 }
 0x1e0   : > { %8022 = vmatpush.bf16.msra.mxu1 %v11347_v7  ;;  %v14605_v42 = vld [vmem:[%s15846_s27 + $0xc64] sm:$0xf]  ;;  %v11184_v43 = vld [vmem:[%s15846_s27 + $0xc70] sm:$0xf0]  ;;  %v11587_v48 = vor.u32 %v14705_v56, %v11584_v45  ;;  %v7705_v56 = vadd.f32 %v16775_v30, %v16723_v55  ;;  %v16875_v45 = vpop.f32.mrf.mxu3 }
 0x1e1   : > { %8035 = vmatpush.bf16.msra.mxu2 %v11475_v15  ;;  %v14637_v60 = vld [vmem:[%s15846_s27 + $0xd64] sm:$0xf]  ;;  %v11312_v6 = vld [vmem:[%s15846_s27 + $0xd70] sm:$0xf0]  ;;  %v11187_v38 = vor.u32 %v14605_v42, %v11184_v43  ;;  %v7771_v43 = vpop.f32.mrf.mxu1 }
 0x1e2   : > { %8048 = vmatpush.bf16.msra.mxu3 %v11603_v47  ;;  %v14669_v9 = vld [vmem:[%s15846_s27 + $0xe64] sm:$0xf]  ;;  %v11440_v11 = vld [vmem:[%s15846_s27 + $0xe70] sm:$0xf0]  ;;  %v11315_v39 = vor.u32 %v14637_v60, %v11312_v6  ;;  %v16868_v47 = vpop.f32.mrf.mxu2 }
 0x1e3   : > { %v14701_v61 = vld [vmem:[%s15846_s27 + $0xf64] sm:$0xf]  ;;  %v11568_v35 = vld [vmem:[%s15846_s27 + $0xf70] sm:$0xf0]  ;;  %8010 = vmatpush.bf16.msra.mxu0 %v11203_v2  ;;  %v11443_v7 = vor.u32 %v14669_v9, %v11440_v11 }
 0x1e4   : > { %8023 = vmatpush.bf16.msra.mxu1 %v11331_v41  ;;  %v14601_v15 = vld [vmem:[%s15846_s27 + $0xc44] sm:$0xf]  ;;  %v11168_v13 = vld [vmem:[%s15846_s27 + $0xc50] sm:$0xf0]  ;;  %v11571_v40 = vor.u32 %v14701_v61, %v11568_v35 }
 0x1e5   : > { %8036 = vmatpush.bf16.msra.mxu2 %v11459_v36  ;;  %v14633_v51 = vld [vmem:[%s15846_s27 + $0xd44] sm:$0xf]  ;;  %v11296_v16 = vld [vmem:[%s15846_s27 + $0xd50] sm:$0xf0]  ;;  %v7758_v36 = vpop.f32.mrf.mxu0  ;;  %v11171_v42 = vor.u32 %v14601_v15, %v11168_v13 }
 0x1e6   : > { %8049 = vmatpush.bf16.msra.mxu3 %v11587_v48  ;;  %v14665_v19 = vld [vmem:[%s15846_s27 + $0xe44] sm:$0xf]  ;;  %v11424_v23 = vld [vmem:[%s15846_s27 + $0xe50] sm:$0xf0]  ;;  %v11299_v60 = vor.u32 %v14633_v51, %v11296_v16 }
 0x1e7   : > { %v14697_v2 = vld [vmem:[%s15846_s27 + $0xf44] sm:$0xf]  ;;  %v11552_v41 = vld [vmem:[%s15846_s27 + $0xf50] sm:$0xf0]  ;;  %8011 = vmatpush.bf16.msra.mxu0 %v11187_v38  ;;  %v11427_v48 = vor.u32 %v14665_v19, %v11424_v23  ;;  %v7718_v38 = vadd.f32 %v16779_v34, %v7705_v56 }
 0x1e8   : > { %8024 = vmatpush.bf16.msra.mxu1 %v11315_v39  ;;  %v14597_v55 = vld [vmem:[%s15846_s27 + $0xc24] sm:$0xf]  ;;  %v11152_v30 = vld [vmem:[%s15846_s27 + $0xc30] sm:$0xf0]  ;;  %v11555_v9 = vor.u32 %v14697_v2, %v11552_v41 }
 0x1e9   : > { %8037 = vmatpush.bf16.msra.mxu2 %v11443_v7  ;;  %v14629_v6 = vld [vmem:[%s15846_s27 + $0xd24] sm:$0xf]  ;;  %v11280_v11 = vld [vmem:[%s15846_s27 + $0xd30] sm:$0xf0]  ;;  %v11155_v7 = vor.u32 %v14597_v55, %v11152_v30 }
 0x1ea   : > { %8050 = vmatpush.bf16.msra.mxu3 %v11571_v40  ;;  %v14661_v61 = vld [vmem:[%s15846_s27 + $0xe24] sm:$0xf]  ;;  %v11408_v35 = vld [vmem:[%s15846_s27 + $0xe30] sm:$0xf0]  ;;  %v7731_v40 = vadd.f32 %v16792_v29, %v7718_v38  ;;  %v11283_v16 = vor.u32 %v14629_v6, %v11280_v11  ;;  %v7784_v43 = vpop.f32.mrf.mxu2 }
 0x1eb   : > { %v14693_v15 = vld [vmem:[%s15846_s27 + $0xf24] sm:$0xf]  ;;  %v11536_v39 = vld [vmem:[%s15846_s27 + $0xf30] sm:$0xf0]  ;;  %8012 = vmatpush.bf16.msra.mxu0 %v11171_v42  ;;  %v11411_v19 = vor.u32 %v14661_v61, %v11408_v35 }
 0x1ec   : > { %v14593_v13 = vld [vmem:[%s15846_s27 + $0xc04] sm:$0xf]  ;;  %v11136_v51 = vld [vmem:[%s15846_s27 + $0xc10] sm:$0xf0]  ;;  %8025 = vmatpush.bf16.msra.mxu1 %v11299_v60  ;;  %v11539_v2 = vor.u32 %v14693_v15, %v11536_v39 }
 0x1ed   : > { %8038 = vmatpush.bf16.msra.mxu2 %v11427_v48  ;;  %v14625_v34 = vld [vmem:[%s15846_s27 + $0xd04] sm:$0xf]  ;;  %v11264_v23 = vld [vmem:[%s15846_s27 + $0xd10] sm:$0xf0]  ;;  %v7797_v48 = vpop.f32.mrf.mxu3  ;;  %v11139_v30 = vor.u32 %v14593_v13, %v11136_v51 }
 0x1ee   : > { %v14657_v56 = vld [vmem:[%s15846_s27 + $0xe04] sm:$0xf]  ;;  %8051 = vmatpush.bf16.msra.mxu3 %v11555_v9  ;;  %v11392_v41 = vld [vmem:[%s15846_s27 + $0xe10] sm:$0xf0]  ;;  %v7744_v9 = vadd.f32 %v16797_v52, %v7731_v40  ;;  %v11267_v35 = vor.u32 %v14625_v34, %v11264_v23 }
 0x1ef   : > { %v14689_v36 = vld [vmem:[%s15846_s27 + $0xf04] sm:$0xf]  ;;  %v11520_v42 = vld [vmem:[%s15846_s27 + $0xf10] sm:$0xf0]  ;;  %8013 = vmatpush.bf16.msra.mxu0 %v11155_v7  ;;  %v11395_v38 = vor.u32 %v14657_v56, %v11392_v41 }
 0x1f0   : > { %v14749_v29 = vld [vmem:[%s15846_s27 + $0x10e4] sm:$0xf]  ;;  %v11760_v55 = vld [vmem:[%s15846_s27 + $0x10f0] sm:$0xf0]  ;;  %8026 = vmatpush.bf16.msra.mxu1 %v11283_v16  ;;  %v11523_v7 = vor.u32 %v14689_v36, %v11520_v42  ;;  %v7757_v51 = vadd.f32 %v16851_v46, %v7744_v9 }
 0x1f1   : > { %v14781_v60 = vld [vmem:[%s15846_s27 + $0x11e4] sm:$0xf]  ;;  %v11888_v6 = vld [vmem:[%s15846_s27 + $0x11f0] sm:$0xf0]  ;;  %8039 = vmatpush.bf16.msra.mxu2 %v11411_v19  ;;  %v11763_v13 = vor.u32 %v14749_v29, %v11760_v55 }
 0x1f2   : > { %v14813_v11 = vld [vmem:[%s15846_s27 + $0x12e4] sm:$0xf]  ;;  %v12016_v61 = vld [vmem:[%s15846_s27 + $0x12f0] sm:$0xf0]  ;;  %8052 = vmatpush.bf16.msra.mxu3 %v11539_v2  ;;  %v11891_v43 = vor.u32 %v14781_v60, %v11888_v6  ;;  %v7770_v41 = vadd.f32 %v16855_v31, %v7757_v51 }
 0x1f3   : > { %v14845_v15 = vld [vmem:[%s15846_s27 + $0x13e4] sm:$0xf]  ;;  %v12144_v39 = vld [vmem:[%s15846_s27 + $0x13f0] sm:$0xf0]  ;;  %v12019_v48 = vor.u32 %v14813_v11, %v12016_v61  ;;  %8014 = vmatpush.bf16.msra.mxu0 %v11139_v30 }
 0x1f4   : > { %v14745_v28 = vld [vmem:[%s15846_s27 + $0x10c4] sm:$0xf]  ;;  %v11744_v52 = vld [vmem:[%s15846_s27 + $0x10d0] sm:$0xf0]  ;;  %v12147_v16 = vor.u32 %v14845_v15, %v12144_v39  ;;  %8027 = vmatpush.bf16.msra.mxu1 %v11267_v35  ;;  %v7783_v31 = vadd.f32 %v16868_v47, %v7770_v41 }
 0x1f5   : > { %v14777_v40 = vld [vmem:[%s15846_s27 + $0x11c4] sm:$0xf]  ;;  %v11872_v19 = vld [vmem:[%s15846_s27 + $0x11d0] sm:$0xf0]  ;;  %8040 = vmatpush.bf16.msra.mxu2 %v11395_v38  ;;  %v11747_v46 = vor.u32 %v14745_v28, %v11744_v52 }
 0x1f6   : > { %v14809_v34 = vld [vmem:[%s15846_s27 + $0x12c4] sm:$0xf]  ;;  %v12000_v23 = vld [vmem:[%s15846_s27 + $0x12d0] sm:$0xf0]  ;;  %8053 = vmatpush.bf16.msra.mxu3 %v11523_v7  ;;  %v11875_v36 = vor.u32 %v14777_v40, %v11872_v19  ;;  %8015 = vmatmul.bf16.vlgmr.msra.gmra.mxu0 %v16191_v14  ;;  %v7796_v52 = vadd.f32 %v16875_v45, %v7783_v31  ;;  %v7808_v40 = vpop.f32.mrf.mxu0 }
 0x1f7   : > { %v14841_v56 = vld [vmem:[%s15846_s27 + $0x13c4] sm:$0xf]  ;;  %v12128_v2 = vld [vmem:[%s15846_s27 + $0x13d0] sm:$0xf0]  ;;  %8059 = vmatpush.bf16.msrb.mxu0 %v11763_v13  ;;  %v12003_v42 = vor.u32 %v14809_v34, %v12000_v23  ;;  %8028 = vmatmul.bf16.vlgmr.msra.gmra.mxu1 %v16198_v22  ;;  %v7821_v23 = vpop.f32.mrf.mxu1 }
 0x1f8   : > { %8072 = vmatpush.bf16.msrb.mxu1 %v11891_v43  ;;  %v14741_v29 = vld [vmem:[%s15846_s27 + $0x10a4] sm:$0xf]  ;;  %v11728_v55 = vld [vmem:[%s15846_s27 + $0x10b0] sm:$0xf0]  ;;  %v12131_v30 = vor.u32 %v14841_v56, %v12128_v2  ;;  %8041 = vmatmul.bf16.vlgmr.msra.gmra.mxu2 %v16196_v21  ;;  %v7809_v56 = vadd.f32 %v7808_v40, %v7796_v52 }
 0x1f9   : > { %8085 = vmatpush.bf16.msrb.mxu2 %v12019_v48  ;;  %v14773_v60 = vld [vmem:[%s15846_s27 + $0x11a4] sm:$0xf]  ;;  %v11856_v6 = vld [vmem:[%s15846_s27 + $0x11b0] sm:$0xf0]  ;;  %8054 = vmatmul.bf16.vlgmr.msra.gmra.mxu3 %v16202_v27  ;;  %v11731_v35 = vor.u32 %v14741_v29, %v11728_v55 }
 0x1fa   : > { %8098 = vmatpush.bf16.msrb.mxu3 %v12147_v16  ;;  %v14805_v11 = vld [vmem:[%s15846_s27 + $0x12a4] sm:$0xf]  ;;  %v11984_v28 = vld [vmem:[%s15846_s27 + $0x12b0] sm:$0xf0]  ;;  %v11859_v38 = vor.u32 %v14773_v60, %v11856_v6 }
 0x1fb   : > { %v14837_v61 = vld [vmem:[%s15846_s27 + $0x13a4] sm:$0xf]  ;;  %v12112_v9 = vld [vmem:[%s15846_s27 + $0x13b0] sm:$0xf0]  ;;  %8060 = vmatpush.bf16.msrb.mxu0 %v11747_v46  ;;  %v11987_v15 = vor.u32 %v14805_v11, %v11984_v28  ;;  %v7822_v28 = vadd.f32 %v7821_v23, %v7809_v56 }
 0x1fc   : > { %8073 = vmatpush.bf16.msrb.mxu1 %v11875_v36  ;;  %v14737_v47 = vld [vmem:[%s15846_s27 + $0x1084] sm:$0xf]  ;;  %v11712_v39 = vld [vmem:[%s15846_s27 + $0x1090] sm:$0xf0]  ;;  %v12115_v13 = vor.u32 %v14837_v61, %v12112_v9 }
 0x1fd   : > { %8086 = vmatpush.bf16.msrb.mxu2 %v12003_v42  ;;  %v14769_v7 = vld [vmem:[%s15846_s27 + $0x1184] sm:$0xf]  ;;  %v11840_v51 = vld [vmem:[%s15846_s27 + $0x1190] sm:$0xf0]  ;;  %v11715_v34 = vor.u32 %v14737_v47, %v11712_v39  ;;  %v7834_v47 = vpop.f32.mrf.mxu2 }
 0x1fe   : > { %8099 = vmatpush.bf16.msrb.mxu3 %v12131_v30  ;;  %v14801_v43 = vld [vmem:[%s15846_s27 + $0x1284] sm:$0xf]  ;;  %v11968_v48 = vld [vmem:[%s15846_s27 + $0x1290] sm:$0xf0]  ;;  %v11843_v2 = vor.u32 %v14769_v7, %v11840_v51  ;;  %v7835_v51 = vadd.f32 %v7834_v47, %v7822_v28  ;;  %v7810_v40 = vpop.f32.mrf.mxu0 }
 0x1ff   : > { %v14833_v16 = vld [vmem:[%s15846_s27 + $0x1384] sm:$0xf]  ;;  %v12096_v19 = vld [vmem:[%s15846_s27 + $0x1390] sm:$0xf0]  ;;  %8061 = vmatpush.bf16.msrb.mxu0 %v11731_v35  ;;  %v11971_v46 = vor.u32 %v14801_v43, %v11968_v48  ;;  %v7847_v43 = vpop.f32.mrf.mxu3 }
 0x200   : > { %8074 = vmatpush.bf16.msrb.mxu1 %v11859_v38  ;;  %v14733_v41 = vld [vmem:[%s15846_s27 + $0x1064] sm:$0xf]  ;;  %v11696_v36 = vld [vmem:[%s15846_s27 + $0x1070] sm:$0xf0]  ;;  %v12099_v42 = vor.u32 %v14833_v16, %v12096_v19  ;;  %v7848_v23 = vadd.f32 %v7847_v43, %v7835_v51 }
 0x201   : > { %8087 = vmatpush.bf16.msrb.mxu2 %v11987_v15  ;;  %v14765_v45 = vld [vmem:[%s15846_s27 + $0x1164] sm:$0xf]  ;;  %v11824_v29 = vld [vmem:[%s15846_s27 + $0x1170] sm:$0xf0]  ;;  %v11699_v11 = vor.u32 %v14733_v41, %v11696_v36 }
 0x202   : > { %8100 = vmatpush.bf16.msrb.mxu3 %v12115_v13  ;;  %v14797_v55 = vld [vmem:[%s15846_s27 + $0x1264] sm:$0xf]  ;;  %v11952_v60 = vld [vmem:[%s15846_s27 + $0x1270] sm:$0xf0]  ;;  %v11827_v31 = vor.u32 %v14765_v45, %v11824_v29 }
 0x203   : > { %v14829_v30 = vld [vmem:[%s15846_s27 + $0x1364] sm:$0xf]  ;;  %v12080_v6 = vld [vmem:[%s15846_s27 + $0x1370] sm:$0xf0]  ;;  %8062 = vmatpush.bf16.msrb.mxu0 %v11715_v34  ;;  %v11955_v61 = vor.u32 %v14797_v55, %v11952_v60  ;;  %v7823_v34 = vpop.f32.mrf.mxu1 }
 0x204   : > { %8075 = vmatpush.bf16.msrb.mxu1 %v11843_v2  ;;  %v14729_v9 = vld [vmem:[%s15846_s27 + $0x1044] sm:$0xf]  ;;  %v11680_v35 = vld [vmem:[%s15846_s27 + $0x1050] sm:$0xf0]  ;;  %v12083_v15 = vor.u32 %v14829_v30, %v12080_v6 }
 0x205   : > { %8088 = vmatpush.bf16.msrb.mxu2 %v11971_v46  ;;  %v14761_v38 = vld [vmem:[%s15846_s27 + $0x1144] sm:$0xf]  ;;  %v11808_v39 = vld [vmem:[%s15846_s27 + $0x1150] sm:$0xf0]  ;;  %v11683_v19 = vor.u32 %v14729_v9, %v11680_v35  ;;  %v7836_v51 = vpop.f32.mrf.mxu2 }
 0x206   : > { %8101 = vmatpush.bf16.msrb.mxu3 %v12099_v42  ;;  %v14793_v7 = vld [vmem:[%s15846_s27 + $0x1244] sm:$0xf]  ;;  %v11936_v13 = vld [vmem:[%s15846_s27 + $0x1250] sm:$0xf0]  ;;  %v11811_v56 = vor.u32 %v14761_v38, %v11808_v39 }
 0x207   : > { %v14825_v48 = vld [vmem:[%s15846_s27 + $0x1344] sm:$0xf]  ;;  %v12064_v52 = vld [vmem:[%s15846_s27 + $0x1350] sm:$0xf0]  ;;  %8063 = vmatpush.bf16.msrb.mxu0 %v11699_v11  ;;  %v11939_v2 = vor.u32 %v14793_v7, %v11936_v13  ;;  %v7849_v40 = vpop.f32.mrf.mxu3 }
 0x208   : > { %v395_v16 = vld [vmem:[#allocation2 + $0x10] sm:$0xff]  ;;  %8076 = vmatpush.bf16.msrb.mxu1 %v11827_v31  ;;  %v14725_v46 = vld [vmem:[%s15846_s27 + $0x1024] sm:$0xf]  ;;  %v12067_v45 = vor.u32 %v14825_v48, %v12064_v52 }
 0x209   : > { %8089 = vmatpush.bf16.msrb.mxu2 %v11955_v61  ;;  %v11664_v41 = vld [vmem:[%s15846_s27 + $0x1030] sm:$0xf0]  ;;  %v14757_v36 = vld [vmem:[%s15846_s27 + $0x1124] sm:$0xf]  ;;  %v9255_v60 = vadd.f32 %v7848_v23, %v395_v16 }
 0x20a   : > { %8102 = vmatpush.bf16.msrb.mxu3 %v12083_v15  ;;  %v11792_v42 = vld [vmem:[%s15846_s27 + $0x1130] sm:$0xf0]  ;;  %v14789_v29 = vld [vmem:[%s15846_s27 + $0x1224] sm:$0xf]  ;;  %v11667_v11 = vor.u32 %v14725_v46, %v11664_v41 }
 0x20b   : > { %v11920_v55 = vld [vmem:[%s15846_s27 + $0x1230] sm:$0xf0]  ;;  %v14821_v30 = vld [vmem:[%s15846_s27 + $0x1324] sm:$0xf]  ;;  %8064 = vmatpush.bf16.msrb.mxu0 %v11683_v19  ;;  %9259 = vst [vmem:[#allocation2 + $0x10] sm:$0xff] %v9255_v60  ;;  %v11795_v9 = vor.u32 %v14757_v36, %v11792_v42 }
 0x20c   : > { %v12048_v6 = vld [vmem:[%s15846_s27 + $0x1330] sm:$0xf0]  ;;  %v14721_v28 = vld [vmem:[%s15846_s27 + $0x1004] sm:$0xf]  ;;  %8077 = vmatpush.bf16.msrb.mxu1 %v11811_v56  ;;  %v11923_v35 = vor.u32 %v14789_v29, %v11920_v55 }
 0x20d   : > { %v11648_v31 = vld [vmem:[%s15846_s27 + $0x1010] sm:$0xf0]  ;;  %v14753_v61 = vld [vmem:[%s15846_s27 + $0x1104] sm:$0xf]  ;;  %8090 = vmatpush.bf16.msrb.mxu2 %v11939_v2  ;;  %v12051_v47 = vor.u32 %v14821_v30, %v12048_v6 }
 0x20e   : > { %v11776_v38 = vld [vmem:[%s15846_s27 + $0x1110] sm:$0xf0]  ;;  %v14785_v15 = vld [vmem:[%s15846_s27 + $0x1204] sm:$0xf]  ;;  %8103 = vmatpush.bf16.msrb.mxu3 %v12067_v45  ;;  %v11651_v16 = vor.u32 %v14721_v28, %v11648_v31 }
 0x20f   : > { %v11904_v39 = vld [vmem:[%s15846_s27 + $0x1210] sm:$0xf0]  ;;  %v14817_v7 = vld [vmem:[%s15846_s27 + $0x1304] sm:$0xf]  ;;  %8065 = vmatpush.bf16.msrb.mxu0 %v11667_v11  ;;  %v11779_v56 = vor.u32 %v14753_v61, %v11776_v38 }
 0x210   : > { %v12032_v13 = vld [vmem:[%s15846_s27 + $0x1310] sm:$0xf0]  ;;  %v14877_v43 = vld [vmem:[%s15846_s27 + $0x14e4] sm:$0xf]  ;;  %8078 = vmatpush.bf16.msrb.mxu1 %v11795_v9  ;;  %v11907_v2 = vor.u32 %v14785_v15, %v11904_v39 }
 0x211   : > { %v12272_v48 = vld [vmem:[%s15846_s27 + $0x14f0] sm:$0xf0]  ;;  %v14909_v52 = vld [vmem:[%s15846_s27 + $0x15e4] sm:$0xf]  ;;  %8091 = vmatpush.bf16.msrb.mxu2 %v11923_v35  ;;  %v12035_v36 = vor.u32 %v14817_v7, %v12032_v13 }
 0x212   : > { %v12400_v19 = vld [vmem:[%s15846_s27 + $0x15f0] sm:$0xf0]  ;;  %v14941_v34 = vld [vmem:[%s15846_s27 + $0x16e4] sm:$0xf]  ;;  %8104 = vmatpush.bf16.msrb.mxu3 %v12051_v47  ;;  %v12275_v45 = vor.u32 %v14877_v43, %v12272_v48 }
 0x213   : > { %v12528_v23 = vld [vmem:[%s15846_s27 + $0x16f0] sm:$0xf0]  ;;  %v14973_v46 = vld [vmem:[%s15846_s27 + $0x17e4] sm:$0xf]  ;;  %v12403_v42 = vor.u32 %v14909_v52, %v12400_v19  ;;  %8066 = vmatpush.bf16.msrb.mxu0 %v11651_v16 }
 0x214   : > { %v12656_v41 = vld [vmem:[%s15846_s27 + $0x17f0] sm:$0xf0]  ;;  %v12531_v29 = vor.u32 %v14941_v34, %v12528_v23  ;;  %v14873_v55 = vld [vmem:[%s15846_s27 + $0x14c4] sm:$0xf]  ;;  %8079 = vmatpush.bf16.msrb.mxu1 %v11779_v56 }
 0x215   : > { %v12256_v60 = vld [vmem:[%s15846_s27 + $0x14d0] sm:$0xf0]  ;;  %v14905_v30 = vld [vmem:[%s15846_s27 + $0x15c4] sm:$0xf]  ;;  %v12659_v6 = vor.u32 %v14973_v46, %v12656_v41  ;;  %8092 = vmatpush.bf16.msrb.mxu2 %v11907_v2 }
 0x216   : > { %v12384_v11 = vld [vmem:[%s15846_s27 + $0x15d0] sm:$0xf0]  ;;  %v14937_v28 = vld [vmem:[%s15846_s27 + $0x16c4] sm:$0xf]  ;;  %8105 = vmatpush.bf16.msrb.mxu3 %v12035_v36  ;;  %v12259_v35 = vor.u32 %v14873_v55, %v12256_v60  ;;  %8067 = vmatmul.bf16.vlgmr.msrb.gmra.mxu0 %v16271_v26  ;;  %v7860_v60 = vpop.f32.mrf.mxu0 }
 0x217   : > { %v12512_v31 = vld [vmem:[%s15846_s27 + $0x16d0] sm:$0xf0]  ;;  %v14969_v61 = vld [vmem:[%s15846_s27 + $0x17c4] sm:$0xf]  ;;  %8111 = vmatpush.bf16.msra.mxu0 %v12275_v45  ;;  %v12387_v38 = vor.u32 %v14905_v30, %v12384_v11  ;;  %8080 = vmatmul.bf16.vlgmr.msrb.gmra.mxu1 %v16278_v33 }
 0x218   : > { %v12640_v9 = vld [vmem:[%s15846_s27 + $0x17d0] sm:$0xf0]  ;;  %8124 = vmatpush.bf16.msra.mxu1 %v12403_v42  ;;  %v12515_v15 = vor.u32 %v14937_v28, %v12512_v31  ;;  %v14869_v47 = vld [vmem:[%s15846_s27 + $0x14a4] sm:$0xf]  ;;  %8093 = vmatmul.bf16.vlgmr.msrb.gmra.mxu2 %v16276_v32 }
 0x219   : > { %8137 = vmatpush.bf16.msra.mxu2 %v12531_v29  ;;  %v12240_v39 = vld [vmem:[%s15846_s27 + $0x14b0] sm:$0xf0]  ;;  %v14901_v7 = vld [vmem:[%s15846_s27 + $0x15a4] sm:$0xf]  ;;  %v12643_v13 = vor.u32 %v14969_v61, %v12640_v9  ;;  %8106 = vmatmul.bf16.vlgmr.msrb.gmra.mxu3 %v16282_v37  ;;  %v7873_v61 = vpop.f32.mrf.mxu1 }
 0x21a   : > { %8150 = vmatpush.bf16.msra.mxu3 %v12659_v6  ;;  %v12368_v51 = vld [vmem:[%s15846_s27 + $0x15b0] sm:$0xf0]  ;;  %v14933_v43 = vld [vmem:[%s15846_s27 + $0x16a4] sm:$0xf]  ;;  %v12243_v16 = vor.u32 %v14869_v47, %v12240_v39  ;;  %v7874_v47 = vadd.f32 %v7873_v61, %v7860_v60 }
 0x21b   : > { %v12496_v48 = vld [vmem:[%s15846_s27 + $0x16b0] sm:$0xf0]  ;;  %v14965_v52 = vld [vmem:[%s15846_s27 + $0x17a4] sm:$0xf]  ;;  %8112 = vmatpush.bf16.msra.mxu0 %v12259_v35  ;;  %v12371_v19 = vor.u32 %v14901_v7, %v12368_v51 }
 0x21c   : > { %v12624_v40 = vld [vmem:[%s15846_s27 + $0x17b0] sm:$0xf0]  ;;  %8125 = vmatpush.bf16.msra.mxu1 %v12387_v38  ;;  %v12499_v34 = vor.u32 %v14933_v43, %v12496_v48  ;;  %v14865_v23 = vld [vmem:[%s15846_s27 + $0x1484] sm:$0xf] }
 0x21d   : > { %8138 = vmatpush.bf16.msra.mxu2 %v12515_v15  ;;  %v12224_v56 = vld [vmem:[%s15846_s27 + $0x1490] sm:$0xf0]  ;;  %v14897_v2 = vld [vmem:[%s15846_s27 + $0x1584] sm:$0xf]  ;;  %v12627_v46 = vor.u32 %v14965_v52, %v12624_v40 }
 0x21e   : > { %8151 = vmatpush.bf16.msra.mxu3 %v12643_v13  ;;  %v12352_v41 = vld [vmem:[%s15846_s27 + $0x1590] sm:$0xf0]  ;;  %v14929_v36 = vld [vmem:[%s15846_s27 + $0x1684] sm:$0xf]  ;;  %v12227_v55 = vor.u32 %v14865_v23, %v12224_v56 }
 0x21f   : > { %v12480_v45 = vld [vmem:[%s15846_s27 + $0x1690] sm:$0xf0]  ;;  %v14961_v42 = vld [vmem:[%s15846_s27 + $0x1784] sm:$0xf]  ;;  %8113 = vmatpush.bf16.msra.mxu0 %v12243_v16  ;;  %v12355_v30 = vor.u32 %v14897_v2, %v12352_v41  ;;  %v7886_v16 = vpop.f32.mrf.mxu2 }
 0x220   : > { %v12608_v29 = vld [vmem:[%s15846_s27 + $0x1790] sm:$0xf0]  ;;  %8126 = vmatpush.bf16.msra.mxu1 %v12371_v19  ;;  %v12483_v6 = vor.u32 %v14929_v36, %v12480_v45  ;;  %v14861_v11 = vld [vmem:[%s15846_s27 + $0x1464] sm:$0xf]  ;;  %v7887_v2 = vadd.f32 %v7886_v16, %v7874_v47 }
 0x221   : > { %8139 = vmatpush.bf16.msra.mxu2 %v12499_v34  ;;  %v12208_v28 = vld [vmem:[%s15846_s27 + $0x1470] sm:$0xf0]  ;;  %v14893_v31 = vld [vmem:[%s15846_s27 + $0x1564] sm:$0xf]  ;;  %v12611_v9 = vor.u32 %v14961_v42, %v12608_v29  ;;  %v7862_v29 = vpop.f32.mrf.mxu0 }
 0x222   : > { %8152 = vmatpush.bf16.msra.mxu3 %v12627_v46  ;;  %v12336_v35 = vld [vmem:[%s15846_s27 + $0x1570] sm:$0xf0]  ;;  %v14925_v38 = vld [vmem:[%s15846_s27 + $0x1664] sm:$0xf]  ;;  %v12211_v13 = vor.u32 %v14861_v11, %v12208_v28  ;;  %v7899_v46 = vpop.f32.mrf.mxu3  ;;  %v7875_v28 = vpop.f32.mrf.mxu1 }
 0x223   : > { %v12464_v15 = vld [vmem:[%s15846_s27 + $0x1670] sm:$0xf0]  ;;  %v14957_v39 = vld [vmem:[%s15846_s27 + $0x1764] sm:$0xf]  ;;  %8114 = vmatpush.bf16.msra.mxu0 %v12227_v55  ;;  %v12339_v51 = vor.u32 %v14893_v31, %v12336_v35  ;;  %v17022_v42 = vadd.f32 %v7899_v46, %v7887_v2 }
 0x224   : > { %v12592_v7 = vld [vmem:[%s15846_s27 + $0x1770] sm:$0xf0]  ;;  %8127 = vmatpush.bf16.msra.mxu1 %v12355_v30  ;;  %v12467_v43 = vor.u32 %v14925_v38, %v12464_v15  ;;  %v14857_v48 = vld [vmem:[%s15846_s27 + $0x1444] sm:$0xf] }
 0x225   : > { %8140 = vmatpush.bf16.msra.mxu2 %v12483_v6  ;;  %v12192_v52 = vld [vmem:[%s15846_s27 + $0x1450] sm:$0xf0]  ;;  %v14889_v40 = vld [vmem:[%s15846_s27 + $0x1544] sm:$0xf]  ;;  %v12595_v19 = vor.u32 %v14957_v39, %v12592_v7 }
 0x226   : > { %8153 = vmatpush.bf16.msra.mxu3 %v12611_v9  ;;  %v12320_v34 = vld [vmem:[%s15846_s27 + $0x1550] sm:$0xf0]  ;;  %v14921_v23 = vld [vmem:[%s15846_s27 + $0x1644] sm:$0xf]  ;;  %v12195_v45 = vor.u32 %v14857_v48, %v12192_v52 }
 0x227   : > { %v12448_v56 = vld [vmem:[%s15846_s27 + $0x1650] sm:$0xf0]  ;;  %v14953_v41 = vld [vmem:[%s15846_s27 + $0x1744] sm:$0xf]  ;;  %8115 = vmatpush.bf16.msra.mxu0 %v12211_v13  ;;  %v12323_v55 = vor.u32 %v14889_v40, %v12320_v34  ;;  %v7888_v40 = vpop.f32.mrf.mxu2 }
 0x228   : > { %v12576_v36 = vld [vmem:[%s15846_s27 + $0x1750] sm:$0xf0]  ;;  %8128 = vmatpush.bf16.msra.mxu1 %v12339_v51  ;;  %v12451_v60 = vor.u32 %v14921_v23, %v12448_v56  ;;  %v14853_v30 = vld [vmem:[%s15846_s27 + $0x1424] sm:$0xf] }
 0x229   : > { %8141 = vmatpush.bf16.msra.mxu2 %v12467_v43  ;;  %v12176_v6 = vld [vmem:[%s15846_s27 + $0x1430] sm:$0xf0]  ;;  %v14885_v11 = vld [vmem:[%s15846_s27 + $0x1524] sm:$0xf]  ;;  %v12579_v31 = vor.u32 %v14953_v41, %v12576_v36 }
 0x22a   : > { %8154 = vmatpush.bf16.msra.mxu3 %v12595_v19  ;;  %v12304_v61 = vld [vmem:[%s15846_s27 + $0x1530] sm:$0xf0]  ;;  %v14917_v9 = vld [vmem:[%s15846_s27 + $0x1624] sm:$0xf]  ;;  %v12179_v47 = vor.u32 %v14853_v30, %v12176_v6  ;;  %v7901_v56 = vpop.f32.mrf.mxu3 }
 0x22b   : > { %v12432_v35 = vld [vmem:[%s15846_s27 + $0x1630] sm:$0xf0]  ;;  %v14949_v38 = vld [vmem:[%s15846_s27 + $0x1724] sm:$0xf]  ;;  %8116 = vmatpush.bf16.msra.mxu0 %v12195_v45  ;;  %v12307_v13 = vor.u32 %v14885_v11, %v12304_v61 }
 0x22c   : > { %v12560_v15 = vld [vmem:[%s15846_s27 + $0x1730] sm:$0xf0]  ;;  %v14849_v39 = vld [vmem:[%s15846_s27 + $0x1404] sm:$0xf]  ;;  %8129 = vmatpush.bf16.msra.mxu1 %v12323_v55  ;;  %v12435_v51 = vor.u32 %v14917_v9, %v12432_v35 }
 0x22d   : > { %v12160_v7 = vld [vmem:[%s15846_s27 + $0x1410] sm:$0xf0]  ;;  %8142 = vmatpush.bf16.msra.mxu2 %v12451_v60  ;;  %v14881_v43 = vld [vmem:[%s15846_s27 + $0x1504] sm:$0xf]  ;;  %v12563_v16 = vor.u32 %v14949_v38, %v12560_v15 }
 0x22e   : > { %v12288_v48 = vld [vmem:[%s15846_s27 + $0x1510] sm:$0xf0]  ;;  %v14913_v52 = vld [vmem:[%s15846_s27 + $0x1604] sm:$0xf]  ;;  %8155 = vmatpush.bf16.msra.mxu3 %v12579_v31  ;;  %v12163_v36 = vor.u32 %v14849_v39, %v12160_v7 }
 0x22f   : > { %v12416_v19 = vld [vmem:[%s15846_s27 + $0x1610] sm:$0xf0]  ;;  %v14945_v34 = vld [vmem:[%s15846_s27 + $0x1704] sm:$0xf]  ;;  %8117 = vmatpush.bf16.msra.mxu0 %v12179_v47  ;;  %v12291_v60 = vor.u32 %v14881_v43, %v12288_v48 }
 0x230   : > { %v12544_v23 = vld [vmem:[%s15846_s27 + $0x1710] sm:$0xf0]  ;;  %v15005_v2 = vld [vmem:[%s15846_s27 + $0x18e4] sm:$0xf]  ;;  %8130 = vmatpush.bf16.msra.mxu1 %v12307_v13  ;;  %v12419_v30 = vor.u32 %v14913_v52, %v12416_v19 }
 0x231   : > { %v12784_v46 = vld [vmem:[%s15846_s27 + $0x18f0] sm:$0xf0]  ;;  %v15037_v41 = vld [vmem:[%s15846_s27 + $0x19e4] sm:$0xf]  ;;  %8143 = vmatpush.bf16.msra.mxu2 %v12435_v51  ;;  %v12547_v28 = vor.u32 %v14945_v34, %v12544_v23 }
 0x232   : > { %v12912_v45 = vld [vmem:[%s15846_s27 + $0x19f0] sm:$0xf0]  ;;  %v15069_v29 = vld [vmem:[%s15846_s27 + $0x1ae4] sm:$0xf]  ;;  %8156 = vmatpush.bf16.msra.mxu3 %v12563_v16  ;;  %v12787_v31 = vor.u32 %v15005_v2, %v12784_v46 }
 0x233   : > { %v13040_v55 = vld [vmem:[%s15846_s27 + $0x1af0] sm:$0xf0]  ;;  %v15101_v6 = vld [vmem:[%s15846_s27 + $0x1be4] sm:$0xf]  ;;  %v12915_v61 = vor.u32 %v15037_v41, %v12912_v45  ;;  %8118 = vmatpush.bf16.msra.mxu0 %v12163_v36 }
 0x234   : > { %v13168_v11 = vld [vmem:[%s15846_s27 + $0x1bf0] sm:$0xf0]  ;;  %v13043_v9 = vor.u32 %v15069_v29, %v13040_v55  ;;  %v15001_v35 = vld [vmem:[%s15846_s27 + $0x18c4] sm:$0xf]  ;;  %8131 = vmatpush.bf16.msra.mxu1 %v12291_v60 }
 0x235   : > { %v12768_v38 = vld [vmem:[%s15846_s27 + $0x18d0] sm:$0xf0]  ;;  %v15033_v15 = vld [vmem:[%s15846_s27 + $0x19c4] sm:$0xf]  ;;  %v13171_v47 = vor.u32 %v15101_v6, %v13168_v11  ;;  %8144 = vmatpush.bf16.msra.mxu2 %v12419_v30 }
 0x236   : > { %v12896_v39 = vld [vmem:[%s15846_s27 + $0x19d0] sm:$0xf0]  ;;  %v15065_v7 = vld [vmem:[%s15846_s27 + $0x1ac4] sm:$0xf]  ;;  %8157 = vmatpush.bf16.msra.mxu3 %v12547_v28  ;;  %v12771_v48 = vor.u32 %v15001_v35, %v12768_v38  ;;  %8119 = vmatmul.bf16.vlgmr.msra.gmra.mxu0 %v16353_v59 }
 0x237   : > { %v13024_v13 = vld [vmem:[%s15846_s27 + $0x1ad0] sm:$0xf0]  ;;  %v15097_v51 = vld [vmem:[%s15846_s27 + $0x1bc4] sm:$0xf]  ;;  %8163 = vmatpush.bf16.msrb.mxu0 %v12787_v31  ;;  %v12899_v52 = vor.u32 %v15033_v15, %v12896_v39  ;;  %8132 = vmatmul.bf16.vlgmr.msra.gmra.mxu1 %v16360_v1  ;;  %v7912_v15 = vpop.f32.mrf.mxu0 }
 0x238   : > { %v13152_v43 = vld [vmem:[%s15846_s27 + $0x1bd0] sm:$0xf0]  ;;  %8176 = vmatpush.bf16.msrb.mxu1 %v12915_v61  ;;  %v13027_v40 = vor.u32 %v15065_v7, %v13024_v13  ;;  %v14997_v16 = vld [vmem:[%s15846_s27 + $0x18a4] sm:$0xf]  ;;  %8145 = vmatmul.bf16.vlgmr.msra.gmra.mxu2 %v16358_v63 }
 0x239   : > { %8189 = vmatpush.bf16.msrb.mxu2 %v13043_v9  ;;  %v12752_v19 = vld [vmem:[%s15846_s27 + $0x18b0] sm:$0xf0]  ;;  %v15029_v34 = vld [vmem:[%s15846_s27 + $0x19a4] sm:$0xf]  ;;  %v13155_v23 = vor.u32 %v15097_v51, %v13152_v43  ;;  %8158 = vmatmul.bf16.vlgmr.msra.gmra.mxu3 %v16364_v5  ;;  %v7913_v43 = vadd.f32 %v7912_v15, %v17022_v42 }
 0x23a   : > { %8202 = vmatpush.bf16.msrb.mxu3 %v13171_v47  ;;  %v12880_v56 = vld [vmem:[%s15846_s27 + $0x19b0] sm:$0xf0]  ;;  %v15061_v2 = vld [vmem:[%s15846_s27 + $0x1aa4] sm:$0xf]  ;;  %v12755_v45 = vor.u32 %v14997_v16, %v12752_v19 }
 0x23b   : > { %v13008_v46 = vld [vmem:[%s15846_s27 + $0x1ab0] sm:$0xf0]  ;;  %v15093_v41 = vld [vmem:[%s15846_s27 + $0x1ba4] sm:$0xf]  ;;  %8164 = vmatpush.bf16.msrb.mxu0 %v12771_v48  ;;  %v12883_v29 = vor.u32 %v15029_v34, %v12880_v56  ;;  %v7925_v48 = vpop.f32.mrf.mxu1 }
 0x23c   : > { %v13136_v36 = vld [vmem:[%s15846_s27 + $0x1bb0] sm:$0xf0]  ;;  %8177 = vmatpush.bf16.msrb.mxu1 %v12899_v52  ;;  %v13011_v55 = vor.u32 %v15061_v2, %v13008_v46  ;;  %v14993_v60 = vld [vmem:[%s15846_s27 + $0x1884] sm:$0xf]  ;;  %v7926_v56 = vadd.f32 %v7925_v48, %v7913_v43 }
 0x23d   : > { %8190 = vmatpush.bf16.msrb.mxu2 %v13027_v40  ;;  %v12736_v30 = vld [vmem:[%s15846_s27 + $0x1890] sm:$0xf0]  ;;  %v15025_v6 = vld [vmem:[%s15846_s27 + $0x1984] sm:$0xf]  ;;  %v13139_v11 = vor.u32 %v15093_v41, %v13136_v36 }
 0x23e   : > { %8203 = vmatpush.bf16.msrb.mxu3 %v13155_v23  ;;  %v12864_v28 = vld [vmem:[%s15846_s27 + $0x1990] sm:$0xf0]  ;;  %v15057_v31 = vld [vmem:[%s15846_s27 + $0x1a84] sm:$0xf]  ;;  %v12739_v38 = vor.u32 %v14993_v60, %v12736_v30 }
 0x23f   : > { %v12992_v61 = vld [vmem:[%s15846_s27 + $0x1a90] sm:$0xf0]  ;;  %v15089_v9 = vld [vmem:[%s15846_s27 + $0x1b84] sm:$0xf]  ;;  %8165 = vmatpush.bf16.msrb.mxu0 %v12755_v45  ;;  %v12867_v47 = vor.u32 %v15025_v6, %v12864_v28  ;;  %v7951_v28 = vpop.f32.mrf.mxu3 }
 0x240   : > { %v13120_v35 = vld [vmem:[%s15846_s27 + $0x1b90] sm:$0xf0]  ;;  %8178 = vmatpush.bf16.msrb.mxu1 %v12883_v29  ;;  %v12995_v39 = vor.u32 %v15057_v31, %v12992_v61  ;;  %v14989_v7 = vld [vmem:[%s15846_s27 + $0x1864] sm:$0xf]  ;;  %v7938_v29 = vpop.f32.mrf.mxu2 }
 0x241   : > { %8191 = vmatpush.bf16.msrb.mxu2 %v13011_v55  ;;  %v12720_v13 = vld [vmem:[%s15846_s27 + $0x1870] sm:$0xf0]  ;;  %v15021_v51 = vld [vmem:[%s15846_s27 + $0x1964] sm:$0xf]  ;;  %v13123_v52 = vor.u32 %v15089_v9, %v13120_v35 }
 0x242   : > { %8204 = vmatpush.bf16.msrb.mxu3 %v13139_v11  ;;  %v12848_v40 = vld [vmem:[%s15846_s27 + $0x1970] sm:$0xf0]  ;;  %v15053_v16 = vld [vmem:[%s15846_s27 + $0x1a64] sm:$0xf]  ;;  %v12723_v2 = vor.u32 %v14989_v7, %v12720_v13  ;;  %v7939_v11 = vadd.f32 %v7938_v29, %v7926_v56 }
 0x243   : > { %v12976_v19 = vld [vmem:[%s15846_s27 + $0x1a70] sm:$0xf0]  ;;  %v15085_v34 = vld [vmem:[%s15846_s27 + $0x1b64] sm:$0xf]  ;;  %8166 = vmatpush.bf16.msrb.mxu0 %v12739_v38  ;;  %v12851_v42 = vor.u32 %v15021_v51, %v12848_v40  ;;  %v7914_v38 = vpop.f32.mrf.mxu0  ;;  %v7927_v51 = vpop.f32.mrf.mxu1 }
 0x244   : > { %v13104_v23 = vld [vmem:[%s15846_s27 + $0x1b70] sm:$0xf0]  ;;  %8179 = vmatpush.bf16.msrb.mxu1 %v12867_v47  ;;  %v12979_v46 = vor.u32 %v15053_v16, %v12976_v19  ;;  %v14985_v41 = vld [vmem:[%s15846_s27 + $0x1844] sm:$0xf]  ;;  %v17093_v35 = vadd.f32 %v7951_v28, %v7939_v11 }
 0x245   : > { %8192 = vmatpush.bf16.msrb.mxu2 %v12995_v39  ;;  %v12704_v36 = vld [vmem:[%s15846_s27 + $0x1850] sm:$0xf0]  ;;  %v15017_v45 = vld [vmem:[%s15846_s27 + $0x1944] sm:$0xf]  ;;  %v13107_v55 = vor.u32 %v15085_v34, %v13104_v23 }
 0x246   : > { %8205 = vmatpush.bf16.msrb.mxu3 %v13123_v52  ;;  %v12832_v60 = vld [vmem:[%s15846_s27 + $0x1950] sm:$0xf0]  ;;  %v15049_v30 = vld [vmem:[%s15846_s27 + $0x1a44] sm:$0xf]  ;;  %v12707_v9 = vor.u32 %v14985_v41, %v12704_v36 }
 0x247   : > { %v12960_v6 = vld [vmem:[%s15846_s27 + $0x1a50] sm:$0xf0]  ;;  %v15081_v31 = vld [vmem:[%s15846_s27 + $0x1b44] sm:$0xf]  ;;  %8167 = vmatpush.bf16.msrb.mxu0 %v12723_v2  ;;  %v12835_v15 = vor.u32 %v15017_v45, %v12832_v60 }
 0x248   : > { %v13088_v61 = vld [vmem:[%s15846_s27 + $0x1b50] sm:$0xf0]  ;;  %8180 = vmatpush.bf16.msrb.mxu1 %v12851_v42  ;;  %v12963_v47 = vor.u32 %v15049_v30, %v12960_v6  ;;  %v14981_v39 = vld [vmem:[%s15846_s27 + $0x1824] sm:$0xf]  ;;  %v7940_v45 = vpop.f32.mrf.mxu2  ;;  %v7953_v6 = vpop.f32.mrf.mxu3 }
 0x249   : > { %8193 = vmatpush.bf16.msrb.mxu2 %v12979_v46  ;;  %v12688_v7 = vld [vmem:[%s15846_s27 + $0x1830] sm:$0xf0]  ;;  %v15013_v13 = vld [vmem:[%s15846_s27 + $0x1924] sm:$0xf]  ;;  %v13091_v43 = vor.u32 %v15081_v31, %v13088_v61 }
 0x24a   : > { %8206 = vmatpush.bf16.msrb.mxu3 %v13107_v55  ;;  %v12816_v48 = vld [vmem:[%s15846_s27 + $0x1930] sm:$0xf0]  ;;  %v15045_v52 = vld [vmem:[%s15846_s27 + $0x1a24] sm:$0xf]  ;;  %v12691_v34 = vor.u32 %v14981_v39, %v12688_v7 }
 0x24b   : > { %v12944_v40 = vld [vmem:[%s15846_s27 + $0x1a30] sm:$0xf0]  ;;  %v15077_v16 = vld [vmem:[%s15846_s27 + $0x1b24] sm:$0xf]  ;;  %8168 = vmatpush.bf16.msrb.mxu0 %v12707_v9  ;;  %v12819_v2 = vor.u32 %v15013_v13, %v12816_v48 }
 0x24c   : > { %v13072_v19 = vld [vmem:[%s15846_s27 + $0x1b30] sm:$0xf0]  ;;  %v14977_v23 = vld [vmem:[%s15846_s27 + $0x1804] sm:$0xf]  ;;  %8181 = vmatpush.bf16.msrb.mxu1 %v12835_v15  ;;  %v12947_v42 = vor.u32 %v15045_v52, %v12944_v40 }
 0x24d   : > { %v12672_v56 = vld [vmem:[%s15846_s27 + $0x1810] sm:$0xf0]  ;;  %8194 = vmatpush.bf16.msrb.mxu2 %v12963_v47  ;;  %v15009_v46 = vld [vmem:[%s15846_s27 + $0x1904] sm:$0xf]  ;;  %v13075_v29 = vor.u32 %v15077_v16, %v13072_v19 }
 0x24e   : > { %v12800_v41 = vld [vmem:[%s15846_s27 + $0x1910] sm:$0xf0]  ;;  %v15041_v36 = vld [vmem:[%s15846_s27 + $0x1a04] sm:$0xf]  ;;  %8207 = vmatpush.bf16.msrb.mxu3 %v13091_v43  ;;  %v12675_v61 = vor.u32 %v14977_v23, %v12672_v56 }
 0x24f   : > { %v12928_v55 = vld [vmem:[%s15846_s27 + $0x1a10] sm:$0xf0]  ;;  %v15073_v60 = vld [vmem:[%s15846_s27 + $0x1b04] sm:$0xf]  ;;  %8169 = vmatpush.bf16.msrb.mxu0 %v12691_v34  ;;  %v12803_v47 = vor.u32 %v15009_v46, %v12800_v41 }
 0x250   : > { %v13056_v30 = vld [vmem:[%s15846_s27 + $0x1b10] sm:$0xf0]  ;;  %v15133_v11 = vld [vmem:[%s15846_s27 + $0x1ce4] sm:$0xf]  ;;  %8182 = vmatpush.bf16.msrb.mxu1 %v12819_v2  ;;  %v12931_v39 = vor.u32 %v15041_v36, %v12928_v55 }
 0x251   : > { %v13296_v28 = vld [vmem:[%s15846_s27 + $0x1cf0] sm:$0xf0]  ;;  %v15165_v31 = vld [vmem:[%s15846_s27 + $0x1de4] sm:$0xf]  ;;  %8195 = vmatpush.bf16.msrb.mxu2 %v12947_v42  ;;  %v13059_v51 = vor.u32 %v15073_v60, %v13056_v30 }
 0x252   : > { %v13424_v9 = vld [vmem:[%s15846_s27 + $0x1df0] sm:$0xf0]  ;;  %v15197_v38 = vld [vmem:[%s15846_s27 + $0x1ee4] sm:$0xf]  ;;  %8208 = vmatpush.bf16.msrb.mxu3 %v13075_v29  ;;  %v13299_v43 = vor.u32 %v15133_v11, %v13296_v28 }
 0x253   : > { %v13552_v15 = vld [vmem:[%s15846_s27 + $0x1ef0] sm:$0xf0]  ;;  %v15229_v7 = vld [vmem:[%s15846_s27 + $0x1fe4] sm:$0xf]  ;;  %v13427_v48 = vor.u32 %v15165_v31, %v13424_v9  ;;  %8170 = vmatpush.bf16.msrb.mxu0 %v12675_v61 }
 0x254   : > { %v13680_v13 = vld [vmem:[%s15846_s27 + $0x1ff0] sm:$0xf0]  ;;  %v13555_v52 = vor.u32 %v15197_v38, %v13552_v15  ;;  %v15129_v40 = vld [vmem:[%s15846_s27 + $0x1cc4] sm:$0xf]  ;;  %8183 = vmatpush.bf16.msrb.mxu1 %v12803_v47 }
 0x255   : > { %v13280_v16 = vld [vmem:[%s15846_s27 + $0x1cd0] sm:$0xf0]  ;;  %v15161_v19 = vld [vmem:[%s15846_s27 + $0x1dc4] sm:$0xf]  ;;  %v13683_v34 = vor.u32 %v15229_v7, %v13680_v13  ;;  %8196 = vmatpush.bf16.msrb.mxu2 %v12931_v39 }
 0x256   : > { %v13408_v23 = vld [vmem:[%s15846_s27 + $0x1dd0] sm:$0xf0]  ;;  %v15193_v56 = vld [vmem:[%s15846_s27 + $0x1ec4] sm:$0xf]  ;;  %8209 = vmatpush.bf16.msrb.mxu3 %v13059_v51  ;;  %v13283_v41 = vor.u32 %v15129_v40, %v13280_v16  ;;  %8171 = vmatmul.bf16.vlgmr.msrb.gmra.mxu0 %v16436_v53 }
 0x257   : > { %v13536_v2 = vld [vmem:[%s15846_s27 + $0x1ed0] sm:$0xf0]  ;;  %v15225_v42 = vld [vmem:[%s15846_s27 + $0x1fc4] sm:$0xf]  ;;  %8215 = vmatpush.bf16.msra.mxu0 %v13299_v43  ;;  %v13411_v36 = vor.u32 %v15161_v19, %v13408_v23  ;;  %8184 = vmatmul.bf16.vlgmr.msrb.gmra.mxu1 %v16443_v58  ;;  %v7977_v23 = vpop.f32.mrf.mxu1 }
 0x258   : > { %v13664_v46 = vld [vmem:[%s15846_s27 + $0x1fd0] sm:$0xf0]  ;;  %8228 = vmatpush.bf16.msra.mxu1 %v13427_v48  ;;  %v13539_v45 = vor.u32 %v15193_v56, %v13536_v2  ;;  %v15125_v29 = vld [vmem:[%s15846_s27 + $0x1ca4] sm:$0xf]  ;;  %8197 = vmatmul.bf16.vlgmr.msrb.gmra.mxu2 %v16441_v57 }
 0x259   : > { %8241 = vmatpush.bf16.msra.mxu2 %v13555_v52  ;;  %v13264_v55 = vld [vmem:[%s15846_s27 + $0x1cb0] sm:$0xf0]  ;;  %v15157_v60 = vld [vmem:[%s15846_s27 + $0x1da4] sm:$0xf]  ;;  %v13667_v30 = vor.u32 %v15225_v42, %v13664_v46  ;;  %8210 = vmatmul.bf16.vlgmr.msrb.gmra.mxu3 %v16447_v62  ;;  %v7964_v52 = vpop.f32.mrf.mxu0 }
 0x25a   : > { %8254 = vmatpush.bf16.msra.mxu3 %v13683_v34  ;;  %v13392_v6 = vld [vmem:[%s15846_s27 + $0x1db0] sm:$0xf0]  ;;  %v15189_v11 = vld [vmem:[%s15846_s27 + $0x1ea4] sm:$0xf]  ;;  %v13267_v9 = vor.u32 %v15125_v29, %v13264_v55  ;;  %v7965_v19 = vadd.f32 %v7964_v52, %v17093_v35 }
 0x25b   : > { %v13520_v28 = vld [vmem:[%s15846_s27 + $0x1eb0] sm:$0xf0]  ;;  %v15221_v31 = vld [vmem:[%s15846_s27 + $0x1fa4] sm:$0xf]  ;;  %8216 = vmatpush.bf16.msra.mxu0 %v13283_v41  ;;  %v13395_v38 = vor.u32 %v15157_v60, %v13392_v6 }
 0x25c   : > { %v13648_v61 = vld [vmem:[%s15846_s27 + $0x1fb0] sm:$0xf0]  ;;  %8229 = vmatpush.bf16.msra.mxu1 %v13411_v36  ;;  %v13523_v15 = vor.u32 %v15189_v11, %v13520_v28  ;;  %v15121_v47 = vld [vmem:[%s15846_s27 + $0x1c84] sm:$0xf] }
 0x25d   : > { %8242 = vmatpush.bf16.msra.mxu2 %v13539_v45  ;;  %v13248_v39 = vld [vmem:[%s15846_s27 + $0x1c90] sm:$0xf0]  ;;  %v15153_v7 = vld [vmem:[%s15846_s27 + $0x1d84] sm:$0xf]  ;;  %v13651_v13 = vor.u32 %v15221_v31, %v13648_v61  ;;  %v7978_v45 = vadd.f32 %v7977_v23, %v7965_v19 }
 0x25e   : > { %8255 = vmatpush.bf16.msra.mxu3 %v13667_v30  ;;  %v13376_v51 = vld [vmem:[%s15846_s27 + $0x1d90] sm:$0xf0]  ;;  %v15185_v43 = vld [vmem:[%s15846_s27 + $0x1e84] sm:$0xf]  ;;  %v13251_v34 = vor.u32 %v15121_v47, %v13248_v39 }
 0x25f   : > { %v13504_v48 = vld [vmem:[%s15846_s27 + $0x1e90] sm:$0xf0]  ;;  %v15217_v40 = vld [vmem:[%s15846_s27 + $0x1f84] sm:$0xf]  ;;  %8217 = vmatpush.bf16.msra.mxu0 %v13267_v9  ;;  %v13379_v56 = vor.u32 %v15153_v7, %v13376_v51  ;;  %v8003_v51 = vpop.f32.mrf.mxu3 }
 0x260   : > { %v13632_v16 = vld [vmem:[%s15846_s27 + $0x1f90] sm:$0xf0]  ;;  %8230 = vmatpush.bf16.msra.mxu1 %v13395_v38  ;;  %v13507_v2 = vor.u32 %v15185_v43, %v13504_v48  ;;  %v15117_v42 = vld [vmem:[%s15846_s27 + $0x1c64] sm:$0xf] }
 0x261   : > { %8243 = vmatpush.bf16.msra.mxu2 %v13523_v15  ;;  %v13232_v46 = vld [vmem:[%s15846_s27 + $0x1c70] sm:$0xf0]  ;;  %v15149_v41 = vld [vmem:[%s15846_s27 + $0x1d64] sm:$0xf]  ;;  %v13635_v36 = vor.u32 %v15217_v40, %v13632_v16  ;;  %v7990_v15 = vpop.f32.mrf.mxu2  ;;  %v7966_v52 = vpop.f32.mrf.mxu0 }
 0x262   : > { %8256 = vmatpush.bf16.msra.mxu3 %v13651_v13  ;;  %v13360_v29 = vld [vmem:[%s15846_s27 + $0x1d70] sm:$0xf0]  ;;  %v15181_v55 = vld [vmem:[%s15846_s27 + $0x1e64] sm:$0xf]  ;;  %v13235_v6 = vor.u32 %v15117_v42, %v13232_v46  ;;  %v7991_v13 = vadd.f32 %v7990_v15, %v7978_v45  ;;  %v7979_v16 = vpop.f32.mrf.mxu1 }
 0x263   : > { %v13488_v35 = vld [vmem:[%s15846_s27 + $0x1e70] sm:$0xf0]  ;;  %v15213_v60 = vld [vmem:[%s15846_s27 + $0x1f64] sm:$0xf]  ;;  %8218 = vmatpush.bf16.msra.mxu0 %v13251_v34  ;;  %v13363_v11 = vor.u32 %v15149_v41, %v13360_v29 }
 0x264   : > { %v13616_v30 = vld [vmem:[%s15846_s27 + $0x1f70] sm:$0xf0]  ;;  %8231 = vmatpush.bf16.msra.mxu1 %v13379_v56  ;;  %v13491_v28 = vor.u32 %v15181_v55, %v13488_v35  ;;  %v15113_v31 = vld [vmem:[%s15846_s27 + $0x1c44] sm:$0xf]  ;;  %v17164_v19 = vadd.f32 %v8003_v51, %v7991_v13 }
 0x265   : > { %8244 = vmatpush.bf16.msra.mxu2 %v13507_v2  ;;  %v13216_v61 = vld [vmem:[%s15846_s27 + $0x1c50] sm:$0xf0]  ;;  %v15145_v9 = vld [vmem:[%s15846_s27 + $0x1d44] sm:$0xf]  ;;  %v13619_v38 = vor.u32 %v15213_v60, %v13616_v30 }
 0x266   : > { %8257 = vmatpush.bf16.msra.mxu3 %v13635_v36  ;;  %v13344_v47 = vld [vmem:[%s15846_s27 + $0x1d50] sm:$0xf0]  ;;  %v15177_v39 = vld [vmem:[%s15846_s27 + $0x1e44] sm:$0xf]  ;;  %v13219_v40 = vor.u32 %v15113_v31, %v13216_v61 }
 0x267   : > { %v13472_v7 = vld [vmem:[%s15846_s27 + $0x1e50] sm:$0xf0]  ;;  %v15209_v43 = vld [vmem:[%s15846_s27 + $0x1f44] sm:$0xf]  ;;  %8219 = vmatpush.bf16.msra.mxu0 %v13235_v6  ;;  %v13347_v34 = vor.u32 %v15145_v9, %v13344_v47 }
 0x268   : > { %v13600_v48 = vld [vmem:[%s15846_s27 + $0x1f50] sm:$0xf0]  ;;  %8232 = vmatpush.bf16.msra.mxu1 %v13363_v11  ;;  %v13475_v23 = vor.u32 %v15177_v39, %v13472_v7  ;;  %v15109_v56 = vld [vmem:[%s15846_s27 + $0x1c24] sm:$0xf] }
 0x269   : > { %8245 = vmatpush.bf16.msra.mxu2 %v13491_v28  ;;  %v13200_v2 = vld [vmem:[%s15846_s27 + $0x1c30] sm:$0xf0]  ;;  %v15141_v42 = vld [vmem:[%s15846_s27 + $0x1d24] sm:$0xf]  ;;  %v13603_v46 = vor.u32 %v15209_v43, %v13600_v48  ;;  %v7992_v39 = vpop.f32.mrf.mxu2  ;;  %v8005_v43 = vpop.f32.mrf.mxu3 }
 0x26a   : > { %8258 = vmatpush.bf16.msra.mxu3 %v13619_v38  ;;  %v13328_v41 = vld [vmem:[%s15846_s27 + $0x1d30] sm:$0xf0]  ;;  %v15173_v36 = vld [vmem:[%s15846_s27 + $0x1e24] sm:$0xf]  ;;  %v13203_v35 = vor.u32 %v15109_v56, %v13200_v2 }
 0x26b   : > { %v13456_v45 = vld [vmem:[%s15846_s27 + $0x1e30] sm:$0xf0]  ;;  %v15205_v29 = vld [vmem:[%s15846_s27 + $0x1f24] sm:$0xf]  ;;  %8220 = vmatpush.bf16.msra.mxu0 %v13219_v40  ;;  %v13331_v6 = vor.u32 %v15141_v42, %v13328_v41 }
 0x26c   : > { %v13584_v55 = vld [vmem:[%s15846_s27 + $0x1f30] sm:$0xf0]  ;;  %v15105_v60 = vld [vmem:[%s15846_s27 + $0x1c04] sm:$0xf]  ;;  %8233 = vmatpush.bf16.msra.mxu1 %v13347_v34  ;;  %v13459_v11 = vor.u32 %v15173_v36, %v13456_v45 }
 0x26d   : > { %v13184_v30 = vld [vmem:[%s15846_s27 + $0x1c10] sm:$0xf0]  ;;  %8246 = vmatpush.bf16.msra.mxu2 %v13475_v23  ;;  %v15137_v28 = vld [vmem:[%s15846_s27 + $0x1d04] sm:$0xf]  ;;  %v13587_v9 = vor.u32 %v15205_v29, %v13584_v55 }
 0x26e   : > { %v13312_v31 = vld [vmem:[%s15846_s27 + $0x1d10] sm:$0xf0]  ;;  %v15169_v61 = vld [vmem:[%s15846_s27 + $0x1e04] sm:$0xf]  ;;  %8259 = vmatpush.bf16.msra.mxu3 %v13603_v46  ;;  %v13187_v48 = vor.u32 %v15105_v60, %v13184_v30 }
 0x26f   : > { %v13440_v38 = vld [vmem:[%s15846_s27 + $0x1e10] sm:$0xf0]  ;;  %v15201_v15 = vld [vmem:[%s15846_s27 + $0x1f04] sm:$0xf]  ;;  %8221 = vmatpush.bf16.msra.mxu0 %v13203_v35  ;;  %v13315_v34 = vor.u32 %v15137_v28, %v13312_v31 }
 0x270   : > { %v13568_v47 = vld [vmem:[%s15846_s27 + $0x1f10] sm:$0xf0]  ;;  %v15261_v7 = vld [vmem:[%s15846_s27 + $0x20e4] sm:$0xf]  ;;  %8234 = vmatpush.bf16.msra.mxu1 %v13331_v6  ;;  %v13443_v23 = vor.u32 %v15169_v61, %v13440_v38 }
 0x271   : > { %v13808_v13 = vld [vmem:[%s15846_s27 + $0x20f0] sm:$0xf0]  ;;  %v15293_v51 = vld [vmem:[%s15846_s27 + $0x21e4] sm:$0xf]  ;;  %8247 = vmatpush.bf16.msra.mxu2 %v13459_v11  ;;  %v13571_v42 = vor.u32 %v15201_v15, %v13568_v47 }
 0x272   : > { %v13936_v52 = vld [vmem:[%s15846_s27 + $0x21f0] sm:$0xf0]  ;;  %v15325_v40 = vld [vmem:[%s15846_s27 + $0x22e4] sm:$0xf]  ;;  %8260 = vmatpush.bf16.msra.mxu3 %v13587_v9  ;;  %v13811_v46 = vor.u32 %v15261_v7, %v13808_v13 }
 0x273   : > { %v14064_v16 = vld [vmem:[%s15846_s27 + $0x22f0] sm:$0xf0]  ;;  %v15357_v56 = vld [vmem:[%s15846_s27 + $0x23e4] sm:$0xf]  ;;  %v13939_v41 = vor.u32 %v15293_v51, %v13936_v52  ;;  %8222 = vmatpush.bf16.msra.mxu0 %v13187_v48 }
 0x274   : > { %v14192_v2 = vld [vmem:[%s15846_s27 + $0x23f0] sm:$0xf0]  ;;  %v14067_v36 = vor.u32 %v15325_v40, %v14064_v16  ;;  %v15257_v45 = vld [vmem:[%s15846_s27 + $0x20c4] sm:$0xf]  ;;  %8235 = vmatpush.bf16.msra.mxu1 %v13315_v34 }
 0x275   : > { %v13792_v29 = vld [vmem:[%s15846_s27 + $0x20d0] sm:$0xf0]  ;;  %v15289_v55 = vld [vmem:[%s15846_s27 + $0x21c4] sm:$0xf]  ;;  %v14195_v35 = vor.u32 %v15357_v56, %v14192_v2  ;;  %8248 = vmatpush.bf16.msra.mxu2 %v13443_v23 }
 0x276   : > { %v13920_v60 = vld [vmem:[%s15846_s27 + $0x21d0] sm:$0xf0]  ;;  %v15321_v30 = vld [vmem:[%s15846_s27 + $0x22c4] sm:$0xf]  ;;  %8261 = vmatpush.bf16.msra.mxu3 %v13571_v42  ;;  %v13795_v31 = vor.u32 %v15257_v45, %v13792_v29  ;;  %8223 = vmatmul.bf16.vlgmr.msra.gmra.mxu0 %v16519_v4 }
 0x277   : > { %v14048_v6 = vld [vmem:[%s15846_s27 + $0x22d0] sm:$0xf0]  ;;  %v15353_v11 = vld [vmem:[%s15846_s27 + $0x23c4] sm:$0xf]  ;;  %8267 = vmatpush.bf16.msrb.mxu0 %v13811_v46  ;;  %v13923_v61 = vor.u32 %v15289_v55, %v13920_v60  ;;  %8236 = vmatmul.bf16.vlgmr.msra.gmra.mxu1 %v16526_v8  ;;  %v8029_v60 = vpop.f32.mrf.mxu1 }
 0x278   : > { %v14176_v28 = vld [vmem:[%s15846_s27 + $0x23d0] sm:$0xf0]  ;;  %8280 = vmatpush.bf16.msrb.mxu1 %v13939_v41  ;;  %v14051_v9 = vor.u32 %v15321_v30, %v14048_v6  ;;  %v15253_v38 = vld [vmem:[%s15846_s27 + $0x20a4] sm:$0xf]  ;;  %8249 = vmatmul.bf16.vlgmr.msra.gmra.mxu2 %v16524_v3 }
 0x279   : > { %8293 = vmatpush.bf16.msrb.mxu2 %v14067_v36  ;;  %v13776_v15 = vld [vmem:[%s15846_s27 + $0x20b0] sm:$0xf0]  ;;  %v15285_v47 = vld [vmem:[%s15846_s27 + $0x21a4] sm:$0xf]  ;;  %v14179_v39 = vor.u32 %v15353_v11, %v14176_v28  ;;  %8262 = vmatmul.bf16.vlgmr.msra.gmra.mxu3 %v16530_v12  ;;  %v8016_v36 = vpop.f32.mrf.mxu0 }
 0x27a   : > { %8306 = vmatpush.bf16.msrb.mxu3 %v14195_v35  ;;  %v13904_v7 = vld [vmem:[%s15846_s27 + $0x21b0] sm:$0xf0]  ;;  %v15317_v13 = vld [vmem:[%s15846_s27 + $0x22a4] sm:$0xf]  ;;  %v13779_v52 = vor.u32 %v15253_v38, %v13776_v15  ;;  %v8017_v55 = vadd.f32 %v8016_v36, %v17164_v19 }
 0x27b   : > { %v14032_v51 = vld [vmem:[%s15846_s27 + $0x22b0] sm:$0xf0]  ;;  %v15349_v43 = vld [vmem:[%s15846_s27 + $0x23a4] sm:$0xf]  ;;  %8268 = vmatpush.bf16.msrb.mxu0 %v13795_v31  ;;  %v13907_v40 = vor.u32 %v15285_v47, %v13904_v7 }
 0x27c   : > { %v14160_v48 = vld [vmem:[%s15846_s27 + $0x23b0] sm:$0xf0]  ;;  %8281 = vmatpush.bf16.msrb.mxu1 %v13923_v61  ;;  %v14035_v16 = vor.u32 %v15317_v13, %v14032_v51  ;;  %v15249_v34 = vld [vmem:[%s15846_s27 + $0x2084] sm:$0xf] }
 0x27d   : > { %8294 = vmatpush.bf16.msrb.mxu2 %v14051_v9  ;;  %v13760_v23 = vld [vmem:[%s15846_s27 + $0x2090] sm:$0xf0]  ;;  %v15281_v56 = vld [vmem:[%s15846_s27 + $0x2184] sm:$0xf]  ;;  %v14163_v2 = vor.u32 %v15349_v43, %v14160_v48  ;;  %v8030_v9 = vadd.f32 %v8029_v60, %v8017_v55 }
 0x27e   : > { %8307 = vmatpush.bf16.msrb.mxu3 %v14179_v39  ;;  %v13888_v42 = vld [vmem:[%s15846_s27 + $0x2190] sm:$0xf0]  ;;  %v15313_v46 = vld [vmem:[%s15846_s27 + $0x2284] sm:$0xf]  ;;  %v13763_v35 = vor.u32 %v15249_v34, %v13760_v23 }
 0x27f   : > { %v14016_v41 = vld [vmem:[%s15846_s27 + $0x2290] sm:$0xf0]  ;;  %v15345_v45 = vld [vmem:[%s15846_s27 + $0x2384] sm:$0xf]  ;;  %8269 = vmatpush.bf16.msrb.mxu0 %v13779_v52  ;;  %v13891_v30 = vor.u32 %v15281_v56, %v13888_v42  ;;  %v8055_v42 = vpop.f32.mrf.mxu3 }
 0x280   : > { %v14144_v29 = vld [vmem:[%s15846_s27 + $0x2390] sm:$0xf0]  ;;  %8282 = vmatpush.bf16.msrb.mxu1 %v13907_v40  ;;  %v14019_v6 = vor.u32 %v15313_v46, %v14016_v41  ;;  %v15245_v11 = vld [vmem:[%s15846_s27 + $0x2064] sm:$0xf] }
 0x281   : > { %8295 = vmatpush.bf16.msrb.mxu2 %v14035_v16  ;;  %v13744_v28 = vld [vmem:[%s15846_s27 + $0x2070] sm:$0xf0]  ;;  %v15277_v31 = vld [vmem:[%s15846_s27 + $0x2164] sm:$0xf]  ;;  %v14147_v61 = vor.u32 %v15345_v45, %v14144_v29  ;;  %v8042_v16 = vpop.f32.mrf.mxu2  ;;  %v8018_v36 = vpop.f32.mrf.mxu0 }
 0x282   : > { %8308 = vmatpush.bf16.msrb.mxu3 %v14163_v2  ;;  %v13872_v38 = vld [vmem:[%s15846_s27 + $0x2170] sm:$0xf0]  ;;  %v15309_v15 = vld [vmem:[%s15846_s27 + $0x2264] sm:$0xf]  ;;  %v13747_v7 = vor.u32 %v15245_v11, %v13744_v28  ;;  %v8043_v2 = vadd.f32 %v8042_v16, %v8030_v9  ;;  %v8031_v29 = vpop.f32.mrf.mxu1  ;;  %v14272_v36 = vld [vmem:[%s15846_s27 + $0x1f4] sm:$0xf0] }
 0x283   : > { %v14000_v19 = vld [vmem:[%s15846_s27 + $0x2270] sm:$0xf0]  ;;  %v15341_v47 = vld [vmem:[%s15846_s27 + $0x2364] sm:$0xf]  ;;  %8270 = vmatpush.bf16.msrb.mxu0 %v13763_v35  ;;  %v13875_v13 = vor.u32 %v15277_v31, %v13872_v38  ;;  %v14304_v29 = vld [vmem:[%s15846_s27 + $0x2f4] sm:$0xf0] }
 0x284   : > { %v14128_v39 = vld [vmem:[%s15846_s27 + $0x2370] sm:$0xf0]  ;;  %8283 = vmatpush.bf16.msrb.mxu1 %v13891_v30  ;;  %v14003_v51 = vor.u32 %v15309_v15, %v14000_v19  ;;  %v15241_v43 = vld [vmem:[%s15846_s27 + $0x2044] sm:$0xf]  ;;  %v17235_v55 = vadd.f32 %v8055_v42, %v8043_v2  ;;  %v14240_v2 = vld [vmem:[%s15846_s27 + $0xf4] sm:$0xf0] }
 0x285   : > { %8296 = vmatpush.bf16.msrb.mxu2 %v14019_v6  ;;  %v13728_v48 = vld [vmem:[%s15846_s27 + $0x2050] sm:$0xf0]  ;;  %v15273_v52 = vld [vmem:[%s15846_s27 + $0x2144] sm:$0xf]  ;;  %v14131_v40 = vor.u32 %v15341_v47, %v14128_v39  ;;  %v9846_v42 = vld [vmem:[%s15846_s27 + $0x1e8] sm:$0xf] }
 0x286   : > { %8309 = vmatpush.bf16.msrb.mxu3 %v14147_v61  ;;  %v13856_v34 = vld [vmem:[%s15846_s27 + $0x2150] sm:$0xf0]  ;;  %v15305_v23 = vld [vmem:[%s15846_s27 + $0x2244] sm:$0xf]  ;;  %v13731_v45 = vor.u32 %v15241_v43, %v13728_v48 }
 0x287   : > { %v13984_v56 = vld [vmem:[%s15846_s27 + $0x2250] sm:$0xf0]  ;;  %v15337_v46 = vld [vmem:[%s15846_s27 + $0x2344] sm:$0xf]  ;;  %8271 = vmatpush.bf16.msrb.mxu0 %v13747_v7  ;;  %v13859_v35 = vor.u32 %v15273_v52, %v13856_v34 }
 0x288   : > { %v14112_v41 = vld [vmem:[%s15846_s27 + $0x2350] sm:$0xf0]  ;;  %8284 = vmatpush.bf16.msrb.mxu1 %v13875_v13  ;;  %v13987_v60 = vor.u32 %v15305_v23, %v13984_v56  ;;  %v15237_v30 = vld [vmem:[%s15846_s27 + $0x2024] sm:$0xf]  ;;  %v9718_v56 = vld [vmem:[%s15846_s27 + $0xe8] sm:$0xf] }
 0x289   : > { %8297 = vmatpush.bf16.msrb.mxu2 %v14003_v51  ;;  %v13712_v6 = vld [vmem:[%s15846_s27 + $0x2030] sm:$0xf0]  ;;  %v15269_v11 = vld [vmem:[%s15846_s27 + $0x2124] sm:$0xf]  ;;  %v14115_v28 = vor.u32 %v15337_v46, %v14112_v41  ;;  %v8044_v23 = vpop.f32.mrf.mxu2  ;;  %v8057_v46 = vpop.f32.mrf.mxu3 }
 0x28a   : > { %8310 = vmatpush.bf16.msrb.mxu3 %v14131_v40  ;;  %v13840_v31 = vld [vmem:[%s15846_s27 + $0x2130] sm:$0xf0]  ;;  %v15301_v61 = vld [vmem:[%s15846_s27 + $0x2224] sm:$0xf]  ;;  %v13715_v19 = vor.u32 %v15237_v30, %v13712_v6  ;;  %v10102_v30 = vld [vmem:[%s15846_s27 + $0x3e8] sm:$0xf] }
 0x28b   : > { %v13968_v9 = vld [vmem:[%s15846_s27 + $0x2230] sm:$0xf0]  ;;  %v15333_v38 = vld [vmem:[%s15846_s27 + $0x2324] sm:$0xf]  ;;  %8272 = vmatpush.bf16.msrb.mxu0 %v13731_v45  ;;  %v13843_v7 = vor.u32 %v15269_v11, %v13840_v31  ;;  %v9974_v45 = vld [vmem:[%s15846_s27 + $0x2e8] sm:$0xf]  ;;  %v9847_v31 = vor.u32 %v14272_v36, %v9846_v42 }
 0x28c   : > { %v14096_v15 = vld [vmem:[%s15846_s27 + $0x2330] sm:$0xf0]  ;;  %v15233_v47 = vld [vmem:[%s15846_s27 + $0x2004] sm:$0xf]  ;;  %8285 = vmatpush.bf16.msrb.mxu1 %v13859_v35  ;;  %v13971_v13 = vor.u32 %v15301_v61, %v13968_v9  ;;  %v14336_v6 = vld [vmem:[%s15846_s27 + $0x3f4] sm:$0xf0]  ;;  %v9975_v61 = vor.u32 %v14304_v29, %v9974_v45 }
 0x28d   : > { %v13696_v39 = vld [vmem:[%s15846_s27 + $0x2010] sm:$0xf0]  ;;  %8298 = vmatpush.bf16.msrb.mxu2 %v13987_v60  ;;  %v15265_v51 = vld [vmem:[%s15846_s27 + $0x2104] sm:$0xf]  ;;  %v14099_v52 = vor.u32 %v15333_v38, %v14096_v15  ;;  %v9702_v9 = vld [vmem:[%s15846_s27 + $0xc8] sm:$0xf] }
 0x28e   : > { %v13824_v43 = vld [vmem:[%s15846_s27 + $0x2110] sm:$0xf0]  ;;  %v15297_v48 = vld [vmem:[%s15846_s27 + $0x2204] sm:$0xf]  ;;  %8311 = vmatpush.bf16.msrb.mxu3 %v14115_v28  ;;  %v13699_v41 = vor.u32 %v15233_v47, %v13696_v39  ;;  %v9719_v28 = vor.u32 %v14240_v2, %v9718_v56  ;;  %v14236_v38 = vld [vmem:[%s15846_s27 + $0xd4] sm:$0xf0] }
 0x28f   : > { %v13952_v40 = vld [vmem:[%s15846_s27 + $0x2210] sm:$0xf0]  ;;  %v15329_v16 = vld [vmem:[%s15846_s27 + $0x2304] sm:$0xf]  ;;  %8273 = vmatpush.bf16.msrb.mxu0 %v13715_v19  ;;  %v13827_v35 = vor.u32 %v15265_v51, %v13824_v43  ;;  %v9830_v15 = vld [vmem:[%s15846_s27 + $0x1c8] sm:$0xf]  ;;  %v10103_v19 = vor.u32 %v14336_v6, %v10102_v30  ;;  %v9703_v43 = vor.u32 %v14236_v38, %v9702_v9 }
 0x290   : > { %v14080_v34 = vld [vmem:[%s15846_s27 + $0x2310] sm:$0xf0]  ;;  %8286 = vmatpush.bf16.msrb.mxu1 %v13843_v7  ;;  %v13955_v60 = vor.u32 %v15297_v48, %v13952_v40  ;;  %v14268_v47 = vld [vmem:[%s15846_s27 + $0x1d4] sm:$0xf0]  ;;  %v9958_v39 = vld [vmem:[%s15846_s27 + $0x2c8] sm:$0xf] }
 0x291   : > { %8299 = vmatpush.bf16.msrb.mxu2 %v13971_v13  ;;  %v14083_v11 = vor.u32 %v15329_v16, %v14080_v34  ;;  %v14300_v7 = vld [vmem:[%s15846_s27 + $0x2d4] sm:$0xf0]  ;;  %v10086_v13 = vld [vmem:[%s15846_s27 + $0x3c8] sm:$0xf]  ;;  %v9831_v48 = vor.u32 %v14268_v47, %v9830_v15 }
 0x292   : > { %8312 = vmatpush.bf16.msrb.mxu3 %v14099_v52  ;;  %v14332_v51 = vld [vmem:[%s15846_s27 + $0x3d4] sm:$0xf0]  ;;  %v9959_v52 = vor.u32 %v14300_v7, %v9958_v39  ;;  %v9686_v40 = vld [vmem:[%s15846_s27 + $0xa8] sm:$0xf] }
 0x293   : > { %8274 = vmatpush.bf16.msrb.mxu0 %v13699_v41  ;;  %v14232_v16 = vld [vmem:[%s15846_s27 + $0xb4] sm:$0xf0]  ;;  %v9814_v34 = vld [vmem:[%s15846_s27 + $0x1a8] sm:$0xf]  ;;  %v10087_v23 = vor.u32 %v14332_v51, %v10086_v13 }
 0x294   : > { %8287 = vmatpush.bf16.msrb.mxu1 %v13827_v35  ;;  %v14264_v56 = vld [vmem:[%s15846_s27 + $0x1b4] sm:$0xf0]  ;;  %v9942_v2 = vld [vmem:[%s15846_s27 + $0x2a8] sm:$0xf]  ;;  %v9687_v36 = vor.u32 %v14232_v16, %v9686_v40  ;;  %v8081_v47 = vpop.f32.mrf.mxu1 }
 0x295   : > { %8300 = vmatpush.bf16.msrb.mxu2 %v13955_v60  ;;  %v14296_v42 = vld [vmem:[%s15846_s27 + $0x2b4] sm:$0xf0]  ;;  %v10070_v46 = vld [vmem:[%s15846_s27 + $0x3a8] sm:$0xf]  ;;  %v9815_v45 = vor.u32 %v14264_v56, %v9814_v34 }
 0x296   : > { %8313 = vmatpush.bf16.msrb.mxu3 %v14083_v11  ;;  %8275 = vmatmul.bf16.vlgmr.msrb.gmra.mxu0 %v16602_v44  ;;  %v14328_v41 = vld [vmem:[%s15846_s27 + $0x3b4] sm:$0xf0]  ;;  %v9943_v29 = vor.u32 %v14296_v42, %v9942_v2  ;;  %v9670_v35 = vld [vmem:[%s15846_s27 + $0x88] sm:$0xf] }
 0x297   : > { %8319 = vmatpush.bf16.msra.mxu0 %v9719_v28  ;;  %8288 = vmatmul.bf16.vlgmr.msrb.gmra.mxu1 %v16609_v50  ;;  %v14228_v60 = vld [vmem:[%s15846_s27 + $0x94] sm:$0xf0]  ;;  %v9798_v30 = vld [vmem:[%s15846_s27 + $0x188] sm:$0xf]  ;;  %v10071_v6 = vor.u32 %v14328_v41, %v10070_v46 }
 0x298   : > { %8332 = vmatpush.bf16.msra.mxu1 %v9847_v31  ;;  %8301 = vmatmul.bf16.vlgmr.msrb.gmra.mxu2 %v16607_v49  ;;  %v14260_v11 = vld [vmem:[%s15846_s27 + $0x194] sm:$0xf0]  ;;  %v9926_v28 = vld [vmem:[%s15846_s27 + $0x288] sm:$0xf] }
 0x299   : > { %8345 = vmatpush.bf16.msra.mxu2 %v9975_v61  ;;  %8314 = vmatmul.bf16.vlgmr.msrb.gmra.mxu3 %v16613_v54  ;;  %v14292_v31 = vld [vmem:[%s15846_s27 + $0x294] sm:$0xf0]  ;;  %v8068_v61 = vpop.f32.mrf.mxu0  ;;  %v10054_v9 = vld [vmem:[%s15846_s27 + $0x388] sm:$0xf]  ;;  %v9799_v39 = vor.u32 %v14260_v11, %v9798_v30 }
 0x29a   : > { %8358 = vmatpush.bf16.msra.mxu3 %v10103_v19  ;;  %v14324_v38 = vld [vmem:[%s15846_s27 + $0x394] sm:$0xf0]  ;;  %v8069_v15 = vadd.f32 %v8068_v61, %v17235_v55  ;;  %v9671_v19 = vor.u32 %v14228_v60, %v9670_v35  ;;  %v9927_v7 = vor.u32 %v14292_v31, %v9926_v28  ;;  %v9654_v13 = vld [vmem:[%s15846_s27 + $0x68] sm:$0xf] }
 0x29b   : > { %8320 = vmatpush.bf16.msra.mxu0 %v9703_v43  ;;  %v14224_v51 = vld [vmem:[%s15846_s27 + $0x74] sm:$0xf0]  ;;  %v9782_v43 = vld [vmem:[%s15846_s27 + $0x168] sm:$0xf] }
 0x29c   : > { %8333 = vmatpush.bf16.msra.mxu1 %v9831_v48  ;;  %v10055_v48 = vor.u32 %v14324_v38, %v10054_v9  ;;  %v14256_v40 = vld [vmem:[%s15846_s27 + $0x174] sm:$0xf0]  ;;  %v9910_v16 = vld [vmem:[%s15846_s27 + $0x268] sm:$0xf]  ;;  %v9655_v56 = vor.u32 %v14224_v51, %v9654_v13  ;;  %v8107_v11 = vpop.f32.mrf.mxu3  ;;  %v8083_v38 = vpop.f32.mrf.mxu1 }
 0x29d   : > { %8346 = vmatpush.bf16.msra.mxu2 %v9959_v52  ;;  %v8082_v52 = vadd.f32 %v8081_v47, %v8069_v15  ;;  %v14288_v55 = vld [vmem:[%s15846_s27 + $0x274] sm:$0xf0]  ;;  %v10038_v34 = vld [vmem:[%s15846_s27 + $0x368] sm:$0xf]  ;;  %v9783_v2 = vor.u32 %v14256_v40, %v9782_v43 }
 0x29e   : > { %8359 = vmatpush.bf16.msra.mxu3 %v10087_v23  ;;  %v14320_v23 = vld [vmem:[%s15846_s27 + $0x374] sm:$0xf0]  ;;  %v9911_v42 = vor.u32 %v14288_v55, %v9910_v16  ;;  %v9638_v46 = vld [vmem:[%s15846_s27 + $0x48] sm:$0xf] }
 0x29f   : > { %8321 = vmatpush.bf16.msra.mxu0 %v9687_v36  ;;  %v14220_v41 = vld [vmem:[%s15846_s27 + $0x54] sm:$0xf0]  ;;  %v9766_v36 = vld [vmem:[%s15846_s27 + $0x148] sm:$0xf] }
 0x2a0   : > { %8334 = vmatpush.bf16.msra.mxu1 %v9815_v45  ;;  %v10039_v45 = vor.u32 %v14320_v23, %v10038_v34  ;;  %v14252_v35 = vld [vmem:[%s15846_s27 + $0x154] sm:$0xf0]  ;;  %v9894_v60 = vld [vmem:[%s15846_s27 + $0x248] sm:$0xf]  ;;  %v9639_v9 = vor.u32 %v14220_v41, %v9638_v46 }
 0x2a1   : > { %8347 = vmatpush.bf16.msra.mxu2 %v9943_v29  ;;  %v8094_v29 = vpop.f32.mrf.mxu2  ;;  %v14284_v30 = vld [vmem:[%s15846_s27 + $0x254] sm:$0xf0]  ;;  %v10022_v28 = vld [vmem:[%s15846_s27 + $0x348] sm:$0xf]  ;;  %v8070_v61 = vpop.f32.mrf.mxu0 }
 0x2a2   : > { %8360 = vmatpush.bf16.msra.mxu3 %v10071_v6  ;;  %v8095_v6 = vadd.f32 %v8094_v29, %v8082_v52  ;;  %v14316_v31 = vld [vmem:[%s15846_s27 + $0x354] sm:$0xf0]  ;;  %v9895_v47 = vor.u32 %v14284_v30, %v9894_v60  ;;  %v9750_v13 = vld [vmem:[%s15846_s27 + $0x128] sm:$0xf] }
 0x2a3   : > { %8322 = vmatpush.bf16.msra.mxu0 %v9671_v19  ;;  %v9767_v19 = vor.u32 %v14252_v35, %v9766_v36  ;;  %v10023_v51 = vor.u32 %v14316_v31, %v10022_v28  ;;  %v14248_v43 = vld [vmem:[%s15846_s27 + $0x134] sm:$0xf0]  ;;  %v10006_v40 = vld [vmem:[%s15846_s27 + $0x328] sm:$0xf] }
 0x2a4   : > { %8335 = vmatpush.bf16.msra.mxu1 %v9799_v39  ;;  %v17306_v15 = vadd.f32 %v8107_v11, %v8095_v6  ;;  %v9622_v39 = vld [vmem:[%s15846_s27 + $0x28] sm:$0xf]  ;;  %v14280_v52 = vld [vmem:[%s15846_s27 + $0x234] sm:$0xf0]  ;;  %v8109_v28 = vpop.f32.mrf.mxu3 }
 0x2a5   : > { %8348 = vmatpush.bf16.msra.mxu2 %v9927_v7  ;;  %v14216_v7 = vld [vmem:[%s15846_s27 + $0x34] sm:$0xf0]  ;;  %v9606_v34 = vld [vmem:[%s15846_s27 + $0x8] sm:$0xf] }
 0x2a6   : > { %8361 = vmatpush.bf16.msra.mxu3 %v10055_v48  ;;  %v9878_v48 = vld [vmem:[%s15846_s27 + $0x228] sm:$0xf]  ;;  %v14312_v16 = vld [vmem:[%s15846_s27 + $0x334] sm:$0xf0]  ;;  %v9623_v55 = vor.u32 %v14216_v7, %v9622_v39 }
 0x2a7   : > { %8323 = vmatpush.bf16.msra.mxu0 %v9655_v56  ;;  %v14212_v23 = vld [vmem:[%s15846_s27 + $0x14] sm:$0xf0]  ;;  %v9751_v56 = vor.u32 %v14248_v43, %v9750_v13  ;;  %v9862_v41 = vld [vmem:[%s15846_s27 + $0x208] sm:$0xf]  ;;  %v10007_v36 = vor.u32 %v14312_v16, %v10006_v40 }
 0x2a8   : > { %8336 = vmatpush.bf16.msra.mxu1 %v9783_v2  ;;  %v9879_v2 = vor.u32 %v14280_v52, %v9878_v48  ;;  %v14244_v46 = vld [vmem:[%s15846_s27 + $0x114] sm:$0xf0]  ;;  %v9990_v29 = vld [vmem:[%s15846_s27 + $0x308] sm:$0xf]  ;;  %v9607_v31 = vor.u32 %v14212_v23, %v9606_v34 }
 0x2a9   : > { %8349 = vmatpush.bf16.msra.mxu2 %v9911_v42  ;;  %v9734_v42 = vld [vmem:[%s15846_s27 + $0x108] sm:$0xf]  ;;  %v14308_v35 = vld [vmem:[%s15846_s27 + $0x314] sm:$0xf0]  ;;  %v8096_v60 = vpop.f32.mrf.mxu2 }
 0x2aa   : > { %8362 = vmatpush.bf16.msra.mxu3 %v10039_v45  ;;  %v14276_v45 = vld [vmem:[%s15846_s27 + $0x214] sm:$0xf0]  ;;  %v10230_v30 = vld [vmem:[%s15846_s27 + $0x4e8] sm:$0xf]  ;;  %v9991_v13 = vor.u32 %v14308_v35, %v9990_v29 }
 0x2ab   : > { %8324 = vmatpush.bf16.msra.mxu0 %v9639_v9  ;;  %v14368_v6 = vld [vmem:[%s15846_s27 + $0x4f4] sm:$0xf0]  ;;  %v10358_v11 = vld [vmem:[%s15846_s27 + $0x5e8] sm:$0xf] }
 0x2ac   : > { %8337 = vmatpush.bf16.msra.mxu1 %v9767_v19  ;;  %v14400_v61 = vld [vmem:[%s15846_s27 + $0x5f4] sm:$0xf0]  ;;  %v10486_v9 = vld [vmem:[%s15846_s27 + $0x6e8] sm:$0xf]  ;;  %v9735_v19 = vor.u32 %v14244_v46, %v9734_v42 }
 0x2ad   : > { %8350 = vmatpush.bf16.msra.mxu2 %v9895_v47  ;;  %v14432_v38 = vld [vmem:[%s15846_s27 + $0x6f4] sm:$0xf0]  ;;  %v9863_v47 = vor.u32 %v14276_v45, %v9862_v41  ;;  %v10614_v39 = vld [vmem:[%s15846_s27 + $0x7e8] sm:$0xf]  ;;  %v10359_v43 = vor.u32 %v14400_v61, %v10358_v11 }
 0x2ae   : > { %8363 = vmatpush.bf16.msra.mxu3 %v10023_v51  ;;  %v14464_v7 = vld [vmem:[%s15846_s27 + $0x7f4] sm:$0xf0]  ;;  %v10231_v51 = vor.u32 %v14368_v6, %v10230_v30  ;;  %v10487_v48 = vor.u32 %v14432_v38, %v10486_v9  ;;  %v10214_v52 = vld [vmem:[%s15846_s27 + $0x4c8] sm:$0xf] }
 0x2af   : > { %8325 = vmatpush.bf16.msra.mxu0 %v9623_v55  ;;  %v14364_v40 = vld [vmem:[%s15846_s27 + $0x4d4] sm:$0xf0]  ;;  %v10342_v16 = vld [vmem:[%s15846_s27 + $0x5c8] sm:$0xf]  ;;  %v10615_v55 = vor.u32 %v14464_v7, %v10614_v39 }
 0x2b0   : > { %8338 = vmatpush.bf16.msra.mxu1 %v9751_v56  ;;  %v14396_v34 = vld [vmem:[%s15846_s27 + $0x5d4] sm:$0xf0]  ;;  %v10470_v23 = vld [vmem:[%s15846_s27 + $0x6c8] sm:$0xf]  ;;  %v10215_v46 = vor.u32 %v14364_v40, %v10214_v52 }
 0x2b1   : > { %8351 = vmatpush.bf16.msra.mxu2 %v9879_v2  ;;  %v14428_v56 = vld [vmem:[%s15846_s27 + $0x6d4] sm:$0xf0]  ;;  %v10598_v2 = vld [vmem:[%s15846_s27 + $0x7c8] sm:$0xf]  ;;  %v10343_v41 = vor.u32 %v14396_v34, %v10342_v16 }
 0x2b2   : > { %8364 = vmatpush.bf16.msra.mxu3 %v10007_v36  ;;  %v14460_v42 = vld [vmem:[%s15846_s27 + $0x7d4] sm:$0xf0]  ;;  %v10471_v36 = vor.u32 %v14428_v56, %v10470_v23  ;;  %v10198_v45 = vld [vmem:[%s15846_s27 + $0x4a8] sm:$0xf] }
 0x2b3   : > { %8326 = vmatpush.bf16.msra.mxu0 %v9607_v31  ;;  %v14360_v29 = vld [vmem:[%s15846_s27 + $0x4b4] sm:$0xf0]  ;;  %v10326_v35 = vld [vmem:[%s15846_s27 + $0x5a8] sm:$0xf]  ;;  %v10599_v60 = vor.u32 %v14460_v42, %v10598_v2 }
 0x2b4   : > { %8339 = vmatpush.bf16.msra.mxu1 %v9735_v19  ;;  %v14392_v30 = vld [vmem:[%s15846_s27 + $0x5b4] sm:$0xf0]  ;;  %v10454_v6 = vld [vmem:[%s15846_s27 + $0x6a8] sm:$0xf]  ;;  %v10199_v61 = vor.u32 %v14360_v29, %v10198_v45  ;;  %v8133_v34 = vpop.f32.mrf.mxu1 }
 0x2b5   : > { %8352 = vmatpush.bf16.msra.mxu2 %v9863_v47  ;;  %v14424_v11 = vld [vmem:[%s15846_s27 + $0x6b4] sm:$0xf0]  ;;  %v10582_v28 = vld [vmem:[%s15846_s27 + $0x7a8] sm:$0xf]  ;;  %v10327_v9 = vor.u32 %v14392_v30, %v10326_v35 }
 0x2b6   : > { %8365 = vmatpush.bf16.msra.mxu3 %v9991_v13  ;;  %v14456_v31 = vld [vmem:[%s15846_s27 + $0x7b4] sm:$0xf0]  ;;  %8327 = vmatmul.bf16.vlgmr.msra.gmra.mxu0 %v15968_v10  ;;  %v10455_v38 = vor.u32 %v14424_v11, %v10454_v6  ;;  %v10182_v19 = vld [vmem:[%s15846_s27 + $0x488] sm:$0xf] }
 0x2b7   : > { %8371 = vmatpush.bf16.msrb.mxu0 %v10231_v51  ;;  %8340 = vmatmul.bf16.vlgmr.msra.gmra.mxu1 %v15977_v18  ;;  %v14356_v47 = vld [vmem:[%s15846_s27 + $0x494] sm:$0xf0]  ;;  %v10310_v39 = vld [vmem:[%s15846_s27 + $0x588] sm:$0xf]  ;;  %v10583_v7 = vor.u32 %v14456_v31, %v10582_v28 }
 0x2b8   : > { %8384 = vmatpush.bf16.msrb.mxu1 %v10359_v43  ;;  %8353 = vmatmul.bf16.vlgmr.msra.gmra.mxu2 %v15959_v0  ;;  %v14388_v13 = vld [vmem:[%s15846_s27 + $0x594] sm:$0xf0]  ;;  %v10438_v51 = vld [vmem:[%s15846_s27 + $0x688] sm:$0xf] }
 0x2b9   : > { %8397 = vmatpush.bf16.msrb.mxu2 %v10487_v48  ;;  %8366 = vmatmul.bf16.vlgmr.msra.gmra.mxu3 %v15975_v17  ;;  %v14420_v43 = vld [vmem:[%s15846_s27 + $0x694] sm:$0xf0]  ;;  %v8120_v48 = vpop.f32.mrf.mxu0  ;;  %v10566_v52 = vld [vmem:[%s15846_s27 + $0x788] sm:$0xf]  ;;  %v10311_v23 = vor.u32 %v14388_v13, %v10310_v39 }
 0x2ba   : > { %8410 = vmatpush.bf16.msrb.mxu3 %v10615_v55  ;;  %v14452_v40 = vld [vmem:[%s15846_s27 + $0x794] sm:$0xf0]  ;;  %v8121_v16 = vadd.f32 %v8120_v48, %v17306_v15  ;;  %v10183_v55 = vor.u32 %v14356_v47, %v10182_v19  ;;  %v10439_v56 = vor.u32 %v14420_v43, %v10438_v51  ;;  %v10166_v2 = vld [vmem:[%s15846_s27 + $0x468] sm:$0xf] }
 0x2bb   : > { %8372 = vmatpush.bf16.msrb.mxu0 %v10215_v46  ;;  %v14352_v42 = vld [vmem:[%s15846_s27 + $0x474] sm:$0xf0]  ;;  %v10294_v46 = vld [vmem:[%s15846_s27 + $0x568] sm:$0xf] }
 0x2bc   : > { %8385 = vmatpush.bf16.msrb.mxu1 %v10343_v41  ;;  %v10567_v41 = vor.u32 %v14452_v40, %v10566_v52  ;;  %v14384_v45 = vld [vmem:[%s15846_s27 + $0x574] sm:$0xf0]  ;;  %v10422_v29 = vld [vmem:[%s15846_s27 + $0x668] sm:$0xf]  ;;  %v10167_v30 = vor.u32 %v14352_v42, %v10166_v2  ;;  %v8159_v13 = vpop.f32.mrf.mxu3  ;;  %v8135_v40 = vpop.f32.mrf.mxu1 }
 0x2bd   : > { %8398 = vmatpush.bf16.msrb.mxu2 %v10471_v36  ;;  %v8134_v36 = vadd.f32 %v8133_v34, %v8121_v16  ;;  %v14416_v15 = vld [vmem:[%s15846_s27 + $0x674] sm:$0xf0]  ;;  %v10550_v35 = vld [vmem:[%s15846_s27 + $0x768] sm:$0xf]  ;;  %v10295_v6 = vor.u32 %v14384_v45, %v10294_v46 }
 0x2be   : > { %8411 = vmatpush.bf16.msrb.mxu3 %v10599_v60  ;;  %v14448_v60 = vld [vmem:[%s15846_s27 + $0x774] sm:$0xf0]  ;;  %v10423_v11 = vor.u32 %v14416_v15, %v10422_v29  ;;  %v10150_v28 = vld [vmem:[%s15846_s27 + $0x448] sm:$0xf] }
 0x2bf   : > { %8373 = vmatpush.bf16.msrb.mxu0 %v10199_v61  ;;  %v14348_v31 = vld [vmem:[%s15846_s27 + $0x454] sm:$0xf0]  ;;  %v10278_v61 = vld [vmem:[%s15846_s27 + $0x548] sm:$0xf] }
 0x2c0   : > { %8386 = vmatpush.bf16.msrb.mxu1 %v10327_v9  ;;  %v10551_v9 = vor.u32 %v14448_v60, %v10550_v35  ;;  %v14380_v19 = vld [vmem:[%s15846_s27 + $0x554] sm:$0xf0]  ;;  %v10406_v47 = vld [vmem:[%s15846_s27 + $0x648] sm:$0xf]  ;;  %v10151_v52 = vor.u32 %v14348_v31, %v10150_v28 }
 0x2c1   : > { %8399 = vmatpush.bf16.msrb.mxu2 %v10455_v38  ;;  %v8146_v38 = vpop.f32.mrf.mxu2  ;;  %v14412_v39 = vld [vmem:[%s15846_s27 + $0x654] sm:$0xf0]  ;;  %v10534_v51 = vld [vmem:[%s15846_s27 + $0x748] sm:$0xf]  ;;  %v8122_v48 = vpop.f32.mrf.mxu0 }
 0x2c2   : > { %8412 = vmatpush.bf16.msrb.mxu3 %v10583_v7  ;;  %v8147_v7 = vadd.f32 %v8146_v38, %v8134_v36  ;;  %v14444_v43 = vld [vmem:[%s15846_s27 + $0x754] sm:$0xf0]  ;;  %v10407_v34 = vor.u32 %v14412_v39, %v10406_v47  ;;  %v10262_v2 = vld [vmem:[%s15846_s27 + $0x528] sm:$0xf] }
 0x2c3   : > { %8374 = vmatpush.bf16.msrb.mxu0 %v10183_v55  ;;  %v10279_v55 = vor.u32 %v14380_v19, %v10278_v61  ;;  %v10535_v42 = vor.u32 %v14444_v43, %v10534_v51  ;;  %v14376_v46 = vld [vmem:[%s15846_s27 + $0x534] sm:$0xf0]  ;;  %v10518_v45 = vld [vmem:[%s15846_s27 + $0x728] sm:$0xf] }
 0x2c4   : > { %8387 = vmatpush.bf16.msrb.mxu1 %v10311_v23  ;;  %v17377_v16 = vadd.f32 %v8159_v13, %v8147_v7  ;;  %v10134_v23 = vld [vmem:[%s15846_s27 + $0x428] sm:$0xf]  ;;  %v14408_v36 = vld [vmem:[%s15846_s27 + $0x634] sm:$0xf0]  ;;  %v8161_v51 = vpop.f32.mrf.mxu3 }
 0x2c5   : > { %8400 = vmatpush.bf16.msrb.mxu2 %v10439_v56  ;;  %v14344_v56 = vld [vmem:[%s15846_s27 + $0x434] sm:$0xf0]  ;;  %v10118_v35 = vld [vmem:[%s15846_s27 + $0x408] sm:$0xf] }
 0x2c6   : > { %8413 = vmatpush.bf16.msrb.mxu3 %v10567_v41  ;;  %v10390_v41 = vld [vmem:[%s15846_s27 + $0x628] sm:$0xf]  ;;  %v14440_v29 = vld [vmem:[%s15846_s27 + $0x734] sm:$0xf0]  ;;  %v10135_v15 = vor.u32 %v14344_v56, %v10134_v23 }
 0x2c7   : > { %8375 = vmatpush.bf16.msrb.mxu0 %v10167_v30  ;;  %v14340_v60 = vld [vmem:[%s15846_s27 + $0x414] sm:$0xf0]  ;;  %v10263_v30 = vor.u32 %v14376_v46, %v10262_v2  ;;  %v10374_v31 = vld [vmem:[%s15846_s27 + $0x608] sm:$0xf]  ;;  %v10519_v61 = vor.u32 %v14440_v29, %v10518_v45 }
 0x2c8   : > { %8388 = vmatpush.bf16.msrb.mxu1 %v10295_v6  ;;  %v10391_v6 = vor.u32 %v14408_v36, %v10390_v41  ;;  %v14372_v28 = vld [vmem:[%s15846_s27 + $0x514] sm:$0xf0]  ;;  %v10502_v38 = vld [vmem:[%s15846_s27 + $0x708] sm:$0xf]  ;;  %v10119_v43 = vor.u32 %v14340_v60, %v10118_v35 }
 0x2c9   : > { %8401 = vmatpush.bf16.msrb.mxu2 %v10423_v11  ;;  %v10246_v11 = vld [vmem:[%s15846_s27 + $0x508] sm:$0xf]  ;;  %v14436_v19 = vld [vmem:[%s15846_s27 + $0x714] sm:$0xf0]  ;;  %v8148_v47 = vpop.f32.mrf.mxu2 }
 0x2ca   : > { %8414 = vmatpush.bf16.msrb.mxu3 %v10551_v9  ;;  %v14404_v9 = vld [vmem:[%s15846_s27 + $0x614] sm:$0xf0]  ;;  %v10742_v39 = vld [vmem:[%s15846_s27 + $0x8e8] sm:$0xf]  ;;  %v10503_v2 = vor.u32 %v14436_v19, %v10502_v38 }
 0x2cb   : > { %8376 = vmatpush.bf16.msrb.mxu0 %v10151_v52  ;;  %v14496_v7 = vld [vmem:[%s15846_s27 + $0x8f4] sm:$0xf0]  ;;  %v10870_v13 = vld [vmem:[%s15846_s27 + $0x9e8] sm:$0xf] }
 0x2cc   : > { %8389 = vmatpush.bf16.msrb.mxu1 %v10279_v55  ;;  %v14528_v48 = vld [vmem:[%s15846_s27 + $0x9f4] sm:$0xf0]  ;;  %v10998_v52 = vld [vmem:[%s15846_s27 + $0xae8] sm:$0xf]  ;;  %v10247_v55 = vor.u32 %v14372_v28, %v10246_v11 }
 0x2cd   : > { %8402 = vmatpush.bf16.msrb.mxu2 %v10407_v34  ;;  %v14560_v40 = vld [vmem:[%s15846_s27 + $0xaf4] sm:$0xf0]  ;;  %v10375_v34 = vor.u32 %v14404_v9, %v10374_v31  ;;  %v11126_v23 = vld [vmem:[%s15846_s27 + $0xbe8] sm:$0xf]  ;;  %v10871_v46 = vor.u32 %v14528_v48, %v10870_v13 }
 0x2ce   : > { %8415 = vmatpush.bf16.msrb.mxu3 %v10535_v42  ;;  %v14592_v56 = vld [vmem:[%s15846_s27 + $0xbf4] sm:$0xf0]  ;;  %v10743_v42 = vor.u32 %v14496_v7, %v10742_v39  ;;  %v10999_v41 = vor.u32 %v14560_v40, %v10998_v52  ;;  %v10726_v36 = vld [vmem:[%s15846_s27 + $0x8c8] sm:$0xf] }
 0x2cf   : > { %8377 = vmatpush.bf16.msrb.mxu0 %v10135_v15  ;;  %v14492_v45 = vld [vmem:[%s15846_s27 + $0x8d4] sm:$0xf0]  ;;  %v10854_v29 = vld [vmem:[%s15846_s27 + $0x9c8] sm:$0xf]  ;;  %v11127_v15 = vor.u32 %v14592_v56, %v11126_v23 }
 0x2d0   : > { %8390 = vmatpush.bf16.msrb.mxu1 %v10263_v30  ;;  %v14524_v35 = vld [vmem:[%s15846_s27 + $0x9d4] sm:$0xf0]  ;;  %v10982_v60 = vld [vmem:[%s15846_s27 + $0xac8] sm:$0xf]  ;;  %v10727_v28 = vor.u32 %v14492_v45, %v10726_v36 }
 0x2d1   : > { %8403 = vmatpush.bf16.msrb.mxu2 %v10391_v6  ;;  %v14556_v30 = vld [vmem:[%s15846_s27 + $0xad4] sm:$0xf0]  ;;  %v11110_v6 = vld [vmem:[%s15846_s27 + $0xbc8] sm:$0xf]  ;;  %v10855_v31 = vor.u32 %v14524_v35, %v10854_v29 }
 0x2d2   : > { %8416 = vmatpush.bf16.msrb.mxu3 %v10519_v61  ;;  %v14588_v11 = vld [vmem:[%s15846_s27 + $0xbd4] sm:$0xf0]  ;;  %v10983_v61 = vor.u32 %v14556_v30, %v10982_v60  ;;  %v10710_v9 = vld [vmem:[%s15846_s27 + $0x8a8] sm:$0xf] }
 0x2d3   : > { %8378 = vmatpush.bf16.msrb.mxu0 %v10119_v43  ;;  %v14488_v38 = vld [vmem:[%s15846_s27 + $0x8b4] sm:$0xf0]  ;;  %v10838_v19 = vld [vmem:[%s15846_s27 + $0x9a8] sm:$0xf]  ;;  %v11111_v47 = vor.u32 %v14588_v11, %v11110_v6  ;;  %v18610_v43 = vld [vmem:[#allocation18_spill] sm:$0xff] }
 0x2d4   : > { %8391 = vmatpush.bf16.msrb.mxu1 %v10247_v55  ;;  %v18609_v39 = vld [vmem:[#allocation17_spill] sm:$0xff]  ;;  %v14520_v7 = vld [vmem:[%s15846_s27 + $0x9b4] sm:$0xf0]  ;;  %v10711_v55 = vor.u32 %v14488_v38, %v10710_v9  ;;  %v17433_v6 = vpop.f32.mrf.mxu1 }
 0x2d5   : > { %8404 = vmatpush.bf16.msrb.mxu2 %v10375_v34  ;;  %v10966_v13 = vld [vmem:[%s15846_s27 + $0xaa8] sm:$0xf]  ;;  %v14552_v51 = vld [vmem:[%s15846_s27 + $0xab4] sm:$0xf0]  ;;  %v18612_v34 = vld [vmem:[#allocation20_spill] sm:$0xff]  ;;  %v10839_v23 = vor.u32 %v14520_v7, %v10838_v19 }
 0x2d6   : > { %8417 = vmatpush.bf16.msrb.mxu3 %v10503_v2  ;;  %8379 = vmatmul.bf16.vlgmr.msrb.gmra.mxu0 %v18610_v43  ;;  %v18611_v48 = vld [vmem:[#allocation19_spill] sm:$0xff]  ;;  %v11094_v52 = vld [vmem:[%s15846_s27 + $0xba8] sm:$0xf]  ;;  %v10967_v56 = vor.u32 %v14552_v51, %v10966_v13 }
 0x2d7   : > { %8423 = vmatpush.bf16.msra.mxu0 %v10743_v42  ;;  %v14584_v40 = vld [vmem:[%s15846_s27 + $0xbb4] sm:$0xf0]  ;;  %8392 = vmatmul.bf16.vlgmr.msrb.gmra.mxu1 %v18612_v34  ;;  %v10694_v2 = vld [vmem:[%s15846_s27 + $0x888] sm:$0xf] }
 0x2d8   : > { %8436 = vmatpush.bf16.msra.mxu1 %v10871_v46  ;;  %8405 = vmatmul.bf16.vlgmr.msrb.gmra.mxu2 %v18609_v39  ;;  %v14484_v42 = vld [vmem:[%s15846_s27 + $0x894] sm:$0xf0]  ;;  %v10822_v46 = vld [vmem:[%s15846_s27 + $0x988] sm:$0xf] }
 0x2d9   : > { %8449 = vmatpush.bf16.msra.mxu2 %v10999_v41  ;;  %8418 = vmatmul.bf16.vlgmr.msrb.gmra.mxu3 %v18611_v48  ;;  %v11095_v41 = vor.u32 %v14584_v40, %v11094_v52  ;;  %v14516_v36 = vld [vmem:[%s15846_s27 + $0x994] sm:$0xf0]  ;;  %v10950_v45 = vld [vmem:[%s15846_s27 + $0xa88] sm:$0xf]  ;;  %v10695_v30 = vor.u32 %v14484_v42, %v10694_v2 }
 0x2da   : > { %8462 = vmatpush.bf16.msra.mxu3 %v11127_v15  ;;  %v14548_v29 = vld [vmem:[%s15846_s27 + $0xa94] sm:$0xf0]  ;;  %v17429_v15 = vpop.f32.mrf.mxu0  ;;  %v11078_v35 = vld [vmem:[%s15846_s27 + $0xb88] sm:$0xf]  ;;  %v10823_v11 = vor.u32 %v14516_v36, %v10822_v46 }
 0x2db   : > { %8424 = vmatpush.bf16.msra.mxu0 %v10727_v28  ;;  %v14580_v60 = vld [vmem:[%s15846_s27 + $0xb94] sm:$0xf0]  ;;  %v10951_v28 = vor.u32 %v14548_v29, %v10950_v45  ;;  %v10806_v9 = vld [vmem:[%s15846_s27 + $0x968] sm:$0xf]  ;;  %v17446_v46 = vpop.f32.mrf.mxu2 }
 0x2dc   : > { %8437 = vmatpush.bf16.msra.mxu1 %v10855_v31  ;;  %v10678_v31 = vld [vmem:[%s15846_s27 + $0x868] sm:$0xf]  ;;  %v11079_v38 = vor.u32 %v14580_v60, %v11078_v35  ;;  %v14512_v19 = vld [vmem:[%s15846_s27 + $0x974] sm:$0xf0]  ;;  %v17451_v29 = vpop.f32.mrf.mxu3 }
 0x2dd   : > { %8450 = vmatpush.bf16.msra.mxu2 %v10983_v61  ;;  %v14480_v61 = vld [vmem:[%s15846_s27 + $0x874] sm:$0xf0]  ;;  %v11062_v13 = vld [vmem:[%s15846_s27 + $0xb68] sm:$0xf]  ;;  %v10807_v40 = vor.u32 %v14512_v19, %v10806_v9 }
 0x2de   : > { %8463 = vmatpush.bf16.msra.mxu3 %v11111_v47  ;;  %v10934_v47 = vld [vmem:[%s15846_s27 + $0xa68] sm:$0xf]  ;;  %v14544_v7 = vld [vmem:[%s15846_s27 + $0xa74] sm:$0xf0]  ;;  %v10679_v52 = vor.u32 %v14480_v61, %v10678_v31 }
 0x2df   : > { %8425 = vmatpush.bf16.msra.mxu0 %v10711_v55  ;;  %v14576_v51 = vld [vmem:[%s15846_s27 + $0xb74] sm:$0xf0]  ;;  %v10935_v55 = vor.u32 %v14544_v7, %v10934_v47  ;;  %v10790_v2 = vld [vmem:[%s15846_s27 + $0x948] sm:$0xf] }
 0x2e0   : > { %8438 = vmatpush.bf16.msra.mxu1 %v10839_v23  ;;  %v10662_v23 = vld [vmem:[%s15846_s27 + $0x848] sm:$0xf]  ;;  %v11063_v42 = vor.u32 %v14576_v51, %v11062_v13  ;;  %v14540_v45 = vld [vmem:[%s15846_s27 + $0xa54] sm:$0xf0] }
 0x2e1   : > { %8451 = vmatpush.bf16.msra.mxu2 %v10967_v56  ;;  %v14476_v56 = vld [vmem:[%s15846_s27 + $0x854] sm:$0xf0]  ;;  %v10918_v36 = vld [vmem:[%s15846_s27 + $0xa48] sm:$0xf] }
 0x2e2   : > { %8464 = vmatpush.bf16.msra.mxu3 %v11095_v41  ;;  %v14508_v41 = vld [vmem:[%s15846_s27 + $0x954] sm:$0xf0]  ;;  %v11046_v35 = vld [vmem:[%s15846_s27 + $0xb48] sm:$0xf]  ;;  %v10919_v61 = vor.u32 %v14540_v45, %v10918_v36 }
 0x2e3   : > { %8426 = vmatpush.bf16.msra.mxu0 %v10695_v30  ;;  %v14572_v60 = vld [vmem:[%s15846_s27 + $0xb54] sm:$0xf0]  ;;  %v8174_v30 = vpop.f32.mrf.mxu0  ;;  %v10791_v31 = vor.u32 %v14508_v41, %v10790_v2  ;;  %v10646_v9 = vld [vmem:[%s15846_s27 + $0x828] sm:$0xf] }
 0x2e4   : > { %8439 = vmatpush.bf16.msra.mxu1 %v10823_v11  ;;  %v10663_v11 = vor.u32 %v14476_v56, %v10662_v23  ;;  %v10774_v19 = vld [vmem:[%s15846_s27 + $0x928] sm:$0xf]  ;;  %v11047_v47 = vor.u32 %v14572_v60, %v11046_v35  ;;  %v14504_v7 = vld [vmem:[%s15846_s27 + $0x934] sm:$0xf0] }
 0x2e5   : > { %8452 = vmatpush.bf16.msra.mxu2 %v10951_v28  ;;  %v8187_v28 = vpop.f32.mrf.mxu1  ;;  %v10902_v13 = vld [vmem:[%s15846_s27 + $0xa28] sm:$0xf]  ;;  %v14536_v51 = vld [vmem:[%s15846_s27 + $0xa34] sm:$0xf0]  ;;  %v10775_v2 = vor.u32 %v14504_v7, %v10774_v19 }
 0x2e6   : > { %8465 = vmatpush.bf16.msra.mxu3 %v11079_v38  ;;  %v14472_v38 = vld [vmem:[%s15846_s27 + $0x834] sm:$0xf0]  ;;  %v10630_v23 = vld [vmem:[%s15846_s27 + $0x808] sm:$0xf]  ;;  %v8200_v28 = vpop.f32.mrf.mxu2 }
 0x2e7   : > { %8427 = vmatpush.bf16.msra.mxu0 %v10679_v52  ;;  %v11030_v52 = vld [vmem:[%s15846_s27 + $0xb28] sm:$0xf]  ;;  %v14468_v56 = vld [vmem:[%s15846_s27 + $0x814] sm:$0xf0] }
 0x2e8   : > { %8440 = vmatpush.bf16.msra.mxu1 %v10807_v40  ;;  %v14568_v40 = vld [vmem:[%s15846_s27 + $0xb34] sm:$0xf0]  ;;  %v10758_v41 = vld [vmem:[%s15846_s27 + $0x908] sm:$0xf]  ;;  %v10631_v19 = vor.u32 %v14468_v56, %v10630_v23 }
 0x2e9   : > { %8453 = vmatpush.bf16.msra.mxu2 %v10935_v55  ;;  %v10647_v55 = vor.u32 %v14472_v38, %v10646_v9  ;;  %v14500_v36 = vld [vmem:[%s15846_s27 + $0x914] sm:$0xf0]  ;;  %v10886_v45 = vld [vmem:[%s15846_s27 + $0xa08] sm:$0xf]  ;;  %v11031_v35 = vor.u32 %v14568_v40, %v11030_v52 }
 0x2ea   : > { %8466 = vmatpush.bf16.msra.mxu3 %v11063_v42  ;;  %v10903_v42 = vor.u32 %v14536_v51, %v10902_v13  ;;  %v14532_v60 = vld [vmem:[%s15846_s27 + $0xa14] sm:$0xf0]  ;;  %v11014_v30 = vld [vmem:[%s15846_s27 + $0xb08] sm:$0xf] }
 0x2eb   : > { %8428 = vmatpush.bf16.msra.mxu0 %v10663_v11  ;;  %v14564_v11 = vld [vmem:[%s15846_s27 + $0xb14] sm:$0xf0]  ;;  %v11254_v9 = vld [vmem:[%s15846_s27 + $0xce8] sm:$0xf]  ;;  %v10887_v52 = vor.u32 %v14532_v60, %v10886_v45 }
 0x2ec   : > { %8441 = vmatpush.bf16.msra.mxu1 %v10791_v31  ;;  %v14624_v38 = vld [vmem:[%s15846_s27 + $0xcf4] sm:$0xf0]  ;;  %v11382_v31 = vld [vmem:[%s15846_s27 + $0xde8] sm:$0xf] }
 0x2ed   : > { %8454 = vmatpush.bf16.msra.mxu2 %v10919_v61  ;;  %v8213_v61 = vpop.f32.mrf.mxu3  ;;  %v14656_v7 = vld [vmem:[%s15846_s27 + $0xdf4] sm:$0xf0]  ;;  %v11510_v13 = vld [vmem:[%s15846_s27 + $0xee8] sm:$0xf] }
 0x2ee   : > { %8467 = vmatpush.bf16.msra.mxu3 %v11047_v47  ;;  %v14688_v51 = vld [vmem:[%s15846_s27 + $0xef4] sm:$0xf0]  ;;  %v10759_v47 = vor.u32 %v14500_v36, %v10758_v41  ;;  %v11638_v40 = vld [vmem:[%s15846_s27 + $0xfe8] sm:$0xf]  ;;  %v11255_v61 = vor.u32 %v14624_v38, %v11254_v9  ;;  %v11383_v23 = vor.u32 %v14656_v7, %v11382_v31 }
 0x2ef   : > { %8429 = vmatpush.bf16.msra.mxu0 %v10647_v55  ;;  %v14720_v28 = vld [vmem:[%s15846_s27 + $0xff4] sm:$0xf0]  ;;  %v11015_v55 = vor.u32 %v14564_v11, %v11014_v30  ;;  %v11511_v56 = vor.u32 %v14688_v51, %v11510_v13  ;;  %v11238_v34 = vld [vmem:[%s15846_s27 + $0xcc8] sm:$0xf] }
 0x2f0   : > { %8442 = vmatpush.bf16.msra.mxu1 %v10775_v2  ;;  %v14620_v48 = vld [vmem:[%s15846_s27 + $0xcd4] sm:$0xf0]  ;;  %v11366_v43 = vld [vmem:[%s15846_s27 + $0xdc8] sm:$0xf]  ;;  %v11639_v2 = vor.u32 %v14720_v28, %v11638_v40 }
 0x2f1   : > { %8455 = vmatpush.bf16.msra.mxu2 %v10903_v42  ;;  %v14652_v42 = vld [vmem:[%s15846_s27 + $0xdd4] sm:$0xf0]  ;;  %v11494_v41 = vld [vmem:[%s15846_s27 + $0xec8] sm:$0xf]  ;;  %v11239_v60 = vor.u32 %v14620_v48, %v11238_v34  ;;  %v18613_v34 = vld [vmem:[#allocation22_spill] sm:$0xff] }
 0x2f2   : > { %8468 = vmatpush.bf16.msra.mxu3 %v11031_v35  ;;  %v14684_v36 = vld [vmem:[%s15846_s27 + $0xed4] sm:$0xf0]  ;;  %v11622_v45 = vld [vmem:[%s15846_s27 + $0xfc8] sm:$0xf]  ;;  %v11367_v30 = vor.u32 %v14652_v42, %v11366_v43 }
 0x2f3   : > { %8430 = vmatpush.bf16.msra.mxu0 %v10631_v19  ;;  %v14716_v35 = vld [vmem:[%s15846_s27 + $0xfd4] sm:$0xf0]  ;;  %v11495_v11 = vor.u32 %v14684_v36, %v11494_v41  ;;  %v11222_v9 = vld [vmem:[%s15846_s27 + $0xca8] sm:$0xf]  ;;  %v17505_v41 = vpop.f32.mrf.mxu0 }
 0x2f4   : > { %8443 = vmatpush.bf16.msra.mxu1 %v10759_v47  ;;  %v14616_v38 = vld [vmem:[%s15846_s27 + $0xcb4] sm:$0xf0]  ;;  %v11350_v31 = vld [vmem:[%s15846_s27 + $0xda8] sm:$0xf]  ;;  %v11623_v19 = vor.u32 %v14716_v35, %v11622_v45 }
 0x2f5   : > { %8456 = vmatpush.bf16.msra.mxu2 %v10887_v52  ;;  %v14648_v7 = vld [vmem:[%s15846_s27 + $0xdb4] sm:$0xf0]  ;;  %v11478_v13 = vld [vmem:[%s15846_s27 + $0xea8] sm:$0xf]  ;;  %v11223_v47 = vor.u32 %v14616_v38, %v11222_v9 }
 0x2f6   : > { %8469 = vmatpush.bf16.msra.mxu3 %v11015_v55  ;;  %8431 = vmatmul.bf16.vlgmr.msra.gmra.mxu0 %v16111_v20  ;;  %v14680_v51 = vld [vmem:[%s15846_s27 + $0xeb4] sm:$0xf0]  ;;  %v11606_v43 = vld [vmem:[%s15846_s27 + $0xfa8] sm:$0xf]  ;;  %v11351_v52 = vor.u32 %v14648_v7, %v11350_v31 }
 0x2f7   : > { %8475 = vmatpush.bf16.msrb.mxu0 %v11255_v61  ;;  %8444 = vmatmul.bf16.vlgmr.msra.gmra.mxu1 %v16118_v25  ;;  %v14712_v48 = vld [vmem:[%s15846_s27 + $0xfb4] sm:$0xf0]  ;;  %v11479_v40 = vor.u32 %v14680_v51, %v11478_v13  ;;  %v11206_v28 = vld [vmem:[%s15846_s27 + $0xc88] sm:$0xf] }
 0x2f8   : > { %8488 = vmatpush.bf16.msrb.mxu1 %v11383_v23  ;;  %8457 = vmatmul.bf16.vlgmr.msra.gmra.mxu2 %v16116_v24  ;;  %v14612_v55 = vld [vmem:[%s15846_s27 + $0xc94] sm:$0xf0]  ;;  %v11334_v61 = vld [vmem:[%s15846_s27 + $0xd88] sm:$0xf]  ;;  %v11607_v23 = vor.u32 %v14712_v48, %v11606_v43 }
 0x2f9   : > { %8501 = vmatpush.bf16.msrb.mxu2 %v11511_v56  ;;  %8470 = vmatmul.bf16.vlgmr.msra.gmra.mxu3 %v18613_v34  ;;  %v14644_v56 = vld [vmem:[%s15846_s27 + $0xd94] sm:$0xf0]  ;;  %v11590_v36 = vld [vmem:[%s15846_s27 + $0xf88] sm:$0xf]  ;;  %v11207_v35 = vor.u32 %v14612_v55, %v11206_v28 }
 0x2fa   : > { %8514 = vmatpush.bf16.msrb.mxu3 %v11639_v2  ;;  %v11462_v2 = vld [vmem:[%s15846_s27 + $0xe88] sm:$0xf]  ;;  %v14676_v42 = vld [vmem:[%s15846_s27 + $0xe94] sm:$0xf0] }
 0x2fb   : > { %8476 = vmatpush.bf16.msrb.mxu0 %v11239_v60  ;;  %v14708_v45 = vld [vmem:[%s15846_s27 + $0xf94] sm:$0xf0]  ;;  %v17509_v60 = vpop.f32.mrf.mxu1  ;;  %v11190_v9 = vld [vmem:[%s15846_s27 + $0xc68] sm:$0xf] }
 0x2fc   : > { %8489 = vmatpush.bf16.msrb.mxu1 %v11367_v30  ;;  %v11335_v30 = vor.u32 %v14644_v56, %v11334_v61  ;;  %v14608_v38 = vld [vmem:[%s15846_s27 + $0xc74] sm:$0xf0]  ;;  %v11318_v31 = vld [vmem:[%s15846_s27 + $0xd68] sm:$0xf]  ;;  %v17522_v56 = vpop.f32.mrf.mxu2 }
 0x2fd   : > { %8502 = vmatpush.bf16.msrb.mxu2 %v11495_v11  ;;  %v11463_v11 = vor.u32 %v14676_v42, %v11462_v2  ;;  %v14640_v7 = vld [vmem:[%s15846_s27 + $0xd74] sm:$0xf0]  ;;  %v11446_v13 = vld [vmem:[%s15846_s27 + $0xe68] sm:$0xf] }
 0x2fe   : > { %8515 = vmatpush.bf16.msrb.mxu3 %v11623_v19  ;;  %v11591_v19 = vor.u32 %v14708_v45, %v11590_v36  ;;  %v14672_v51 = vld [vmem:[%s15846_s27 + $0xe74] sm:$0xf0]  ;;  %v11574_v43 = vld [vmem:[%s15846_s27 + $0xf68] sm:$0xf]  ;;  %v8173_v45 = vadd.f32 %v17429_v15, %v17377_v16 }
 0x2ff   : > { %8477 = vmatpush.bf16.msrb.mxu0 %v11223_v47  ;;  %v14704_v48 = vld [vmem:[%s15846_s27 + $0xf74] sm:$0xf0]  ;;  %v11191_v47 = vor.u32 %v14608_v38, %v11190_v9  ;;  %v11174_v28 = vld [vmem:[%s15846_s27 + $0xc48] sm:$0xf]  ;;  %v8226_v9 = vpop.f32.mrf.mxu0 }
 0x300   : > { %8490 = vmatpush.bf16.msrb.mxu1 %v11351_v52  ;;  %v11319_v52 = vor.u32 %v14640_v7, %v11318_v31  ;;  %v14604_v55 = vld [vmem:[%s15846_s27 + $0xc54] sm:$0xf0]  ;;  %v11302_v61 = vld [vmem:[%s15846_s27 + $0xd48] sm:$0xf] }
 0x301   : > { %8503 = vmatpush.bf16.msrb.mxu2 %v11479_v40  ;;  %v11447_v40 = vor.u32 %v14672_v51, %v11446_v13  ;;  %v14636_v2 = vld [vmem:[%s15846_s27 + $0xd54] sm:$0xf0]  ;;  %v11430_v42 = vld [vmem:[%s15846_s27 + $0xe48] sm:$0xf]  ;;  %v11175_v38 = vor.u32 %v14604_v55, %v11174_v28  ;;  %v8186_v28 = vadd.f32 %v17433_v6, %v8173_v45 }
 0x302   : > { %8516 = vmatpush.bf16.msrb.mxu3 %v11607_v23  ;;  %v11575_v23 = vor.u32 %v14704_v48, %v11574_v43  ;;  %v14668_v36 = vld [vmem:[%s15846_s27 + $0xe54] sm:$0xf0]  ;;  %v11158_v16 = vld [vmem:[%s15846_s27 + $0xc28] sm:$0xf] }
 0x303   : > { %8478 = vmatpush.bf16.msrb.mxu0 %v11207_v35  ;;  %v17529_v35 = vpop.f32.mrf.mxu3  ;;  %v8239_v31 = vpop.f32.mrf.mxu1  ;;  %v11431_v7 = vor.u32 %v14668_v36, %v11430_v42  ;;  %v14600_v15 = vld [vmem:[%s15846_s27 + $0xc34] sm:$0xf0]  ;;  %v11286_v13 = vld [vmem:[%s15846_s27 + $0xd28] sm:$0xf] }
 0x304   : > { %8491 = vmatpush.bf16.msrb.mxu1 %v11335_v30  ;;  %v11558_v30 = vld [vmem:[%s15846_s27 + $0xf48] sm:$0xf]  ;;  %v14632_v43 = vld [vmem:[%s15846_s27 + $0xd34] sm:$0xf0] }
 0x305   : > { %8504 = vmatpush.bf16.msrb.mxu2 %v11463_v11  ;;  %v14700_v11 = vld [vmem:[%s15846_s27 + $0xf54] sm:$0xf0]  ;;  %v11414_v48 = vld [vmem:[%s15846_s27 + $0xe28] sm:$0xf]  ;;  %v11287_v42 = vor.u32 %v14632_v43, %v11286_v13 }
 0x306   : > { %8517 = vmatpush.bf16.msrb.mxu3 %v11591_v19  ;;  %v11303_v19 = vor.u32 %v14636_v2, %v11302_v61  ;;  %v11559_v51 = vor.u32 %v14700_v11, %v11558_v30  ;;  %v11542_v55 = vld [vmem:[%s15846_s27 + $0xf28] sm:$0xf]  ;;  %v14596_v2 = vld [vmem:[%s15846_s27 + $0xc14] sm:$0xf0] }
 0x307   : > { %8479 = vmatpush.bf16.msrb.mxu0 %v11191_v47  ;;  %v14664_v47 = vld [vmem:[%s15846_s27 + $0xe34] sm:$0xf0]  ;;  %v11142_v61 = vld [vmem:[%s15846_s27 + $0xc08] sm:$0xf] }
 0x308   : > { %8492 = vmatpush.bf16.msrb.mxu1 %v11319_v52  ;;  %v14696_v52 = vld [vmem:[%s15846_s27 + $0xf34] sm:$0xf0]  ;;  %v11415_v36 = vor.u32 %v14664_v47, %v11414_v48  ;;  %v11270_v6 = vld [vmem:[%s15846_s27 + $0xd08] sm:$0xf]  ;;  %v11143_v13 = vor.u32 %v14596_v2, %v11142_v61 }
 0x309   : > { %8505 = vmatpush.bf16.msrb.mxu2 %v11447_v40  ;;  %v11159_v40 = vor.u32 %v14600_v15, %v11158_v16  ;;  %v14628_v45 = vld [vmem:[%s15846_s27 + $0xd14] sm:$0xf0]  ;;  %v11398_v30 = vld [vmem:[%s15846_s27 + $0xe08] sm:$0xf]  ;;  %v11543_v11 = vor.u32 %v14696_v52, %v11542_v55  ;;  %v8252_v16 = vpop.f32.mrf.mxu2 }
 0x30a   : > { %8518 = vmatpush.bf16.msrb.mxu3 %v11575_v23  ;;  %v8199_v23 = vadd.f32 %v17446_v46, %v8186_v28  ;;  %v14660_v9 = vld [vmem:[%s15846_s27 + $0xe14] sm:$0xf0]  ;;  %v11766_v46 = vld [vmem:[%s15846_s27 + $0x10e8] sm:$0xf]  ;;  %v11271_v28 = vor.u32 %v14628_v45, %v11270_v6 }
 0x30b   : > { %8480 = vmatpush.bf16.msrb.mxu0 %v11175_v38  ;;  %v11526_v38 = vld [vmem:[%s15846_s27 + $0xf08] sm:$0xf]  ;;  %v14692_v31 = vld [vmem:[%s15846_s27 + $0xf14] sm:$0xf0]  ;;  %v11399_v55 = vor.u32 %v14660_v9, %v11398_v30 }
 0x30c   : > { %8493 = vmatpush.bf16.msrb.mxu1 %v11303_v19  ;;  %v14752_v15 = vld [vmem:[%s15846_s27 + $0x10f4] sm:$0xf0]  ;;  %v11894_v19 = vld [vmem:[%s15846_s27 + $0x11e8] sm:$0xf] }
 0x30d   : > { %8506 = vmatpush.bf16.msrb.mxu2 %v11431_v7  ;;  %v8265_v7 = vpop.f32.mrf.mxu3  ;;  %v14784_v43 = vld [vmem:[%s15846_s27 + $0x11f4] sm:$0xf0]  ;;  %v12022_v48 = vld [vmem:[%s15846_s27 + $0x12e8] sm:$0xf]  ;;  %v11767_v61 = vor.u32 %v14752_v15, %v11766_v46 }
 0x30e   : > { %8519 = vmatpush.bf16.msrb.mxu3 %v11559_v51  ;;  %v14816_v47 = vld [vmem:[%s15846_s27 + $0x12f4] sm:$0xf0]  ;;  %v8212_v51 = vadd.f32 %v17451_v29, %v8199_v23  ;;  %v12150_v52 = vld [vmem:[%s15846_s27 + $0x13e8] sm:$0xf]  ;;  %v11895_v7 = vor.u32 %v14784_v43, %v11894_v19 }
 0x30f   : > { %8481 = vmatpush.bf16.msrb.mxu0 %v11159_v40  ;;  %v14848_v16 = vld [vmem:[%s15846_s27 + $0x13f4] sm:$0xf0]  ;;  %v11527_v40 = vor.u32 %v14692_v31, %v11526_v38  ;;  %v12023_v34 = vor.u32 %v14816_v47, %v12022_v48  ;;  %v11750_v25 = vld [vmem:[%s15846_s27 + $0x10c8] sm:$0xf] }
 0x310   : > { %8494 = vmatpush.bf16.msrb.mxu1 %v11287_v42  ;;  %v8225_v2 = vadd.f32 %v17505_v41, %v8212_v51  ;;  %v14748_v29 = vld [vmem:[%s15846_s27 + $0x10d4] sm:$0xf0]  ;;  %v11878_v23 = vld [vmem:[%s15846_s27 + $0x11c8] sm:$0xf]  ;;  %v12151_v42 = vor.u32 %v14848_v16, %v12150_v52 }
 0x311   : > { %8507 = vmatpush.bf16.msrb.mxu2 %v11415_v36  ;;  %v14780_v36 = vld [vmem:[%s15846_s27 + $0x11d4] sm:$0xf0]  ;;  %v12006_v6 = vld [vmem:[%s15846_s27 + $0x12c8] sm:$0xf]  ;;  %v11751_v41 = vor.u32 %v14748_v29, %v11750_v25 }
 0x312   : > { %8520 = vmatpush.bf16.msrb.mxu3 %v11543_v11  ;;  %v14812_v45 = vld [vmem:[%s15846_s27 + $0x12d4] sm:$0xf0]  ;;  %v12134_v30 = vld [vmem:[%s15846_s27 + $0x13c8] sm:$0xf]  ;;  %v8238_v9 = vadd.f32 %v17509_v60, %v8225_v2  ;;  %v11879_v38 = vor.u32 %v14780_v36, %v11878_v23 }
 0x313   : > { %8482 = vmatpush.bf16.msrb.mxu0 %v11143_v13  ;;  %v14844_v11 = vld [vmem:[%s15846_s27 + $0x13d4] sm:$0xf0]  ;;  %v12007_v31 = vor.u32 %v14812_v45, %v12006_v6  ;;  %v11734_v46 = vld [vmem:[%s15846_s27 + $0x10a8] sm:$0xf]  ;;  %v8276_v23 = vpop.f32.mrf.mxu0 }
 0x314   : > { %8495 = vmatpush.bf16.msrb.mxu1 %v11271_v28  ;;  %v14744_v15 = vld [vmem:[%s15846_s27 + $0x10b4] sm:$0xf0]  ;;  %v11862_v19 = vld [vmem:[%s15846_s27 + $0x11a8] sm:$0xf]  ;;  %v12135_v13 = vor.u32 %v14844_v11, %v12134_v30  ;;  %v8251_v60 = vadd.f32 %v17522_v56, %v8238_v9  ;;  %v8289_v45 = vpop.f32.mrf.mxu1 }
 0x315   : > { %8508 = vmatpush.bf16.msrb.mxu2 %v11399_v55  ;;  %v14776_v43 = vld [vmem:[%s15846_s27 + $0x11b4] sm:$0xf0]  ;;  %v11990_v48 = vld [vmem:[%s15846_s27 + $0x12a8] sm:$0xf]  ;;  %v11735_v51 = vor.u32 %v14744_v15, %v11734_v46 }
 0x316   : > { %8521 = vmatpush.bf16.msrb.mxu3 %v11527_v40  ;;  %8483 = vmatmul.bf16.vlgmr.msrb.gmra.mxu0 %v16191_v14  ;;  %v14808_v25 = vld [vmem:[%s15846_s27 + $0x12b4] sm:$0xf0]  ;;  %v11863_v28 = vor.u32 %v14776_v43, %v11862_v19  ;;  %v11718_v56 = vld [vmem:[%s15846_s27 + $0x1088] sm:$0xf]  ;;  %v8264_v29 = vadd.f32 %v17529_v35, %v8251_v60 }
 0x317   : > { %8527 = vmatpush.bf16.msra.mxu0 %v11767_v61  ;;  %8496 = vmatmul.bf16.vlgmr.msrb.gmra.mxu1 %v16198_v22  ;;  %v14840_v47 = vld [vmem:[%s15846_s27 + $0x13b4] sm:$0xf0]  ;;  %v11991_v55 = vor.u32 %v14808_v25, %v11990_v48  ;;  %v11846_v16 = vld [vmem:[%s15846_s27 + $0x1188] sm:$0xf] }
 0x318   : > { %8540 = vmatpush.bf16.msra.mxu1 %v11895_v7  ;;  %8509 = vmatmul.bf16.vlgmr.msrb.gmra.mxu2 %v16196_v21  ;;  %v14740_v52 = vld [vmem:[%s15846_s27 + $0x1094] sm:$0xf0]  ;;  %v11974_v2 = vld [vmem:[%s15846_s27 + $0x1288] sm:$0xf]  ;;  %v8277_v30 = vadd.f32 %v8276_v23, %v8264_v29 }
 0x319   : > { %8553 = vmatpush.bf16.msra.mxu2 %v12023_v34  ;;  %v12118_v34 = vld [vmem:[%s15846_s27 + $0x13a8] sm:$0xf]  ;;  %8522 = vmatmul.bf16.vlgmr.msrb.gmra.mxu3 %v16202_v27  ;;  %v14772_v61 = vld [vmem:[%s15846_s27 + $0x1194] sm:$0xf0]  ;;  %v11719_v6 = vor.u32 %v14740_v52, %v11718_v56 }
 0x31a   : > { %8566 = vmatpush.bf16.msra.mxu3 %v12151_v42  ;;  %v12119_v40 = vor.u32 %v14840_v47, %v12118_v34  ;;  %v14804_v7 = vld [vmem:[%s15846_s27 + $0x1294] sm:$0xf0]  ;;  %v12102_v42 = vld [vmem:[%s15846_s27 + $0x1388] sm:$0xf]  ;;  %v11847_v11 = vor.u32 %v14772_v61, %v11846_v16  ;;  %v8290_v25 = vadd.f32 %v8289_v45, %v8277_v30 }
 0x31b   : > { %8528 = vmatpush.bf16.msra.mxu0 %v11751_v41  ;;  %v14836_v36 = vld [vmem:[%s15846_s27 + $0x1394] sm:$0xf0]  ;;  %v11975_v41 = vor.u32 %v14804_v7, %v11974_v2  ;;  %v11702_v9 = vld [vmem:[%s15846_s27 + $0x1068] sm:$0xf]  ;;  %v8302_v56 = vpop.f32.mrf.mxu2  ;;  %v8278_v23 = vpop.f32.mrf.mxu0 }
 0x31c   : > { %8541 = vmatpush.bf16.msra.mxu1 %v11879_v38  ;;  %v14736_v38 = vld [vmem:[%s15846_s27 + $0x1074] sm:$0xf0]  ;;  %v11830_v35 = vld [vmem:[%s15846_s27 + $0x1168] sm:$0xf]  ;;  %v8303_v61 = vadd.f32 %v8302_v56, %v8290_v25  ;;  %v8315_v2 = vpop.f32.mrf.mxu3 }
 0x31d   : > { %8554 = vmatpush.bf16.msra.mxu2 %v12007_v31  ;;  %v12103_v31 = vor.u32 %v14836_v36, %v12102_v42  ;;  %v14768_v46 = vld [vmem:[%s15846_s27 + $0x1174] sm:$0xf0]  ;;  %v11958_v15 = vld [vmem:[%s15846_s27 + $0x1268] sm:$0xf]  ;;  %v11703_v48 = vor.u32 %v14736_v38, %v11702_v9  ;;  %v396_v42 = vld [vmem:[#allocation2] sm:$0xff] }
 0x31e   : > { %8567 = vmatpush.bf16.msra.mxu3 %v12135_v13  ;;  %v14800_v19 = vld [vmem:[%s15846_s27 + $0x1274] sm:$0xf0]  ;;  %v12086_v13 = vld [vmem:[%s15846_s27 + $0x1368] sm:$0xf]  ;;  %v11831_v60 = vor.u32 %v14768_v46, %v11830_v35  ;;  %v8316_v45 = vadd.f32 %v8315_v2, %v8303_v61 }
 0x31f   : > { %8529 = vmatpush.bf16.msra.mxu0 %v11735_v51  ;;  %v14832_v43 = vld [vmem:[%s15846_s27 + $0x1374] sm:$0xf0]  ;;  %v11959_v34 = vor.u32 %v14800_v19, %v11958_v15  ;;  %v11686_v47 = vld [vmem:[%s15846_s27 + $0x1048] sm:$0xf] }
 0x320   : > { %8542 = vmatpush.bf16.msra.mxu1 %v11863_v28  ;;  %v14732_v51 = vld [vmem:[%s15846_s27 + $0x1054] sm:$0xf0]  ;;  %v11814_v28 = vld [vmem:[%s15846_s27 + $0x1148] sm:$0xf]  ;;  %v9256_v19 = vadd.f32 %v8316_v45, %v396_v42 }
 0x321   : > { %8555 = vmatpush.bf16.msra.mxu2 %v11991_v55  ;;  %v12087_v55 = vor.u32 %v14832_v43, %v12086_v13  ;;  %v14764_v52 = vld [vmem:[%s15846_s27 + $0x1154] sm:$0xf0]  ;;  %v11942_v16 = vld [vmem:[%s15846_s27 + $0x1248] sm:$0xf]  ;;  %v11687_v36 = vor.u32 %v14732_v51, %v11686_v47 }
 0x322   : > { %8568 = vmatpush.bf16.msra.mxu3 %v12119_v40  ;;  %v14796_v40 = vld [vmem:[%s15846_s27 + $0x1254] sm:$0xf0]  ;;  %v12070_v7 = vld [vmem:[%s15846_s27 + $0x1348] sm:$0xf]  ;;  %v11815_v30 = vor.u32 %v14764_v52, %v11814_v28  ;;  %9260 = vst [vmem:[#allocation2] sm:$0xff] %v9256_v19 }
 0x323   : > { %8530 = vmatpush.bf16.msra.mxu0 %v11719_v6  ;;  %v14828_v29 = vld [vmem:[%s15846_s27 + $0x1354] sm:$0xf0]  ;;  %v8291_v6 = vpop.f32.mrf.mxu1  ;;  %v11798_v38 = vld [vmem:[%s15846_s27 + $0x1128] sm:$0xf]  ;;  %v8304_v61 = vpop.f32.mrf.mxu2 }
 0x324   : > { %8543 = vmatpush.bf16.msra.mxu1 %v11847_v11  ;;  %v11943_v11 = vor.u32 %v14796_v40, %v11942_v16  ;;  %v14728_v9 = vld [vmem:[%s15846_s27 + $0x1034] sm:$0xf0]  ;;  %v12071_v35 = vor.u32 %v14828_v29, %v12070_v7  ;;  %v11926_v46 = vld [vmem:[%s15846_s27 + $0x1228] sm:$0xf]  ;;  %v8317_v23 = vpop.f32.mrf.mxu3 }
 0x325   : > { %8556 = vmatpush.bf16.msra.mxu2 %v11975_v41  ;;  %v11670_v41 = vld [vmem:[%s15846_s27 + $0x1028] sm:$0xf]  ;;  %v14792_v15 = vld [vmem:[%s15846_s27 + $0x1234] sm:$0xf0] }
 0x326   : > { %8569 = vmatpush.bf16.msra.mxu3 %v12103_v31  ;;  %v14760_v31 = vld [vmem:[%s15846_s27 + $0x1134] sm:$0xf0]  ;;  %v12054_v13 = vld [vmem:[%s15846_s27 + $0x1328] sm:$0xf]  ;;  %v11927_v51 = vor.u32 %v14792_v15, %v11926_v46 }
 0x327   : > { %8531 = vmatpush.bf16.msra.mxu0 %v11703_v48  ;;  %v14824_v43 = vld [vmem:[%s15846_s27 + $0x1334] sm:$0xf0]  ;;  %v11671_v48 = vor.u32 %v14728_v9, %v11670_v41  ;;  %v11654_v25 = vld [vmem:[%s15846_s27 + $0x1008] sm:$0xf]  ;;  %v11799_v47 = vor.u32 %v14760_v31, %v11798_v38 }
 0x328   : > { %8544 = vmatpush.bf16.msra.mxu1 %v11831_v60  ;;  %v14724_v60 = vld [vmem:[%s15846_s27 + $0x1014] sm:$0xf0]  ;;  %v12055_v56 = vor.u32 %v14824_v43, %v12054_v13  ;;  %v12038_v16 = vld [vmem:[%s15846_s27 + $0x1308] sm:$0xf] }
 0x329   : > { %8557 = vmatpush.bf16.msra.mxu2 %v11959_v34  ;;  %v11782_v34 = vld [vmem:[%s15846_s27 + $0x1108] sm:$0xf]  ;;  %v14756_v28 = vld [vmem:[%s15846_s27 + $0x1114] sm:$0xf0]  ;;  %v11655_v42 = vor.u32 %v14724_v60, %v11654_v25 }
 0x32a   : > { %8570 = vmatpush.bf16.msra.mxu3 %v12087_v55  ;;  %v11910_v55 = vld [vmem:[%s15846_s27 + $0x1208] sm:$0xf]  ;;  %v14788_v52 = vld [vmem:[%s15846_s27 + $0x1214] sm:$0xf0] }
 0x32b   : > { %8532 = vmatpush.bf16.msra.mxu0 %v11687_v36  ;;  %v14820_v40 = vld [vmem:[%s15846_s27 + $0x1314] sm:$0xf0]  ;;  %v12278_v2 = vld [vmem:[%s15846_s27 + $0x14e8] sm:$0xf] }
 0x32c   : > { %8545 = vmatpush.bf16.msra.mxu1 %v11815_v30  ;;  %v14880_v7 = vld [vmem:[%s15846_s27 + $0x14f4] sm:$0xf0]  ;;  %v12406_v29 = vld [vmem:[%s15846_s27 + $0x15e8] sm:$0xf]  ;;  %v11783_v30 = vor.u32 %v14756_v28, %v11782_v34  ;;  %v12039_v38 = vor.u32 %v14820_v40, %v12038_v16 }
 0x32d   : > { %8558 = vmatpush.bf16.msra.mxu2 %v11943_v11  ;;  %v14912_v36 = vld [vmem:[%s15846_s27 + $0x15f4] sm:$0xf0]  ;;  %v12534_v6 = vld [vmem:[%s15846_s27 + $0x16e8] sm:$0xf]  ;;  %v11911_v11 = vor.u32 %v14788_v52, %v11910_v55 }
 0x32e   : > { %8571 = vmatpush.bf16.msra.mxu3 %v12071_v35  ;;  %v14944_v45 = vld [vmem:[%s15846_s27 + $0x16f4] sm:$0xf0]  ;;  %v12662_v41 = vld [vmem:[%s15846_s27 + $0x17e8] sm:$0xf]  ;;  %v12279_v35 = vor.u32 %v14880_v7, %v12278_v2  ;;  %v12407_v31 = vor.u32 %v14912_v36, %v12406_v29 }
 0x32f   : > { %8533 = vmatpush.bf16.msra.mxu0 %v11671_v48  ;;  %v14976_v9 = vld [vmem:[%s15846_s27 + $0x17f4] sm:$0xf0]  ;;  %v12535_v46 = vor.u32 %v14944_v45, %v12534_v6  ;;  %v12262_v15 = vld [vmem:[%s15846_s27 + $0x14c8] sm:$0xf] }
 0x330   : > { %8546 = vmatpush.bf16.msra.mxu1 %v11799_v47  ;;  %v14876_v19 = vld [vmem:[%s15846_s27 + $0x14d4] sm:$0xf0]  ;;  %v12390_v13 = vld [vmem:[%s15846_s27 + $0x15c8] sm:$0xf]  ;;  %v12663_v43 = vor.u32 %v14976_v9, %v12662_v41 }
 0x331   : > { %8559 = vmatpush.bf16.msra.mxu2 %v11927_v51  ;;  %v14908_v48 = vld [vmem:[%s15846_s27 + $0x15d4] sm:$0xf0]  ;;  %v12518_v25 = vld [vmem:[%s15846_s27 + $0x16c8] sm:$0xf]  ;;  %v12263_v51 = vor.u32 %v14876_v19, %v12262_v15 }
 0x332   : > { %8572 = vmatpush.bf16.msra.mxu3 %v12055_v56  ;;  %v14940_v60 = vld [vmem:[%s15846_s27 + $0x16d4] sm:$0xf0]  ;;  %v12646_v34 = vld [vmem:[%s15846_s27 + $0x17c8] sm:$0xf]  ;;  %v12391_v28 = vor.u32 %v14908_v48, %v12390_v13 }
 0x333   : > { %8534 = vmatpush.bf16.msra.mxu0 %v11655_v42  ;;  %v14972_v47 = vld [vmem:[%s15846_s27 + $0x17d4] sm:$0xf0]  ;;  %v12519_v55 = vor.u32 %v14940_v60, %v12518_v25  ;;  %v12246_v56 = vld [vmem:[%s15846_s27 + $0x14a8] sm:$0xf]  ;;  %v8328_v19 = vpop.f32.mrf.mxu0 }
 0x334   : > { %8547 = vmatpush.bf16.msra.mxu1 %v11783_v30  ;;  %v14872_v52 = vld [vmem:[%s15846_s27 + $0x14b4] sm:$0xf0]  ;;  %v12374_v16 = vld [vmem:[%s15846_s27 + $0x15a8] sm:$0xf]  ;;  %v12647_v40 = vor.u32 %v14972_v47, %v12646_v34  ;;  %v8341_v34 = vpop.f32.mrf.mxu1 }
 0x335   : > { %8560 = vmatpush.bf16.msra.mxu2 %v11911_v11  ;;  %v14904_v61 = vld [vmem:[%s15846_s27 + $0x15b4] sm:$0xf0]  ;;  %v12502_v2 = vld [vmem:[%s15846_s27 + $0x16a8] sm:$0xf]  ;;  %v12247_v42 = vor.u32 %v14872_v52, %v12246_v56  ;;  %v8342_v56 = vadd.f32 %v8341_v34, %v8328_v19 }
 0x336   : > { %8573 = vmatpush.bf16.msra.mxu3 %v12039_v38  ;;  %8535 = vmatmul.bf16.vlgmr.msra.gmra.mxu0 %v16271_v26  ;;  %v14936_v7 = vld [vmem:[%s15846_s27 + $0x16b4] sm:$0xf0]  ;;  %v12630_v29 = vld [vmem:[%s15846_s27 + $0x17a8] sm:$0xf]  ;;  %v12375_v36 = vor.u32 %v14904_v61, %v12374_v16 }
 0x337   : > { %8579 = vmatpush.bf16.msrb.mxu0 %v12279_v35  ;;  %8548 = vmatmul.bf16.vlgmr.msra.gmra.mxu1 %v16278_v33  ;;  %v14968_v23 = vld [vmem:[%s15846_s27 + $0x17b4] sm:$0xf0]  ;;  %v12503_v6 = vor.u32 %v14936_v7, %v12502_v2  ;;  %v12230_v45 = vld [vmem:[%s15846_s27 + $0x1488] sm:$0xf] }
 0x338   : > { %8592 = vmatpush.bf16.msrb.mxu1 %v12407_v31  ;;  %8561 = vmatmul.bf16.vlgmr.msra.gmra.mxu2 %v16276_v32  ;;  %v14868_v30 = vld [vmem:[%s15846_s27 + $0x1494] sm:$0xf0]  ;;  %v12358_v11 = vld [vmem:[%s15846_s27 + $0x1588] sm:$0xf]  ;;  %v12631_v41 = vor.u32 %v14968_v23, %v12630_v29 }
 0x339   : > { %8605 = vmatpush.bf16.msrb.mxu2 %v12535_v46  ;;  %8574 = vmatmul.bf16.vlgmr.msra.gmra.mxu3 %v16282_v37  ;;  %v14900_v9 = vld [vmem:[%s15846_s27 + $0x1594] sm:$0xf0]  ;;  %v12486_v38 = vld [vmem:[%s15846_s27 + $0x1688] sm:$0xf]  ;;  %v12231_v15 = vor.u32 %v14868_v30, %v12230_v45 }
 0x33a   : > { %8618 = vmatpush.bf16.msrb.mxu3 %v12663_v43  ;;  %v14932_v35 = vld [vmem:[%s15846_s27 + $0x1694] sm:$0xf0]  ;;  %v12614_v31 = vld [vmem:[%s15846_s27 + $0x1788] sm:$0xf]  ;;  %v12359_v13 = vor.u32 %v14900_v9, %v12358_v11 }
 0x33b   : > { %8580 = vmatpush.bf16.msrb.mxu0 %v12263_v51  ;;  %v14964_v46 = vld [vmem:[%s15846_s27 + $0x1794] sm:$0xf0]  ;;  %v12487_v43 = vor.u32 %v14932_v35, %v12486_v38  ;;  %v12214_v48 = vld [vmem:[%s15846_s27 + $0x1468] sm:$0xf] }
 0x33c   : > { %8593 = vmatpush.bf16.msrb.mxu1 %v12391_v28  ;;  %v14864_v25 = vld [vmem:[%s15846_s27 + $0x1474] sm:$0xf0]  ;;  %v12342_v60 = vld [vmem:[%s15846_s27 + $0x1568] sm:$0xf]  ;;  %v12615_v47 = vor.u32 %v14964_v46, %v12614_v31  ;;  %v8330_v46 = vpop.f32.mrf.mxu0 }
 0x33d   : > { %8606 = vmatpush.bf16.msrb.mxu2 %v12519_v55  ;;  %v14896_v51 = vld [vmem:[%s15846_s27 + $0x1574] sm:$0xf0]  ;;  %v12470_v28 = vld [vmem:[%s15846_s27 + $0x1668] sm:$0xf] }
 0x33e   : > { %8619 = vmatpush.bf16.msrb.mxu3 %v12647_v40  ;;  %v14928_v55 = vld [vmem:[%s15846_s27 + $0x1674] sm:$0xf0]  ;;  %v12598_v52 = vld [vmem:[%s15846_s27 + $0x1768] sm:$0xf]  ;;  %v12215_v40 = vor.u32 %v14864_v25, %v12214_v48  ;;  %v12343_v61 = vor.u32 %v14896_v51, %v12342_v60  ;;  %v8343_v25 = vpop.f32.mrf.mxu1 }
 0x33f   : > { %8581 = vmatpush.bf16.msrb.mxu0 %v12247_v42  ;;  %v14960_v16 = vld [vmem:[%s15846_s27 + $0x1774] sm:$0xf0]  ;;  %v12471_v2 = vor.u32 %v14928_v55, %v12470_v28  ;;  %v12198_v7 = vld [vmem:[%s15846_s27 + $0x1448] sm:$0xf]  ;;  %v8354_v42 = vpop.f32.mrf.mxu2 }
 0x340   : > { %8594 = vmatpush.bf16.msrb.mxu1 %v12375_v36  ;;  %v14860_v29 = vld [vmem:[%s15846_s27 + $0x1454] sm:$0xf0]  ;;  %v12326_v23 = vld [vmem:[%s15846_s27 + $0x1548] sm:$0xf]  ;;  %v12599_v36 = vor.u32 %v14960_v16, %v12598_v52  ;;  %v8355_v11 = vadd.f32 %v8354_v42, %v8342_v56 }
 0x341   : > { %8607 = vmatpush.bf16.msrb.mxu2 %v12503_v6  ;;  %v14892_v6 = vld [vmem:[%s15846_s27 + $0x1554] sm:$0xf0]  ;;  %v12454_v45 = vld [vmem:[%s15846_s27 + $0x1648] sm:$0xf]  ;;  %v12199_v35 = vor.u32 %v14860_v29, %v12198_v7 }
 0x342   : > { %8620 = vmatpush.bf16.msrb.mxu3 %v12631_v41  ;;  %v14924_v30 = vld [vmem:[%s15846_s27 + $0x1654] sm:$0xf0]  ;;  %v8367_v41 = vpop.f32.mrf.mxu3  ;;  %v12582_v9 = vld [vmem:[%s15846_s27 + $0x1748] sm:$0xf] }
 0x343   : > { %8582 = vmatpush.bf16.msrb.mxu0 %v12231_v15  ;;  %v14956_v38 = vld [vmem:[%s15846_s27 + $0x1754] sm:$0xf0]  ;;  %v17676_v31 = vadd.f32 %v8367_v41, %v8355_v11  ;;  %v12327_v15 = vor.u32 %v14892_v6, %v12326_v23  ;;  %v12455_v19 = vor.u32 %v14924_v30, %v12454_v45  ;;  %v12310_v48 = vld [vmem:[%s15846_s27 + $0x1528] sm:$0xf] }
 0x344   : > { %8595 = vmatpush.bf16.msrb.mxu1 %v12359_v13  ;;  %v12182_v13 = vld [vmem:[%s15846_s27 + $0x1428] sm:$0xf]  ;;  %v12583_v60 = vor.u32 %v14956_v38, %v12582_v9  ;;  %v14888_v34 = vld [vmem:[%s15846_s27 + $0x1534] sm:$0xf0] }
 0x345   : > { %8608 = vmatpush.bf16.msrb.mxu2 %v12487_v43  ;;  %v14856_v43 = vld [vmem:[%s15846_s27 + $0x1434] sm:$0xf0]  ;;  %v12566_v28 = vld [vmem:[%s15846_s27 + $0x1728] sm:$0xf] }
 0x346   : > { %8621 = vmatpush.bf16.msrb.mxu3 %v12615_v47  ;;  %v12438_v47 = vld [vmem:[%s15846_s27 + $0x1628] sm:$0xf]  ;;  %v14920_v51 = vld [vmem:[%s15846_s27 + $0x1634] sm:$0xf0]  ;;  %v12183_v56 = vor.u32 %v14856_v43, %v12182_v13 }
 0x347   : > { %8583 = vmatpush.bf16.msrb.mxu0 %v12215_v40  ;;  %v14952_v55 = vld [vmem:[%s15846_s27 + $0x1734] sm:$0xf0]  ;;  %v12166_v52 = vld [vmem:[%s15846_s27 + $0x1408] sm:$0xf]  ;;  %v12311_v40 = vor.u32 %v14888_v34, %v12310_v48  ;;  %v8356_v23 = vpop.f32.mrf.mxu2 }
 0x348   : > { %8596 = vmatpush.bf16.msrb.mxu1 %v12343_v61  ;;  %v14852_v16 = vld [vmem:[%s15846_s27 + $0x1414] sm:$0xf0]  ;;  %v12439_v61 = vor.u32 %v14920_v51, %v12438_v47  ;;  %v12422_v29 = vld [vmem:[%s15846_s27 + $0x1608] sm:$0xf]  ;;  %v12567_v42 = vor.u32 %v14952_v55, %v12566_v28 }
 0x349   : > { %8609 = vmatpush.bf16.msrb.mxu2 %v12471_v2  ;;  %v12294_v2 = vld [vmem:[%s15846_s27 + $0x1508] sm:$0xf]  ;;  %v14884_v7 = vld [vmem:[%s15846_s27 + $0x1514] sm:$0xf0]  ;;  %v12167_v38 = vor.u32 %v14852_v16, %v12166_v52 }
 0x34a   : > { %8622 = vmatpush.bf16.msrb.mxu3 %v12599_v36  ;;  %v14916_v36 = vld [vmem:[%s15846_s27 + $0x1614] sm:$0xf0]  ;;  %v12550_v6 = vld [vmem:[%s15846_s27 + $0x1708] sm:$0xf]  ;;  %v8369_v30 = vpop.f32.mrf.mxu3 }
 0x34b   : > { %8584 = vmatpush.bf16.msrb.mxu0 %v12199_v35  ;;  %v14948_v45 = vld [vmem:[%s15846_s27 + $0x1714] sm:$0xf0]  ;;  %v12790_v11 = vld [vmem:[%s15846_s27 + $0x18e8] sm:$0xf]  ;;  %v12423_v13 = vor.u32 %v14916_v36, %v12422_v29 }
 0x34c   : > { %8597 = vmatpush.bf16.msrb.mxu1 %v12327_v15  ;;  %v15008_v41 = vld [vmem:[%s15846_s27 + $0x18f4] sm:$0xf0]  ;;  %v12918_v9 = vld [vmem:[%s15846_s27 + $0x19e8] sm:$0xf]  ;;  %v12551_v25 = vor.u32 %v14948_v45, %v12550_v6 }
 0x34d   : > { %8610 = vmatpush.bf16.msrb.mxu2 %v12455_v19  ;;  %v15040_v35 = vld [vmem:[%s15846_s27 + $0x19f4] sm:$0xf0]  ;;  %v13046_v46 = vld [vmem:[%s15846_s27 + $0x1ae8] sm:$0xf]  ;;  %v12295_v19 = vor.u32 %v14884_v7, %v12294_v2 }
 0x34e   : > { %8623 = vmatpush.bf16.msrb.mxu3 %v12583_v60  ;;  %v15072_v15 = vld [vmem:[%s15846_s27 + $0x1af4] sm:$0xf0]  ;;  %v13174_v43 = vld [vmem:[%s15846_s27 + $0x1be8] sm:$0xf]  ;;  %v12791_v60 = vor.u32 %v15008_v41, %v12790_v11  ;;  %v12919_v34 = vor.u32 %v15040_v35, %v12918_v9 }
 0x34f   : > { %8585 = vmatpush.bf16.msrb.mxu0 %v12183_v56  ;;  %v15104_v48 = vld [vmem:[%s15846_s27 + $0x1bf4] sm:$0xf0]  ;;  %v13047_v47 = vor.u32 %v15072_v15, %v13046_v46  ;;  %v12774_v51 = vld [vmem:[%s15846_s27 + $0x18c8] sm:$0xf] }
 0x350   : > { %8598 = vmatpush.bf16.msrb.mxu1 %v12311_v40  ;;  %v15004_v28 = vld [vmem:[%s15846_s27 + $0x18d4] sm:$0xf0]  ;;  %v12902_v55 = vld [vmem:[%s15846_s27 + $0x19c8] sm:$0xf]  ;;  %v13175_v56 = vor.u32 %v15104_v48, %v13174_v43 }
 0x351   : > { %8611 = vmatpush.bf16.msrb.mxu2 %v12439_v61  ;;  %v15036_v52 = vld [vmem:[%s15846_s27 + $0x19d4] sm:$0xf0]  ;;  %v13030_v16 = vld [vmem:[%s15846_s27 + $0x1ac8] sm:$0xf]  ;;  %v12775_v7 = vor.u32 %v15004_v28, %v12774_v51 }
 0x352   : > { %8624 = vmatpush.bf16.msrb.mxu3 %v12567_v42  ;;  %v15068_v40 = vld [vmem:[%s15846_s27 + $0x1ad4] sm:$0xf0]  ;;  %v13158_v61 = vld [vmem:[%s15846_s27 + $0x1bc8] sm:$0xf]  ;;  %v12903_v29 = vor.u32 %v15036_v52, %v12902_v55 }
 0x353   : > { %8586 = vmatpush.bf16.msrb.mxu0 %v12167_v38  ;;  %v15100_v2 = vld [vmem:[%s15846_s27 + $0x1bd4] sm:$0xf0]  ;;  %v13031_v23 = vor.u32 %v15068_v40, %v13030_v16  ;;  %v12758_v42 = vld [vmem:[%s15846_s27 + $0x18a8] sm:$0xf]  ;;  %v8380_v55 = vpop.f32.mrf.mxu0 }
 0x354   : > { %8599 = vmatpush.bf16.msrb.mxu1 %v12295_v19  ;;  %v15000_v36 = vld [vmem:[%s15846_s27 + $0x18b4] sm:$0xf0]  ;;  %v12886_v6 = vld [vmem:[%s15846_s27 + $0x19a8] sm:$0xf]  ;;  %v13159_v45 = vor.u32 %v15100_v2, %v13158_v61  ;;  %v8381_v2 = vadd.f32 %v8380_v55, %v17676_v31 }
 0x355   : > { %8612 = vmatpush.bf16.msrb.mxu2 %v12423_v13  ;;  %v15032_v30 = vld [vmem:[%s15846_s27 + $0x19b4] sm:$0xf0]  ;;  %v13014_v11 = vld [vmem:[%s15846_s27 + $0x1aa8] sm:$0xf]  ;;  %v12759_v35 = vor.u32 %v15000_v36, %v12758_v42 }
 0x356   : > { %8625 = vmatpush.bf16.msrb.mxu3 %v12551_v25  ;;  %8587 = vmatmul.bf16.vlgmr.msrb.gmra.mxu0 %v16353_v59  ;;  %v15064_v41 = vld [vmem:[%s15846_s27 + $0x1ab4] sm:$0xf0]  ;;  %v13142_v9 = vld [vmem:[%s15846_s27 + $0x1ba8] sm:$0xf]  ;;  %v12887_v46 = vor.u32 %v15032_v30, %v12886_v6 }
 0x357   : > { %8631 = vmatpush.bf16.msra.mxu0 %v12791_v60  ;;  %8600 = vmatmul.bf16.vlgmr.msrb.gmra.mxu1 %v16360_v1  ;;  %v15096_v38 = vld [vmem:[%s15846_s27 + $0x1bb4] sm:$0xf0]  ;;  %v13015_v15 = vor.u32 %v15064_v41, %v13014_v11  ;;  %v12742_v19 = vld [vmem:[%s15846_s27 + $0x1888] sm:$0xf] }
 0x358   : > { %8644 = vmatpush.bf16.msra.mxu1 %v12919_v34  ;;  %8613 = vmatmul.bf16.vlgmr.msrb.gmra.mxu2 %v16358_v63  ;;  %v14996_v13 = vld [vmem:[%s15846_s27 + $0x1894] sm:$0xf0]  ;;  %v12870_v43 = vld [vmem:[%s15846_s27 + $0x1988] sm:$0xf]  ;;  %v13143_v48 = vor.u32 %v15096_v38, %v13142_v9 }
 0x359   : > { %8657 = vmatpush.bf16.msra.mxu2 %v13047_v47  ;;  %8626 = vmatmul.bf16.vlgmr.msrb.gmra.mxu3 %v16364_v5  ;;  %v15028_v25 = vld [vmem:[%s15846_s27 + $0x1994] sm:$0xf0]  ;;  %v12998_v60 = vld [vmem:[%s15846_s27 + $0x1a88] sm:$0xf]  ;;  %v12743_v28 = vor.u32 %v14996_v13, %v12742_v19 }
 0x35a   : > { %8670 = vmatpush.bf16.msra.mxu3 %v13175_v56  ;;  %v15060_v34 = vld [vmem:[%s15846_s27 + $0x1a94] sm:$0xf0]  ;;  %v13126_v47 = vld [vmem:[%s15846_s27 + $0x1b88] sm:$0xf]  ;;  %v12871_v56 = vor.u32 %v15028_v25, %v12870_v43 }
 0x35b   : > { %8632 = vmatpush.bf16.msra.mxu0 %v12775_v7  ;;  %v15092_v51 = vld [vmem:[%s15846_s27 + $0x1b94] sm:$0xf0]  ;;  %v12999_v52 = vor.u32 %v15060_v34, %v12998_v60  ;;  %v12726_v16 = vld [vmem:[%s15846_s27 + $0x1868] sm:$0xf]  ;;  %v8393_v7 = vpop.f32.mrf.mxu1 }
 0x35c   : > { %8645 = vmatpush.bf16.msra.mxu1 %v12903_v29  ;;  %v14992_v40 = vld [vmem:[%s15846_s27 + $0x1874] sm:$0xf0]  ;;  %v12854_v61 = vld [vmem:[%s15846_s27 + $0x1968] sm:$0xf]  ;;  %v13127_v29 = vor.u32 %v15092_v51, %v13126_v47  ;;  %v8394_v30 = vadd.f32 %v8393_v7, %v8381_v2  ;;  %v8419_v25 = vpop.f32.mrf.mxu3 }
 0x35d   : > { %8658 = vmatpush.bf16.msra.mxu2 %v13031_v23  ;;  %v15024_v23 = vld [vmem:[%s15846_s27 + $0x1974] sm:$0xf0]  ;;  %v12982_v42 = vld [vmem:[%s15846_s27 + $0x1a68] sm:$0xf]  ;;  %v12727_v11 = vor.u32 %v14992_v40, %v12726_v16 }
 0x35e   : > { %8671 = vmatpush.bf16.msra.mxu3 %v13159_v45  ;;  %v15056_v36 = vld [vmem:[%s15846_s27 + $0x1a74] sm:$0xf0]  ;;  %v13110_v6 = vld [vmem:[%s15846_s27 + $0x1b68] sm:$0xf]  ;;  %v12855_v31 = vor.u32 %v15024_v23, %v12854_v61 }
 0x35f   : > { %8633 = vmatpush.bf16.msra.mxu0 %v12759_v35  ;;  %v15088_v45 = vld [vmem:[%s15846_s27 + $0x1b74] sm:$0xf0]  ;;  %v12983_v41 = vor.u32 %v15056_v36, %v12982_v42  ;;  %v12710_v9 = vld [vmem:[%s15846_s27 + $0x1848] sm:$0xf] }
 0x360   : > { %8646 = vmatpush.bf16.msra.mxu1 %v12887_v46  ;;  %v14988_v38 = vld [vmem:[%s15846_s27 + $0x1854] sm:$0xf0]  ;;  %v12838_v35 = vld [vmem:[%s15846_s27 + $0x1948] sm:$0xf]  ;;  %v8406_v46 = vpop.f32.mrf.mxu2 }
 0x361   : > { %8659 = vmatpush.bf16.msra.mxu2 %v13015_v15  ;;  %v13111_v15 = vor.u32 %v15088_v45, %v13110_v6  ;;  %v15020_v19 = vld [vmem:[%s15846_s27 + $0x1954] sm:$0xf0]  ;;  %v12966_v13 = vld [vmem:[%s15846_s27 + $0x1a48] sm:$0xf]  ;;  %v12711_v47 = vor.u32 %v14988_v38, %v12710_v9 }
 0x362   : > { %8672 = vmatpush.bf16.msra.mxu3 %v13143_v48  ;;  %v15052_v43 = vld [vmem:[%s15846_s27 + $0x1a54] sm:$0xf0]  ;;  %v8407_v48 = vadd.f32 %v8406_v46, %v8394_v30  ;;  %v13094_v60 = vld [vmem:[%s15846_s27 + $0x1b48] sm:$0xf]  ;;  %v12839_v55 = vor.u32 %v15020_v19, %v12838_v35 }
 0x363   : > { %8634 = vmatpush.bf16.msra.mxu0 %v12743_v28  ;;  %v15084_v34 = vld [vmem:[%s15846_s27 + $0x1b54] sm:$0xf0]  ;;  %v8382_v28 = vpop.f32.mrf.mxu0  ;;  %v12822_v40 = vld [vmem:[%s15846_s27 + $0x1928] sm:$0xf]  ;;  %v8395_v61 = vpop.f32.mrf.mxu1 }
 0x364   : > { %8647 = vmatpush.bf16.msra.mxu1 %v12871_v56  ;;  %v17747_v51 = vadd.f32 %v8419_v25, %v8407_v48  ;;  %v12967_v56 = vor.u32 %v15052_v43, %v12966_v13  ;;  %v14984_v16 = vld [vmem:[%s15846_s27 + $0x1834] sm:$0xf0]  ;;  %v13095_v2 = vor.u32 %v15084_v34, %v13094_v60  ;;  %v13078_v42 = vld [vmem:[%s15846_s27 + $0x1b28] sm:$0xf]  ;;  %v8421_v43 = vpop.f32.mrf.mxu3 }
 0x365   : > { %8660 = vmatpush.bf16.msra.mxu2 %v12999_v52  ;;  %v12694_v52 = vld [vmem:[%s15846_s27 + $0x1828] sm:$0xf]  ;;  %v15016_v7 = vld [vmem:[%s15846_s27 + $0x1934] sm:$0xf0] }
 0x366   : > { %8673 = vmatpush.bf16.msra.mxu3 %v13127_v29  ;;  %v12950_v29 = vld [vmem:[%s15846_s27 + $0x1a28] sm:$0xf]  ;;  %v15048_v23 = vld [vmem:[%s15846_s27 + $0x1a34] sm:$0xf0]  ;;  %v12695_v6 = vor.u32 %v14984_v16, %v12694_v52 }
 0x367   : > { %8635 = vmatpush.bf16.msra.mxu0 %v12727_v11  ;;  %v15080_v36 = vld [vmem:[%s15846_s27 + $0x1b34] sm:$0xf0]  ;;  %v12678_v45 = vld [vmem:[%s15846_s27 + $0x1808] sm:$0xf]  ;;  %v12823_v11 = vor.u32 %v15016_v7, %v12822_v40 }
 0x368   : > { %8648 = vmatpush.bf16.msra.mxu1 %v12855_v31  ;;  %v14980_v30 = vld [vmem:[%s15846_s27 + $0x1814] sm:$0xf0]  ;;  %v12951_v31 = vor.u32 %v15048_v23, %v12950_v29  ;;  %v12934_v38 = vld [vmem:[%s15846_s27 + $0x1a08] sm:$0xf]  ;;  %v8408_v35 = vpop.f32.mrf.mxu2  ;;  %v13079_v46 = vor.u32 %v15080_v36, %v13078_v42 }
 0x369   : > { %8661 = vmatpush.bf16.msra.mxu2 %v12983_v41  ;;  %v12806_v41 = vld [vmem:[%s15846_s27 + $0x1908] sm:$0xf]  ;;  %v15012_v9 = vld [vmem:[%s15846_s27 + $0x1914] sm:$0xf0]  ;;  %v12679_v34 = vor.u32 %v14980_v30, %v12678_v45 }
 0x36a   : > { %8674 = vmatpush.bf16.msra.mxu3 %v13111_v15  ;;  %v15044_v15 = vld [vmem:[%s15846_s27 + $0x1a14] sm:$0xf0]  ;;  %v13062_v19 = vld [vmem:[%s15846_s27 + $0x1b08] sm:$0xf] }
 0x36b   : > { %8636 = vmatpush.bf16.msra.mxu0 %v12711_v47  ;;  %v15076_v13 = vld [vmem:[%s15846_s27 + $0x1b14] sm:$0xf0]  ;;  %v13302_v48 = vld [vmem:[%s15846_s27 + $0x1ce8] sm:$0xf]  ;;  %v12935_v52 = vor.u32 %v15044_v15, %v12934_v38 }
 0x36c   : > { %8649 = vmatpush.bf16.msra.mxu1 %v12839_v55  ;;  %v15136_v25 = vld [vmem:[%s15846_s27 + $0x1cf4] sm:$0xf0]  ;;  %v13430_v60 = vld [vmem:[%s15846_s27 + $0x1de8] sm:$0xf]  ;;  %v13063_v61 = vor.u32 %v15076_v13, %v13062_v19 }
 0x36d   : > { %8662 = vmatpush.bf16.msra.mxu2 %v12967_v56  ;;  %v15168_v47 = vld [vmem:[%s15846_s27 + $0x1df4] sm:$0xf0]  ;;  %v13558_v28 = vld [vmem:[%s15846_s27 + $0x1ee8] sm:$0xf]  ;;  %v12807_v56 = vor.u32 %v15012_v9, %v12806_v41 }
 0x36e   : > { %8675 = vmatpush.bf16.msra.mxu3 %v13095_v2  ;;  %v15200_v55 = vld [vmem:[%s15846_s27 + $0x1ef4] sm:$0xf0]  ;;  %v13686_v16 = vld [vmem:[%s15846_s27 + $0x1fe8] sm:$0xf]  ;;  %v13303_v2 = vor.u32 %v15136_v25, %v13302_v48  ;;  %v13431_v7 = vor.u32 %v15168_v47, %v13430_v60 }
 0x36f   : > { %8637 = vmatpush.bf16.msra.mxu0 %v12695_v6  ;;  %v15232_v40 = vld [vmem:[%s15846_s27 + $0x1ff4] sm:$0xf0]  ;;  %v13559_v29 = vor.u32 %v15200_v55, %v13558_v28  ;;  %v13286_v23 = vld [vmem:[%s15846_s27 + $0x1cc8] sm:$0xf] }
 0x370   : > { %8650 = vmatpush.bf16.msra.mxu1 %v12823_v11  ;;  %v15132_v42 = vld [vmem:[%s15846_s27 + $0x1cd4] sm:$0xf0]  ;;  %v13414_v36 = vld [vmem:[%s15846_s27 + $0x1dc8] sm:$0xf]  ;;  %v13687_v6 = vor.u32 %v15232_v40, %v13686_v16 }
 0x371   : > { %8663 = vmatpush.bf16.msra.mxu2 %v12951_v31  ;;  %v15164_v45 = vld [vmem:[%s15846_s27 + $0x1dd4] sm:$0xf0]  ;;  %v13542_v30 = vld [vmem:[%s15846_s27 + $0x1ec8] sm:$0xf]  ;;  %v13287_v9 = vor.u32 %v15132_v42, %v13286_v23 }
 0x372   : > { %8676 = vmatpush.bf16.msra.mxu3 %v13079_v46  ;;  %v15196_v11 = vld [vmem:[%s15846_s27 + $0x1ed4] sm:$0xf0]  ;;  %v13670_v31 = vld [vmem:[%s15846_s27 + $0x1fc8] sm:$0xf]  ;;  %v13415_v38 = vor.u32 %v15164_v45, %v13414_v36 }
 0x373   : > { %8638 = vmatpush.bf16.msra.mxu0 %v12679_v34  ;;  %v15228_v41 = vld [vmem:[%s15846_s27 + $0x1fd4] sm:$0xf0]  ;;  %v13543_v35 = vor.u32 %v15196_v11, %v13542_v30  ;;  %v13270_v46 = vld [vmem:[%s15846_s27 + $0x1ca8] sm:$0xf] }
 0x374   : > { %8651 = vmatpush.bf16.msra.mxu1 %v12807_v56  ;;  %v15128_v15 = vld [vmem:[%s15846_s27 + $0x1cb4] sm:$0xf0]  ;;  %v13398_v19 = vld [vmem:[%s15846_s27 + $0x1da8] sm:$0xf]  ;;  %v13671_v13 = vor.u32 %v15228_v41, %v13670_v31  ;;  %v8445_v45 = vpop.f32.mrf.mxu1 }
 0x375   : > { %8664 = vmatpush.bf16.msra.mxu2 %v12935_v52  ;;  %v15160_v43 = vld [vmem:[%s15846_s27 + $0x1db4] sm:$0xf0]  ;;  %v13526_v48 = vld [vmem:[%s15846_s27 + $0x1ea8] sm:$0xf]  ;;  %v13271_v47 = vor.u32 %v15128_v15, %v13270_v46 }
 0x376   : > { %8677 = vmatpush.bf16.msra.mxu3 %v13063_v61  ;;  %8639 = vmatmul.bf16.vlgmr.msra.gmra.mxu0 %v16436_v53  ;;  %v15192_v25 = vld [vmem:[%s15846_s27 + $0x1eb4] sm:$0xf0]  ;;  %v13654_v60 = vld [vmem:[%s15846_s27 + $0x1fa8] sm:$0xf]  ;;  %v13399_v28 = vor.u32 %v15160_v43, %v13398_v19 }
 0x377   : > { %8683 = vmatpush.bf16.msrb.mxu0 %v13303_v2  ;;  %8652 = vmatmul.bf16.vlgmr.msra.gmra.mxu1 %v16443_v58  ;;  %v15224_v34 = vld [vmem:[%s15846_s27 + $0x1fb4] sm:$0xf0]  ;;  %v13527_v55 = vor.u32 %v15192_v25, %v13526_v48  ;;  %v13254_v56 = vld [vmem:[%s15846_s27 + $0x1c88] sm:$0xf] }
 0x378   : > { %8696 = vmatpush.bf16.msrb.mxu1 %v13431_v7  ;;  %8665 = vmatmul.bf16.vlgmr.msra.gmra.mxu2 %v16441_v57  ;;  %v15124_v52 = vld [vmem:[%s15846_s27 + $0x1c94] sm:$0xf0]  ;;  %v13382_v16 = vld [vmem:[%s15846_s27 + $0x1d88] sm:$0xf]  ;;  %v13655_v40 = vor.u32 %v15224_v34, %v13654_v60 }
 0x379   : > { %8709 = vmatpush.bf16.msrb.mxu2 %v13559_v29  ;;  %8678 = vmatmul.bf16.vlgmr.msra.gmra.mxu3 %v16447_v62  ;;  %v15156_v61 = vld [vmem:[%s15846_s27 + $0x1d94] sm:$0xf0]  ;;  %v13510_v2 = vld [vmem:[%s15846_s27 + $0x1e88] sm:$0xf]  ;;  %v8432_v29 = vpop.f32.mrf.mxu0 }
 0x37a   : > { %8722 = vmatpush.bf16.msrb.mxu3 %v13687_v6  ;;  %v15188_v7 = vld [vmem:[%s15846_s27 + $0x1e94] sm:$0xf0]  ;;  %v13638_v23 = vld [vmem:[%s15846_s27 + $0x1f88] sm:$0xf]  ;;  %v8433_v36 = vadd.f32 %v8432_v29, %v17747_v51  ;;  %v13255_v6 = vor.u32 %v15124_v52, %v13254_v56  ;;  %v13383_v30 = vor.u32 %v15156_v61, %v13382_v16 }
 0x37b   : > { %8684 = vmatpush.bf16.msrb.mxu0 %v13287_v9  ;;  %v15220_v42 = vld [vmem:[%s15846_s27 + $0x1f94] sm:$0xf0]  ;;  %v13511_v11 = vor.u32 %v15188_v7, %v13510_v2  ;;  %v13238_v31 = vld [vmem:[%s15846_s27 + $0x1c68] sm:$0xf] }
 0x37c   : > { %8697 = vmatpush.bf16.msrb.mxu1 %v13415_v38  ;;  %v15120_v41 = vld [vmem:[%s15846_s27 + $0x1c74] sm:$0xf0]  ;;  %v13366_v9 = vld [vmem:[%s15846_s27 + $0x1d68] sm:$0xf]  ;;  %v13639_v38 = vor.u32 %v15220_v42, %v13638_v23  ;;  %v8471_v61 = vpop.f32.mrf.mxu3  ;;  %v8447_v42 = vpop.f32.mrf.mxu1 }
 0x37d   : > { %8710 = vmatpush.bf16.msrb.mxu2 %v13543_v35  ;;  %v8446_v35 = vadd.f32 %v8445_v45, %v8433_v36  ;;  %v15152_v46 = vld [vmem:[%s15846_s27 + $0x1d74] sm:$0xf0]  ;;  %v13494_v15 = vld [vmem:[%s15846_s27 + $0x1e68] sm:$0xf]  ;;  %v13239_v43 = vor.u32 %v15120_v41, %v13238_v31 }
 0x37e   : > { %8723 = vmatpush.bf16.msrb.mxu3 %v13671_v13  ;;  %v15184_v51 = vld [vmem:[%s15846_s27 + $0x1e74] sm:$0xf0]  ;;  %v13622_v19 = vld [vmem:[%s15846_s27 + $0x1f68] sm:$0xf]  ;;  %v13367_v48 = vor.u32 %v15152_v46, %v13366_v9 }
 0x37f   : > { %8685 = vmatpush.bf16.msrb.mxu0 %v13271_v47  ;;  %v15216_v13 = vld [vmem:[%s15846_s27 + $0x1f74] sm:$0xf0]  ;;  %v13495_v25 = vor.u32 %v15184_v51, %v13494_v15  ;;  %v13222_v60 = vld [vmem:[%s15846_s27 + $0x1c48] sm:$0xf] }
 0x380   : > { %8698 = vmatpush.bf16.msrb.mxu1 %v13399_v28  ;;  %v15116_v34 = vld [vmem:[%s15846_s27 + $0x1c54] sm:$0xf0]  ;;  %v13350_v47 = vld [vmem:[%s15846_s27 + $0x1d48] sm:$0xf]  ;;  %v13623_v28 = vor.u32 %v15216_v13, %v13622_v19 }
 0x381   : > { %8711 = vmatpush.bf16.msrb.mxu2 %v13527_v55  ;;  %v8458_v55 = vpop.f32.mrf.mxu2  ;;  %v15148_v56 = vld [vmem:[%s15846_s27 + $0x1d54] sm:$0xf0]  ;;  %v13478_v52 = vld [vmem:[%s15846_s27 + $0x1e48] sm:$0xf]  ;;  %v8434_v29 = vpop.f32.mrf.mxu0  ;;  %v13223_v23 = vor.u32 %v15116_v34, %v13222_v60 }
 0x382   : > { %8724 = vmatpush.bf16.msrb.mxu3 %v13655_v40  ;;  %v15180_v16 = vld [vmem:[%s15846_s27 + $0x1e54] sm:$0xf0]  ;;  %v8459_v40 = vadd.f32 %v8458_v55, %v8446_v35  ;;  %v13606_v2 = vld [vmem:[%s15846_s27 + $0x1f48] sm:$0xf] }
 0x383   : > { %8686 = vmatpush.bf16.msrb.mxu0 %v13255_v6  ;;  %v15212_v7 = vld [vmem:[%s15846_s27 + $0x1f54] sm:$0xf0]  ;;  %v13351_v6 = vor.u32 %v15148_v56, %v13350_v47  ;;  %v13479_v45 = vor.u32 %v15180_v16, %v13478_v52  ;;  %v13334_v31 = vld [vmem:[%s15846_s27 + $0x1d28] sm:$0xf] }
 0x384   : > { %8699 = vmatpush.bf16.msrb.mxu1 %v13383_v30  ;;  %v17818_v36 = vadd.f32 %v8471_v61, %v8459_v40  ;;  %v13206_v30 = vld [vmem:[%s15846_s27 + $0x1c28] sm:$0xf]  ;;  %v13607_v41 = vor.u32 %v15212_v7, %v13606_v2  ;;  %v15144_v9 = vld [vmem:[%s15846_s27 + $0x1d34] sm:$0xf0]  ;;  %v8473_v2 = vpop.f32.mrf.mxu3 }
 0x385   : > { %8712 = vmatpush.bf16.msrb.mxu2 %v13511_v11  ;;  %v15112_v11 = vld [vmem:[%s15846_s27 + $0x1c34] sm:$0xf0]  ;;  %v13590_v46 = vld [vmem:[%s15846_s27 + $0x1f28] sm:$0xf] }
 0x386   : > { %8725 = vmatpush.bf16.msrb.mxu3 %v13639_v38  ;;  %v13462_v38 = vld [vmem:[%s15846_s27 + $0x1e28] sm:$0xf]  ;;  %v15176_v35 = vld [vmem:[%s15846_s27 + $0x1e34] sm:$0xf0]  ;;  %v13207_v51 = vor.u32 %v15112_v11, %v13206_v30 }
 0x387   : > { %8687 = vmatpush.bf16.msrb.mxu0 %v13239_v43  ;;  %v15208_v15 = vld [vmem:[%s15846_s27 + $0x1f34] sm:$0xf0]  ;;  %v13190_v19 = vld [vmem:[%s15846_s27 + $0x1c08] sm:$0xf]  ;;  %v13335_v43 = vor.u32 %v15144_v9, %v13334_v31 }
 0x388   : > { %8700 = vmatpush.bf16.msrb.mxu1 %v13367_v48  ;;  %v15108_v13 = vld [vmem:[%s15846_s27 + $0x1c14] sm:$0xf0]  ;;  %v13463_v48 = vor.u32 %v15176_v35, %v13462_v38  ;;  %v13446_v34 = vld [vmem:[%s15846_s27 + $0x1e08] sm:$0xf]  ;;  %v13591_v47 = vor.u32 %v15208_v15, %v13590_v46 }
 0x389   : > { %8713 = vmatpush.bf16.msrb.mxu2 %v13495_v25  ;;  %v13318_v25 = vld [vmem:[%s15846_s27 + $0x1d08] sm:$0xf]  ;;  %v15140_v60 = vld [vmem:[%s15846_s27 + $0x1d14] sm:$0xf0]  ;;  %v8460_v52 = vpop.f32.mrf.mxu2  ;;  %v13191_v7 = vor.u32 %v15108_v13, %v13190_v19 }
 0x38a   : > { %8726 = vmatpush.bf16.msrb.mxu3 %v13623_v28  ;;  %v15172_v28 = vld [vmem:[%s15846_s27 + $0x1e14] sm:$0xf0]  ;;  %v13574_v55 = vld [vmem:[%s15846_s27 + $0x1f08] sm:$0xf] }
 0x38b   : > { %8688 = vmatpush.bf16.msrb.mxu0 %v13223_v23  ;;  %v15204_v56 = vld [vmem:[%s15846_s27 + $0x1f14] sm:$0xf0]  ;;  %v13814_v16 = vld [vmem:[%s15846_s27 + $0x20e8] sm:$0xf] }
 0x38c   : > { %8701 = vmatpush.bf16.msrb.mxu1 %v13351_v6  ;;  %v15264_v40 = vld [vmem:[%s15846_s27 + $0x20f4] sm:$0xf0]  ;;  %v13942_v61 = vld [vmem:[%s15846_s27 + $0x21e8] sm:$0xf]  ;;  %v13319_v6 = vor.u32 %v15140_v60, %v13318_v25  ;;  %v13575_v31 = vor.u32 %v15204_v56, %v13574_v55 }
 0x38d   : > { %8714 = vmatpush.bf16.msrb.mxu2 %v13479_v45  ;;  %v15296_v29 = vld [vmem:[%s15846_s27 + $0x21f4] sm:$0xf0]  ;;  %v14070_v23 = vld [vmem:[%s15846_s27 + $0x22e8] sm:$0xf]  ;;  %v13447_v45 = vor.u32 %v15172_v28, %v13446_v34 }
 0x38e   : > { %8727 = vmatpush.bf16.msrb.mxu3 %v13607_v41  ;;  %v15328_v42 = vld [vmem:[%s15846_s27 + $0x22f4] sm:$0xf0]  ;;  %v14198_v30 = vld [vmem:[%s15846_s27 + $0x23e8] sm:$0xf]  ;;  %v13815_v41 = vor.u32 %v15264_v40, %v13814_v16  ;;  %v13943_v9 = vor.u32 %v15296_v29, %v13942_v61 }
 0x38f   : > { %8689 = vmatpush.bf16.msrb.mxu0 %v13207_v51  ;;  %v15360_v11 = vld [vmem:[%s15846_s27 + $0x23f4] sm:$0xf0]  ;;  %v14071_v38 = vor.u32 %v15328_v42, %v14070_v23  ;;  %v13798_v35 = vld [vmem:[%s15846_s27 + $0x20c8] sm:$0xf] }
 0x390   : > { %8702 = vmatpush.bf16.msrb.mxu1 %v13335_v43  ;;  %v15260_v46 = vld [vmem:[%s15846_s27 + $0x20d4] sm:$0xf0]  ;;  %v13926_v15 = vld [vmem:[%s15846_s27 + $0x21c8] sm:$0xf]  ;;  %v14199_v51 = vor.u32 %v15360_v11, %v14198_v30 }
 0x391   : > { %8715 = vmatpush.bf16.msrb.mxu2 %v13463_v48  ;;  %v15292_v19 = vld [vmem:[%s15846_s27 + $0x21d4] sm:$0xf0]  ;;  %v14054_v13 = vld [vmem:[%s15846_s27 + $0x22c8] sm:$0xf]  ;;  %v13799_v60 = vor.u32 %v15260_v46, %v13798_v35 }
 0x392   : > { %8728 = vmatpush.bf16.msrb.mxu3 %v13591_v47  ;;  %v15324_v43 = vld [vmem:[%s15846_s27 + $0x22d4] sm:$0xf0]  ;;  %v14182_v48 = vld [vmem:[%s15846_s27 + $0x23c8] sm:$0xf]  ;;  %v13927_v34 = vor.u32 %v15292_v19, %v13926_v15 }
 0x393   : > { %8690 = vmatpush.bf16.msrb.mxu0 %v13191_v7  ;;  %v15356_v25 = vld [vmem:[%s15846_s27 + $0x23d4] sm:$0xf0]  ;;  %v14055_v47 = vor.u32 %v15324_v43, %v14054_v13  ;;  %v13782_v28 = vld [vmem:[%s15846_s27 + $0x20a8] sm:$0xf] }
 0x394   : > { %8703 = vmatpush.bf16.msrb.mxu1 %v13319_v6  ;;  %v15256_v55 = vld [vmem:[%s15846_s27 + $0x20b4] sm:$0xf0]  ;;  %v13910_v56 = vld [vmem:[%s15846_s27 + $0x21a8] sm:$0xf]  ;;  %v14183_v52 = vor.u32 %v15356_v25, %v14182_v48  ;;  %v8497_v19 = vpop.f32.mrf.mxu1 }
 0x395   : > { %8716 = vmatpush.bf16.msrb.mxu2 %v13447_v45  ;;  %v15288_v16 = vld [vmem:[%s15846_s27 + $0x21b4] sm:$0xf0]  ;;  %v14038_v40 = vld [vmem:[%s15846_s27 + $0x22a8] sm:$0xf]  ;;  %v13783_v29 = vor.u32 %v15256_v55, %v13782_v28 }
 0x396   : > { %8729 = vmatpush.bf16.msrb.mxu3 %v13575_v31  ;;  %8691 = vmatmul.bf16.vlgmr.msrb.gmra.mxu0 %v16519_v4  ;;  %v15320_v61 = vld [vmem:[%s15846_s27 + $0x22b4] sm:$0xf0]  ;;  %v14166_v2 = vld [vmem:[%s15846_s27 + $0x23a8] sm:$0xf]  ;;  %v13911_v23 = vor.u32 %v15288_v16, %v13910_v56 }
 0x397   : > { %8735 = vmatpush.bf16.msra.mxu0 %v13815_v41  ;;  %8704 = vmatmul.bf16.vlgmr.msrb.gmra.mxu1 %v16526_v8  ;;  %v15352_v7 = vld [vmem:[%s15846_s27 + $0x23b4] sm:$0xf0]  ;;  %v14039_v42 = vor.u32 %v15320_v61, %v14038_v40  ;;  %v13766_v6 = vld [vmem:[%s15846_s27 + $0x2088] sm:$0xf] }
 0x398   : > { %8748 = vmatpush.bf16.msra.mxu1 %v13943_v9  ;;  %8717 = vmatmul.bf16.vlgmr.msrb.gmra.mxu2 %v16524_v3  ;;  %v15252_v45 = vld [vmem:[%s15846_s27 + $0x2094] sm:$0xf0]  ;;  %v13894_v30 = vld [vmem:[%s15846_s27 + $0x2188] sm:$0xf]  ;;  %v14167_v11 = vor.u32 %v15352_v7, %v14166_v2 }
 0x399   : > { %8761 = vmatpush.bf16.msra.mxu2 %v14071_v38  ;;  %8730 = vmatmul.bf16.vlgmr.msrb.gmra.mxu3 %v16530_v12  ;;  %v15284_v31 = vld [vmem:[%s15846_s27 + $0x2194] sm:$0xf0]  ;;  %v14022_v41 = vld [vmem:[%s15846_s27 + $0x2288] sm:$0xf]  ;;  %v8484_v38 = vpop.f32.mrf.mxu0 }
 0x39a   : > { %8774 = vmatpush.bf16.msra.mxu3 %v14199_v51  ;;  %v15316_v9 = vld [vmem:[%s15846_s27 + $0x2294] sm:$0xf0]  ;;  %v14150_v35 = vld [vmem:[%s15846_s27 + $0x2388] sm:$0xf]  ;;  %v8485_v15 = vadd.f32 %v8484_v38, %v17818_v36  ;;  %v13767_v51 = vor.u32 %v15252_v45, %v13766_v6  ;;  %v13895_v13 = vor.u32 %v15284_v31, %v13894_v30 }
 0x39b   : > { %8736 = vmatpush.bf16.msra.mxu0 %v13799_v60  ;;  %v15348_v46 = vld [vmem:[%s15846_s27 + $0x2394] sm:$0xf0]  ;;  %v14023_v43 = vor.u32 %v15316_v9, %v14022_v41  ;;  %v13750_v48 = vld [vmem:[%s15846_s27 + $0x2068] sm:$0xf] }
 0x39c   : > { %8749 = vmatpush.bf16.msra.mxu1 %v13927_v34  ;;  %v15248_v25 = vld [vmem:[%s15846_s27 + $0x2074] sm:$0xf0]  ;;  %v13878_v60 = vld [vmem:[%s15846_s27 + $0x2168] sm:$0xf]  ;;  %v14151_v34 = vor.u32 %v15348_v46, %v14150_v35  ;;  %v8523_v31 = vpop.f32.mrf.mxu3  ;;  %v8499_v46 = vpop.f32.mrf.mxu1 }
 0x39d   : > { %8762 = vmatpush.bf16.msra.mxu2 %v14055_v47  ;;  %v8498_v47 = vadd.f32 %v8497_v19, %v8485_v15  ;;  %v15280_v28 = vld [vmem:[%s15846_s27 + $0x2174] sm:$0xf0]  ;;  %v14006_v55 = vld [vmem:[%s15846_s27 + $0x2268] sm:$0xf]  ;;  %v13751_v16 = vor.u32 %v15248_v25, %v13750_v48  ;;  %v9976_v46 = vld [vmem:[%s15846_s27 + $0x2f8] sm:$0xf0] }
 0x39e   : > { %8775 = vmatpush.bf16.msra.mxu3 %v14183_v52  ;;  %v15312_v36 = vld [vmem:[%s15846_s27 + $0x2274] sm:$0xf0]  ;;  %v14134_v56 = vld [vmem:[%s15846_s27 + $0x2368] sm:$0xf]  ;;  %v13879_v40 = vor.u32 %v15280_v28, %v13878_v60 }
 0x39f   : > { %8737 = vmatpush.bf16.msra.mxu0 %v13783_v29  ;;  %v15344_v52 = vld [vmem:[%s15846_s27 + $0x2374] sm:$0xf0]  ;;  %v14007_v61 = vor.u32 %v15312_v36, %v14006_v55  ;;  %v13734_v2 = vld [vmem:[%s15846_s27 + $0x2048] sm:$0xf] }
 0x3a0   : > { %8750 = vmatpush.bf16.msra.mxu1 %v13911_v23  ;;  %v15244_v7 = vld [vmem:[%s15846_s27 + $0x2054] sm:$0xf0]  ;;  %v13862_v29 = vld [vmem:[%s15846_s27 + $0x2148] sm:$0xf]  ;;  %v14135_v23 = vor.u32 %v15344_v52, %v14134_v56 }
 0x3a1   : > { %8763 = vmatpush.bf16.msra.mxu2 %v14039_v42  ;;  %v8510_v42 = vpop.f32.mrf.mxu2  ;;  %v15276_v6 = vld [vmem:[%s15846_s27 + $0x2154] sm:$0xf0]  ;;  %v13990_v45 = vld [vmem:[%s15846_s27 + $0x2248] sm:$0xf]  ;;  %v8486_v38 = vpop.f32.mrf.mxu0  ;;  %v13735_v35 = vor.u32 %v15244_v7, %v13734_v2 }
 0x3a2   : > { %8776 = vmatpush.bf16.msra.mxu3 %v14167_v11  ;;  %v15308_v30 = vld [vmem:[%s15846_s27 + $0x2254] sm:$0xf0]  ;;  %v8511_v11 = vadd.f32 %v8510_v42, %v8498_v47  ;;  %v14118_v41 = vld [vmem:[%s15846_s27 + $0x2348] sm:$0xf]  ;;  %v9848_v38 = vld [vmem:[%s15846_s27 + $0x1f8] sm:$0xf0] }
 0x3a3   : > { %8738 = vmatpush.bf16.msra.mxu0 %v13767_v51  ;;  %v15340_v9 = vld [vmem:[%s15846_s27 + $0x2354] sm:$0xf0]  ;;  %v13863_v51 = vor.u32 %v15276_v6, %v13862_v29  ;;  %v13991_v19 = vor.u32 %v15308_v30, %v13990_v45  ;;  %v13846_v48 = vld [vmem:[%s15846_s27 + $0x2128] sm:$0xf]  ;;  %v14238_v30 = vld [vmem:[%s15846_s27 + $0xec] sm:$0xf] }
 0x3a4   : > { %8751 = vmatpush.bf16.msra.mxu1 %v13895_v13  ;;  %v17889_v15 = vadd.f32 %v8523_v31, %v8511_v11  ;;  %v13718_v13 = vld [vmem:[%s15846_s27 + $0x2028] sm:$0xf]  ;;  %v14119_v25 = vor.u32 %v15340_v9, %v14118_v41  ;;  %v15272_v60 = vld [vmem:[%s15846_s27 + $0x2134] sm:$0xf0]  ;;  %v9720_v11 = vld [vmem:[%s15846_s27 + $0xf8] sm:$0xf0]  ;;  %v8525_v41 = vpop.f32.mrf.mxu3 }
 0x3a5   : > { %8764 = vmatpush.bf16.msra.mxu2 %v14023_v43  ;;  %v15240_v43 = vld [vmem:[%s15846_s27 + $0x2034] sm:$0xf0]  ;;  %v14102_v28 = vld [vmem:[%s15846_s27 + $0x2328] sm:$0xf]  ;;  %v14270_v31 = vld [vmem:[%s15846_s27 + $0x1ec] sm:$0xf] }
 0x3a6   : > { %8777 = vmatpush.bf16.msra.mxu3 %v14151_v34  ;;  %v13974_v34 = vld [vmem:[%s15846_s27 + $0x2228] sm:$0xf]  ;;  %v15304_v47 = vld [vmem:[%s15846_s27 + $0x2234] sm:$0xf0]  ;;  %v13719_v36 = vor.u32 %v15240_v43, %v13718_v13  ;;  %v14334_v13 = vld [vmem:[%s15846_s27 + $0x3ec] sm:$0xf] }
 0x3a7   : > { %8739 = vmatpush.bf16.msra.mxu0 %v13751_v16  ;;  %v15336_v55 = vld [vmem:[%s15846_s27 + $0x2334] sm:$0xf0]  ;;  %v13702_v56 = vld [vmem:[%s15846_s27 + $0x2008] sm:$0xf]  ;;  %v13847_v16 = vor.u32 %v15272_v60, %v13846_v48  ;;  %v10104_v43 = vld [vmem:[%s15846_s27 + $0x3f8] sm:$0xf0]  ;;  %v9851_v60 = vor.u32 %v14270_v31, %v9848_v38 }
 0x3a8   : > { %8752 = vmatpush.bf16.msra.mxu1 %v13879_v40  ;;  %v15236_v52 = vld [vmem:[%s15846_s27 + $0x2014] sm:$0xf0]  ;;  %v13975_v40 = vor.u32 %v15304_v47, %v13974_v34  ;;  %v13958_v7 = vld [vmem:[%s15846_s27 + $0x2208] sm:$0xf]  ;;  %v14103_v29 = vor.u32 %v15336_v55, %v14102_v28  ;;  %v14234_v47 = vld [vmem:[%s15846_s27 + $0xcc] sm:$0xf] }
 0x3a9   : > { %8765 = vmatpush.bf16.msra.mxu2 %v14007_v61  ;;  %v13830_v61 = vld [vmem:[%s15846_s27 + $0x2108] sm:$0xf]  ;;  %v15268_v2 = vld [vmem:[%s15846_s27 + $0x2114] sm:$0xf0]  ;;  %v8512_v45 = vpop.f32.mrf.mxu2  ;;  %v13703_v9 = vor.u32 %v15236_v52, %v13702_v56  ;;  %v9704_v28 = vld [vmem:[%s15846_s27 + $0xd8] sm:$0xf0] }
 0x3aa   : > { %8778 = vmatpush.bf16.msra.mxu3 %v14135_v23  ;;  %v15300_v23 = vld [vmem:[%s15846_s27 + $0x2214] sm:$0xf0]  ;;  %v14086_v42 = vld [vmem:[%s15846_s27 + $0x2308] sm:$0xf]  ;;  %v14266_v55 = vld [vmem:[%s15846_s27 + $0x1cc] sm:$0xf] }
 0x3ab   : > { %8740 = vmatpush.bf16.msra.mxu0 %v13735_v35  ;;  %v15332_v6 = vld [vmem:[%s15846_s27 + $0x2314] sm:$0xf0]  ;;  %v14302_v35 = vld [vmem:[%s15846_s27 + $0x2ec] sm:$0xf]  ;;  %v9832_v56 = vld [vmem:[%s15846_s27 + $0x1d8] sm:$0xf0] }
 0x3ac   : > { %8753 = vmatpush.bf16.msra.mxu1 %v13863_v51  ;;  %v13831_v51 = vor.u32 %v15268_v2, %v13830_v61  ;;  %v14087_v48 = vor.u32 %v15332_v6, %v14086_v42  ;;  %v9979_v34 = vor.u32 %v14302_v35, %v9976_v46  ;;  %v14298_v52 = vld [vmem:[%s15846_s27 + $0x2cc] sm:$0xf]  ;;  %v10088_v61 = vld [vmem:[%s15846_s27 + $0x3d8] sm:$0xf0]  ;;  %v9707_v2 = vor.u32 %v14234_v47, %v9704_v28 }
 0x3ad   : > { %8766 = vmatpush.bf16.msra.mxu2 %v13991_v19  ;;  %v13959_v19 = vor.u32 %v15300_v23, %v13958_v7  ;;  %v9835_v7 = vor.u32 %v14266_v55, %v9832_v56  ;;  %v14230_v23 = vld [vmem:[%s15846_s27 + $0xac] sm:$0xf]  ;;  %v9688_v42 = vld [vmem:[%s15846_s27 + $0xb8] sm:$0xf0] }
 0x3ae   : > { %8779 = vmatpush.bf16.msra.mxu3 %v14119_v25  ;;  %v9723_v25 = vor.u32 %v14238_v30, %v9720_v11  ;;  %v14262_v6 = vld [vmem:[%s15846_s27 + $0x1ac] sm:$0xf]  ;;  %v9816_v30 = vld [vmem:[%s15846_s27 + $0x1b8] sm:$0xf0]  ;;  %v9691_v38 = vor.u32 %v14230_v23, %v9688_v42 }
 0x3af   : > { %8741 = vmatpush.bf16.msra.mxu0 %v13719_v36  ;;  %v10107_v36 = vor.u32 %v14334_v13, %v10104_v43  ;;  %v14294_v11 = vld [vmem:[%s15846_s27 + $0x2ac] sm:$0xf]  ;;  %v9944_v31 = vld [vmem:[%s15846_s27 + $0x2b8] sm:$0xf0]  ;;  %v9819_v35 = vor.u32 %v14262_v6, %v9816_v30 }
 0x3b0   : > { %8754 = vmatpush.bf16.msra.mxu1 %v13847_v16  ;;  %v9960_v16 = vld [vmem:[%s15846_s27 + $0x2d8] sm:$0xf0]  ;;  %v14326_v41 = vld [vmem:[%s15846_s27 + $0x3ac] sm:$0xf]  ;;  %v9947_v46 = vor.u32 %v14294_v11, %v9944_v31 }
 0x3b1   : > { %8767 = vmatpush.bf16.msra.mxu2 %v13975_v40  ;;  %v14330_v40 = vld [vmem:[%s15846_s27 + $0x3cc] sm:$0xf]  ;;  %v10056_v28 = vld [vmem:[%s15846_s27 + $0x398] sm:$0xf0] }
 0x3b2   : > { %8780 = vmatpush.bf16.msra.mxu3 %v14103_v29  ;;  %v9963_v29 = vor.u32 %v14298_v52, %v9960_v16  ;;  %v10091_v45 = vor.u32 %v14330_v40, %v10088_v61  ;;  %v14258_v13 = vld [vmem:[%s15846_s27 + $0x18c] sm:$0xf]  ;;  %v9656_v61 = vld [vmem:[%s15846_s27 + $0x78] sm:$0xf0] }
 0x3b3   : > { %8742 = vmatpush.bf16.msra.mxu0 %v13703_v9  ;;  %v10072_v9 = vld [vmem:[%s15846_s27 + $0x3b8] sm:$0xf0]  ;;  %v14322_v47 = vld [vmem:[%s15846_s27 + $0x38c] sm:$0xf] }
 0x3b4   : > { %8755 = vmatpush.bf16.msra.mxu1 %v13831_v51  ;;  %v14226_v51 = vld [vmem:[%s15846_s27 + $0x8c] sm:$0xf]  ;;  %v10075_v43 = vor.u32 %v14326_v41, %v10072_v9  ;;  %v8549_v56 = vpop.f32.mrf.mxu1  ;;  %v9784_v23 = vld [vmem:[%s15846_s27 + $0x178] sm:$0xf0] }
 0x3b5   : > { %8768 = vmatpush.bf16.msra.mxu2 %v13959_v19  ;;  %v9672_v19 = vld [vmem:[%s15846_s27 + $0x98] sm:$0xf0]  ;;  %v14222_v40 = vld [vmem:[%s15846_s27 + $0x6c] sm:$0xf] }
 0x3b6   : > { %8781 = vmatpush.bf16.msra.mxu3 %v14087_v48  ;;  %8743 = vmatmul.bf16.vlgmr.msra.gmra.mxu0 %v16602_v44  ;;  %v9800_v48 = vld [vmem:[%s15846_s27 + $0x198] sm:$0xf0]  ;;  %v14286_v42 = vld [vmem:[%s15846_s27 + $0x26c] sm:$0xf]  ;;  %v9659_v30 = vor.u32 %v14222_v40, %v9656_v61 }
 0x3b7   : > { %8787 = vmatpush.bf16.msrb.mxu0 %v9723_v25  ;;  %8756 = vmatmul.bf16.vlgmr.msra.gmra.mxu1 %v16609_v50  ;;  %v14290_v25 = vld [vmem:[%s15846_s27 + $0x28c] sm:$0xf]  ;;  %v9803_v52 = vor.u32 %v14258_v13, %v9800_v48  ;;  %v9640_v9 = vld [vmem:[%s15846_s27 + $0x58] sm:$0xf0] }
 0x3b8   : > { %8800 = vmatpush.bf16.msrb.mxu1 %v9851_v60  ;;  %8769 = vmatmul.bf16.vlgmr.msra.gmra.mxu2 %v16607_v49  ;;  %v9928_v60 = vld [vmem:[%s15846_s27 + $0x298] sm:$0xf0]  ;;  %v14318_v6 = vld [vmem:[%s15846_s27 + $0x36c] sm:$0xf] }
 0x3b9   : > { %8813 = vmatpush.bf16.msrb.mxu2 %v9979_v34  ;;  %8782 = vmatmul.bf16.vlgmr.msra.gmra.mxu3 %v16613_v54  ;;  %v8536_v34 = vpop.f32.mrf.mxu0  ;;  %v9931_v16 = vor.u32 %v14290_v25, %v9928_v60  ;;  %v14218_v41 = vld [vmem:[%s15846_s27 + $0x4c] sm:$0xf]  ;;  %v9896_v13 = vld [vmem:[%s15846_s27 + $0x258] sm:$0xf0] }
 0x3ba   : > { %8826 = vmatpush.bf16.msrb.mxu3 %v10107_v36  ;;  %v8537_v55 = vadd.f32 %v8536_v34, %v17889_v15  ;;  %v9675_v36 = vor.u32 %v14226_v51, %v9672_v19  ;;  %v9912_v15 = vld [vmem:[%s15846_s27 + $0x278] sm:$0xf0]  ;;  %v14282_v19 = vld [vmem:[%s15846_s27 + $0x24c] sm:$0xf] }
 0x3bb   : > { %8788 = vmatpush.bf16.msrb.mxu0 %v9707_v2  ;;  %v14254_v2 = vld [vmem:[%s15846_s27 + $0x16c] sm:$0xf]  ;;  %v9915_v31 = vor.u32 %v14286_v42, %v9912_v15  ;;  %v9768_v51 = vld [vmem:[%s15846_s27 + $0x158] sm:$0xf0] }
 0x3bc   : > { %8801 = vmatpush.bf16.msrb.mxu1 %v9835_v7  ;;  %v10059_v7 = vor.u32 %v14322_v47, %v10056_v28  ;;  %v9787_v11 = vor.u32 %v14254_v2, %v9784_v23  ;;  %v8575_v48 = vpop.f32.mrf.mxu3  ;;  %v14314_v25 = vld [vmem:[%s15846_s27 + $0x34c] sm:$0xf]  ;;  %v10024_v60 = vld [vmem:[%s15846_s27 + $0x358] sm:$0xf0]  ;;  %v9643_v47 = vor.u32 %v14218_v41, %v9640_v9  ;;  %v8551_v28 = vpop.f32.mrf.mxu1 }
 0x3bd   : > { %8814 = vmatpush.bf16.msrb.mxu2 %v9963_v29  ;;  %v8550_v29 = vadd.f32 %v8549_v56, %v8537_v55  ;;  %v9899_v56 = vor.u32 %v14282_v19, %v9896_v13  ;;  %v14246_v40 = vld [vmem:[%s15846_s27 + $0x12c] sm:$0xf]  ;;  %v10027_v61 = vor.u32 %v14314_v25, %v10024_v60  ;;  %v9752_v2 = vld [vmem:[%s15846_s27 + $0x138] sm:$0xf0] }
 0x3be   : > { %8827 = vmatpush.bf16.msrb.mxu3 %v10091_v45  ;;  %v10040_v45 = vld [vmem:[%s15846_s27 + $0x378] sm:$0xf0]  ;;  %v14310_v23 = vld [vmem:[%s15846_s27 + $0x32c] sm:$0xf] }
 0x3bf   : > { %8789 = vmatpush.bf16.msrb.mxu0 %v9691_v38  ;;  %v14250_v38 = vld [vmem:[%s15846_s27 + $0x14c] sm:$0xf]  ;;  %v10008_v42 = vld [vmem:[%s15846_s27 + $0x338] sm:$0xf0] }
 0x3c0   : > { %8802 = vmatpush.bf16.msrb.mxu1 %v9819_v35  ;;  %v10043_v35 = vor.u32 %v14318_v6, %v10040_v45  ;;  %v14210_v6 = vld [vmem:[%s15846_s27 + $0xc] sm:$0xf]  ;;  %v9608_v45 = vld [vmem:[%s15846_s27 + $0x18] sm:$0xf0] }
 0x3c1   : > { %8815 = vmatpush.bf16.msrb.mxu2 %v9947_v46  ;;  %v8562_v46 = vpop.f32.mrf.mxu2  ;;  %v8538_v34 = vpop.f32.mrf.mxu0  ;;  %v9736_v41 = vld [vmem:[%s15846_s27 + $0x118] sm:$0xf0]  ;;  %v14274_v9 = vld [vmem:[%s15846_s27 + $0x20c] sm:$0xf]  ;;  %v9611_v60 = vor.u32 %v14210_v6, %v9608_v45 }
 0x3c2   : > { %8828 = vmatpush.bf16.msrb.mxu3 %v10075_v43  ;;  %v8563_v43 = vadd.f32 %v8562_v46, %v8550_v29  ;;  %v9880_v29 = vld [vmem:[%s15846_s27 + $0x238] sm:$0xf0]  ;;  %v14306_v46 = vld [vmem:[%s15846_s27 + $0x30c] sm:$0xf] }
 0x3c3   : > { %8790 = vmatpush.bf16.msrb.mxu0 %v9675_v36  ;;  %v9771_v36 = vor.u32 %v14250_v38, %v9768_v51  ;;  %v10011_v38 = vor.u32 %v14310_v23, %v10008_v42  ;;  %v9992_v51 = vld [vmem:[%s15846_s27 + $0x318] sm:$0xf0]  ;;  %v14366_v13 = vld [vmem:[%s15846_s27 + $0x4ec] sm:$0xf] }
 0x3c4   : > { %8803 = vmatpush.bf16.msrb.mxu1 %v9803_v52  ;;  %v17960_v55 = vadd.f32 %v8575_v48, %v8563_v43  ;;  %v14214_v52 = vld [vmem:[%s15846_s27 + $0x2c] sm:$0xf]  ;;  %v10232_v43 = vld [vmem:[%s15846_s27 + $0x4f8] sm:$0xf0]  ;;  %v8577_v25 = vpop.f32.mrf.mxu3 }
 0x3c5   : > { %8816 = vmatpush.bf16.msrb.mxu2 %v9931_v16  ;;  %v9624_v16 = vld [vmem:[%s15846_s27 + $0x38] sm:$0xf0]  ;;  %v14398_v48 = vld [vmem:[%s15846_s27 + $0x5ec] sm:$0xf] }
 0x3c6   : > { %8829 = vmatpush.bf16.msrb.mxu3 %v10059_v7  ;;  %v14278_v7 = vld [vmem:[%s15846_s27 + $0x22c] sm:$0xf]  ;;  %v9627_v15 = vor.u32 %v14214_v52, %v9624_v16  ;;  %v10360_v34 = vld [vmem:[%s15846_s27 + $0x5f8] sm:$0xf0] }
 0x3c7   : > { %8791 = vmatpush.bf16.msrb.mxu0 %v9659_v30  ;;  %v9755_v30 = vor.u32 %v14246_v40, %v9752_v2  ;;  %v10488_v28 = vld [vmem:[%s15846_s27 + $0x6f8] sm:$0xf0]  ;;  %v14462_v52 = vld [vmem:[%s15846_s27 + $0x7ec] sm:$0xf]  ;;  %v9995_v40 = vor.u32 %v14306_v46, %v9992_v51  ;;  %v10363_v2 = vor.u32 %v14398_v48, %v10360_v34 }
 0x3c8   : > { %8804 = vmatpush.bf16.msrb.mxu1 %v9787_v11  ;;  %v9883_v11 = vor.u32 %v14278_v7, %v9880_v29  ;;  %v10616_v16 = vld [vmem:[%s15846_s27 + $0x7f8] sm:$0xf0]  ;;  %v14362_v29 = vld [vmem:[%s15846_s27 + $0x4cc] sm:$0xf] }
 0x3c9   : > { %8817 = vmatpush.bf16.msrb.mxu2 %v9915_v31  ;;  %v14242_v31 = vld [vmem:[%s15846_s27 + $0x10c] sm:$0xf]  ;;  %v8564_v19 = vpop.f32.mrf.mxu2  ;;  %v10216_v23 = vld [vmem:[%s15846_s27 + $0x4d8] sm:$0xf0] }
 0x3ca   : > { %8830 = vmatpush.bf16.msrb.mxu3 %v10043_v35  ;;  %v9864_v35 = vld [vmem:[%s15846_s27 + $0x218] sm:$0xf0]  ;;  %v14394_v42 = vld [vmem:[%s15846_s27 + $0x5cc] sm:$0xf] }
 0x3cb   : > { %8792 = vmatpush.bf16.msrb.mxu0 %v9643_v47  ;;  %v14430_v47 = vld [vmem:[%s15846_s27 + $0x6ec] sm:$0xf]  ;;  %v10344_v6 = vld [vmem:[%s15846_s27 + $0x5d8] sm:$0xf0] }
 0x3cc   : > { %8805 = vmatpush.bf16.msrb.mxu1 %v9771_v36  ;;  %v9739_v36 = vor.u32 %v14242_v31, %v9736_v41  ;;  %v10491_v7 = vor.u32 %v14430_v47, %v10488_v28  ;;  %v14426_v45 = vld [vmem:[%s15846_s27 + $0x6cc] sm:$0xf]  ;;  %v10600_v31 = vld [vmem:[%s15846_s27 + $0x7d8] sm:$0xf0]  ;;  %v10219_v41 = vor.u32 %v14362_v29, %v10216_v23 }
 0x3cd   : > { %8818 = vmatpush.bf16.msrb.mxu2 %v9899_v56  ;;  %v9867_v56 = vor.u32 %v14274_v9, %v9864_v35  ;;  %v10347_v9 = vor.u32 %v14394_v42, %v10344_v6  ;;  %v14358_v35 = vld [vmem:[%s15846_s27 + $0x4ac] sm:$0xf]  ;;  %v10200_v46 = vld [vmem:[%s15846_s27 + $0x4b8] sm:$0xf0] }
 0x3ce   : > { %8831 = vmatpush.bf16.msrb.mxu3 %v10027_v61  ;;  %v10235_v61 = vor.u32 %v14366_v13, %v10232_v43  ;;  %v14390_v51 = vld [vmem:[%s15846_s27 + $0x5ac] sm:$0xf]  ;;  %v10328_v13 = vld [vmem:[%s15846_s27 + $0x5b8] sm:$0xf0]  ;;  %v10203_v34 = vor.u32 %v14358_v35, %v10200_v46 }
 0x3cf   : > { %8793 = vmatpush.bf16.msrb.mxu0 %v9627_v15  ;;  %v10619_v15 = vor.u32 %v14462_v52, %v10616_v16  ;;  %v14422_v43 = vld [vmem:[%s15846_s27 + $0x6ac] sm:$0xf]  ;;  %v10456_v48 = vld [vmem:[%s15846_s27 + $0x6b8] sm:$0xf0]  ;;  %v10331_v47 = vor.u32 %v14390_v51, %v10328_v13 }
 0x3d0   : > { %8806 = vmatpush.bf16.msrb.mxu1 %v9755_v30  ;;  %v10472_v30 = vld [vmem:[%s15846_s27 + $0x6d8] sm:$0xf0]  ;;  %v14454_v25 = vld [vmem:[%s15846_s27 + $0x7ac] sm:$0xf]  ;;  %v10459_v28 = vor.u32 %v14422_v43, %v10456_v48 }
 0x3d1   : > { %8819 = vmatpush.bf16.msrb.mxu2 %v9883_v11  ;;  %v14458_v11 = vld [vmem:[%s15846_s27 + $0x7cc] sm:$0xf]  ;;  %v10440_v16 = vld [vmem:[%s15846_s27 + $0x698] sm:$0xf0] }
 0x3d2   : > { %8832 = vmatpush.bf16.msrb.mxu3 %v10011_v38  ;;  %v10475_v38 = vor.u32 %v14426_v45, %v10472_v30  ;;  %v10603_v19 = vor.u32 %v14458_v11, %v10600_v31  ;;  %v10168_v6 = vld [vmem:[%s15846_s27 + $0x478] sm:$0xf0]  ;;  %v14382_v45 = vld [vmem:[%s15846_s27 + $0x56c] sm:$0xf] }
 0x3d3   : > { %8794 = vmatpush.bf16.msrb.mxu0 %v9611_v60  ;;  %v10584_v60 = vld [vmem:[%s15846_s27 + $0x7b8] sm:$0xf0]  ;;  %v14378_v43 = vld [vmem:[%s15846_s27 + $0x54c] sm:$0xf] }
 0x3d4   : > { %8807 = vmatpush.bf16.msrb.mxu1 %v9739_v36  ;;  %v10184_v36 = vld [vmem:[%s15846_s27 + $0x498] sm:$0xf0]  ;;  %v10587_v52 = vor.u32 %v14454_v25, %v10584_v60  ;;  %v8601_v29 = vpop.f32.mrf.mxu1 }
 0x3d5   : > { %8820 = vmatpush.bf16.msrb.mxu2 %v9867_v56  ;;  %v14386_v56 = vld [vmem:[%s15846_s27 + $0x58c] sm:$0xf]  ;;  %v10296_v31 = vld [vmem:[%s15846_s27 + $0x578] sm:$0xf0] }
 0x3d6   : > { %8833 = vmatpush.bf16.msrb.mxu3 %v9995_v40  ;;  %8795 = vmatmul.bf16.vlgmr.msrb.gmra.mxu0 %v15968_v10  ;;  %v10312_v10 = vld [vmem:[%s15846_s27 + $0x598] sm:$0xf0]  ;;  %v8588_v40 = vpop.f32.mrf.mxu0  ;;  %v10299_v46 = vor.u32 %v14382_v45, %v10296_v31 }
 0x3d7   : > { %8839 = vmatpush.bf16.msra.mxu0 %v10235_v61  ;;  %8808 = vmatmul.bf16.vlgmr.msrb.gmra.mxu1 %v15977_v18  ;;  %v14450_v61 = vld [vmem:[%s15846_s27 + $0x78c] sm:$0xf]  ;;  %v8589_v18 = vadd.f32 %v8588_v40, %v17960_v55  ;;  %v10315_v23 = vor.u32 %v14386_v56, %v10312_v10  ;;  %v10424_v55 = vld [vmem:[%s15846_s27 + $0x678] sm:$0xf0] }
 0x3d8   : > { %8852 = vmatpush.bf16.msra.mxu1 %v10363_v2  ;;  %8821 = vmatmul.bf16.vlgmr.msrb.gmra.mxu2 %v15959_v0  ;;  %v14354_v0 = vld [vmem:[%s15846_s27 + $0x48c] sm:$0xf]  ;;  %v10568_v2 = vld [vmem:[%s15846_s27 + $0x798] sm:$0xf0] }
 0x3d9   : > { %8865 = vmatpush.bf16.msra.mxu2 %v10491_v7  ;;  %8834 = vmatmul.bf16.vlgmr.msrb.gmra.mxu3 %v15975_v17  ;;  %v14418_v17 = vld [vmem:[%s15846_s27 + $0x68c] sm:$0xf]  ;;  %v10187_v7 = vor.u32 %v14354_v0, %v10184_v36  ;;  %v10571_v30 = vor.u32 %v14450_v61, %v10568_v2  ;;  %v8602_v11 = vadd.f32 %v8601_v29, %v8589_v18  ;;  %v10152_v13 = vld [vmem:[%s15846_s27 + $0x458] sm:$0xf0] }
 0x3da   : > { %8878 = vmatpush.bf16.msra.mxu3 %v10619_v15  ;;  %v10443_v42 = vor.u32 %v14418_v17, %v10440_v16  ;;  %v14350_v15 = vld [vmem:[%s15846_s27 + $0x46c] sm:$0xf]  ;;  %v10280_v60 = vld [vmem:[%s15846_s27 + $0x558] sm:$0xf0] }
 0x3db   : > { %8840 = vmatpush.bf16.msra.mxu0 %v10219_v41  ;;  %v14414_v41 = vld [vmem:[%s15846_s27 + $0x66c] sm:$0xf]  ;;  %v10171_v35 = vor.u32 %v14350_v15, %v10168_v6  ;;  %v8614_v25 = vpop.f32.mrf.mxu2  ;;  %v10536_v56 = vld [vmem:[%s15846_s27 + $0x758] sm:$0xf0]  ;;  %v10283_v40 = vor.u32 %v14378_v43, %v10280_v60 }
 0x3dc   : > { %8853 = vmatpush.bf16.msra.mxu1 %v10347_v9  ;;  %v14446_v9 = vld [vmem:[%s15846_s27 + $0x76c] sm:$0xf]  ;;  %v10427_v51 = vor.u32 %v14414_v41, %v10424_v55  ;;  %v8627_v0 = vpop.f32.mrf.mxu3  ;;  %v8603_v17 = vpop.f32.mrf.mxu1  ;;  %v10136_v18 = vld [vmem:[%s15846_s27 + $0x438] sm:$0xf0] }
 0x3dd   : > { %8866 = vmatpush.bf16.msra.mxu2 %v10475_v38  ;;  %v10552_v38 = vld [vmem:[%s15846_s27 + $0x778] sm:$0xf0]  ;;  %v14442_v36 = vld [vmem:[%s15846_s27 + $0x74c] sm:$0xf] }
 0x3de   : > { %8879 = vmatpush.bf16.msra.mxu3 %v10603_v19  ;;  %v14346_v19 = vld [vmem:[%s15846_s27 + $0x44c] sm:$0xf]  ;;  %v10555_v48 = vor.u32 %v14446_v9, %v10552_v38  ;;  %v10539_v29 = vor.u32 %v14442_v36, %v10536_v56  ;;  %v10392_v15 = vld [vmem:[%s15846_s27 + $0x638] sm:$0xf0] }
 0x3df   : > { %8841 = vmatpush.bf16.msra.mxu0 %v10203_v34  ;;  %v14410_v34 = vld [vmem:[%s15846_s27 + $0x64c] sm:$0xf]  ;;  %v10155_v10 = vor.u32 %v14346_v19, %v10152_v13  ;;  %v10520_v45 = vld [vmem:[%s15846_s27 + $0x738] sm:$0xf0] }
 0x3e0   : > { %8854 = vmatpush.bf16.msra.mxu1 %v10331_v47  ;;  %v10408_v47 = vld [vmem:[%s15846_s27 + $0x658] sm:$0xf0]  ;;  %v14342_v2 = vld [vmem:[%s15846_s27 + $0x42c] sm:$0xf] }
 0x3e1   : > { %8867 = vmatpush.bf16.msra.mxu2 %v10459_v28  ;;  %v8615_v28 = vadd.f32 %v8614_v25, %v8602_v11  ;;  %v10411_v61 = vor.u32 %v14410_v34, %v10408_v47  ;;  %v14438_v6 = vld [vmem:[%s15846_s27 + $0x72c] sm:$0xf]  ;;  %v10120_v31 = vld [vmem:[%s15846_s27 + $0x418] sm:$0xf0] }
 0x3e2   : > { %8880 = vmatpush.bf16.msra.mxu3 %v10587_v52  ;;  %v8590_v52 = vpop.f32.mrf.mxu0  ;;  %v14338_v11 = vld [vmem:[%s15846_s27 + $0x40c] sm:$0xf]  ;;  %v10248_v38 = vld [vmem:[%s15846_s27 + $0x518] sm:$0xf0] }
 0x3e3   : > { %8842 = vmatpush.bf16.msra.mxu0 %v10187_v7  ;;  %v18031_v16 = vadd.f32 %v8627_v0, %v8615_v28  ;;  %v14374_v7 = vld [vmem:[%s15846_s27 + $0x52c] sm:$0xf]  ;;  %v10504_v13 = vld [vmem:[%s15846_s27 + $0x718] sm:$0xf0]  ;;  %v8616_v43 = vpop.f32.mrf.mxu2  ;;  %v10123_v47 = vor.u32 %v14338_v11, %v10120_v31 }
 0x3e4   : > { %8855 = vmatpush.bf16.msra.mxu1 %v10315_v23  ;;  %v10264_v23 = vld [vmem:[%s15846_s27 + $0x538] sm:$0xf0]  ;;  %v14370_v9 = vld [vmem:[%s15846_s27 + $0x50c] sm:$0xf]  ;;  %v8629_v34 = vpop.f32.mrf.mxu3  ;;  %v18614_v43 = vld [vmem:[#allocation18_spill] sm:$0xff] }
 0x3e5   : > { %8868 = vmatpush.bf16.msra.mxu2 %v10443_v42  ;;  %v14406_v42 = vld [vmem:[%s15846_s27 + $0x62c] sm:$0xf]  ;;  %v10267_v41 = vor.u32 %v14374_v7, %v10264_v23  ;;  %v10744_v25 = vld [vmem:[%s15846_s27 + $0x8f8] sm:$0xf0]  ;;  %v10251_v56 = vor.u32 %v14370_v9, %v10248_v38 }
 0x3e6   : > { %8881 = vmatpush.bf16.msra.mxu3 %v10571_v30  ;;  %v10139_v30 = vor.u32 %v14342_v2, %v10136_v18  ;;  %v10395_v55 = vor.u32 %v14406_v42, %v10392_v15  ;;  %v14434_v19 = vld [vmem:[%s15846_s27 + $0x70c] sm:$0xf]  ;;  %v10872_v28 = vld [vmem:[%s15846_s27 + $0x9f8] sm:$0xf0] }
 0x3e7   : > { %8843 = vmatpush.bf16.msra.mxu0 %v10171_v35  ;;  %v14402_v35 = vld [vmem:[%s15846_s27 + $0x60c] sm:$0xf]  ;;  %v11000_v36 = vld [vmem:[%s15846_s27 + $0xaf8] sm:$0xf0] }
 0x3e8   : > { %8856 = vmatpush.bf16.msra.mxu1 %v10299_v46  ;;  %v10523_v46 = vor.u32 %v14438_v6, %v10520_v45  ;;  %v14526_v60 = vld [vmem:[%s15846_s27 + $0x9ec] sm:$0xf]  ;;  %v11128_v17 = vld [vmem:[%s15846_s27 + $0xbf8] sm:$0xf0] }
 0x3e9   : > { %8869 = vmatpush.bf16.msra.mxu2 %v10427_v51  ;;  %v10376_v51 = vld [vmem:[%s15846_s27 + $0x618] sm:$0xf0]  ;;  %v14558_v0 = vld [vmem:[%s15846_s27 + $0xaec] sm:$0xf]  ;;  %v10875_v2 = vor.u32 %v14526_v60, %v10872_v28 }
 0x3ea   : > { %8882 = vmatpush.bf16.msra.mxu3 %v10555_v48  ;;  %v14494_v48 = vld [vmem:[%s15846_s27 + $0x8ec] sm:$0xf]  ;;  %v10379_v52 = vor.u32 %v14402_v35, %v10376_v51  ;;  %v11003_v18 = vor.u32 %v14558_v0, %v11000_v36  ;;  %v10856_v15 = vld [vmem:[%s15846_s27 + $0x9d8] sm:$0xf0] }
 0x3eb   : > { %8844 = vmatpush.bf16.msra.mxu0 %v10155_v10  ;;  %v14590_v10 = vld [vmem:[%s15846_s27 + $0xbec] sm:$0xf]  ;;  %v10984_v45 = vld [vmem:[%s15846_s27 + $0xad8] sm:$0xf0] }
 0x3ec   : > { %8857 = vmatpush.bf16.msra.mxu1 %v10283_v40  ;;  %v10507_v40 = vor.u32 %v14434_v19, %v10504_v13  ;;  %v14490_v7 = vld [vmem:[%s15846_s27 + $0x8cc] sm:$0xf]  ;;  %v11131_v42 = vor.u32 %v14590_v10, %v11128_v17  ;;  %v11112_v11 = vld [vmem:[%s15846_s27 + $0xbd8] sm:$0xf0] }
 0x3ed   : > { %8870 = vmatpush.bf16.msra.mxu2 %v10411_v61  ;;  %v10747_v61 = vor.u32 %v14494_v48, %v10744_v25  ;;  %v14522_v23 = vld [vmem:[%s15846_s27 + $0x9cc] sm:$0xf]  ;;  %v10712_v38 = vld [vmem:[%s15846_s27 + $0x8b8] sm:$0xf0] }
 0x3ee   : > { %8883 = vmatpush.bf16.msra.mxu3 %v10539_v29  ;;  %v10728_v29 = vld [vmem:[%s15846_s27 + $0x8d8] sm:$0xf0]  ;;  %v14554_v6 = vld [vmem:[%s15846_s27 + $0xacc] sm:$0xf] }
 0x3ef   : > { %8845 = vmatpush.bf16.msra.mxu0 %v10139_v30  ;;  %v14586_v30 = vld [vmem:[%s15846_s27 + $0xbcc] sm:$0xf]  ;;  %v10731_v31 = vor.u32 %v14490_v7, %v10728_v29  ;;  %v10840_v51 = vld [vmem:[%s15846_s27 + $0x9b8] sm:$0xf0] }
 0x3f0   : > { %8858 = vmatpush.bf16.msra.mxu1 %v10267_v41  ;;  %v10859_v41 = vor.u32 %v14522_v23, %v10856_v15  ;;  %v14486_v9 = vld [vmem:[%s15846_s27 + $0x8ac] sm:$0xf]  ;;  %v10968_v13 = vld [vmem:[%s15846_s27 + $0xab8] sm:$0xf0] }
 0x3f1   : > { %8871 = vmatpush.bf16.msra.mxu2 %v10395_v55  ;;  %v10987_v55 = vor.u32 %v14554_v6, %v10984_v45  ;;  %v14518_v35 = vld [vmem:[%s15846_s27 + $0x9ac] sm:$0xf]  ;;  %v18615_v48 = vld [vmem:[#allocation19_spill] sm:$0xff]  ;;  %v10715_v34 = vor.u32 %v14486_v9, %v10712_v38 }
 0x3f2   : > { %8884 = vmatpush.bf16.msra.mxu3 %v10523_v46  ;;  %v11115_v46 = vor.u32 %v14586_v30, %v11112_v11  ;;  %v14550_v19 = vld [vmem:[%s15846_s27 + $0xaac] sm:$0xf]  ;;  %v11096_v60 = vld [vmem:[%s15846_s27 + $0xbb8] sm:$0xf0] }
 0x3f3   : > { %8846 = vmatpush.bf16.msra.mxu0 %v10123_v47  ;;  %v14582_v25 = vld [vmem:[%s15846_s27 + $0xbac] sm:$0xf]  ;;  %v18616_v47 = vld [vmem:[#allocation20_spill] sm:$0xff]  ;;  %v10971_v28 = vor.u32 %v14550_v19, %v10968_v13  ;;  %v10696_v36 = vld [vmem:[%s15846_s27 + $0x898] sm:$0xf0] }
 0x3f4   : > { %8859 = vmatpush.bf16.msra.mxu1 %v10251_v56  ;;  %v14482_v0 = vld [vmem:[%s15846_s27 + $0x88c] sm:$0xf]  ;;  %v10824_v10 = vld [vmem:[%s15846_s27 + $0x998] sm:$0xf0]  ;;  %v18087_v29 = vpop.f32.mrf.mxu1 }
 0x3f5   : > { %8872 = vmatpush.bf16.msra.mxu2 %v10379_v52  ;;  %v14514_v56 = vld [vmem:[%s15846_s27 + $0x98c] sm:$0xf]  ;;  %v11099_v52 = vor.u32 %v14582_v25, %v11096_v60  ;;  %v10699_v7 = vor.u32 %v14482_v0, %v10696_v36  ;;  %v10680_v6 = vld [vmem:[%s15846_s27 + $0x878] sm:$0xf0] }
 0x3f6   : > { %8885 = vmatpush.bf16.msra.mxu3 %v10507_v40  ;;  %8847 = vmatmul.bf16.vlgmr.msra.gmra.mxu0 %v18614_v43  ;;  %v14546_v17 = vld [vmem:[%s15846_s27 + $0xa8c] sm:$0xf]  ;;  %v10952_v40 = vld [vmem:[%s15846_s27 + $0xa98] sm:$0xf0]  ;;  %v10827_v23 = vor.u32 %v14514_v56, %v10824_v10 }
 0x3f7   : > { %8891 = vmatpush.bf16.msrb.mxu0 %v10747_v61  ;;  %8860 = vmatmul.bf16.vlgmr.msra.gmra.mxu1 %v18616_v47  ;;  %v18083_v61 = vpop.f32.mrf.mxu0  ;;  %v14478_v15 = vld [vmem:[%s15846_s27 + $0x86c] sm:$0xf]  ;;  %v10808_v11 = vld [vmem:[%s15846_s27 + $0x978] sm:$0xf0] }
 0x3f8   : > { %8904 = vmatpush.bf16.msrb.mxu1 %v10875_v2  ;;  %8873 = vmatmul.bf16.vlgmr.msra.gmra.mxu2 %v18609_v39  ;;  %v10843_v39 = vor.u32 %v14518_v35, %v10840_v51  ;;  %v14578_v2 = vld [vmem:[%s15846_s27 + $0xb8c] sm:$0xf]  ;;  %v11064_v9 = vld [vmem:[%s15846_s27 + $0xb78] sm:$0xf0]  ;;  %v10683_v38 = vor.u32 %v14478_v15, %v10680_v6 }
 0x3f9   : > { %8917 = vmatpush.bf16.msrb.mxu2 %v11003_v18  ;;  %8886 = vmatmul.bf16.vlgmr.msra.gmra.mxu3 %v18615_v48  ;;  %v11080_v18 = vld [vmem:[%s15846_s27 + $0xb98] sm:$0xf0]  ;;  %v14510_v45 = vld [vmem:[%s15846_s27 + $0x96c] sm:$0xf] }
 0x3fa   : > { %8930 = vmatpush.bf16.msrb.mxu3 %v11131_v42  ;;  %v10955_v42 = vor.u32 %v14546_v17, %v10952_v40  ;;  %v11083_v30 = vor.u32 %v14578_v2, %v11080_v18  ;;  %v10811_v35 = vor.u32 %v14510_v45, %v10808_v11  ;;  %v14474_v51 = vld [vmem:[%s15846_s27 + $0x84c] sm:$0xf]  ;;  %v10664_v19 = vld [vmem:[%s15846_s27 + $0x858] sm:$0xf0] }
 0x3fb   : > { %8892 = vmatpush.bf16.msrb.mxu0 %v10731_v31  ;;  %v14542_v31 = vld [vmem:[%s15846_s27 + $0xa6c] sm:$0xf]  ;;  %v18100_v48 = vpop.f32.mrf.mxu2  ;;  %v10792_v25 = vld [vmem:[%s15846_s27 + $0x958] sm:$0xf0]  ;;  %v10667_v36 = vor.u32 %v14474_v51, %v10664_v19 }
 0x3fc   : > { %8905 = vmatpush.bf16.msrb.mxu1 %v10859_v41  ;;  %v10936_v41 = vld [vmem:[%s15846_s27 + $0xa78] sm:$0xf0]  ;;  %v14506_v13 = vld [vmem:[%s15846_s27 + $0x94c] sm:$0xf]  ;;  %v18105_v47 = vpop.f32.mrf.mxu3  ;;  %v8655_v56 = vpop.f32.mrf.mxu1 }
 0x3fd   : > { %8918 = vmatpush.bf16.msrb.mxu2 %v10987_v55  ;;  %v14574_v55 = vld [vmem:[%s15846_s27 + $0xb6c] sm:$0xf]  ;;  %v10648_v40 = vld [vmem:[%s15846_s27 + $0x838] sm:$0xf0] }
 0x3fe   : > { %8931 = vmatpush.bf16.msrb.mxu3 %v11115_v46  ;;  %v10939_v46 = vor.u32 %v14542_v31, %v10936_v41  ;;  %v11067_v43 = vor.u32 %v14574_v55, %v11064_v9  ;;  %v14538_v60 = vld [vmem:[%s15846_s27 + $0xa4c] sm:$0xf]  ;;  %v11032_v6 = vld [vmem:[%s15846_s27 + $0xb38] sm:$0xf0] }
 0x3ff   : > { %8893 = vmatpush.bf16.msrb.mxu0 %v10715_v34  ;;  %v10920_v34 = vld [vmem:[%s15846_s27 + $0xa58] sm:$0xf0]  ;;  %v8642_v0 = vpop.f32.mrf.mxu0  ;;  %v14470_v17 = vld [vmem:[%s15846_s27 + $0x82c] sm:$0xf] }
 0x400   : > { %8906 = vmatpush.bf16.msrb.mxu1 %v10843_v39  ;;  %v14570_v39 = vld [vmem:[%s15846_s27 + $0xb4c] sm:$0xf]  ;;  %v10923_v10 = vor.u32 %v14538_v60, %v10920_v34  ;;  %v10651_v45 = vor.u32 %v14470_v17, %v10648_v40  ;;  %v10632_v11 = vld [vmem:[%s15846_s27 + $0x818] sm:$0xf0] }
 0x401   : > { %8919 = vmatpush.bf16.msrb.mxu2 %v10971_v28  ;;  %v11048_v28 = vld [vmem:[%s15846_s27 + $0xb58] sm:$0xf0]  ;;  %v14502_v2 = vld [vmem:[%s15846_s27 + $0x92c] sm:$0xf] }
 0x402   : > { %8932 = vmatpush.bf16.msrb.mxu3 %v11099_v52  ;;  %v10795_v52 = vor.u32 %v14506_v13, %v10792_v25  ;;  %v11051_v18 = vor.u32 %v14570_v39, %v11048_v28  ;;  %v14566_v15 = vld [vmem:[%s15846_s27 + $0xb2c] sm:$0xf]  ;;  %v10760_v9 = vld [vmem:[%s15846_s27 + $0x918] sm:$0xf0] }
 0x403   : > { %8894 = vmatpush.bf16.msrb.mxu0 %v10699_v7  ;;  %v10776_v7 = vld [vmem:[%s15846_s27 + $0x938] sm:$0xf0]  ;;  %v14498_v55 = vld [vmem:[%s15846_s27 + $0x90c] sm:$0xf]  ;;  %v8668_v13 = vpop.f32.mrf.mxu2 }
 0x404   : > { %8907 = vmatpush.bf16.msrb.mxu1 %v10827_v23  ;;  %v14534_v23 = vld [vmem:[%s15846_s27 + $0xa2c] sm:$0xf]  ;;  %v10779_v31 = vor.u32 %v14502_v2, %v10776_v7  ;;  %v11016_v19 = vld [vmem:[%s15846_s27 + $0xb18] sm:$0xf0]  ;;  %v8681_v34 = vpop.f32.mrf.mxu3  ;;  %v10763_v56 = vor.u32 %v14498_v55, %v10760_v9 }
 0x405   : > { %8920 = vmatpush.bf16.msrb.mxu2 %v10955_v42  ;;  %v10904_v42 = vld [vmem:[%s15846_s27 + $0xa38] sm:$0xf0]  ;;  %v14562_v51 = vld [vmem:[%s15846_s27 + $0xb0c] sm:$0xf] }
 0x406   : > { %8933 = vmatpush.bf16.msrb.mxu3 %v11083_v30  ;;  %v14466_v30 = vld [vmem:[%s15846_s27 + $0x80c] sm:$0xf]  ;;  %v10907_v41 = vor.u32 %v14534_v23, %v10904_v42  ;;  %v11256_v25 = vld [vmem:[%s15846_s27 + $0xcf8] sm:$0xf0]  ;;  %v11019_v40 = vor.u32 %v14562_v51, %v11016_v19 }
 0x407   : > { %8895 = vmatpush.bf16.msrb.mxu0 %v10683_v38  ;;  %v14530_v38 = vld [vmem:[%s15846_s27 + $0xa0c] sm:$0xf]  ;;  %v10635_v39 = vor.u32 %v14466_v30, %v10632_v11  ;;  %v11384_v28 = vld [vmem:[%s15846_s27 + $0xdf8] sm:$0xf0] }
 0x408   : > { %8908 = vmatpush.bf16.msrb.mxu1 %v10811_v35  ;;  %v11035_v35 = vor.u32 %v14566_v15, %v11032_v6  ;;  %v14654_v60 = vld [vmem:[%s15846_s27 + $0xdec] sm:$0xf]  ;;  %v11640_v17 = vld [vmem:[%s15846_s27 + $0xff8] sm:$0xf0] }
 0x409   : > { %8921 = vmatpush.bf16.msrb.mxu2 %v10939_v46  ;;  %v10888_v46 = vld [vmem:[%s15846_s27 + $0xa18] sm:$0xf0]  ;;  %v14686_v0 = vld [vmem:[%s15846_s27 + $0xeec] sm:$0xf] }
 0x40a   : > { %8934 = vmatpush.bf16.msrb.mxu3 %v11067_v43  ;;  %v14622_v43 = vld [vmem:[%s15846_s27 + $0xcec] sm:$0xf]  ;;  %v11240_v42 = vld [vmem:[%s15846_s27 + $0xcd8] sm:$0xf0] }
 0x40b   : > { %8896 = vmatpush.bf16.msrb.mxu0 %v10667_v36  ;;  %v11512_v36 = vld [vmem:[%s15846_s27 + $0xef8] sm:$0xf0]  ;;  %v11259_v2 = vor.u32 %v14622_v43, %v11256_v25  ;;  %v14618_v23 = vld [vmem:[%s15846_s27 + $0xccc] sm:$0xf] }
 0x40c   : > { %8909 = vmatpush.bf16.msrb.mxu1 %v10795_v52  ;;  %v10891_v52 = vor.u32 %v14530_v38, %v10888_v46  ;;  %v11515_v7 = vor.u32 %v14686_v0, %v11512_v36  ;;  %v14650_v15 = vld [vmem:[%s15846_s27 + $0xdcc] sm:$0xf]  ;;  %v11496_v11 = vld [vmem:[%s15846_s27 + $0xed8] sm:$0xf0]  ;;  %v11243_v55 = vor.u32 %v14618_v23, %v11240_v42 }
 0x40d   : > { %8922 = vmatpush.bf16.msrb.mxu2 %v10923_v10  ;;  %v14718_v10 = vld [vmem:[%s15846_s27 + $0xfec] sm:$0xf]  ;;  %v11224_v46 = vld [vmem:[%s15846_s27 + $0xcb8] sm:$0xf0] }
 0x40e   : > { %8935 = vmatpush.bf16.msrb.mxu3 %v11051_v18  ;;  %v11387_v18 = vor.u32 %v14654_v60, %v11384_v28  ;;  %v11643_v6 = vor.u32 %v14718_v10, %v11640_v17  ;;  %v14682_v30 = vld [vmem:[%s15846_s27 + $0xecc] sm:$0xf]  ;;  %v11352_v13 = vld [vmem:[%s15846_s27 + $0xdb8] sm:$0xf0]  ;;  %v18618_v28 = vld [vmem:[#allocation22_spill] sm:$0xff] }
 0x40f   : > { %8897 = vmatpush.bf16.msrb.mxu0 %v10651_v45  ;;  %v11368_v45 = vld [vmem:[%s15846_s27 + $0xdd8] sm:$0xf0]  ;;  %v11499_v38 = vor.u32 %v14682_v30, %v11496_v11  ;;  %v14646_v51 = vld [vmem:[%s15846_s27 + $0xdac] sm:$0xf] }
 0x410   : > { %8910 = vmatpush.bf16.msrb.mxu1 %v10779_v31  ;;  %v14714_v31 = vld [vmem:[%s15846_s27 + $0xfcc] sm:$0xf]  ;;  %v11371_v9 = vor.u32 %v14650_v15, %v11368_v45  ;;  %v11480_v25 = vld [vmem:[%s15846_s27 + $0xeb8] sm:$0xf0]  ;;  %v11355_v0 = vor.u32 %v14646_v51, %v11352_v13 }
 0x411   : > { %8923 = vmatpush.bf16.msrb.mxu2 %v10907_v41  ;;  %v11624_v41 = vld [vmem:[%s15846_s27 + $0xfd8] sm:$0xf0]  ;;  %v14678_v43 = vld [vmem:[%s15846_s27 + $0xeac] sm:$0xf] }
 0x412   : > { %8936 = vmatpush.bf16.msrb.mxu3 %v11035_v35  ;;  %v14614_v35 = vld [vmem:[%s15846_s27 + $0xcac] sm:$0xf]  ;;  %v11627_v19 = vor.u32 %v14714_v31, %v11624_v41  ;;  %v11483_v36 = vor.u32 %v14678_v43, %v11480_v25  ;;  %v11336_v17 = vld [vmem:[%s15846_s27 + $0xd98] sm:$0xf0] }
 0x413   : > { %8898 = vmatpush.bf16.msrb.mxu0 %v10635_v39  ;;  %v18617_v60 = vld [vmem:[#allocation21_spill] sm:$0xff]  ;;  %v11608_v39 = vld [vmem:[%s15846_s27 + $0xfb8] sm:$0xf0] }
 0x414   : > { %8911 = vmatpush.bf16.msrb.mxu1 %v10763_v56  ;;  %v14710_v34 = vld [vmem:[%s15846_s27 + $0xfac] sm:$0xf]  ;;  %v11592_v23 = vld [vmem:[%s15846_s27 + $0xf98] sm:$0xf0]  ;;  %v18163_v15 = vpop.f32.mrf.mxu1 }
 0x415   : > { %8924 = vmatpush.bf16.msrb.mxu2 %v10891_v52  ;;  %v14610_v56 = vld [vmem:[%s15846_s27 + $0xc8c] sm:$0xf]  ;;  %v11208_v52 = vld [vmem:[%s15846_s27 + $0xc98] sm:$0xf0]  ;;  %v11611_v10 = vor.u32 %v14710_v34, %v11608_v39 }
 0x416   : > { %8937 = vmatpush.bf16.msrb.mxu3 %v11019_v40  ;;  %8899 = vmatmul.bf16.vlgmr.msrb.gmra.mxu0 %v16111_v20  ;;  %v11227_v20 = vor.u32 %v14614_v35, %v11224_v46  ;;  %v14674_v40 = vld [vmem:[%s15846_s27 + $0xe8c] sm:$0xf]  ;;  %v11211_v42 = vor.u32 %v14610_v56, %v11208_v52  ;;  %v11192_v11 = vld [vmem:[%s15846_s27 + $0xc78] sm:$0xf0] }
 0x417   : > { %8943 = vmatpush.bf16.msra.mxu0 %v11259_v2  ;;  %8912 = vmatmul.bf16.vlgmr.msrb.gmra.mxu1 %v18617_v60  ;;  %v11464_v2 = vld [vmem:[%s15846_s27 + $0xe98] sm:$0xf0]  ;;  %v14606_v30 = vld [vmem:[%s15846_s27 + $0xc6c] sm:$0xf] }
 0x418   : > { %8956 = vmatpush.bf16.msra.mxu1 %v11387_v18  ;;  %8925 = vmatmul.bf16.vlgmr.msrb.gmra.mxu2 %v16116_v24  ;;  %v14642_v24 = vld [vmem:[%s15846_s27 + $0xd8c] sm:$0xf]  ;;  %v18159_v18 = vpop.f32.mrf.mxu0  ;;  %v11467_v45 = vor.u32 %v14674_v40, %v11464_v2  ;;  %v11576_v46 = vld [vmem:[%s15846_s27 + $0xf78] sm:$0xf0]  ;;  %v11195_v51 = vor.u32 %v14606_v30, %v11192_v11 }
 0x419   : > { %8969 = vmatpush.bf16.msra.mxu2 %v11515_v7  ;;  %8938 = vmatmul.bf16.vlgmr.msrb.gmra.mxu3 %v18618_v28  ;;  %v14706_v7 = vld [vmem:[%s15846_s27 + $0xf8c] sm:$0xf]  ;;  %v11176_v25 = vld [vmem:[%s15846_s27 + $0xc58] sm:$0xf0] }
 0x41a   : > { %8982 = vmatpush.bf16.msra.mxu3 %v11643_v6  ;;  %v11339_v6 = vor.u32 %v14642_v24, %v11336_v17  ;;  %v14638_v31 = vld [vmem:[%s15846_s27 + $0xd6c] sm:$0xf]  ;;  %v11595_v41 = vor.u32 %v14706_v7, %v11592_v23  ;;  %v11304_v28 = vld [vmem:[%s15846_s27 + $0xd58] sm:$0xf0] }
 0x41b   : > { %8944 = vmatpush.bf16.msra.mxu0 %v11243_v55  ;;  %v11320_v55 = vld [vmem:[%s15846_s27 + $0xd78] sm:$0xf0]  ;;  %v14702_v35 = vld [vmem:[%s15846_s27 + $0xf6c] sm:$0xf]  ;;  %v18176_v39 = vpop.f32.mrf.mxu2 }
 0x41c   : > { %8957 = vmatpush.bf16.msra.mxu1 %v11371_v9  ;;  %v14670_v9 = vld [vmem:[%s15846_s27 + $0xe6c] sm:$0xf]  ;;  %v11579_v34 = vor.u32 %v14702_v35, %v11576_v46  ;;  %v18183_v56 = vpop.f32.mrf.mxu3  ;;  %v11560_v24 = vld [vmem:[%s15846_s27 + $0xf58] sm:$0xf0]  ;;  %v8707_v40 = vpop.f32.mrf.mxu1 }
 0x41d   : > { %8970 = vmatpush.bf16.msra.mxu2 %v11499_v38  ;;  %v11448_v38 = vld [vmem:[%s15846_s27 + $0xe78] sm:$0xf0]  ;;  %v14602_v43 = vld [vmem:[%s15846_s27 + $0xc4c] sm:$0xf] }
 0x41e   : > { %8983 = vmatpush.bf16.msra.mxu3 %v11627_v19  ;;  %v11323_v19 = vor.u32 %v14638_v31, %v11320_v55  ;;  %v11451_v13 = vor.u32 %v14670_v9, %v11448_v38  ;;  %v14634_v60 = vld [vmem:[%s15846_s27 + $0xd4c] sm:$0xf]  ;;  %v11179_v17 = vor.u32 %v14602_v43, %v11176_v25  ;;  %v11416_v30 = vld [vmem:[%s15846_s27 + $0xe38] sm:$0xf0] }
 0x41f   : > { %8945 = vmatpush.bf16.msra.mxu0 %v11227_v20  ;;  %v14666_v20 = vld [vmem:[%s15846_s27 + $0xe4c] sm:$0xf]  ;;  %v11307_v2 = vor.u32 %v14634_v60, %v11304_v28  ;;  %v11144_v38 = vld [vmem:[%s15846_s27 + $0xc18] sm:$0xf0] }
 0x420   : > { %8958 = vmatpush.bf16.msra.mxu1 %v11355_v0  ;;  %v11432_v0 = vld [vmem:[%s15846_s27 + $0xe58] sm:$0xf0]  ;;  %v14698_v52 = vld [vmem:[%s15846_s27 + $0xf4c] sm:$0xf] }
 0x421   : > { %8971 = vmatpush.bf16.msra.mxu2 %v11483_v36  ;;  %v8641_v36 = vadd.f32 %v18083_v61, %v18031_v16  ;;  %v11435_v7 = vor.u32 %v14666_v20, %v11432_v0  ;;  %v14598_v16 = vld [vmem:[%s15846_s27 + $0xc2c] sm:$0xf]  ;;  %v11160_v61 = vld [vmem:[%s15846_s27 + $0xc38] sm:$0xf0] }
 0x422   : > { %8984 = vmatpush.bf16.msra.mxu3 %v11611_v10  ;;  %v8694_v10 = vpop.f32.mrf.mxu0  ;;  %v14630_v23 = vld [vmem:[%s15846_s27 + $0xd2c] sm:$0xf]  ;;  %v11163_v55 = vor.u32 %v14598_v16, %v11160_v61  ;;  %v11400_v25 = vld [vmem:[%s15846_s27 + $0xe18] sm:$0xf0] }
 0x423   : > { %8946 = vmatpush.bf16.msra.mxu0 %v11211_v42  ;;  %v11563_v42 = vor.u32 %v14698_v52, %v11560_v24  ;;  %v8654_v11 = vadd.f32 %v18087_v29, %v8641_v36  ;;  %v14694_v31 = vld [vmem:[%s15846_s27 + $0xf2c] sm:$0xf]  ;;  %v8720_v28 = vpop.f32.mrf.mxu2  ;;  %v11768_v20 = vld [vmem:[%s15846_s27 + $0x10f8] sm:$0xf0] }
 0x424   : > { %8959 = vmatpush.bf16.msra.mxu1 %v11339_v6  ;;  %v11288_v6 = vld [vmem:[%s15846_s27 + $0xd38] sm:$0xf0]  ;;  %v14594_v9 = vld [vmem:[%s15846_s27 + $0xc0c] sm:$0xf]  ;;  %v8733_v36 = vpop.f32.mrf.mxu3 }
 0x425   : > { %8972 = vmatpush.bf16.msra.mxu2 %v11467_v45  ;;  %v14662_v45 = vld [vmem:[%s15846_s27 + $0xe2c] sm:$0xf]  ;;  %v8667_v35 = vadd.f32 %v18100_v48, %v8654_v11  ;;  %v11291_v46 = vor.u32 %v14630_v23, %v11288_v6  ;;  %v11147_v52 = vor.u32 %v14594_v9, %v11144_v38  ;;  %v11896_v24 = vld [vmem:[%s15846_s27 + $0x11f8] sm:$0xf0] }
 0x426   : > { %8985 = vmatpush.bf16.msra.mxu3 %v11595_v41  ;;  %v11544_v41 = vld [vmem:[%s15846_s27 + $0xf38] sm:$0xf0]  ;;  %v14626_v29 = vld [vmem:[%s15846_s27 + $0xd0c] sm:$0xf] }
 0x427   : > { %8947 = vmatpush.bf16.msra.mxu0 %v11195_v51  ;;  %v11419_v51 = vor.u32 %v14662_v45, %v11416_v30  ;;  %v11547_v43 = vor.u32 %v14694_v31, %v11544_v41  ;;  %v14690_v60 = vld [vmem:[%s15846_s27 + $0xf0c] sm:$0xf]  ;;  %v8680_v40 = vadd.f32 %v18105_v47, %v8667_v35  ;;  %v12152_v61 = vld [vmem:[%s15846_s27 + $0x13f8] sm:$0xf0] }
 0x428   : > { %8960 = vmatpush.bf16.msra.mxu1 %v11323_v19  ;;  %v11272_v19 = vld [vmem:[%s15846_s27 + $0xd18] sm:$0xf0]  ;;  %v14750_v48 = vld [vmem:[%s15846_s27 + $0x10ec] sm:$0xf] }
 0x429   : > { %8973 = vmatpush.bf16.msra.mxu2 %v11451_v13  ;;  %v14658_v13 = vld [vmem:[%s15846_s27 + $0xe0c] sm:$0xf]  ;;  %v8693_v6 = vadd.f32 %v18159_v18, %v8680_v40  ;;  %v11752_v47 = vld [vmem:[%s15846_s27 + $0x10d8] sm:$0xf0] }
 0x42a   : > { %8986 = vmatpush.bf16.msra.mxu3 %v11579_v34  ;;  %v11528_v34 = vld [vmem:[%s15846_s27 + $0xf18] sm:$0xf0]  ;;  %v14782_v0 = vld [vmem:[%s15846_s27 + $0x11ec] sm:$0xf] }
 0x42b   : > { %8948 = vmatpush.bf16.msra.mxu0 %v11179_v17  ;;  %v14814_v10 = vld [vmem:[%s15846_s27 + $0x12ec] sm:$0xf]  ;;  %v12024_v17 = vld [vmem:[%s15846_s27 + $0x12f8] sm:$0xf0]  ;;  %v11531_v23 = vor.u32 %v14690_v60, %v11528_v34  ;;  %v11899_v45 = vor.u32 %v14782_v0, %v11896_v24 }
 0x42c   : > { %8961 = vmatpush.bf16.msra.mxu1 %v11307_v2  ;;  %v11275_v2 = vor.u32 %v14626_v29, %v11272_v19  ;;  %v14846_v16 = vld [vmem:[%s15846_s27 + $0x13ec] sm:$0xf]  ;;  %v12027_v30 = vor.u32 %v14814_v10, %v12024_v17  ;;  %v12008_v38 = vld [vmem:[%s15846_s27 + $0x12d8] sm:$0xf0] }
 0x42d   : > { %8974 = vmatpush.bf16.msra.mxu2 %v11435_v7  ;;  %v11403_v7 = vor.u32 %v14658_v13, %v11400_v25  ;;  %v14746_v11 = vld [vmem:[%s15846_s27 + $0x10cc] sm:$0xf]  ;;  %v12155_v41 = vor.u32 %v14846_v16, %v12152_v61  ;;  %v11864_v34 = vld [vmem:[%s15846_s27 + $0x11b8] sm:$0xf0] }
 0x42e   : > { %8987 = vmatpush.bf16.msra.mxu3 %v11563_v42  ;;  %v11771_v42 = vor.u32 %v14750_v48, %v11768_v20  ;;  %v14778_v31 = vld [vmem:[%s15846_s27 + $0x11cc] sm:$0xf]  ;;  %v11755_v18 = vor.u32 %v14746_v11, %v11752_v47  ;;  %v11992_v48 = vld [vmem:[%s15846_s27 + $0x12b8] sm:$0xf0] }
 0x42f   : > { %8949 = vmatpush.bf16.msra.mxu0 %v11163_v55  ;;  %v11880_v55 = vld [vmem:[%s15846_s27 + $0x11d8] sm:$0xf0]  ;;  %v14810_v9 = vld [vmem:[%s15846_s27 + $0x12cc] sm:$0xf] }
 0x430   : > { %8962 = vmatpush.bf16.msra.mxu1 %v11291_v46  ;;  %v14842_v35 = vld [vmem:[%s15846_s27 + $0x13cc] sm:$0xf]  ;;  %v12136_v46 = vld [vmem:[%s15846_s27 + $0x13d8] sm:$0xf0]  ;;  %v11883_v29 = vor.u32 %v14778_v31, %v11880_v55  ;;  %v12011_v19 = vor.u32 %v14810_v9, %v12008_v38 }
 0x431   : > { %8975 = vmatpush.bf16.msra.mxu2 %v11419_v51  ;;  %v8706_v51 = vadd.f32 %v18163_v15, %v8693_v6  ;;  %v14742_v13 = vld [vmem:[%s15846_s27 + $0x10ac] sm:$0xf]  ;;  %v12139_v60 = vor.u32 %v14842_v35, %v12136_v46  ;;  %v12120_v0 = vld [vmem:[%s15846_s27 + $0x13b8] sm:$0xf0] }
 0x432   : > { %8988 = vmatpush.bf16.msra.mxu3 %v11547_v43  ;;  %v11736_v43 = vld [vmem:[%s15846_s27 + $0x10b8] sm:$0xf0]  ;;  %v14774_v25 = vld [vmem:[%s15846_s27 + $0x11ac] sm:$0xf] }
 0x433   : > { %8950 = vmatpush.bf16.msra.mxu0 %v11147_v52  ;;  %v14806_v28 = vld [vmem:[%s15846_s27 + $0x12ac] sm:$0xf]  ;;  %v8719_v15 = vadd.f32 %v18176_v39, %v8706_v51  ;;  %v11867_v36 = vor.u32 %v14774_v25, %v11864_v34  ;;  %v11720_v24 = vld [vmem:[%s15846_s27 + $0x1098] sm:$0xf0] }
 0x434   : > { %8963 = vmatpush.bf16.msra.mxu1 %v11275_v2  ;;  %v14838_v20 = vld [vmem:[%s15846_s27 + $0x13ac] sm:$0xf]  ;;  %v11995_v52 = vor.u32 %v14806_v28, %v11992_v48  ;;  %v11976_v40 = vld [vmem:[%s15846_s27 + $0x1298] sm:$0xf0]  ;;  %v8744_v2 = vpop.f32.mrf.mxu0 }
 0x435   : > { %8976 = vmatpush.bf16.msra.mxu2 %v11403_v7  ;;  %v14738_v39 = vld [vmem:[%s15846_s27 + $0x108c] sm:$0xf]  ;;  %v12123_v10 = vor.u32 %v14838_v20, %v12120_v0  ;;  %v12104_v16 = vld [vmem:[%s15846_s27 + $0x1398] sm:$0xf0] }
 0x436   : > { %8989 = vmatpush.bf16.msra.mxu3 %v11531_v23  ;;  %8951 = vmatmul.bf16.vlgmr.msra.gmra.mxu0 %v16191_v14  ;;  %v11739_v14 = vor.u32 %v14742_v13, %v11736_v43  ;;  %v14802_v17 = vld [vmem:[%s15846_s27 + $0x128c] sm:$0xf]  ;;  %v11723_v61 = vor.u32 %v14738_v39, %v11720_v24  ;;  %v8757_v23 = vpop.f32.mrf.mxu1  ;;  %v11704_v11 = vld [vmem:[%s15846_s27 + $0x1078] sm:$0xf0] }
 0x437   : > { %8995 = vmatpush.bf16.msrb.mxu0 %v11771_v42  ;;  %8964 = vmatmul.bf16.vlgmr.msra.gmra.mxu1 %v16198_v22  ;;  %v11848_v22 = vld [vmem:[%s15846_s27 + $0x1198] sm:$0xf0]  ;;  %v14834_v7 = vld [vmem:[%s15846_s27 + $0x138c] sm:$0xf] }
 0x438   : > { %9008 = vmatpush.bf16.msrb.mxu1 %v11899_v45  ;;  %8977 = vmatmul.bf16.vlgmr.msra.gmra.mxu2 %v16196_v21  ;;  %v14770_v21 = vld [vmem:[%s15846_s27 + $0x118c] sm:$0xf]  ;;  %v11979_v45 = vor.u32 %v14802_v17, %v11976_v40  ;;  %v12107_v47 = vor.u32 %v14834_v7, %v12104_v16  ;;  %v11832_v31 = vld [vmem:[%s15846_s27 + $0x1178] sm:$0xf0] }
 0x439   : > { %9021 = vmatpush.bf16.msrb.mxu2 %v12027_v30  ;;  %8990 = vmatmul.bf16.vlgmr.msra.gmra.mxu3 %v16202_v27  ;;  %v8732_v27 = vadd.f32 %v18183_v56, %v8719_v15  ;;  %v11851_v6 = vor.u32 %v14770_v21, %v11848_v22  ;;  %v14734_v30 = vld [vmem:[%s15846_s27 + $0x106c] sm:$0xf]  ;;  %v11960_v55 = vld [vmem:[%s15846_s27 + $0x1278] sm:$0xf0] }
 0x43a   : > { %9034 = vmatpush.bf16.msrb.mxu3 %v12155_v41  ;;  %v14766_v56 = vld [vmem:[%s15846_s27 + $0x116c] sm:$0xf]  ;;  %v12088_v38 = vld [vmem:[%s15846_s27 + $0x1378] sm:$0xf0]  ;;  %v11707_v35 = vor.u32 %v14734_v30, %v11704_v11 }
 0x43b   : > { %8996 = vmatpush.bf16.msrb.mxu0 %v11755_v18  ;;  %v8745_v42 = vadd.f32 %v8744_v2, %v8732_v27  ;;  %v14798_v41 = vld [vmem:[%s15846_s27 + $0x126c] sm:$0xf]  ;;  %v11835_v18 = vor.u32 %v14766_v56, %v11832_v31  ;;  %v8770_v25 = vpop.f32.mrf.mxu2  ;;  %v11944_v28 = vld [vmem:[%s15846_s27 + $0x1258] sm:$0xf0] }
 0x43c   : > { %9009 = vmatpush.bf16.msrb.mxu1 %v11883_v29  ;;  %v14830_v9 = vld [vmem:[%s15846_s27 + $0x136c] sm:$0xf]  ;;  %v11963_v51 = vor.u32 %v14798_v41, %v11960_v55  ;;  %v8783_v15 = vpop.f32.mrf.mxu3  ;;  %v12072_v0 = vld [vmem:[%s15846_s27 + $0x1358] sm:$0xf0] }
 0x43d   : > { %9022 = vmatpush.bf16.msrb.mxu2 %v12011_v19  ;;  %v8758_v46 = vadd.f32 %v8757_v23, %v8745_v42  ;;  %v14730_v29 = vld [vmem:[%s15846_s27 + $0x104c] sm:$0xf]  ;;  %v11688_v19 = vld [vmem:[%s15846_s27 + $0x1058] sm:$0xf0]  ;;  %v12091_v43 = vor.u32 %v14830_v9, %v12088_v38 }
 0x43e   : > { %9035 = vmatpush.bf16.msrb.mxu3 %v12139_v60  ;;  %v14762_v13 = vld [vmem:[%s15846_s27 + $0x114c] sm:$0xf]  ;;  %v11816_v60 = vld [vmem:[%s15846_s27 + $0x1158] sm:$0xf0]  ;;  %v8759_v39 = vpop.f32.mrf.mxu1 }
 0x43f   : > { %8997 = vmatpush.bf16.msrb.mxu0 %v11739_v14  ;;  %v14794_v34 = vld [vmem:[%s15846_s27 + $0x124c] sm:$0xf]  ;;  %v8771_v48 = vadd.f32 %v8770_v25, %v8758_v46  ;;  %v8746_v14 = vpop.f32.mrf.mxu0  ;;  %v11819_v21 = vor.u32 %v14762_v13, %v11816_v60  ;;  %v11672_v17 = vld [vmem:[%s15846_s27 + $0x1038] sm:$0xf0] }
 0x440   : > { %9010 = vmatpush.bf16.msrb.mxu1 %v11867_v36  ;;  %v14826_v20 = vld [vmem:[%s15846_s27 + $0x134c] sm:$0xf]  ;;  %v397_v36 = vld [vmem:[#allocation2 + $0x18] sm:$0xff] }
 0x441   : > { %9023 = vmatpush.bf16.msrb.mxu2 %v11995_v52  ;;  %v11691_v52 = vor.u32 %v14730_v29, %v11688_v19  ;;  %v8784_v24 = vadd.f32 %v8783_v15, %v8771_v48  ;;  %v14726_v22 = vld [vmem:[%s15846_s27 + $0x102c] sm:$0xf]  ;;  %v12075_v27 = vor.u32 %v14826_v20, %v12072_v0  ;;  %v11800_v2 = vld [vmem:[%s15846_s27 + $0x1138] sm:$0xf0] }
 0x442   : > { %9036 = vmatpush.bf16.msrb.mxu3 %v12123_v10  ;;  %v11947_v10 = vor.u32 %v14794_v34, %v11944_v28  ;;  %v14758_v40 = vld [vmem:[%s15846_s27 + $0x112c] sm:$0xf]  ;;  %v11928_v16 = vld [vmem:[%s15846_s27 + $0x1238] sm:$0xf0] }
 0x443   : > { %8998 = vmatpush.bf16.msrb.mxu0 %v11723_v61  ;;  %v14790_v7 = vld [vmem:[%s15846_s27 + $0x122c] sm:$0xf]  ;;  %v9257_v61 = vadd.f32 %v8784_v24, %v397_v36  ;;  %v12056_v42 = vld [vmem:[%s15846_s27 + $0x1338] sm:$0xf0]  ;;  %v11803_v56 = vor.u32 %v14758_v40, %v11800_v2  ;;  %v8772_v46 = vpop.f32.mrf.mxu2 }
 0x444   : > { %9011 = vmatpush.bf16.msrb.mxu1 %v11851_v6  ;;  %v14822_v23 = vld [vmem:[%s15846_s27 + $0x132c] sm:$0xf]  ;;  %v11675_v6 = vor.u32 %v14726_v22, %v11672_v17  ;;  %v11656_v30 = vld [vmem:[%s15846_s27 + $0x1018] sm:$0xf0]  ;;  %v8785_v19 = vpop.f32.mrf.mxu3 }
 0x445   : > { %9024 = vmatpush.bf16.msrb.mxu2 %v11979_v45  ;;  %v14722_v45 = vld [vmem:[%s15846_s27 + $0x100c] sm:$0xf]  ;;  %9261 = vst [vmem:[#allocation2 + $0x18] sm:$0xff] %v9257_v61  ;;  %v11784_v31 = vld [vmem:[%s15846_s27 + $0x1118] sm:$0xf0]  ;;  %v12059_v55 = vor.u32 %v14822_v23, %v12056_v42 }
 0x446   : > { %9037 = vmatpush.bf16.msrb.mxu3 %v12107_v47  ;;  %v14754_v11 = vld [vmem:[%s15846_s27 + $0x110c] sm:$0xf]  ;;  %v11931_v47 = vor.u32 %v14790_v7, %v11928_v16  ;;  %v11912_v9 = vld [vmem:[%s15846_s27 + $0x1218] sm:$0xf0]  ;;  %v11659_v13 = vor.u32 %v14722_v45, %v11656_v30 }
 0x447   : > { %8999 = vmatpush.bf16.msrb.mxu0 %v11707_v35  ;;  %v14786_v41 = vld [vmem:[%s15846_s27 + $0x120c] sm:$0xf]  ;;  %v12040_v35 = vld [vmem:[%s15846_s27 + $0x1318] sm:$0xf0]  ;;  %v11787_v34 = vor.u32 %v14754_v11, %v11784_v31 }
 0x448   : > { %9012 = vmatpush.bf16.msrb.mxu1 %v11835_v18  ;;  %v14818_v38 = vld [vmem:[%s15846_s27 + $0x130c] sm:$0xf]  ;;  %v12536_v60 = vld [vmem:[%s15846_s27 + $0x16f8] sm:$0xf0]  ;;  %v11915_v28 = vor.u32 %v14786_v41, %v11912_v9 }
 0x449   : > { %9025 = vmatpush.bf16.msrb.mxu2 %v11963_v51  ;;  %v14878_v18 = vld [vmem:[%s15846_s27 + $0x14ec] sm:$0xf]  ;;  %v12280_v51 = vld [vmem:[%s15846_s27 + $0x14f8] sm:$0xf0]  ;;  %v12043_v20 = vor.u32 %v14818_v38, %v12040_v35 }
 0x44a   : > { %9038 = vmatpush.bf16.msrb.mxu3 %v12091_v43  ;;  %v14910_v29 = vld [vmem:[%s15846_s27 + $0x15ec] sm:$0xf]  ;;  %v12408_v43 = vld [vmem:[%s15846_s27 + $0x15f8] sm:$0xf0]  ;;  %v12283_v0 = vor.u32 %v14878_v18, %v12280_v51 }
 0x44b   : > { %9000 = vmatpush.bf16.msrb.mxu0 %v11691_v52  ;;  %v14942_v25 = vld [vmem:[%s15846_s27 + $0x16ec] sm:$0xf]  ;;  %v12664_v15 = vld [vmem:[%s15846_s27 + $0x17f8] sm:$0xf0]  ;;  %v12411_v14 = vor.u32 %v14910_v29, %v12408_v43 }
 0x44c   : > { %9013 = vmatpush.bf16.msrb.mxu1 %v11819_v21  ;;  %v14974_v48 = vld [vmem:[%s15846_s27 + $0x17ec] sm:$0xf]  ;;  %v12539_v36 = vor.u32 %v14942_v25, %v12536_v60  ;;  %v12264_v39 = vld [vmem:[%s15846_s27 + $0x14d8] sm:$0xf0] }
 0x44d   : > { %9026 = vmatpush.bf16.msrb.mxu2 %v11947_v10  ;;  %v14874_v52 = vld [vmem:[%s15846_s27 + $0x14cc] sm:$0xf]  ;;  %v12667_v21 = vor.u32 %v14974_v48, %v12664_v15  ;;  %v12392_v10 = vld [vmem:[%s15846_s27 + $0x15d8] sm:$0xf0] }
 0x44e   : > { %9039 = vmatpush.bf16.msrb.mxu3 %v12075_v27  ;;  %v14906_v24 = vld [vmem:[%s15846_s27 + $0x15cc] sm:$0xf]  ;;  %v12520_v17 = vld [vmem:[%s15846_s27 + $0x16d8] sm:$0xf0]  ;;  %v12267_v2 = vor.u32 %v14874_v52, %v12264_v39 }
 0x44f   : > { %9001 = vmatpush.bf16.msrb.mxu0 %v11675_v6  ;;  %v14938_v22 = vld [vmem:[%s15846_s27 + $0x16cc] sm:$0xf]  ;;  %v12648_v27 = vld [vmem:[%s15846_s27 + $0x17d8] sm:$0xf0]  ;;  %v12395_v7 = vor.u32 %v14906_v24, %v12392_v10 }
 0x450   : > { %9014 = vmatpush.bf16.msrb.mxu1 %v11803_v56  ;;  %v14970_v40 = vld [vmem:[%s15846_s27 + $0x17cc] sm:$0xf]  ;;  %v12523_v16 = vor.u32 %v14938_v22, %v12520_v17  ;;  %v12248_v23 = vld [vmem:[%s15846_s27 + $0x14b8] sm:$0xf0] }
 0x451   : > { %9027 = vmatpush.bf16.msrb.mxu2 %v11931_v47  ;;  %v14870_v61 = vld [vmem:[%s15846_s27 + $0x14ac] sm:$0xf]  ;;  %v12651_v6 = vor.u32 %v14970_v40, %v12648_v27  ;;  %v12376_v45 = vld [vmem:[%s15846_s27 + $0x15b8] sm:$0xf0] }
 0x452   : > { %9040 = vmatpush.bf16.msrb.mxu3 %v12059_v55  ;;  %v14902_v42 = vld [vmem:[%s15846_s27 + $0x15ac] sm:$0xf]  ;;  %v12504_v11 = vld [vmem:[%s15846_s27 + $0x16b8] sm:$0xf0] }
 0x453   : > { %9002 = vmatpush.bf16.msrb.mxu0 %v11659_v13  ;;  %v14934_v30 = vld [vmem:[%s15846_s27 + $0x16ac] sm:$0xf]  ;;  %v12632_v47 = vld [vmem:[%s15846_s27 + $0x17b8] sm:$0xf0]  ;;  %v12379_v31 = vor.u32 %v14902_v42, %v12376_v45  ;;  %v8796_v29 = vpop.f32.mrf.mxu0 }
 0x454   : > { %9015 = vmatpush.bf16.msrb.mxu1 %v11787_v34  ;;  %v14966_v56 = vld [vmem:[%s15846_s27 + $0x17ac] sm:$0xf]  ;;  %v12507_v41 = vor.u32 %v14934_v30, %v12504_v11  ;;  %v12232_v9 = vld [vmem:[%s15846_s27 + $0x1498] sm:$0xf0]  ;;  %v8809_v34 = vpop.f32.mrf.mxu1 }
 0x455   : > { %9028 = vmatpush.bf16.msrb.mxu2 %v11915_v28  ;;  %v14866_v55 = vld [vmem:[%s15846_s27 + $0x148c] sm:$0xf]  ;;  %v12360_v38 = vld [vmem:[%s15846_s27 + $0x1598] sm:$0xf0] }
 0x456   : > { %9041 = vmatpush.bf16.msrb.mxu3 %v12043_v20  ;;  %9003 = vmatmul.bf16.vlgmr.msrb.gmra.mxu0 %v16271_v26  ;;  %v12251_v26 = vor.u32 %v14870_v61, %v12248_v23  ;;  %v14930_v35 = vld [vmem:[%s15846_s27 + $0x168c] sm:$0xf]  ;;  %v12488_v46 = vld [vmem:[%s15846_s27 + $0x1698] sm:$0xf0]  ;;  %v12235_v51 = vor.u32 %v14866_v55, %v12232_v9 }
 0x457   : > { %9047 = vmatpush.bf16.msra.mxu0 %v12283_v0  ;;  %9016 = vmatmul.bf16.vlgmr.msrb.gmra.mxu1 %v16278_v33  ;;  %v12635_v33 = vor.u32 %v14966_v56, %v12632_v47  ;;  %v12616_v18 = vld [vmem:[%s15846_s27 + $0x1798] sm:$0xf0]  ;;  %v12491_v13 = vor.u32 %v14930_v35, %v12488_v46  ;;  %v14862_v43 = vld [vmem:[%s15846_s27 + $0x146c] sm:$0xf]  ;;  %v8810_v0 = vadd.f32 %v8809_v34, %v8796_v29 }
 0x458   : > { %9060 = vmatpush.bf16.msra.mxu1 %v12411_v14  ;;  %9029 = vmatmul.bf16.vlgmr.msrb.gmra.mxu2 %v16276_v32  ;;  %v14898_v32 = vld [vmem:[%s15846_s27 + $0x158c] sm:$0xf]  ;;  %v12216_v25 = vld [vmem:[%s15846_s27 + $0x1478] sm:$0xf0] }
 0x459   : > { %9073 = vmatpush.bf16.msra.mxu2 %v12539_v36  ;;  %9042 = vmatmul.bf16.vlgmr.msrb.gmra.mxu3 %v16282_v37  ;;  %v14962_v37 = vld [vmem:[%s15846_s27 + $0x178c] sm:$0xf]  ;;  %v12363_v19 = vor.u32 %v14898_v32, %v12360_v38  ;;  %v12344_v48 = vld [vmem:[%s15846_s27 + $0x1578] sm:$0xf0]  ;;  %v12219_v52 = vor.u32 %v14862_v43, %v12216_v25 }
 0x45a   : > { %9086 = vmatpush.bf16.msra.mxu3 %v12667_v21  ;;  %v14894_v60 = vld [vmem:[%s15846_s27 + $0x156c] sm:$0xf]  ;;  %v12619_v28 = vor.u32 %v14962_v37, %v12616_v18  ;;  %v12472_v20 = vld [vmem:[%s15846_s27 + $0x1678] sm:$0xf0] }
 0x45b   : > { %9048 = vmatpush.bf16.msra.mxu0 %v12267_v2  ;;  %v14926_v15 = vld [vmem:[%s15846_s27 + $0x166c] sm:$0xf]  ;;  %v12600_v36 = vld [vmem:[%s15846_s27 + $0x1778] sm:$0xf0]  ;;  %v12347_v39 = vor.u32 %v14894_v60, %v12344_v48  ;;  %v8822_v17 = vpop.f32.mrf.mxu2  ;;  %v8798_v30 = vpop.f32.mrf.mxu0 }
 0x45c   : > { %9061 = vmatpush.bf16.msra.mxu1 %v12395_v7  ;;  %v14958_v14 = vld [vmem:[%s15846_s27 + $0x176c] sm:$0xf]  ;;  %v12475_v24 = vor.u32 %v14926_v15, %v12472_v20  ;;  %v12200_v10 = vld [vmem:[%s15846_s27 + $0x1458] sm:$0xf0]  ;;  %v8835_v61 = vpop.f32.mrf.mxu3 }
 0x45d   : > { %9074 = vmatpush.bf16.msra.mxu2 %v12523_v16  ;;  %v14858_v21 = vld [vmem:[%s15846_s27 + $0x144c] sm:$0xf]  ;;  %v12603_v40 = vor.u32 %v14958_v14, %v12600_v36  ;;  %v12328_v27 = vld [vmem:[%s15846_s27 + $0x1558] sm:$0xf0]  ;;  %v8823_v16 = vadd.f32 %v8822_v17, %v8810_v0 }
 0x45e   : > { %9087 = vmatpush.bf16.msra.mxu3 %v12651_v6  ;;  %v14890_v22 = vld [vmem:[%s15846_s27 + $0x154c] sm:$0xf]  ;;  %v12456_v7 = vld [vmem:[%s15846_s27 + $0x1658] sm:$0xf0]  ;;  %v12203_v6 = vor.u32 %v14858_v21, %v12200_v10 }
 0x45f   : > { %9049 = vmatpush.bf16.msra.mxu0 %v12251_v26  ;;  %v14922_v2 = vld [vmem:[%s15846_s27 + $0x164c] sm:$0xf]  ;;  %v12584_v42 = vld [vmem:[%s15846_s27 + $0x1758] sm:$0xf0]  ;;  %v18330_v45 = vadd.f32 %v8835_v61, %v8823_v16  ;;  %v12331_v11 = vor.u32 %v14890_v22, %v12328_v27 }
 0x460   : > { %9062 = vmatpush.bf16.msra.mxu1 %v12379_v31  ;;  %v14954_v23 = vld [vmem:[%s15846_s27 + $0x174c] sm:$0xf]  ;;  %v12459_v56 = vor.u32 %v14922_v2, %v12456_v7  ;;  %v12184_v26 = vld [vmem:[%s15846_s27 + $0x1438] sm:$0xf0] }
 0x461   : > { %9075 = vmatpush.bf16.msra.mxu2 %v12507_v41  ;;  %v14854_v47 = vld [vmem:[%s15846_s27 + $0x142c] sm:$0xf]  ;;  %v8811_v41 = vpop.f32.mrf.mxu1  ;;  %v12587_v55 = vor.u32 %v14954_v23, %v12584_v42  ;;  %v12312_v9 = vld [vmem:[%s15846_s27 + $0x1538] sm:$0xf0] }
 0x462   : > { %9088 = vmatpush.bf16.msra.mxu3 %v12635_v33  ;;  %v14886_v31 = vld [vmem:[%s15846_s27 + $0x152c] sm:$0xf]  ;;  %v12440_v33 = vld [vmem:[%s15846_s27 + $0x1638] sm:$0xf0]  ;;  %v12187_v46 = vor.u32 %v14854_v47, %v12184_v26 }
 0x463   : > { %9050 = vmatpush.bf16.msra.mxu0 %v12235_v51  ;;  %v14918_v32 = vld [vmem:[%s15846_s27 + $0x162c] sm:$0xf]  ;;  %v12568_v35 = vld [vmem:[%s15846_s27 + $0x1738] sm:$0xf0]  ;;  %v12315_v51 = vor.u32 %v14886_v31, %v12312_v9  ;;  %v8824_v25 = vpop.f32.mrf.mxu2 }
 0x464   : > { %9063 = vmatpush.bf16.msra.mxu1 %v12363_v19  ;;  %v14950_v38 = vld [vmem:[%s15846_s27 + $0x172c] sm:$0xf]  ;;  %v12168_v18 = vld [vmem:[%s15846_s27 + $0x1418] sm:$0xf0]  ;;  %v12443_v29 = vor.u32 %v14918_v32, %v12440_v33  ;;  %v8837_v15 = vpop.f32.mrf.mxu3 }
 0x465   : > { %9076 = vmatpush.bf16.msra.mxu2 %v12491_v13  ;;  %v14850_v37 = vld [vmem:[%s15846_s27 + $0x140c] sm:$0xf]  ;;  %v12296_v13 = vld [vmem:[%s15846_s27 + $0x1518] sm:$0xf0]  ;;  %v12571_v60 = vor.u32 %v14950_v38, %v12568_v35 }
 0x466   : > { %9089 = vmatpush.bf16.msra.mxu3 %v12619_v28  ;;  %v14882_v19 = vld [vmem:[%s15846_s27 + $0x150c] sm:$0xf]  ;;  %v12424_v34 = vld [vmem:[%s15846_s27 + $0x1618] sm:$0xf0]  ;;  %v12171_v36 = vor.u32 %v14850_v37, %v12168_v18 }
 0x467   : > { %9051 = vmatpush.bf16.msra.mxu0 %v12219_v52  ;;  %v14914_v43 = vld [vmem:[%s15846_s27 + $0x160c] sm:$0xf]  ;;  %v12552_v48 = vld [vmem:[%s15846_s27 + $0x1718] sm:$0xf0]  ;;  %v12299_v21 = vor.u32 %v14882_v19, %v12296_v13 }
 0x468   : > { %9064 = vmatpush.bf16.msra.mxu1 %v12347_v39  ;;  %v14946_v28 = vld [vmem:[%s15846_s27 + $0x170c] sm:$0xf]  ;;  %v12792_v0 = vld [vmem:[%s15846_s27 + $0x18f8] sm:$0xf0]  ;;  %v12427_v10 = vor.u32 %v14914_v43, %v12424_v34 }
 0x469   : > { %9077 = vmatpush.bf16.msra.mxu2 %v12475_v24  ;;  %v15006_v20 = vld [vmem:[%s15846_s27 + $0x18ec] sm:$0xf]  ;;  %v12920_v52 = vld [vmem:[%s15846_s27 + $0x19f8] sm:$0xf0] }
 0x46a   : > { %9090 = vmatpush.bf16.msra.mxu3 %v12603_v40  ;;  %v15038_v14 = vld [vmem:[%s15846_s27 + $0x19ec] sm:$0xf]  ;;  %v13048_v24 = vld [vmem:[%s15846_s27 + $0x1af8] sm:$0xf0]  ;;  %v12555_v40 = vor.u32 %v14946_v28, %v12552_v48  ;;  %v12795_v27 = vor.u32 %v15006_v20, %v12792_v0 }
 0x46b   : > { %9052 = vmatpush.bf16.msra.mxu0 %v12203_v6  ;;  %v15070_v39 = vld [vmem:[%s15846_s27 + $0x1aec] sm:$0xf]  ;;  %v13176_v17 = vld [vmem:[%s15846_s27 + $0x1bf8] sm:$0xf0]  ;;  %v12923_v2 = vor.u32 %v15038_v14, %v12920_v52 }
 0x46c   : > { %9065 = vmatpush.bf16.msra.mxu1 %v12331_v11  ;;  %v15102_v22 = vld [vmem:[%s15846_s27 + $0x1bec] sm:$0xf]  ;;  %v13051_v7 = vor.u32 %v15070_v39, %v13048_v24  ;;  %v12776_v61 = vld [vmem:[%s15846_s27 + $0x18d8] sm:$0xf0] }
 0x46d   : > { %9078 = vmatpush.bf16.msra.mxu2 %v12459_v56  ;;  %v15002_v16 = vld [vmem:[%s15846_s27 + $0x18cc] sm:$0xf]  ;;  %v13179_v42 = vor.u32 %v15102_v22, %v13176_v17  ;;  %v12904_v6 = vld [vmem:[%s15846_s27 + $0x19d8] sm:$0xf0] }
 0x46e   : > { %9091 = vmatpush.bf16.msra.mxu3 %v12587_v55  ;;  %v15034_v23 = vld [vmem:[%s15846_s27 + $0x19cc] sm:$0xf]  ;;  %v13032_v11 = vld [vmem:[%s15846_s27 + $0x1ad8] sm:$0xf0]  ;;  %v12779_v26 = vor.u32 %v15002_v16, %v12776_v61 }
 0x46f   : > { %9053 = vmatpush.bf16.msra.mxu0 %v12187_v46  ;;  %v15066_v30 = vld [vmem:[%s15846_s27 + $0x1acc] sm:$0xf]  ;;  %v13160_v47 = vld [vmem:[%s15846_s27 + $0x1bd8] sm:$0xf0]  ;;  %v12907_v31 = vor.u32 %v15034_v23, %v12904_v6 }
 0x470   : > { %9066 = vmatpush.bf16.msra.mxu1 %v12315_v51  ;;  %v15098_v56 = vld [vmem:[%s15846_s27 + $0x1bcc] sm:$0xf]  ;;  %v13035_v41 = vor.u32 %v15066_v30, %v13032_v11  ;;  %v12760_v9 = vld [vmem:[%s15846_s27 + $0x18b8] sm:$0xf0] }
 0x471   : > { %9079 = vmatpush.bf16.msra.mxu2 %v12443_v29  ;;  %v14998_v55 = vld [vmem:[%s15846_s27 + $0x18ac] sm:$0xf]  ;;  %v13163_v33 = vor.u32 %v15098_v56, %v13160_v47  ;;  %v12888_v38 = vld [vmem:[%s15846_s27 + $0x19b8] sm:$0xf0] }
 0x472   : > { %9092 = vmatpush.bf16.msra.mxu3 %v12571_v60  ;;  %v15030_v32 = vld [vmem:[%s15846_s27 + $0x19ac] sm:$0xf]  ;;  %v13016_v46 = vld [vmem:[%s15846_s27 + $0x1ab8] sm:$0xf0] }
 0x473   : > { %9054 = vmatpush.bf16.msra.mxu0 %v12171_v36  ;;  %v15062_v35 = vld [vmem:[%s15846_s27 + $0x1aac] sm:$0xf]  ;;  %v13144_v18 = vld [vmem:[%s15846_s27 + $0x1bb8] sm:$0xf0]  ;;  %v12891_v51 = vor.u32 %v15030_v32, %v12888_v38  ;;  %v8848_v48 = vpop.f32.mrf.mxu0 }
 0x474   : > { %9067 = vmatpush.bf16.msra.mxu1 %v12299_v21  ;;  %v15094_v37 = vld [vmem:[%s15846_s27 + $0x1bac] sm:$0xf]  ;;  %v13019_v29 = vor.u32 %v15062_v35, %v13016_v46  ;;  %v12744_v13 = vld [vmem:[%s15846_s27 + $0x1898] sm:$0xf0]  ;;  %v8849_v52 = vadd.f32 %v8848_v48, %v18330_v45  ;;  %v8861_v39 = vpop.f32.mrf.mxu1 }
 0x475   : > { %9080 = vmatpush.bf16.msra.mxu2 %v12427_v10  ;;  %v14994_v19 = vld [vmem:[%s15846_s27 + $0x188c] sm:$0xf]  ;;  %v12872_v43 = vld [vmem:[%s15846_s27 + $0x1998] sm:$0xf0] }
 0x476   : > { %9093 = vmatpush.bf16.msra.mxu3 %v12555_v40  ;;  %9055 = vmatmul.bf16.vlgmr.msra.gmra.mxu0 %v16353_v59  ;;  %v12763_v59 = vor.u32 %v14998_v55, %v12760_v9  ;;  %v15058_v25 = vld [vmem:[%s15846_s27 + $0x1a8c] sm:$0xf]  ;;  %v13000_v60 = vld [vmem:[%s15846_s27 + $0x1a98] sm:$0xf0]  ;;  %v12747_v28 = vor.u32 %v14994_v19, %v12744_v13 }
 0x477   : > { %9099 = vmatpush.bf16.msrb.mxu0 %v12795_v27  ;;  %9068 = vmatmul.bf16.vlgmr.msra.gmra.mxu1 %v16360_v1  ;;  %v13147_v1 = vor.u32 %v15094_v37, %v13144_v18  ;;  %v15090_v34 = vld [vmem:[%s15846_s27 + $0x1b8c] sm:$0xf]  ;;  %v13003_v20 = vor.u32 %v15058_v25, %v13000_v60  ;;  %v12728_v14 = vld [vmem:[%s15846_s27 + $0x1878] sm:$0xf0]  ;;  %v8862_v27 = vadd.f32 %v8861_v39, %v8849_v52 }
 0x478   : > { %9112 = vmatpush.bf16.msrb.mxu1 %v12923_v2  ;;  %9081 = vmatmul.bf16.vlgmr.msra.gmra.mxu2 %v16358_v63  ;;  %v15026_v63 = vld [vmem:[%s15846_s27 + $0x198c] sm:$0xf]  ;;  %v12856_v21 = vld [vmem:[%s15846_s27 + $0x1978] sm:$0xf0] }
 0x479   : > { %9125 = vmatpush.bf16.msrb.mxu2 %v13051_v7  ;;  %9094 = vmatmul.bf16.vlgmr.msra.gmra.mxu3 %v16364_v5  ;;  %v13128_v5 = vld [vmem:[%s15846_s27 + $0x1b98] sm:$0xf0]  ;;  %v12875_v15 = vor.u32 %v15026_v63, %v12872_v43  ;;  %v14990_v0 = vld [vmem:[%s15846_s27 + $0x186c] sm:$0xf] }
 0x47a   : > { %9138 = vmatpush.bf16.msrb.mxu3 %v13179_v42  ;;  %v15022_v36 = vld [vmem:[%s15846_s27 + $0x196c] sm:$0xf]  ;;  %v13131_v24 = vor.u32 %v15090_v34, %v13128_v5  ;;  %v12984_v22 = vld [vmem:[%s15846_s27 + $0x1a78] sm:$0xf0]  ;;  %v12731_v2 = vor.u32 %v14990_v0, %v12728_v14 }
 0x47b   : > { %9100 = vmatpush.bf16.msrb.mxu0 %v12779_v26  ;;  %v15054_v10 = vld [vmem:[%s15846_s27 + $0x1a6c] sm:$0xf]  ;;  %v13112_v40 = vld [vmem:[%s15846_s27 + $0x1b78] sm:$0xf0]  ;;  %v12859_v45 = vor.u32 %v15022_v36, %v12856_v21  ;;  %v8874_v42 = vpop.f32.mrf.mxu2  ;;  %v8850_v32 = vpop.f32.mrf.mxu0 }
 0x47c   : > { %9113 = vmatpush.bf16.msrb.mxu1 %v12907_v31  ;;  %v15086_v17 = vld [vmem:[%s15846_s27 + $0x1b6c] sm:$0xf]  ;;  %v12987_v7 = vor.u32 %v15054_v10, %v12984_v22  ;;  %v12712_v61 = vld [vmem:[%s15846_s27 + $0x1858] sm:$0xf0]  ;;  %v8875_v47 = vadd.f32 %v8874_v42, %v8862_v27  ;;  %v8887_v26 = vpop.f32.mrf.mxu3  ;;  %v8863_v18 = vpop.f32.mrf.mxu1 }
 0x47d   : > { %9126 = vmatpush.bf16.msrb.mxu2 %v13035_v41  ;;  %v14986_v16 = vld [vmem:[%s15846_s27 + $0x184c] sm:$0xf]  ;;  %v13115_v6 = vor.u32 %v15086_v17, %v13112_v40  ;;  %v12840_v30 = vld [vmem:[%s15846_s27 + $0x1958] sm:$0xf0] }
 0x47e   : > { %9139 = vmatpush.bf16.msrb.mxu3 %v13163_v33  ;;  %v15018_v23 = vld [vmem:[%s15846_s27 + $0x194c] sm:$0xf]  ;;  %v12968_v56 = vld [vmem:[%s15846_s27 + $0x1a58] sm:$0xf0]  ;;  %v12715_v55 = vor.u32 %v14986_v16, %v12712_v61  ;;  %v18401_v9 = vadd.f32 %v8887_v26, %v8875_v47 }
 0x47f   : > { %9101 = vmatpush.bf16.msrb.mxu0 %v12763_v59  ;;  %v15050_v11 = vld [vmem:[%s15846_s27 + $0x1a4c] sm:$0xf]  ;;  %v13096_v41 = vld [vmem:[%s15846_s27 + $0x1b58] sm:$0xf0]  ;;  %v12843_v33 = vor.u32 %v15018_v23, %v12840_v30 }
 0x480   : > { %9114 = vmatpush.bf16.msrb.mxu1 %v12891_v51  ;;  %v15082_v31 = vld [vmem:[%s15846_s27 + $0x1b4c] sm:$0xf]  ;;  %v12971_v38 = vor.u32 %v15050_v11, %v12968_v56  ;;  %v12696_v46 = vld [vmem:[%s15846_s27 + $0x1838] sm:$0xf0] }
 0x481   : > { %9127 = vmatpush.bf16.msrb.mxu2 %v13019_v29  ;;  %v14982_v35 = vld [vmem:[%s15846_s27 + $0x182c] sm:$0xf]  ;;  %v13099_v59 = vor.u32 %v15082_v31, %v13096_v41  ;;  %v12824_v51 = vld [vmem:[%s15846_s27 + $0x1938] sm:$0xf0] }
 0x482   : > { %9140 = vmatpush.bf16.msrb.mxu3 %v13147_v1  ;;  %v15014_v37 = vld [vmem:[%s15846_s27 + $0x192c] sm:$0xf]  ;;  %v12952_v19 = vld [vmem:[%s15846_s27 + $0x1a38] sm:$0xf0]  ;;  %v12699_v1 = vor.u32 %v14982_v35, %v12696_v46 }
 0x483   : > { %9102 = vmatpush.bf16.msrb.mxu0 %v12747_v28  ;;  %v15046_v29 = vld [vmem:[%s15846_s27 + $0x1a2c] sm:$0xf]  ;;  %v13080_v63 = vld [vmem:[%s15846_s27 + $0x1b38] sm:$0xf0]  ;;  %v12827_v60 = vor.u32 %v15014_v37, %v12824_v51 }
 0x484   : > { %9115 = vmatpush.bf16.msrb.mxu1 %v12875_v15  ;;  %v15078_v13 = vld [vmem:[%s15846_s27 + $0x1b2c] sm:$0xf]  ;;  %v12680_v25 = vld [vmem:[%s15846_s27 + $0x1818] sm:$0xf0]  ;;  %v12955_v34 = vor.u32 %v15046_v29, %v12952_v19  ;;  %v8876_v15 = vpop.f32.mrf.mxu2  ;;  %v8889_v52 = vpop.f32.mrf.mxu3 }
 0x485   : > { %9128 = vmatpush.bf16.msrb.mxu2 %v13003_v20  ;;  %v14978_v43 = vld [vmem:[%s15846_s27 + $0x180c] sm:$0xf]  ;;  %v12808_v28 = vld [vmem:[%s15846_s27 + $0x1918] sm:$0xf0]  ;;  %v13083_v20 = vor.u32 %v15078_v13, %v13080_v63 }
 0x486   : > { %9141 = vmatpush.bf16.msrb.mxu3 %v13131_v24  ;;  %v15010_v5 = vld [vmem:[%s15846_s27 + $0x190c] sm:$0xf]  ;;  %v12936_v0 = vld [vmem:[%s15846_s27 + $0x1a18] sm:$0xf0]  ;;  %v12683_v10 = vor.u32 %v14978_v43, %v12680_v25 }
 0x487   : > { %9103 = vmatpush.bf16.msrb.mxu0 %v12731_v2  ;;  %v15042_v48 = vld [vmem:[%s15846_s27 + $0x1a0c] sm:$0xf]  ;;  %v13064_v36 = vld [vmem:[%s15846_s27 + $0x1b18] sm:$0xf0]  ;;  %v12811_v27 = vor.u32 %v15010_v5, %v12808_v28 }
 0x488   : > { %9116 = vmatpush.bf16.msrb.mxu1 %v12859_v45  ;;  %v15074_v14 = vld [vmem:[%s15846_s27 + $0x1b0c] sm:$0xf]  ;;  %v13304_v24 = vld [vmem:[%s15846_s27 + $0x1cf8] sm:$0xf0]  ;;  %v12939_v2 = vor.u32 %v15042_v48, %v12936_v0 }
 0x489   : > { %9129 = vmatpush.bf16.msrb.mxu2 %v12987_v7  ;;  %v15134_v39 = vld [vmem:[%s15846_s27 + $0x1cec] sm:$0xf]  ;;  %v13432_v22 = vld [vmem:[%s15846_s27 + $0x1df8] sm:$0xf0]  ;;  %v13067_v16 = vor.u32 %v15074_v14, %v13064_v36 }
 0x48a   : > { %9142 = vmatpush.bf16.msrb.mxu3 %v13115_v6  ;;  %v15166_v21 = vld [vmem:[%s15846_s27 + $0x1dec] sm:$0xf]  ;;  %v13560_v40 = vld [vmem:[%s15846_s27 + $0x1ef8] sm:$0xf0]  ;;  %v13307_v61 = vor.u32 %v15134_v39, %v13304_v24 }
 0x48b   : > { %9104 = vmatpush.bf16.msrb.mxu0 %v12715_v55  ;;  %v15198_v17 = vld [vmem:[%s15846_s27 + $0x1eec] sm:$0xf]  ;;  %v13688_v7 = vld [vmem:[%s15846_s27 + $0x1ff8] sm:$0xf0]  ;;  %v13435_v23 = vor.u32 %v15166_v21, %v13432_v22 }
 0x48c   : > { %9117 = vmatpush.bf16.msrb.mxu1 %v12843_v33  ;;  %v15230_v45 = vld [vmem:[%s15846_s27 + $0x1fec] sm:$0xf]  ;;  %v13563_v42 = vor.u32 %v15198_v17, %v13560_v40  ;;  %v13288_v30 = vld [vmem:[%s15846_s27 + $0x1cd8] sm:$0xf0] }
 0x48d   : > { %9130 = vmatpush.bf16.msrb.mxu2 %v12971_v38  ;;  %v15130_v6 = vld [vmem:[%s15846_s27 + $0x1ccc] sm:$0xf]  ;;  %v13691_v56 = vor.u32 %v15230_v45, %v13688_v7  ;;  %v13416_v47 = vld [vmem:[%s15846_s27 + $0x1dd8] sm:$0xf0] }
 0x48e   : > { %9143 = vmatpush.bf16.msrb.mxu3 %v13099_v59  ;;  %v15162_v11 = vld [vmem:[%s15846_s27 + $0x1dcc] sm:$0xf]  ;;  %v13544_v31 = vld [vmem:[%s15846_s27 + $0x1ed8] sm:$0xf0]  ;;  %v13291_v32 = vor.u32 %v15130_v6, %v13288_v30 }
 0x48f   : > { %9105 = vmatpush.bf16.msrb.mxu0 %v12699_v1  ;;  %v15194_v26 = vld [vmem:[%s15846_s27 + $0x1ecc] sm:$0xf]  ;;  %v13672_v55 = vld [vmem:[%s15846_s27 + $0x1fd8] sm:$0xf0]  ;;  %v13419_v33 = vor.u32 %v15162_v11, %v13416_v47 }
 0x490   : > { %9118 = vmatpush.bf16.msrb.mxu1 %v12827_v60  ;;  %v15226_v41 = vld [vmem:[%s15846_s27 + $0x1fcc] sm:$0xf]  ;;  %v13547_v38 = vor.u32 %v15194_v26, %v13544_v31  ;;  %v13272_v46 = vld [vmem:[%s15846_s27 + $0x1cb8] sm:$0xf0] }
 0x491   : > { %9131 = vmatpush.bf16.msrb.mxu2 %v12955_v34  ;;  %v15126_v35 = vld [vmem:[%s15846_s27 + $0x1cac] sm:$0xf]  ;;  %v13675_v18 = vor.u32 %v15226_v41, %v13672_v55  ;;  %v13400_v59 = vld [vmem:[%s15846_s27 + $0x1db8] sm:$0xf0] }
 0x492   : > { %9144 = vmatpush.bf16.msrb.mxu3 %v13083_v20  ;;  %v15158_v37 = vld [vmem:[%s15846_s27 + $0x1dac] sm:$0xf]  ;;  %v13528_v29 = vld [vmem:[%s15846_s27 + $0x1eb8] sm:$0xf0] }
 0x493   : > { %9106 = vmatpush.bf16.msrb.mxu0 %v12683_v10  ;;  %v15190_v51 = vld [vmem:[%s15846_s27 + $0x1eac] sm:$0xf]  ;;  %v13656_v13 = vld [vmem:[%s15846_s27 + $0x1fb8] sm:$0xf0]  ;;  %v13403_v63 = vor.u32 %v15158_v37, %v13400_v59 }
 0x494   : > { %9119 = vmatpush.bf16.msrb.mxu1 %v12811_v27  ;;  %v15222_v19 = vld [vmem:[%s15846_s27 + $0x1fac] sm:$0xf]  ;;  %v13531_v1 = vor.u32 %v15190_v51, %v13528_v29  ;;  %v13256_v25 = vld [vmem:[%s15846_s27 + $0x1c98] sm:$0xf0]  ;;  %v8913_v0 = vpop.f32.mrf.mxu1 }
 0x495   : > { %9132 = vmatpush.bf16.msrb.mxu2 %v12939_v2  ;;  %v15122_v43 = vld [vmem:[%s15846_s27 + $0x1c8c] sm:$0xf]  ;;  %v13384_v60 = vld [vmem:[%s15846_s27 + $0x1d98] sm:$0xf0] }
 0x496   : > { %9145 = vmatpush.bf16.msrb.mxu3 %v13067_v16  ;;  %9107 = vmatmul.bf16.vlgmr.msrb.gmra.mxu0 %v16436_v53  ;;  %v13275_v53 = vor.u32 %v15126_v35, %v13272_v46  ;;  %v15186_v34 = vld [vmem:[%s15846_s27 + $0x1e8c] sm:$0xf]  ;;  %v13512_v5 = vld [vmem:[%s15846_s27 + $0x1e98] sm:$0xf0]  ;;  %v13259_v20 = vor.u32 %v15122_v43, %v13256_v25 }
 0x497   : > { %9151 = vmatpush.bf16.msra.mxu0 %v13307_v61  ;;  %9120 = vmatmul.bf16.vlgmr.msrb.gmra.mxu1 %v16443_v58  ;;  %v13659_v58 = vor.u32 %v15222_v19, %v13656_v13  ;;  %v15218_v28 = vld [vmem:[%s15846_s27 + $0x1f8c] sm:$0xf]  ;;  %v13640_v48 = vld [vmem:[%s15846_s27 + $0x1f98] sm:$0xf0]  ;;  %v13515_v36 = vor.u32 %v15186_v34, %v13512_v5 }
 0x498   : > { %9164 = vmatpush.bf16.msra.mxu1 %v13435_v23  ;;  %9133 = vmatmul.bf16.vlgmr.msrb.gmra.mxu2 %v16441_v57  ;;  %v15154_v57 = vld [vmem:[%s15846_s27 + $0x1d8c] sm:$0xf]  ;;  %v13240_v39 = vld [vmem:[%s15846_s27 + $0x1c78] sm:$0xf0]  ;;  %v13643_v21 = vor.u32 %v15218_v28, %v13640_v48 }
 0x499   : > { %9177 = vmatpush.bf16.msra.mxu2 %v13563_v42  ;;  %9146 = vmatmul.bf16.vlgmr.msrb.gmra.mxu3 %v16447_v62  ;;  %v8900_v62 = vpop.f32.mrf.mxu0  ;;  %v13387_v14 = vor.u32 %v15154_v57, %v13384_v60  ;;  %v15118_v52 = vld [vmem:[%s15846_s27 + $0x1c6c] sm:$0xf]  ;;  %v13368_v22 = vld [vmem:[%s15846_s27 + $0x1d78] sm:$0xf0] }
 0x49a   : > { %9190 = vmatpush.bf16.msra.mxu3 %v13691_v56  ;;  %v8901_v15 = vadd.f32 %v8900_v62, %v18401_v9  ;;  %v15150_v24 = vld [vmem:[%s15846_s27 + $0x1d6c] sm:$0xf]  ;;  %v13496_v9 = vld [vmem:[%s15846_s27 + $0x1e78] sm:$0xf0]  ;;  %v13243_v2 = vor.u32 %v15118_v52, %v13240_v39 }
 0x49b   : > { %9152 = vmatpush.bf16.msra.mxu0 %v13291_v32  ;;  %v15182_v17 = vld [vmem:[%s15846_s27 + $0x1e6c] sm:$0xf]  ;;  %v13624_v27 = vld [vmem:[%s15846_s27 + $0x1f78] sm:$0xf0]  ;;  %v13371_v45 = vor.u32 %v15150_v24, %v13368_v22  ;;  %v8926_v6 = vpop.f32.mrf.mxu2 }
 0x49c   : > { %9165 = vmatpush.bf16.msra.mxu1 %v13419_v33  ;;  %v8914_v10 = vadd.f32 %v8913_v0, %v8901_v15  ;;  %v15214_v40 = vld [vmem:[%s15846_s27 + $0x1f6c] sm:$0xf]  ;;  %v13499_v7 = vor.u32 %v15182_v17, %v13496_v9  ;;  %v13224_v61 = vld [vmem:[%s15846_s27 + $0x1c58] sm:$0xf0]  ;;  %v8939_v26 = vpop.f32.mrf.mxu3  ;;  %v8915_v33 = vpop.f32.mrf.mxu1 }
 0x49d   : > { %9178 = vmatpush.bf16.msra.mxu2 %v13547_v38  ;;  %v15114_v16 = vld [vmem:[%s15846_s27 + $0x1c4c] sm:$0xf]  ;;  %v13627_v42 = vor.u32 %v15214_v40, %v13624_v27  ;;  %v13352_v30 = vld [vmem:[%s15846_s27 + $0x1d58] sm:$0xf0] }
 0x49e   : > { %9191 = vmatpush.bf16.msra.mxu3 %v13675_v18  ;;  %v15146_v23 = vld [vmem:[%s15846_s27 + $0x1d4c] sm:$0xf]  ;;  %v13480_v56 = vld [vmem:[%s15846_s27 + $0x1e58] sm:$0xf0]  ;;  %v8927_v47 = vadd.f32 %v8926_v6, %v8914_v10  ;;  %v13227_v32 = vor.u32 %v15114_v16, %v13224_v61 }
 0x49f   : > { %9153 = vmatpush.bf16.msra.mxu0 %v13275_v53  ;;  %v15178_v11 = vld [vmem:[%s15846_s27 + $0x1e4c] sm:$0xf]  ;;  %v13608_v41 = vld [vmem:[%s15846_s27 + $0x1f58] sm:$0xf0]  ;;  %v13355_v35 = vor.u32 %v15146_v23, %v13352_v30 }
 0x4a0   : > { %9166 = vmatpush.bf16.msra.mxu1 %v13403_v63  ;;  %v15210_v31 = vld [vmem:[%s15846_s27 + $0x1f4c] sm:$0xf]  ;;  %v18472_v38 = vadd.f32 %v8939_v26, %v8927_v47  ;;  %v13483_v46 = vor.u32 %v15178_v11, %v13480_v56  ;;  %v13208_v18 = vld [vmem:[%s15846_s27 + $0x1c38] sm:$0xf0] }
 0x4a1   : > { %9179 = vmatpush.bf16.msra.mxu2 %v13531_v1  ;;  %v8902_v55 = vpop.f32.mrf.mxu0  ;;  %v15110_v37 = vld [vmem:[%s15846_s27 + $0x1c2c] sm:$0xf]  ;;  %v13611_v51 = vor.u32 %v15210_v31, %v13608_v41  ;;  %v13336_v29 = vld [vmem:[%s15846_s27 + $0x1d38] sm:$0xf0] }
 0x4a2   : > { %9192 = vmatpush.bf16.msra.mxu3 %v13659_v58  ;;  %v15142_v59 = vld [vmem:[%s15846_s27 + $0x1d2c] sm:$0xf]  ;;  %v13464_v13 = vld [vmem:[%s15846_s27 + $0x1e38] sm:$0xf0]  ;;  %v13211_v1 = vor.u32 %v15110_v37, %v13208_v18 }
 0x4a3   : > { %9154 = vmatpush.bf16.msra.mxu0 %v13259_v20  ;;  %v15174_v19 = vld [vmem:[%s15846_s27 + $0x1e2c] sm:$0xf]  ;;  %v13592_v63 = vld [vmem:[%s15846_s27 + $0x1f38] sm:$0xf0]  ;;  %v13339_v57 = vor.u32 %v15142_v59, %v13336_v29  ;;  %v8928_v20 = vpop.f32.mrf.mxu2 }
 0x4a4   : > { %9167 = vmatpush.bf16.msra.mxu1 %v13387_v14  ;;  %v15206_v53 = vld [vmem:[%s15846_s27 + $0x1f2c] sm:$0xf]  ;;  %v13192_v25 = vld [vmem:[%s15846_s27 + $0x1c18] sm:$0xf0]  ;;  %v13467_v58 = vor.u32 %v15174_v19, %v13464_v13  ;;  %v8941_v52 = vpop.f32.mrf.mxu3 }
 0x4a5   : > { %9180 = vmatpush.bf16.msra.mxu2 %v13515_v36  ;;  %v15106_v43 = vld [vmem:[%s15846_s27 + $0x1c0c] sm:$0xf]  ;;  %v13320_v34 = vld [vmem:[%s15846_s27 + $0x1d18] sm:$0xf0]  ;;  %v13595_v62 = vor.u32 %v15206_v53, %v13592_v63 }
 0x4a6   : > { %9193 = vmatpush.bf16.msra.mxu3 %v13643_v21  ;;  %v15138_v60 = vld [vmem:[%s15846_s27 + $0x1d0c] sm:$0xf]  ;;  %v13448_v28 = vld [vmem:[%s15846_s27 + $0x1e18] sm:$0xf0]  ;;  %v13195_v39 = vor.u32 %v15106_v43, %v13192_v25 }
 0x4a7   : > { %9155 = vmatpush.bf16.msra.mxu0 %v13243_v2  ;;  %v15170_v5 = vld [vmem:[%s15846_s27 + $0x1e0c] sm:$0xf]  ;;  %v13576_v15 = vld [vmem:[%s15846_s27 + $0x1f18] sm:$0xf0]  ;;  %v13323_v22 = vor.u32 %v15138_v60, %v13320_v34 }
 0x4a8   : > { %9168 = vmatpush.bf16.msra.mxu1 %v13371_v45  ;;  %v15202_v48 = vld [vmem:[%s15846_s27 + $0x1f0c] sm:$0xf]  ;;  %v13816_v14 = vld [vmem:[%s15846_s27 + $0x20f8] sm:$0xf0]  ;;  %v13451_v17 = vor.u32 %v15170_v5, %v13448_v28 }
 0x4a9   : > { %9181 = vmatpush.bf16.msra.mxu2 %v13499_v7  ;;  %v15262_v0 = vld [vmem:[%s15846_s27 + $0x20ec] sm:$0xf]  ;;  %v13944_v24 = vld [vmem:[%s15846_s27 + $0x21f8] sm:$0xf0]  ;;  %v13579_v27 = vor.u32 %v15202_v48, %v13576_v15 }
 0x4aa   : > { %9194 = vmatpush.bf16.msra.mxu3 %v13627_v42  ;;  %v15294_v36 = vld [vmem:[%s15846_s27 + $0x21ec] sm:$0xf]  ;;  %v14072_v10 = vld [vmem:[%s15846_s27 + $0x22f8] sm:$0xf0]  ;;  %v13819_v2 = vor.u32 %v15262_v0, %v13816_v14 }
 0x4ab   : > { %9156 = vmatpush.bf16.msra.mxu0 %v13227_v32  ;;  %v15326_v21 = vld [vmem:[%s15846_s27 + $0x22ec] sm:$0xf]  ;;  %v14200_v40 = vld [vmem:[%s15846_s27 + $0x23f8] sm:$0xf0]  ;;  %v13947_v45 = vor.u32 %v15294_v36, %v13944_v24 }
 0x4ac   : > { %9169 = vmatpush.bf16.msra.mxu1 %v13355_v35  ;;  %v15358_v9 = vld [vmem:[%s15846_s27 + $0x23ec] sm:$0xf]  ;;  %v14075_v7 = vor.u32 %v15326_v21, %v14072_v10  ;;  %v13800_v61 = vld [vmem:[%s15846_s27 + $0x20d8] sm:$0xf0] }
 0x4ad   : > { %9182 = vmatpush.bf16.msra.mxu2 %v13483_v46  ;;  %v15258_v16 = vld [vmem:[%s15846_s27 + $0x20cc] sm:$0xf]  ;;  %v14203_v42 = vor.u32 %v15358_v9, %v14200_v40  ;;  %v13928_v6 = vld [vmem:[%s15846_s27 + $0x21d8] sm:$0xf0] }
 0x4ae   : > { %9195 = vmatpush.bf16.msra.mxu3 %v13611_v51  ;;  %v15290_v23 = vld [vmem:[%s15846_s27 + $0x21cc] sm:$0xf]  ;;  %v14056_v11 = vld [vmem:[%s15846_s27 + $0x22d8] sm:$0xf0]  ;;  %v13803_v26 = vor.u32 %v15258_v16, %v13800_v61 }
 0x4af   : > { %9157 = vmatpush.bf16.msra.mxu0 %v13211_v1  ;;  %v15322_v30 = vld [vmem:[%s15846_s27 + $0x22cc] sm:$0xf]  ;;  %v14184_v47 = vld [vmem:[%s15846_s27 + $0x23d8] sm:$0xf0]  ;;  %v13931_v31 = vor.u32 %v15290_v23, %v13928_v6 }
 0x4b0   : > { %9170 = vmatpush.bf16.msra.mxu1 %v13339_v57  ;;  %v15354_v56 = vld [vmem:[%s15846_s27 + $0x23cc] sm:$0xf]  ;;  %v14059_v41 = vor.u32 %v15322_v30, %v14056_v11  ;;  %v13784_v32 = vld [vmem:[%s15846_s27 + $0x20b8] sm:$0xf0] }
 0x4b1   : > { %9183 = vmatpush.bf16.msra.mxu2 %v13467_v58  ;;  %v15254_v55 = vld [vmem:[%s15846_s27 + $0x20ac] sm:$0xf]  ;;  %v14187_v35 = vor.u32 %v15354_v56, %v14184_v47  ;;  %v13912_v46 = vld [vmem:[%s15846_s27 + $0x21b8] sm:$0xf0] }
 0x4b2   : > { %9196 = vmatpush.bf16.msra.mxu3 %v13595_v62  ;;  %v15286_v33 = vld [vmem:[%s15846_s27 + $0x21ac] sm:$0xf]  ;;  %v14040_v18 = vld [vmem:[%s15846_s27 + $0x22b8] sm:$0xf0] }
 0x4b3   : > { %9158 = vmatpush.bf16.msra.mxu0 %v13195_v39  ;;  %v15318_v37 = vld [vmem:[%s15846_s27 + $0x22ac] sm:$0xf]  ;;  %v14168_v51 = vld [vmem:[%s15846_s27 + $0x23b8] sm:$0xf0]  ;;  %v13915_v29 = vor.u32 %v15286_v33, %v13912_v46 }
 0x4b4   : > { %9171 = vmatpush.bf16.msra.mxu1 %v13323_v22  ;;  %v15350_v59 = vld [vmem:[%s15846_s27 + $0x23ac] sm:$0xf]  ;;  %v14043_v19 = vor.u32 %v15318_v37, %v14040_v18  ;;  %v13768_v53 = vld [vmem:[%s15846_s27 + $0x2098] sm:$0xf0]  ;;  %v8965_v34 = vpop.f32.mrf.mxu1 }
 0x4b5   : > { %9184 = vmatpush.bf16.msra.mxu2 %v13451_v17  ;;  %v15250_v13 = vld [vmem:[%s15846_s27 + $0x208c] sm:$0xf]  ;;  %v13896_v63 = vld [vmem:[%s15846_s27 + $0x2198] sm:$0xf0] }
 0x4b6   : > { %9197 = vmatpush.bf16.msra.mxu3 %v13579_v27  ;;  %9159 = vmatmul.bf16.vlgmr.msra.gmra.mxu0 %v16519_v4  ;;  %v13787_v4 = vor.u32 %v15254_v55, %v13784_v32  ;;  %v15314_v1 = vld [vmem:[%s15846_s27 + $0x228c] sm:$0xf]  ;;  %v14024_v43 = vld [vmem:[%s15846_s27 + $0x2298] sm:$0xf0]  ;;  %v13771_v60 = vor.u32 %v15250_v13, %v13768_v53 }
 0x4b7   : > { %9203 = vmatpush.bf16.msrb.mxu0 %v13819_v2  ;;  %9172 = vmatmul.bf16.vlgmr.msra.gmra.mxu1 %v16526_v8  ;;  %v14171_v8 = vor.u32 %v15350_v59, %v14168_v51  ;;  %v15346_v25 = vld [vmem:[%s15846_s27 + $0x238c] sm:$0xf]  ;;  %v14152_v57 = vld [vmem:[%s15846_s27 + $0x2398] sm:$0xf0]  ;;  %v14027_v62 = vor.u32 %v15314_v1, %v14024_v43 }
 0x4b8   : > { %9216 = vmatpush.bf16.msrb.mxu1 %v13947_v45  ;;  %9185 = vmatmul.bf16.vlgmr.msra.gmra.mxu2 %v16524_v3  ;;  %v15282_v3 = vld [vmem:[%s15846_s27 + $0x218c] sm:$0xf]  ;;  %v13752_v48 = vld [vmem:[%s15846_s27 + $0x2078] sm:$0xf0]  ;;  %v14155_v20 = vor.u32 %v15346_v25, %v14152_v57 }
 0x4b9   : > { %9229 = vmatpush.bf16.msrb.mxu2 %v14075_v7  ;;  %9198 = vmatmul.bf16.vlgmr.msra.gmra.mxu3 %v16530_v12  ;;  %v8952_v12 = vpop.f32.mrf.mxu0  ;;  %v13899_v5 = vor.u32 %v15282_v3, %v13896_v63  ;;  %v15246_v28 = vld [vmem:[%s15846_s27 + $0x206c] sm:$0xf]  ;;  %v13880_v14 = vld [vmem:[%s15846_s27 + $0x2178] sm:$0xf0] }
 0x4ba   : > { %9242 = vmatpush.bf16.msrb.mxu3 %v14203_v42  ;;  %v8953_v58 = vadd.f32 %v8952_v12, %v18472_v38  ;;  %v15278_v15 = vld [vmem:[%s15846_s27 + $0x216c] sm:$0xf]  ;;  %v14008_v38 = vld [vmem:[%s15846_s27 + $0x2278] sm:$0xf0]  ;;  %v13755_v24 = vor.u32 %v15246_v28, %v13752_v48 }
 0x4bb   : > { %9204 = vmatpush.bf16.msrb.mxu0 %v13803_v26  ;;  %v15310_v36 = vld [vmem:[%s15846_s27 + $0x226c] sm:$0xf]  ;;  %v14136_v39 = vld [vmem:[%s15846_s27 + $0x2378] sm:$0xf0]  ;;  %v13883_v21 = vor.u32 %v15278_v15, %v13880_v14  ;;  %v8978_v27 = vpop.f32.mrf.mxu2 }
 0x4bc   : > { %9217 = vmatpush.bf16.msrb.mxu1 %v13931_v31  ;;  %v8966_v0 = vadd.f32 %v8965_v34, %v8953_v58  ;;  %v15342_v52 = vld [vmem:[%s15846_s27 + $0x236c] sm:$0xf]  ;;  %v14011_v10 = vor.u32 %v15310_v36, %v14008_v38  ;;  %v13736_v17 = vld [vmem:[%s15846_s27 + $0x2058] sm:$0xf0]  ;;  %v8991_v61 = vpop.f32.mrf.mxu3  ;;  %v8967_v11 = vpop.f32.mrf.mxu1 }
 0x4bd   : > { %9230 = vmatpush.bf16.msrb.mxu2 %v14059_v41  ;;  %v15242_v22 = vld [vmem:[%s15846_s27 + $0x204c] sm:$0xf]  ;;  %v14139_v40 = vor.u32 %v15342_v52, %v14136_v39  ;;  %v13864_v2 = vld [vmem:[%s15846_s27 + $0x2158] sm:$0xf0] }
 0x4be   : > { %9243 = vmatpush.bf16.msrb.mxu3 %v14187_v35  ;;  %v15274_v9 = vld [vmem:[%s15846_s27 + $0x214c] sm:$0xf]  ;;  %v13992_v7 = vld [vmem:[%s15846_s27 + $0x2258] sm:$0xf0]  ;;  %v8979_v16 = vadd.f32 %v8978_v27, %v8966_v0  ;;  %v13739_v30 = vor.u32 %v15242_v22, %v13736_v17 }
 0x4bf   : > { %9205 = vmatpush.bf16.msrb.mxu0 %v13787_v4  ;;  %v15306_v45 = vld [vmem:[%s15846_s27 + $0x224c] sm:$0xf]  ;;  %v14120_v42 = vld [vmem:[%s15846_s27 + $0x2358] sm:$0xf0]  ;;  %v13867_v47 = vor.u32 %v15274_v9, %v13864_v2 }
 0x4c0   : > { %9218 = vmatpush.bf16.msrb.mxu1 %v13915_v29  ;;  %v15338_v23 = vld [vmem:[%s15846_s27 + $0x234c] sm:$0xf]  ;;  %v8992_v56 = vadd.f32 %v8991_v61, %v8979_v16  ;;  %v13995_v26 = vor.u32 %v15306_v45, %v13992_v7  ;;  %v13720_v41 = vld [vmem:[%s15846_s27 + $0x2038] sm:$0xf0] }
 0x4c1   : > { %9231 = vmatpush.bf16.msrb.mxu2 %v14043_v19  ;;  %v8954_v6 = vpop.f32.mrf.mxu0  ;;  %v15238_v31 = vld [vmem:[%s15846_s27 + $0x202c] sm:$0xf]  ;;  %v14123_v32 = vor.u32 %v15338_v23, %v14120_v42  ;;  %v13848_v33 = vld [vmem:[%s15846_s27 + $0x2138] sm:$0xf0] }
 0x4c2   : > { %9244 = vmatpush.bf16.msrb.mxu3 %v14171_v8  ;;  %v15270_v55 = vld [vmem:[%s15846_s27 + $0x212c] sm:$0xf]  ;;  %v13976_v46 = vld [vmem:[%s15846_s27 + $0x2238] sm:$0xf0]  ;;  %v13723_v59 = vor.u32 %v15238_v31, %v13720_v41 }
 0x4c3   : > { %9206 = vmatpush.bf16.msrb.mxu0 %v13771_v60  ;;  %v15302_v35 = vld [vmem:[%s15846_s27 + $0x222c] sm:$0xf]  ;;  %v14104_v18 = vld [vmem:[%s15846_s27 + $0x2338] sm:$0xf0]  ;;  %v13851_v51 = vor.u32 %v15270_v55, %v13848_v33  ;;  %v8980_v1 = vpop.f32.mrf.mxu2 }
 0x4c4   : > { %9219 = vmatpush.bf16.msrb.mxu1 %v13899_v5  ;;  %v15334_v37 = vld [vmem:[%s15846_s27 + $0x232c] sm:$0xf]  ;;  %v13979_v4 = vor.u32 %v15302_v35, %v13976_v46  ;;  %v13704_v19 = vld [vmem:[%s15846_s27 + $0x2018] sm:$0xf0]  ;;  %v8993_v25 = vpop.f32.mrf.mxu3 }
 0x4c5   : > { %9232 = vmatpush.bf16.msrb.mxu2 %v14027_v62  ;;  %v15234_v29 = vld [vmem:[%s15846_s27 + $0x200c] sm:$0xf]  ;;  %v14107_v53 = vor.u32 %v15334_v37, %v14104_v18  ;;  %v13832_v3 = vld [vmem:[%s15846_s27 + $0x2118] sm:$0xf0] }
 0x4c6   : > { %9245 = vmatpush.bf16.msrb.mxu3 %v14155_v20  ;;  %v15266_v13 = vld [vmem:[%s15846_s27 + $0x210c] sm:$0xf]  ;;  %v13960_v63 = vld [vmem:[%s15846_s27 + $0x2218] sm:$0xf0]  ;;  %v13707_v57 = vor.u32 %v15234_v29, %v13704_v19 }
 0x4c7   : > { %9207 = vmatpush.bf16.msrb.mxu0 %v13755_v24  ;;  %v15298_v8 = vld [vmem:[%s15846_s27 + $0x220c] sm:$0xf]  ;;  %v14088_v12 = vld [vmem:[%s15846_s27 + $0x2318] sm:$0xf0]  ;;  %v13835_v58 = vor.u32 %v15266_v13, %v13832_v3 }
 0x4c8   : > { %9220 = vmatpush.bf16.msrb.mxu1 %v13883_v21  ;;  %v15330_v43 = vld [vmem:[%s15846_s27 + $0x230c] sm:$0xf]  ;;  %v13963_v60 = vor.u32 %v15298_v8, %v13960_v63 }
 0x4c9   : > { %9233 = vmatpush.bf16.msrb.mxu2 %v14011_v10  ;;  %v14091_v34 = vor.u32 %v15330_v43, %v14088_v12  ;;  %v398_v1 = vld [vmem:[#allocation2 + $0x8] sm:$0xff] }
 0x4ca   : > { %9246 = vmatpush.bf16.msrb.mxu3 %v14139_v40 }
 0x4cb   : > { %9208 = vmatpush.bf16.msrb.mxu0 %v13739_v30 }
 0x4cc   : > { %9221 = vmatpush.bf16.msrb.mxu1 %v13867_v47 }
 0x4cd   : > { %9234 = vmatpush.bf16.msrb.mxu2 %v13995_v26 }
 0x4ce   : > { %9247 = vmatpush.bf16.msrb.mxu3 %v14123_v32 }
 0x4cf   : > { %9209 = vmatpush.bf16.msrb.mxu0 %v13723_v59 }
 0x4d0   : > { %9222 = vmatpush.bf16.msrb.mxu1 %v13851_v51 }
 0x4d1   : > { %9235 = vmatpush.bf16.msrb.mxu2 %v13979_v4 }
 0x4d2   : > { %9248 = vmatpush.bf16.msrb.mxu3 %v14107_v53 }
 0x4d3   : > { %9210 = vmatpush.bf16.msrb.mxu0 %v13707_v57  ;;  %v9004_v5 = vpop.f32.mrf.mxu0 }
 0x4d4   : > { %9223 = vmatpush.bf16.msrb.mxu1 %v13835_v58  ;;  %v9005_v62 = vadd.f32 %v9004_v5, %v8992_v56  ;;  %v9017_v28 = vpop.f32.mrf.mxu1 }
 0x4d5   : > { %9236 = vmatpush.bf16.msrb.mxu2 %v13963_v60 }
 0x4d6   : > { %9249 = vmatpush.bf16.msrb.mxu3 %v14091_v34  ;;  %9211 = vmatmul.bf16.vlgmr.msrb.gmra.mxu0 %v16602_v44  ;;  %v9018_v48 = vadd.f32 %v9017_v28, %v9005_v62 }
 0x4d7   : > { %9224 = vmatmul.bf16.vlgmr.msrb.gmra.mxu1 %v16609_v50 }
 0x4d8   : > { %9237 = vmatmul.bf16.vlgmr.msrb.gmra.mxu2 %v16607_v49 }
 0x4d9   : > { %9250 = vmatmul.bf16.vlgmr.msrb.gmra.mxu3 %v16613_v54 }
 0x4db   : > { %v9030_v15 = vpop.f32.mrf.mxu2  ;;  %v9006_v14 = vpop.f32.mrf.mxu0 }
 0x4dc   : > { %v9031_v20 = vadd.f32 %v9030_v15, %v9018_v48  ;;  %v9043_v0 = vpop.f32.mrf.mxu3  ;;  %v9019_v36 = vpop.f32.mrf.mxu1 }
 0x4de   : > { %v9044_v38 = vadd.f32 %v9043_v0, %v9031_v20 }
 0x4e3   : > { %v9032_v52 = vpop.f32.mrf.mxu2 }
 0x4e4   : > { %v9045_v39 = vpop.f32.mrf.mxu3 }
 0x4f3   : > { %v9056_v24 = vpop.f32.mrf.mxu0 }
 0x4f4   : > { %v9057_v44 = vadd.f32 %v9056_v24, %v9044_v38  ;;  %v9069_v21 = vpop.f32.mrf.mxu1 }
 0x4f6   : > { %v9070_v50 = vadd.f32 %v9069_v21, %v9057_v44 }
 0x4fb   : > { %v9082_v10 = vpop.f32.mrf.mxu2  ;;  %v9058_v54 = vpop.f32.mrf.mxu0 }
 0x4fc   : > { %v9083_v49 = vadd.f32 %v9082_v10, %v9070_v50  ;;  %v9095_v22 = vpop.f32.mrf.mxu3  ;;  %v9071_v17 = vpop.f32.mrf.mxu1 }
 0x4fe   : > { %v9096_v9 = vadd.f32 %v9095_v22, %v9083_v49 }
 0x503   : > { %v9084_v40 = vpop.f32.mrf.mxu2 }
 0x504   : > { %v9097_v27 = vpop.f32.mrf.mxu3 }
 0x513   : > { %v9108_v2 = vpop.f32.mrf.mxu0 }
 0x514   : > { %v9121_v45 = vpop.f32.mrf.mxu1  ;;  %v9109_v56 = vadd.f32 %v9108_v2, %v9096_v9 }
 0x516   : > { %v9122_v55 = vadd.f32 %v9121_v45, %v9109_v56 }
 0x51b   : > { %v9134_v7 = vpop.f32.mrf.mxu2  ;;  %v9110_v61 = vpop.f32.mrf.mxu0 }
 0x51c   : > { %v9147_v16 = vpop.f32.mrf.mxu3  ;;  %v9123_v23 = vpop.f32.mrf.mxu1  ;;  %v9135_v32 = vadd.f32 %v9134_v7, %v9122_v55 }
 0x51e   : > { %v9148_v46 = vadd.f32 %v9147_v16, %v9135_v32 }
 0x523   : > { %v9136_v42 = vpop.f32.mrf.mxu2 }
 0x524   : > { %v9149_v6 = vpop.f32.mrf.mxu3 }
 0x533   : > { %v9160_v30 = vpop.f32.mrf.mxu0 }
 0x534   : > { %v9173_v11 = vpop.f32.mrf.mxu1  ;;  %v9161_v37 = vadd.f32 %v9160_v30, %v9148_v46 }
 0x536   : > { %v9174_v18 = vadd.f32 %v9173_v11, %v9161_v37 }
 0x53b   : > { %v9186_v47 = vpop.f32.mrf.mxu2  ;;  %v9162_v31 = vpop.f32.mrf.mxu0 }
 0x53c   : > { %v9199_v26 = vpop.f32.mrf.mxu3  ;;  %v9175_v41 = vpop.f32.mrf.mxu1  ;;  %v9187_v59 = vadd.f32 %v9186_v47, %v9174_v18 }
 0x53e   : > { %v9200_v51 = vadd.f32 %v9199_v26, %v9187_v59 }
 0x543   : > { %v9188_v33 = vpop.f32.mrf.mxu2 }
 0x544   : > { %v9201_v35 = vpop.f32.mrf.mxu3 }
 0x553   : > { %v9212_v4 = vpop.f32.mrf.mxu0 }
 0x554   : > { %v9225_v29 = vpop.f32.mrf.mxu1  ;;  %v9213_v19 = vadd.f32 %v9212_v4, %v9200_v51 }
 0x556   : > { %v9226_v13 = vadd.f32 %v9225_v29, %v9213_v19 }
 0x55b   : > { %v9238_v53 = vpop.f32.mrf.mxu2  ;;  %v9214_v63 = vpop.f32.mrf.mxu0 }
 0x55c   : > { %v9239_v3 = vadd.f32 %v9238_v53, %v9226_v13  ;;  %v9251_v8 = vpop.f32.mrf.mxu3  ;;  %v9227_v43 = vpop.f32.mrf.mxu1 }
 0x55e   : > { %v9252_v12 = vadd.f32 %v9251_v8, %v9239_v3 }
 0x560   : > { %v9258_v25 = vadd.f32 %v9252_v12, %v398_v1  ;;  %9266 = sbr.rel (%p14204_p1) target bundleno = 1681 (0x691), region = 80 }
 0x562   : > { %9262 = vst [vmem:[#allocation2 + $0x8] sm:$0xff] %v9258_v25 }
 0x563   : > { %v9240_v57 = vpop.f32.mrf.mxu2 }
 0x564   : > { %v9253_v58 = vpop.f32.mrf.mxu3 }
 0x565   : > { %v9336_v60 = vld [vmem:[#allocation7 + $0x178] sm:$0xff]  ;;  %v9335_v5 = vld [vmem:[#allocation7 + $0x170] sm:$0xff]  ;;  %v9334_v15 = vld [vmem:[#allocation7 + $0x168] sm:$0xff] }
 0x566   : > { %v9304_v34 = vld [vmem:[#allocation7 + $0x78] sm:$0xff]  ;;  %9397 = vmatpush.msra.mxu2 %v9336_v60  ;;  %v9303_v28 = vld [vmem:[#allocation7 + $0x70] sm:$0xff]  ;;  %v9302_v0 = vld [vmem:[#allocation7 + $0x68] sm:$0xff] }
 0x567   : > { %9357 = vmatpush.msra.mxu0 %v9304_v34  ;;  %v9352_v62 = vld [vmem:[#allocation7 + $0x1f8] sm:$0xff]  ;;  %v9351_v20 = vld [vmem:[#allocation7 + $0x1f0] sm:$0xff]  ;;  %v9350_v36 = vld [vmem:[#allocation7 + $0x1e8] sm:$0xff] }
 0x568   : > { %v9320_v48 = vld [vmem:[#allocation7 + $0xf8] sm:$0xff]  ;;  %9417 = vmatpush.msra.mxu3 %v9352_v62  ;;  %9398 = vmatpush.msra.mxu2 %v9335_v5  ;;  %v9319_v14 = vld [vmem:[#allocation7 + $0xf0] sm:$0xff]  ;;  %v9333_v38 = vld [vmem:[#allocation7 + $0x160] sm:$0xff] }
 0x569   : > { %9377 = vmatpush.msra.mxu1 %v9320_v48  ;;  %9358 = vmatpush.msra.mxu0 %v9303_v28  ;;  %v9301_v52 = vld [vmem:[#allocation7 + $0x60] sm:$0xff]  ;;  %v9318_v39 = vld [vmem:[#allocation7 + $0xe8] sm:$0xff]  ;;  %v9332_v21 = vld [vmem:[#allocation7 + $0x158] sm:$0xff] }
 0x56a   : > { %9418 = vmatpush.msra.mxu3 %v9351_v20  ;;  %9399 = vmatpush.msra.mxu2 %v9334_v15  ;;  %v9349_v24 = vld [vmem:[#allocation7 + $0x1e0] sm:$0xff]  ;;  %v9300_v50 = vld [vmem:[#allocation7 + $0x58] sm:$0xff]  ;;  %v9331_v22 = vld [vmem:[#allocation7 + $0x150] sm:$0xff] }
 0x56b   : > { %9378 = vmatpush.msra.mxu1 %v9319_v14  ;;  %9359 = vmatpush.msra.mxu0 %v9302_v0  ;;  %v9317_v44 = vld [vmem:[#allocation7 + $0xe0] sm:$0xff]  ;;  %v9348_v10 = vld [vmem:[#allocation7 + $0x1d8] sm:$0xff]  ;;  %v9299_v54 = vld [vmem:[#allocation7 + $0x50] sm:$0xff] }
 0x56c   : > { %9419 = vmatpush.msra.mxu3 %v9350_v36  ;;  %9400 = vmatpush.msra.mxu2 %v9333_v38  ;;  %v9316_v49 = vld [vmem:[#allocation7 + $0xd8] sm:$0xff]  ;;  %v9347_v17 = vld [vmem:[#allocation7 + $0x1d0] sm:$0xff]  ;;  %v9330_v40 = vld [vmem:[#allocation7 + $0x148] sm:$0xff] }
 0x56d   : > { %9379 = vmatpush.msra.mxu1 %v9318_v39  ;;  %9360 = vmatpush.msra.mxu0 %v9301_v52  ;;  %v9315_v9 = vld [vmem:[#allocation7 + $0xd0] sm:$0xff]  ;;  %v9298_v27 = vld [vmem:[#allocation7 + $0x48] sm:$0xff]  ;;  %v9329_v7 = vld [vmem:[#allocation7 + $0x140] sm:$0xff] }
 0x56e   : > { %9420 = vmatpush.msra.mxu3 %v9349_v24  ;;  %9401 = vmatpush.msra.mxu2 %v9332_v21  ;;  %v9346_v2 = vld [vmem:[#allocation7 + $0x1c8] sm:$0xff]  ;;  %v9297_v16 = vld [vmem:[#allocation7 + $0x40] sm:$0xff]  ;;  %v9328_v42 = vld [vmem:[#allocation7 + $0x138] sm:$0xff] }
 0x56f   : > { %9380 = vmatpush.msra.mxu1 %v9317_v44  ;;  %9361 = vmatpush.msra.mxu0 %v9300_v50  ;;  %v9314_v45 = vld [vmem:[#allocation7 + $0xc8] sm:$0xff]  ;;  %v9345_v61 = vld [vmem:[#allocation7 + $0x1c0] sm:$0xff]  ;;  %v9296_v6 = vld [vmem:[#allocation7 + $0x38] sm:$0xff] }
 0x570   : > { %9421 = vmatpush.msra.mxu3 %v9348_v10  ;;  %9402 = vmatpush.msra.mxu2 %v9331_v22  ;;  %v9313_v23 = vld [vmem:[#allocation7 + $0xc0] sm:$0xff]  ;;  %v9344_v30 = vld [vmem:[#allocation7 + $0x1b8] sm:$0xff]  ;;  %v9327_v56 = vld [vmem:[#allocation7 + $0x130] sm:$0xff] }
 0x571   : > { %9381 = vmatpush.msra.mxu1 %v9316_v49  ;;  %9362 = vmatpush.msra.mxu0 %v9299_v54  ;;  %v9312_v11 = vld [vmem:[#allocation7 + $0xb8] sm:$0xff]  ;;  %v9295_v47 = vld [vmem:[#allocation7 + $0x30] sm:$0xff]  ;;  %v9326_v41 = vld [vmem:[#allocation7 + $0x128] sm:$0xff] }
 0x572   : > { %9422 = vmatpush.msra.mxu3 %v9347_v17  ;;  %9403 = vmatpush.msra.mxu2 %v9330_v40  ;;  %v9343_v26 = vld [vmem:[#allocation7 + $0x1b0] sm:$0xff]  ;;  %v9294_v55 = vld [vmem:[#allocation7 + $0x28] sm:$0xff]  ;;  %v9325_v32 = vld [vmem:[#allocation7 + $0x120] sm:$0xff] }
 0x573   : > { %9382 = vmatpush.msra.mxu1 %v9315_v9  ;;  %9363 = vmatpush.msra.mxu0 %v9298_v27  ;;  %v9311_v31 = vld [vmem:[#allocation7 + $0xb0] sm:$0xff]  ;;  %v9342_v33 = vld [vmem:[#allocation7 + $0x1a8] sm:$0xff]  ;;  %v9293_v46 = vld [vmem:[#allocation7 + $0x20] sm:$0xff] }
 0x574   : > { %9423 = vmatpush.msra.mxu3 %v9346_v2  ;;  %9404 = vmatpush.msra.mxu2 %v9329_v7  ;;  %v9310_v35 = vld [vmem:[#allocation7 + $0xa8] sm:$0xff]  ;;  %v9324_v37 = vld [vmem:[#allocation7 + $0x118] sm:$0xff]  ;;  %v9341_v59 = vld [vmem:[#allocation7 + $0x1a0] sm:$0xff] }
 0x575   : > { %9383 = vmatpush.msra.mxu1 %v9314_v45  ;;  %9364 = vmatpush.msra.mxu0 %v9297_v16  ;;  %v9271_v18 = vld [vmem:[#allocation5] sm:$0xf]  ;;  %v9309_v51 = vld [vmem:[#allocation7 + $0xa0] sm:$0xff]  ;;  %v9269_v4 = vld [vmem:[#allocation2 + $0x18] sm:$0xff] }
 0x576   : > { %9424 = vmatpush.msra.mxu3 %v9345_v61  ;;  %9405 = vmatpush.msra.mxu2 %v9328_v42  ;;  %v9275_v29 = vperm.slane %v9271_v18, 2  ;;  %v9273_v19 = vperm.slane %v9271_v18, 0  ;;  %v9276_v13 = vperm.slane %v9271_v18, 3  ;;  %v9292_v53 = vld [vmem:[#allocation7 + $0x18] sm:$0xff]  ;;  %v9267_v3 = vld [vmem:[#allocation2 + $0x10] sm:$0xff]  ;;  %v9270_v8 = vld [vmem:[#allocation2 + $0x8] sm:$0xff] }
 0x577   : > { %9384 = vmatpush.msra.mxu1 %v9313_v23  ;;  %9365 = vmatpush.msra.mxu0 %v9296_v6  ;;  %v9340_v63 = vld [vmem:[#allocation7 + $0x198] sm:$0xff]  ;;  %v9274_v43 = vperm.slane %v9271_v18, 1  ;;  %v9323_v12 = vld [vmem:[#allocation7 + $0x110] sm:$0xff]  ;;  %v9322_v28 = vld [vmem:[#allocation7 + $0x108] sm:$0xff] }
 0x578   : > { %9425 = vmatpush.msra.mxu3 %v9344_v30  ;;  %9406 = vmatpush.msra.mxu2 %v9327_v56  ;;  %v9308_v1 = vld [vmem:[#allocation7 + $0x98] sm:$0xff]  ;;  %v9291_v25 = vld [vmem:[#allocation7 + $0x10] sm:$0xff]  ;;  %v9283_v57 = vadd.f32 %v9275_v29, %v9269_v4  ;;  %v9281_v5 = vadd.f32 %v9273_v19, %v9267_v3  ;;  %v9284_v62 = vadd.f32 %v9276_v13, %v9270_v8  ;;  %v9290_v48 = vld [vmem:[#allocation7 + $0x8] sm:$0xff] }
 0x579   : > { %9385 = vmatpush.msra.mxu1 %v9312_v11  ;;  %9366 = vmatpush.msra.mxu0 %v9295_v47  ;;  %v9268_v58 = vld [vmem:[#allocation2] sm:$0xff]  ;;  %v9339_v60 = vld [vmem:[#allocation7 + $0x190] sm:$0xff]  ;;  %v9338_v15 = vld [vmem:[#allocation7 + $0x188] sm:$0xff] }
 0x57a   : > { %9426 = vmatpush.msra.mxu3 %v9343_v26  ;;  %9407 = vmatpush.msra.mxu2 %v9326_v41  ;;  %v9307_v34 = vld [vmem:[#allocation7 + $0x90] sm:$0xff]  ;;  %v9306_v20 = vld [vmem:[#allocation7 + $0x88] sm:$0xff]  ;;  %v9282_v0 = vadd.f32 %v9274_v43, %v9268_v58  ;;  %v9321_v14 = vld [vmem:[#allocation7 + $0x100] sm:$0xff]  ;;  %v9287_v36 = vmax.f32 %v9283_v57, 0.0  ;;  %v9285_v39 = vmax.f32 %v9281_v5, 0.0  ;;  %v9288_v24 = vmax.f32 %v9284_v62, 0.0 }
 0x57b   : > { %9386 = vmatpush.msra.mxu1 %v9311_v31  ;;  %9367 = vmatpush.msra.mxu0 %v9294_v55  ;;  %v9289_v38 = vld [vmem:[#allocation7] sm:$0xff]  ;;  %v9452_v10 = vld [vmem:[#allocation10 + $0x70] sm:$0xff]  ;;  %v9451_v49 = vld [vmem:[#allocation10 + $0x68] sm:$0xff] }
 0x57c   : > { %9427 = vmatpush.msra.mxu3 %v9342_v33  ;;  %9408 = vmatpush.msra.mxu2 %v9325_v32  ;;  %v9337_v52 = vld [vmem:[#allocation7 + $0x180] sm:$0xff]  ;;  %v9286_v21 = vmax.f32 %v9282_v0, 0.0  ;;  %v9448_v17 = vld [vmem:[#allocation10 + $0x50] sm:$0xff]  ;;  %v9447_v9 = vld [vmem:[#allocation10 + $0x48] sm:$0xff] }
 0x57d   : > { %9387 = vmatpush.msra.mxu1 %v9310_v35  ;;  %9368 = vmatpush.msra.mxu0 %v9293_v46  ;;  %v9305_v44 = vld [vmem:[#allocation7 + $0x80] sm:$0xff]  ;;  %v9444_v2 = vld [vmem:[#allocation10 + $0x30] sm:$0xff]  ;;  %v9443_v45 = vld [vmem:[#allocation10 + $0x28] sm:$0xff] }
 0x57e   : > { %9428 = vmatpush.msra.mxu3 %v9341_v59  ;;  %9409 = vmatpush.msra.mxu2 %v9324_v37  ;;  %v9453_v50 = vld [vmem:[#allocation10 + $0x78] sm:$0xff]  ;;  %v9450_v22 = vld [vmem:[#allocation10 + $0x60] sm:$0xff]  ;;  %v9440_v61 = vld [vmem:[#allocation10 + $0x10] sm:$0xff] }
 0x57f   : > { %9388 = vmatpush.msra.mxu1 %v9309_v51  ;;  %9369 = vmatpush.msra.mxu0 %v9292_v53  ;;  %v9449_v54 = vld [vmem:[#allocation10 + $0x58] sm:$0xff]  ;;  %v9446_v40 = vld [vmem:[#allocation10 + $0x40] sm:$0xff]  ;;  %v9439_v23 = vld [vmem:[#allocation10 + $0x8] sm:$0xff] }
 0x580   : > { %9429 = vmatpush.msra.mxu3 %v9340_v63  ;;  %9410 = vmatpush.msra.mxu2 %v9323_v12  ;;  %v9445_v27 = vld [vmem:[#allocation10 + $0x38] sm:$0xff]  ;;  %v9442_v7 = vld [vmem:[#allocation10 + $0x20] sm:$0xff] }
 0x581   : > { %9389 = vmatpush.msra.mxu1 %v9308_v1  ;;  %9370 = vmatpush.msra.mxu0 %v9291_v25  ;;  %v9441_v16 = vld [vmem:[#allocation10 + $0x18] sm:$0xff]  ;;  %v9438_v42 = vld [vmem:[#allocation10] sm:$0xff] }
 0x582   : > { %9430 = vmatpush.msra.mxu3 %v9339_v60  ;;  %9411 = vmatpush.msra.mxu2 %v9322_v28  ;;  %v15459_v6 = vld [vmem:[#allocation8] ss:$0 sm:$0xff]  ;;  %v15460_v33 = vld [vmem:[#allocation11] ss:$0 sm:$0xff] }
 0x583   : > { %9390 = vmatpush.msra.mxu1 %v9307_v34  ;;  %9371 = vmatpush.msra.mxu0 %v9290_v48 }
 0x584   : > { %9431 = vmatpush.msra.mxu3 %v9338_v15  ;;  %9412 = vmatpush.msra.mxu2 %v9321_v14 }
 0x585   : > { %9391 = vmatpush.msra.mxu1 %v9306_v20  ;;  %9372 = vmatpush.msra.mxu0 %v9289_v38 }
 0x586   : > { %9413 = vmatmul.f32.vlgmr.msra.gmra.mxu2 %v9287_v36  ;;  %9432 = vmatpush.msra.mxu3 %v9337_v52 }
 0x587   : > { %9373 = vmatmul.f32.vlgmr.msra.gmra.mxu0 %v9285_v39  ;;  %9433 = vmatmul.f32.vlgmr.msra.gmra.mxu3 %v9288_v24 }
 0x588   : > { %9392 = vmatpush.msra.mxu1 %v9305_v44  ;;  %9458 = vmatpush.msrb.mxu0 %v9453_v50 }
 0x589   : > { %9393 = vmatmul.f32.vlgmr.msra.gmra.mxu1 %v9286_v21 }
 0x58a   : > { %9459 = vmatpush.msrb.mxu0 %v9452_v10 }
 0x58c   : > { %9460 = vmatpush.msrb.mxu0 %v9451_v49 }
 0x58e   : > { %9461 = vmatpush.msrb.mxu0 %v9450_v22 }
 0x590   : > { %9462 = vmatpush.msrb.mxu0 %v9449_v54 }
 0x592   : > { %9463 = vmatpush.msrb.mxu0 %v9448_v17 }
 0x594   : > { %9464 = vmatpush.msrb.mxu0 %v9447_v9 }
 0x596   : > { %9465 = vmatpush.msrb.mxu0 %v9446_v40 }
 0x598   : > { %9466 = vmatpush.msrb.mxu0 %v9445_v27 }
 0x59a   : > { %9467 = vmatpush.msrb.mxu0 %v9444_v2 }
 0x59c   : > { %9468 = vmatpush.msrb.mxu0 %v9443_v45 }
 0x59e   : > { %9469 = vmatpush.msrb.mxu0 %v9442_v7 }
 0x5a0   : > { %9470 = vmatpush.msrb.mxu0 %v9441_v16 }
 0x5a2   : > { %9471 = vmatpush.msrb.mxu0 %v9440_v61 }
 0x5a4   : > { %9472 = vmatpush.msrb.mxu0 %v9439_v23 }
 0x5a6   : > { %9473 = vmatpush.msrb.mxu0 %v9438_v42 }
 0x604   : > { %v9374_v30 = vpop.f32.mrf.mxu0 }
 0x605   : > { %v9375_v11 = vadd.f32 %v15459_v6, %v9374_v30 }
 0x606   : > { %v9394_v56 = vpop.f32.mrf.mxu1 }
 0x607   : > { %v9395_v47 = vadd.f32 %v9394_v56, %v9375_v11 }
 0x609   : > { %v9414_v26 = vpop.f32.mrf.mxu2 }
 0x60a   : > { %v9415_v31 = vadd.f32 %v9414_v26, %v9395_v47  ;;  %v9434_v41 = vpop.f32.mrf.mxu3 }
 0x60c   : > { %v9435_v55 = vadd.f32 %v9434_v41, %v9415_v31 }
 0x60e   : > { %v9437_v32 = vmax.f32 %v9435_v55, 0.0 }
 0x610   : > { %9474 = vmatmul.f32.vlgmr.msrb.gmra.mxu0 %v9437_v32 }
 0x68d   : > { %v9475_v35 = vpop.f32.mrf.mxu0 }
 0x68e   : > { %v9476_v46 = vadd.f32 %v15460_v33, %v9475_v35 }
 0x690   : > { %9478 = vst [vmem:[%s18587_s7] sm:$0xff] %v9476_v46 }
 0x691 PF: > { %p20_p3 = scmp.ge.s32.totalorder %s15804_s19, 6   ;;  %s18619_s24 = smov %s15679_s25 }
 0x692   : > { %s18620_s25 = smov %s15683_s26  ;;  %s18621_s26 = smov %s15815_s22 }
 0x693   : > { %s18622_s27 = smov %s15804_s19  ;;  %22 = sbr.rel (!%p20_p3) target bundleno = 6 (0x6), region = 115 }
 0x698   :  { %9490 = vsyncpa [#allocation4], 1 }
 0x699   :  { %9492 = vsyncpa [#allocation4 + $0x1], 1 }
 0x69a   :  { %9493 = vsyncpa [#allocation6], 1 }
 0x69b   :  { %9494 = vsyncpa [#allocation9], 1 }
 0x69c   :  { %9495 = vsyncpa [#allocation12], 1 }

</bundles_post_ra>
